<compile_context>
chip_gen: v7x
topology: tpu7x:2x2x1
jax: 0.10.0
libtpu: 0.0.40
codegen_flags: <defaults>
</compile_context>

<pallas_src>
import functools
import math

import jax
import jax.numpy as jnp
from jax.experimental import pallas as pl
from jax.experimental.pallas import tpu as pltpu

LN_EPS = 1e-5
BN_EPS = 1e-5
NEG = -1e30


# ----------------------------------------------------------------------------------
# small shape helpers
# ----------------------------------------------------------------------------------
def _round_up(n, m):
    return (n + m - 1) // m * m


def _sub_tiles(n, cap):
    """Tile a sublane-ish (row) dim: single padded block if small, else `cap`-sized tiles."""
    if n <= cap:
        npad = _round_up(n, 8)
        return npad, npad
    return _round_up(n, cap), cap


def _lane_tiles(n, cap, tile):
    """Tile a lane-ish (col / contraction) dim: full block if small, else `tile`-sized tiles."""
    if n <= cap:
        return n, n
    return _round_up(n, tile), tile


def _pad2(x, rows, cols):
    pr, pc = rows - x.shape[0], cols - x.shape[1]
    if pr == 0 and pc == 0:
        return x
    return jnp.pad(x, ((0, pr), (0, pc)))


def _pad_rows(x, rows):
    if x.shape[0] == rows:
        return x
    return jnp.pad(x, ((0, rows - x.shape[0]), (0, 0)))


def _ln(x, g, b, eps):
    mu = jnp.mean(x, axis=-1, keepdims=True)
    var = jnp.mean(jnp.square(x - mu), axis=-1, keepdims=True)
    return (x - mu) * jax.lax.rsqrt(var + eps) * g + b


# ----------------------------------------------------------------------------------
# Pallas kernels
# ----------------------------------------------------------------------------------
def _matmul_kernel(x_ref, w_ref, b_ref, *rest, activation, has_mask, has_res):
    o_ref, acc_ref = rest[-2], rest[-1]
    extras = rest[:-2]
    pos = 0
    msk_ref = None
    res_ref = None
    if has_mask:
        msk_ref = extras[pos]
        pos += 1
    if has_res:
        res_ref = extras[pos]
        pos += 1

    @pl.when(pl.program_id(2) == 0)
    def _():
        acc_ref[...] = jnp.zeros_like(acc_ref)

    acc_ref[...] += jnp.dot(x_ref[...], w_ref[...], preferred_element_type=jnp.float32)

    @pl.when(pl.program_id(2) == pl.num_programs(2) - 1)
    def _():
        y = acc_ref[...] + b_ref[...]
        if activation == "relu":
            y = jnp.maximum(y, 0.0)
        elif activation == "swish":
            y = y * jax.nn.sigmoid(y)
        if has_mask:
            y = y * msk_ref[...]
        if has_res:
            y = y + res_ref[...].astype(jnp.float32)
        o_ref[...] = y.astype(o_ref.dtype)


def _ln_kernel(x_ref, g_ref, b_ref, o_ref, *, eps):
    xn = _ln(x_ref[...].astype(jnp.float32), g_ref[...], b_ref[...], eps)
    o_ref[...] = xn.astype(o_ref.dtype)


def _ln_matmul_kernel(x_ref, g_ref, bta_ref, *rest, activation, glu, eps, has_mask):
    o_ref = rest[-1]
    pos = 0
    msk_ref = None
    if has_mask:
        msk_ref = rest[pos]
        pos += 1
    w_ref, b_ref = rest[pos], rest[pos + 1]

    xn = _ln(x_ref[...].astype(jnp.float32), g_ref[...], bta_ref[...], eps)
    if has_mask:
        xn = xn * msk_ref[...]
    y = jnp.dot(xn.astype(jnp.bfloat16), w_ref[...],
                preferred_element_type=jnp.float32) + b_ref[...]
    if glu:
        h = y.shape[-1] // 2
        y = y[:, :h] * jax.nn.sigmoid(y[:, h:])
    if activation == "relu":
        y = jnp.maximum(y, 0.0)
    elif activation == "swish":
        y = y * jax.nn.sigmoid(y)
    o_ref[...] = y.astype(o_ref.dtype)


def _ffn_kernel(x_ref, g_ref, bta_ref, w1_ref, b1_ref, w2_ref, b2_ref, o_ref, *,
                activation, scale, eps, u_chunk):
    x = x_ref[...].astype(jnp.float32)
    xn = _ln(x, g_ref[...], bta_ref[...], eps).astype(jnp.bfloat16)
    U = w1_ref.shape[1]
    D = w2_ref.shape[1]
    y = jnp.zeros((x.shape[0], D), jnp.float32)
    # chunk the hidden dim so the (tm, U) intermediate never spills to VMEM
    for c0 in range(0, U, u_chunk):
        c1 = min(c0 + u_chunk, U)
        h = jnp.dot(xn, w1_ref[:, c0:c1],
                    preferred_element_type=jnp.float32) + b1_ref[:, c0:c1]
        if activation == "relu":
            h = jnp.maximum(h, 0.0)
        else:                                   # swish
            h = h * jax.nn.sigmoid(h)
        y = y + jnp.dot(h.astype(jnp.bfloat16), w2_ref[c0:c1, :],
                        preferred_element_type=jnp.float32)
    y = y + b2_ref[...]
    o_ref[...] = (x + scale * y).astype(o_ref.dtype)   # fused residual


def _log_softmax_kernel(x_ref, o_ref):
    x = x_ref[...].astype(jnp.float32)
    m = jnp.max(x, axis=-1, keepdims=True)
    z = x - m
    o_ref[...] = z - jnp.log(jnp.sum(jnp.exp(z), axis=-1, keepdims=True))


def _flash_attn_kernel(lens_ref, q_ref, k_ref, v_ref, o_ref, m_sc, l_sc, acc_sc, *,
                       scale, H, dk, tq, tk, causal):
    b = pl.program_id(0)
    qi = pl.program_id(1)
    ki = pl.program_id(2)

    @pl.when(ki == 0)
    def _():
        m_sc[...] = jnp.full(m_sc.shape, -jnp.inf, jnp.float32)
        l_sc[...] = jnp.zeros_like(l_sc)
        acc_sc[...] = jnp.zeros_like(acc_sc)

    # mask generated in-kernel from the prefetched key lengths (no HBM mask tensor)
    k_len = lens_ref[b]
    kv_pos = ki * tk + jax.lax.broadcasted_iota(jnp.int32, (tq, tk), 1)
    valid = kv_pos < k_len
    if causal:
        q_pos = qi * tq + jax.lax.broadcasted_iota(jnp.int32, (tq, tk), 0)
        valid = jnp.logical_and(valid, kv_pos <= q_pos)

    q = q_ref[0]                                  # (tq, D) bf16
    k = k_ref[0]                                  # (tk, D) bf16
    v = v_ref[0]                                  # (tk, D) bf16

    for h in range(H):                            # all heads of this (b, q-tile) in one program
        sl = slice(h * dk, (h + 1) * dk)
        s = jax.lax.dot_general(q[:, sl], k[:, sl], (((1,), (1,)), ((), ())),
                                preferred_element_type=jnp.float32) * scale
        s = jnp.where(valid, s, NEG)

        m_prev = m_sc[h]
        m_new = jnp.maximum(m_prev, jnp.max(s, axis=-1, keepdims=True))
        alpha = jnp.exp(m_prev - m_new)
        p = jnp.where(valid, jnp.exp(s - m_new), 0.0)

        l_sc[h] = alpha * l_sc[h] + jnp.sum(p, axis=-1, keepdims=True)
        acc_sc[h] = alpha * acc_sc[h] + jnp.dot(p.astype(jnp.bfloat16), v[:, sl],
                                                preferred_element_type=jnp.float32)
        m_sc[h] = m_new

    @pl.when(ki == pl.num_programs(2) - 1)
    def _():
        pieces = []
        for h in range(H):
            l = l_sc[h]
            inv = jnp.where(l > 0.0,
                            pl.reciprocal(jnp.maximum(l, 1e-30), approx=True), 0.0)
            pieces.append((acc_sc[h] * inv).astype(o_ref.dtype))
        o_ref[0] = jnp.concatenate(pieces, axis=-1)   # lane-dense (tq, D) output slab


def _dwconv_kernel(x_ref, w_ref, b_ref, o_ref, *, K, T, bn_scale):
    x = x_ref[0].astype(jnp.float32)              # (Tp, D), Tp multiple of 8
    Tp = x.shape[0]
    acc = jnp.zeros_like(x)
    for t in range(K):                            # taps via XLU roll (no unaligned slices)
        xt = x if t == 0 else pltpu.roll(x, shift=(Tp - t) % Tp, axis=0)
        acc = acc + xt * w_ref[t:t + 1, :]
    y = acc[:T, :] + b_ref[...]
    y = y * bn_scale                              # BatchNorm1d eval with default stats
    y = y * jax.nn.sigmoid(y)                     # swish
    o_ref[0] = y.astype(o_ref.dtype)


# ----------------------------------------------------------------------------------
# Pallas wrappers
# ----------------------------------------------------------------------------------
def matmul(x, p, activation=None, residual=None, row_mask=None, out_dtype=jnp.bfloat16):
    """y = [act(x @ W + b)] (* row_mask) (+ residual), tiled (M,N,K) with f32 acc scratch."""
    shp = x.shape
    x2 = x.reshape(-1, shp[-1]).astype(jnp.bfloat16)
    M, K = x2.shape
    w, b = p["w"], p["b"]
    N = w.shape[1]

    Mp, tm = _sub_tiles(M, 256)
    Kp, tk = _lane_tiles(K, 1024, 512)
    Np, tn = _lane_tiles(N, 512, 256)

    x2 = _pad2(x2, Mp, Kp)
    wp = _pad2(w.astype(jnp.bfloat16), Kp, Np)
    bp = _pad2(b.reshape(1, -1).astype(jnp.float32), 1, Np)

    has_mask = row_mask is not None
    has_res = residual is not None

    operands = [x2, wp, bp]
    in_specs = [
        pl.BlockSpec((tm, tk), lambda i, j, k: (i, k)),
        pl.BlockSpec((tk, tn), lambda i, j, k: (k, j)),
        pl.BlockSpec((1, tn), lambda i, j, k: (0, j)),
    ]
    if has_mask:
        msk = _pad_rows(row_mask.reshape(M, 1).astype(jnp.float32), Mp)
        operands.append(msk)
        in_specs.append(pl.BlockSpec((tm, 1), lambda i, j, k: (i, 0)))
    if has_res:
        r2 = _pad2(residual.reshape(M, N).astype(jnp.bfloat16), Mp, Np)
        operands.append(r2)
        in_specs.append(pl.BlockSpec((tm, tn), lambda i, j, k: (i, j)))

    out = pl.pallas_call(
        functools.partial(_matmul_kernel, activation=activation,
                          has_mask=has_mask, has_res=has_res),
        out_shape=jax.ShapeDtypeStruct((Mp, Np), out_dtype),
        grid=(Mp // tm, Np // tn, Kp // tk),
        in_specs=in_specs,
        out_specs=pl.BlockSpec((tm, tn), lambda i, j, k: (i, j)),
        scratch_shapes=[pltpu.VMEM((tm, tn), jnp.float32)],
        compiler_params=pltpu.CompilerParams(
            dimension_semantics=("parallel", "parallel", "arbitrary")),
    )(*operands)
    return out[:M, :N].reshape(shp[:-1] + (N,))


def layer_norm(x, p, eps=LN_EPS):
    shp = x.shape
    D = shp[-1]
    x2 = x.reshape(-1, D)
    M = x2.shape[0]
    Mp, tm = _sub_tiles(M, 512)
    x2 = _pad_rows(x2, Mp)
    out = pl.pallas_call(
        functools.partial(_ln_kernel, eps=eps),
        out_shape=jax.ShapeDtypeStruct((Mp, D), jnp.bfloat16),
        grid=(Mp // tm,),
        in_specs=[pl.BlockSpec((tm, D), lambda i: (i, 0)),
                  pl.BlockSpec((1, D), lambda i: (0, 0)),
                  pl.BlockSpec((1, D), lambda i: (0, 0))],
        out_specs=pl.BlockSpec((tm, D), lambda i: (i, 0)),
        compiler_params=pltpu.CompilerParams(dimension_semantics=("parallel",)),
    )(x2, p["g"].reshape(1, D), p["b"].reshape(1, D))
    return out[:M].reshape(shp)


def ln_matmul(x, ln_p, p, activation=None, glu=False, row_mask=None):
    """y = act(GLU?((LN(x) [* row_mask]) @ W + b)); row-tiled grid, weights resident."""
    shp = x.shape
    D = shp[-1]
    x2 = x.reshape(-1, D).astype(jnp.bfloat16)
    M = x2.shape[0]
    w, b = p["w"], p["b"]
    N = w.shape[1]
    N_out = N // 2 if glu else N

    Mp, tm = _sub_tiles(M, 256)
    x2 = _pad_rows(x2, Mp)
    has_mask = row_mask is not None

    operands = [x2, ln_p["g"].reshape(1, D), ln_p["b"].reshape(1, D)]
    in_specs = [
        pl.BlockSpec((tm, D), lambda i: (i, 0)),
        pl.BlockSpec((1, D), lambda i: (0, 0)),
        pl.BlockSpec((1, D), lambda i: (0, 0)),
    ]
    if has_mask:
        msk = _pad_rows(row_mask.reshape(M, 1).astype(jnp.float32), Mp)
        operands.append(msk)
        in_specs.append(pl.BlockSpec((tm, 1), lambda i: (i, 0)))
    operands += [w.astype(jnp.bfloat16), b.reshape(1, N).astype(jnp.float32)]
    in_specs += [pl.BlockSpec((D, N), lambda i: (0, 0)),
                 pl.BlockSpec((1, N), lambda i: (0, 0))]

    out = pl.pallas_call(
        functools.partial(_ln_matmul_kernel, activation=activation, glu=glu,
                          eps=LN_EPS, has_mask=has_mask),
        out_shape=jax.ShapeDtypeStruct((Mp, N_out), jnp.bfloat16),
        grid=(Mp // tm,),
        in_specs=in_specs,
        out_specs=pl.BlockSpec((tm, N_out), lambda i: (i, 0)),
        compiler_params=pltpu.CompilerParams(dimension_semantics=("parallel",)),
    )(*operands)
    return out[:M].reshape(shp[:-1] + (N_out,))


def ffn_residual(x, ln_p, ff_p, activation, scale):
    """x + scale * W2(act(W1(LN(x)))) fused in one kernel (hidden dim chunked)."""
    B, T, D = x.shape
    x2 = x.reshape(B * T, D).astype(jnp.bfloat16)
    M = B * T
    Mp, tm = _sub_tiles(M, 256)
    x2 = _pad_rows(x2, Mp)
    w1, b1 = ff_p["l1"]["w"], ff_p["l1"]["b"]
    w2, b2 = ff_p["l2"]["w"], ff_p["l2"]["b"]
    U = w1.shape[1]
    u_chunk = U if U <= 512 else 512

    out = pl.pallas_call(
        functools.partial(_ffn_kernel, activation=activation, scale=scale,
                          eps=LN_EPS, u_chunk=u_chunk),
        out_shape=jax.ShapeDtypeStruct((Mp, D), jnp.bfloat16),
        grid=(Mp // tm,),
        in_specs=[
            pl.BlockSpec((tm, D), lambda i: (i, 0)),
            pl.BlockSpec((1, D), lambda i: (0, 0)),
            pl.BlockSpec((1, D), lambda i: (0, 0)),
            pl.BlockSpec((D, U), lambda i: (0, 0)),
            pl.BlockSpec((1, U), lambda i: (0, 0)),
            pl.BlockSpec((U, D), lambda i: (0, 0)),
            pl.BlockSpec((1, D), lambda i: (0, 0)),
        ],
        out_specs=pl.BlockSpec((tm, D), lambda i: (i, 0)),
        compiler_params=pltpu.CompilerParams(dimension_semantics=("parallel",)),
    )(x2, ln_p["g"].reshape(1, D), ln_p["b"].reshape(1, D),
      w1.astype(jnp.bfloat16), b1.reshape(1, U).astype(jnp.float32),
      w2.astype(jnp.bfloat16), b2.reshape(1, D).astype(jnp.float32))
    return out[:M].reshape(B, T, D)


def log_softmax(x):
    shp = x.shape
    V = shp[-1]
    x2 = x.reshape(-1, V)
    M = x2.shape[0]
    rows_budget = max(8, ((2 << 20) // (V * 4)) // 8 * 8)   # ~2 MiB f32 per block
    Mp, tm = _sub_tiles(M, min(512, rows_budget))
    x2 = _pad_rows(x2, Mp)
    out = pl.pallas_call(
        _log_softmax_kernel,
        out_shape=jax.ShapeDtypeStruct((Mp, V), jnp.float32),
        grid=(Mp // tm,),
        in_specs=[pl.BlockSpec((tm, V), lambda i: (i, 0))],
        out_specs=pl.BlockSpec((tm, V), lambda i: (i, 0)),
        compiler_params=pltpu.CompilerParams(dimension_semantics=("parallel",)),
    )(x2)
    return out[:M].reshape(shp)


def flash_attention(q_arr, kv_arr, k_lens, num_heads, d_model, *, causal,
                    q_idx, k_idx, v_idx):
    """Online-softmax attention reading Q/K/V directly out of fused projection outputs.

    q_arr:  (B, Tq, nq*D) -- the q_idx-th D-block is Q.
    kv_arr: (B, Tk, nk*D) -- the k_idx / v_idx-th D-blocks are K / V.
    Mask is generated in-kernel from k_lens (+ causal flag); no mask tensor in HBM.
    """
    B, Tq = q_arr.shape[0], q_arr.shape[1]
    Tk = kv_arr.shape[1]
    H = num_heads
    D = d_model
    dk = D // H
    scale = 1.0 / math.sqrt(dk)

    Tqp, tq = _sub_tiles(Tq, 256)
    Tkp, tk = _sub_tiles(Tk, 512)

    qp = q_arr if Tqp == Tq else jnp.pad(q_arr, ((0, 0), (0, Tqp - Tq), (0, 0)))
    kvp = kv_arr if Tkp == Tk else jnp.pad(kv_arr, ((0, 0), (0, Tkp - Tk), (0, 0)))
    qp = qp.astype(jnp.bfloat16)
    kvp = kvp.astype(jnp.bfloat16)
    lens = k_lens.astype(jnp.int32)

    out = pl.pallas_call(
        functools.partial(_flash_attn_kernel, scale=scale, H=H, dk=dk,
                          tq=tq, tk=tk, causal=causal),
        out_shape=jax.ShapeDtypeStruct((B, Tqp, D), jnp.bfloat16),
        grid_spec=pltpu.PrefetchScalarGridSpec(
            num_scalar_prefetch=1,
            grid=(B, Tqp // tq, Tkp // tk),
            in_specs=[
                pl.BlockSpec((1, tq, D), lambda b, qi, ki, lens: (b, qi, q_idx)),
                pl.BlockSpec((1, tk, D), lambda b, qi, ki, lens: (b, ki, k_idx)),
                pl.BlockSpec((1, tk, D), lambda b, qi, ki, lens: (b, ki, v_idx)),
            ],
            out_specs=pl.BlockSpec((1, tq, D), lambda b, qi, ki, lens: (b, qi, 0)),
            scratch_shapes=[pltpu.VMEM((H, tq, 1), jnp.float32),
                            pltpu.VMEM((H, tq, 1), jnp.float32),
                            pltpu.VMEM((H, tq, dk), jnp.float32)],
        ),
        compiler_params=pltpu.CompilerParams(
            dimension_semantics=("parallel", "parallel", "arbitrary")),
    )(lens, qp, kvp, kvp)
    return out[:, :Tq, :]


def dwconv_bn_swish(x, w, b, *, kernel_size):
    """Depthwise conv (same padding) + BatchNorm(eval, default stats) + swish."""
    # TODO(synk): T-axis tiling with a halo (for very long sequences) is not implemented;
    # each batch element is one block, which is fine at these model sizes in bf16.
    B, T, D = x.shape
    pad = (kernel_size - 1) // 2
    Tp = _round_up(T + kernel_size - 1, 8)
    xp = jnp.pad(x.astype(jnp.bfloat16), ((0, 0), (pad, Tp - T - pad), (0, 0)))
    bn_scale = 1.0 / math.sqrt(1.0 + BN_EPS)
    return pl.pallas_call(
        functools.partial(_dwconv_kernel, K=kernel_size, T=T, bn_scale=bn_scale),
        out_shape=jax.ShapeDtypeStruct((B, T, D), jnp.bfloat16),
        grid=(B,),
        in_specs=[
            pl.BlockSpec((1, Tp, D), lambda i: (i, 0, 0)),
            pl.BlockSpec((kernel_size, D), lambda i: (0, 0)),
            pl.BlockSpec((1, D), lambda i: (0, 0)),
        ],
        out_specs=pl.BlockSpec((1, T, D), lambda i: (i, 0, 0)),
        compiler_params=pltpu.CompilerParams(dimension_semantics=("parallel",)),
    )(xp, w, b.reshape(1, D))


# ----------------------------------------------------------------------------------
# Model pieces
# ----------------------------------------------------------------------------------
def sinusoidal_pe(max_len, d):
    pos = jnp.arange(max_len, dtype=jnp.float32)[:, None]
    div = jnp.exp(jnp.arange(0, d, 2, dtype=jnp.float32) * (-math.log(10000.0) / d))
    pe = jnp.zeros((max_len, d), jnp.float32)
    pe = pe.at[:, 0::2].set(jnp.sin(pos * div))
    pe = pe.at[:, 1::2].set(jnp.cos(pos * div))
    return pe


def im2col(x, k=3, s=2):
    """x: (B, C, H, W) NCHW; returns (B*Ho*Wo, C*k*k) patches (C-major, then k,k)."""
    B, C, H, W = x.shape
    Ho = (H - k) // s + 1
    Wo = (W - k) // s + 1
    cols = []
    for i in range(k):
        for j in range(k):
            cols.append(x[:, :, i:i + s * Ho:s, j:j + s * Wo:s])
    patches = jnp.stack(cols, axis=2)                       # (B, C, k*k, Ho, Wo)
    patches = patches.transpose(0, 3, 4, 1, 2).reshape(B * Ho * Wo, C * k * k)
    return patches, Ho, Wo


def conformer_layer(x, enc_lens, pad_mask, p, cfg):
    d = cfg["d_model"]
    H = cfg["heads"]
    # macaron FFN (LN + FFN + 0.5*residual fused)
    x = ffn_residual(x, p["ln_ff_mac"], p["ff_mac"], "swish", 0.5)
    # self-attention: LN fused with fused-QKV projection; residual fused into out-projection
    qkv = ln_matmul(x, p["ln_mha"], p["attn"]["qkv"])
    o = flash_attention(qkv, qkv, enc_lens, H, d, causal=False, q_idx=0, k_idx=1, v_idx=2)
    x = matmul(o, p["attn"]["o"], residual=x)
    # conv module: LN + pad-mask + pw1 + GLU fused; dwconv+BN+swish; pw2 + mask + residual fused
    row_mask = pad_mask.reshape(-1)
    h = ln_matmul(x, p["ln_conv"], p["conv"]["pw1"], glu=True, row_mask=row_mask)
    h = dwconv_bn_swish(h, p["conv"]["dw_w"], p["conv"]["dw_b"], kernel_size=cfg["cnn_kernel"])
    x = matmul(h, p["conv"]["pw2"], residual=x, row_mask=row_mask)
    # final FFN + final LN
    x = ffn_residual(x, p["ln_ff"], p["ff"], "swish", 0.5)
    return layer_norm(x, p["ln_final"])


def decoder_layer(x, memory, tgt_lens, mem_lens, p, cfg):
    d = cfg["d_model"]
    H = cfg["heads"]
    # masked self-attention (causal + target-length mask generated in-kernel)
    qkv = ln_matmul(x, p["ln1"], p["self"]["qkv"])
    o = flash_attention(qkv, qkv, tgt_lens, H, d, causal=True, q_idx=0, k_idx=1, v_idx=2)
    x = matmul(o, p["self"]["o"], residual=x)
    # cross attention on encoder memory
    q = ln_matmul(x, p["ln2"], p["src"]["q"])
    kv = matmul(memory, p["src"]["kv"])
    o = flash_attention(q, kv, mem_lens, H, d, causal=False, q_idx=0, k_idx=0, v_idx=1)
    x = matmul(o, p["src"]["o"], residual=x)
    # FFN
    x = ffn_residual(x, p["ln3"], p["ff"], "relu", 1.0)
    return x


def forward_encoder(params, features, features_length, cfg):
    B, T, _ = features.shape
    d = cfg["d_model"]
    valid = jnp.arange(T)[None, :] < features_length[:, None]   # ~make_pad_mask
    sub_mask = valid[:, :-2:2][:, :-2:2]                        # subsample x4 mask

    # Conv2dSubsampling4: two Conv2d(k=3, s=2)+ReLU as im2col matmuls, then Linear + abs PE.
    x = features[:, None, :, :].astype(jnp.float32)             # NCHW, C=1
    p1, H1, W1 = im2col(x)
    h1 = matmul(p1, params["conv1"], activation="relu").reshape(B, H1, W1, d)
    p2, H2, W2 = im2col(h1.transpose(0, 3, 1, 2))
    h2 = matmul(p2, params["conv2"], activation="relu").reshape(B, H2, W2, d)
    h2 = h2.transpose(0, 1, 3, 2).reshape(B, H2, d * W2)        # (B, T', C*F')  C-major

    T_enc = _round_up(H2, 8)                                    # sublane-friendly sequence dim
    h2 = jnp.pad(h2, ((0, 0), (0, T_enc - H2), (0, 0)))
    pad_mask = jnp.pad(sub_mask, ((0, 0), (0, T_enc - H2)))
    enc_lens = jnp.sum(sub_mask, axis=-1).astype(jnp.int32)

    xs = matmul(h2, params["embed_out"])
    xs = (xs.astype(jnp.float32) * math.sqrt(d)
          + sinusoidal_pe(T_enc, d)[None, :, :]).astype(jnp.bfloat16)

    for lp in params["enc_layers"]:
        xs = conformer_layer(xs, enc_lens, pad_mask, lp, cfg)
    xs = layer_norm(xs, params["enc_after_norm"])
    return xs, pad_mask, enc_lens


def forward_decoder(params, memory, enc_lens, ys_in, ys_in_lens, cfg):
    B, L = ys_in.shape
    d = cfg["d_model"]
    Lp = _round_up(L, 8)
    ys_in_p = jnp.pad(ys_in, ((0, 0), (0, Lp - L)), constant_values=cfg["eos"])

    x = params["dec_embed"][ys_in_p] * math.sqrt(d) + sinusoidal_pe(Lp, d)[None, :, :]
    x = x.astype(jnp.bfloat16)

    tgt_lens = ys_in_lens.astype(jnp.int32)
    for lp in params["dec_layers"]:
        x = decoder_layer(x, memory, tgt_lens, enc_lens, lp, cfg)
    x = layer_norm(x, params["dec_after_norm"])
    logits = matmul(x, params["dec_out"])        # N/K-tiled -> safe for large vocab
    return logits[:, :L, :]


# ----------------------------------------------------------------------------------
# Target preparation / losses (vectorized, jit-friendly)
# ----------------------------------------------------------------------------------
def add_sos_eos(ys_pad, ys_lens, sos, eos, ignore_id):
    B, L = ys_pad.shape
    idx = jnp.arange(L + 1)[None, :]
    lens = ys_lens[:, None]
    ys = jnp.pad(ys_pad, ((0, 0), (0, 1))).astype(jnp.int32)
    shifted = jnp.pad(ys_pad, ((0, 0), (1, 0))).astype(jnp.int32)
    ys_in = jnp.where(idx == 0, sos, jnp.where(idx <= lens, shifted, eos)).astype(jnp.int32)
    ys_out = jnp.where(idx < lens, ys, jnp.where(idx == lens, eos, ignore_id)).astype(jnp.int32)
    return ys_in, ys_out


def ctc_loss(logp, hlens, targets, tlens, blank=0):
    """CTC forward DP (log space) as a lax.scan; log-softmax already applied in a Pallas kernel."""
    B, T, V = logp.shape
    U = targets.shape[1]
    S = 2 * U + 1

    u_idx = jnp.arange(U)
    tgt = jnp.where(u_idx[None, :] < tlens[:, None], targets, blank).astype(jnp.int32)
    ext = jnp.zeros((B, S), jnp.int32).at[:, 1::2].set(tgt)
    s_idx = jnp.arange(S)
    ext_m2 = jnp.pad(ext, ((0, 0), (2, 0)))[:, :S]
    can_skip = (s_idx[None, :] >= 2) & (ext != blank) & (ext != ext_m2)

    lp_all = jnp.take_along_axis(logp, jnp.broadcast_to(ext[:, None, :], (B, T, S)), axis=2)

    alpha0 = jnp.full((B, S), NEG)
    alpha0 = alpha0.at[:, 0].set(lp_all[:, 0, 0])
    alpha0 = alpha0.at[:, 1].set(jnp.where(tlens > 0, lp_all[:, 0, 1], NEG))

    def shift(a, n):
        return jnp.pad(a, ((0, 0), (n, 0)), constant_values=NEG)[:, :S]

    def step(alpha, inputs):
        lp_t, t = inputs
        na = jnp.logaddexp(alpha, shift(alpha, 1))
        na = jnp.where(can_skip, jnp.logaddexp(na, shift(alpha, 2)), na)
        na = na + lp_t
        return jnp.where((t < hlens)[:, None], na, alpha), None

    lp_rest = jnp.transpose(lp_all[:, 1:, :], (1, 0, 2))
    alpha, _ = jax.lax.scan(step, alpha0, (lp_rest, jnp.arange(1, T)))

    end_blank = jnp.take_along_axis(alpha, (2 * tlens)[:, None], axis=1)[:, 0]
    end_label = jnp.take_along_axis(alpha, jnp.maximum(2 * tlens - 1, 0)[:, None], axis=1)[:, 0]
    ll = jnp.where(tlens > 0, jnp.logaddexp(end_blank, end_label), end_blank)
    return -jnp.sum(ll) / B      # CTCLoss(reduction='sum') / batch


def label_smoothing_loss(logits, targets, padding_idx, smoothing):
    B, L, V = logits.shape
    x = logits.reshape(-1, V)
    t = targets.reshape(-1)
    logp = log_softmax(x)
    conf = 1.0 - smoothing
    low = smoothing / (V - 1)
    ignore = t == padding_idx
    t0 = jnp.where(ignore, 0, t)
    true_dist = jnp.full((x.shape[0], V), low, jnp.float32)
    true_dist = true_dist.at[jnp.arange(x.shape[0]), t0].set(conf)
    kl = true_dist * (jnp.log(true_dist) - logp)
    kl = jnp.where(ignore[:, None], 0.0, kl)
    return jnp.sum(kl) / B       # normalize_length=False -> divide by batch size


def th_accuracy(logits, targets, ignore_id):
    pred = jnp.argmax(logits, axis=-1)
    mask = targets != ignore_id
    correct = jnp.sum(jnp.where(mask, pred == targets, False))
    return correct.astype(jnp.float32) / jnp.sum(mask).astype(jnp.float32)


# ----------------------------------------------------------------------------------
# Full forward
# ----------------------------------------------------------------------------------
def asr_forward(params, features, features_length, targets, targets_length, cfg):
    enc_out, enc_mask, enc_lens = forward_encoder(params, features, features_length, cfg)

    ctc_logits = matmul(enc_out, params["ctc"])
    ctc_logp = log_softmax(ctc_logits)
    loss_ctc = ctc_loss(ctc_logp, enc_lens, targets, targets_length)

    ys_in, ys_out = add_sos_eos(targets, targets_length, cfg["sos"], cfg["eos"], cfg["ignore_id"])
    ys_in_lens = targets_length + 1
    dec_logits = forward_decoder(params, enc_out, enc_lens, ys_in, ys_in_lens, cfg)
    loss_att = label_smoothing_loss(dec_logits, ys_out, cfg["ignore_id"], cfg["lsm"])
    acc_att = th_accuracy(dec_logits, ys_out, cfg["ignore_id"])

    # reverse_weight = 0 -> right-to-left decoder branch contributes nothing.
    loss = cfg["ctc_weight"] * loss_ctc + (1.0 - cfg["ctc_weight"]) * loss_att
    return loss, acc_att


# ----------------------------------------------------------------------------------
# Deterministic parameter construction (matmul weights stored in bf16, biases/LN in f32)
# ----------------------------------------------------------------------------------
def make_params(cfg, key):
    d = cfg["d_model"]
    u = cfg["linear_units"]
    V = cfg["vocab"]
    K = cfg["cnn_kernel"]
    f_sub = ((cfg["input_size"] - 1) // 2 - 1) // 2
    keys = iter(jax.random.split(key, 4096))

    def W(*shape):
        return jax.random.normal(next(keys), shape, jnp.float32) * 0.05

    def Z(*shape):
        return jnp.zeros(shape, jnp.float32)

    def lin(din, dout):
        return {"w": W(din, dout).astype(jnp.bfloat16), "b": Z(dout)}

    def ln_p():
        return {"g": jnp.ones((d,), jnp.float32), "b": Z(d)}

    def self_mha():
        return {"qkv": lin(d, 3 * d), "o": lin(d, d)}

    def cross_mha():
        return {"q": lin(d, d), "kv": lin(d, 2 * d), "o": lin(d, d)}

    def ff_p():
        return {"l1": lin(d, u), "l2": lin(u, d)}

    enc_layers = []
    for _ in range(cfg["enc_blocks"]):
        enc_layers.append({
            "ff_mac": ff_p(), "ln_ff_mac": ln_p(),
            "attn": self_mha(), "ln_mha": ln_p(),
            "conv": {"pw1": lin(d, 2 * d), "dw_w": W(K, d), "dw_b": Z(d), "pw2": lin(d, d)},
            "ln_conv": ln_p(),
            "ff": ff_p(), "ln_ff": ln_p(),
            "ln_final": ln_p(),
        })

    dec_layers = []
    for _ in range(cfg["dec_blocks"]):
        dec_layers.append({"self": self_mha(), "ln1": ln_p(),
                           "src": cross_mha(), "ln2": ln_p(),
                           "ff": ff_p(), "ln3": ln_p()})

    return {
        "conv1": lin(1 * 9, d),            # Conv2d(1, d, 3, 2) as im2col matmul
        "conv2": lin(d * 9, d),            # Conv2d(d, d, 3, 2) as im2col matmul
        "embed_out": lin(d * f_sub, d),    # Linear(d * F'', d)
        "enc_layers": enc_layers,
        "enc_after_norm": ln_p(),
        "ctc": lin(d, V),
        "dec_embed": W(V, d),
        "dec_layers": dec_layers,
        "dec_after_norm": ln_p(),
        "dec_out": lin(d, V),
    }


# ----------------------------------------------------------------------------------
if __name__ == "__main__":
    # TODO(synk): BatchNorm in the conv module uses freshly-initialized running stats
    # (eval-mode x/sqrt(1+eps)); beam-search / rescoring inference paths are not implemented.
    cfg = dict(
        input_size=20, vocab=128, d_model=256, heads=2, linear_units=512,
        enc_blocks=2, dec_blocks=1, cnn_kernel=15,
        ctc_weight=0.3, lsm=0.1, ignore_id=-1,
    )
    cfg["sos"] = cfg["vocab"] - 1
    cfg["eos"] = cfg["vocab"] - 1

    key = jax.random.PRNGKey(0)
    pkey, fkey = jax.random.split(key)
    params = make_params(cfg, pkey)

    B, T = 2, 32
    features = jax.random.normal(fkey, (B, T, cfg["input_size"]), jnp.float32)
    features_length = jnp.array([32, 20], jnp.int32)
    targets = jnp.array([[3, 5, 7, 2],
                         [4, 6, 1, -1]], jnp.int32)
    targets_length = jnp.array([4, 3], jnp.int32)

    fwd = jax.jit(lambda p, f, fl, t, tl: asr_forward(p, f, fl, t, tl, cfg))
    loss, acc = fwd(params, features, features_length, targets, targets_length)
    jax.block_until_ready((loss, acc))
    print("KERNEL_OK")
</pallas_src>

<mosaic_0001>
module attributes {stable_mosaic.version = 11 : i64} {
  func.func @_matmul_kernel(%arg0: i32, %arg1: i32, %arg2: i32, %arg3: memref<256x9xbf16, #tpu.memory_space<vmem>>, %arg4: memref<9x256xbf16, #tpu.memory_space<vmem>>, %arg5: memref<1x256xf32, #tpu.memory_space<vmem>>, %arg6: memref<256x256xbf16, #tpu.memory_space<vmem>>, %arg7: memref<256x256xf32, #tpu.memory_space<vmem>>) attributes {dimension_semantics = [#tpu.dimension_semantics<parallel>, #tpu.dimension_semantics<parallel>, #tpu.dimension_semantics<arbitrary>], iteration_bounds = array<i64: 2, 1, 1>, scalar_prefetch = 0 : i64, scratch_operands = 1 : i64, tpu.core_type = #tpu.core_type<tc>, window_params = [{transform_indices = @transform_0, window_bounds = array<i64: 256, 9>}, {transform_indices = @transform_1, window_bounds = array<i64: 9, 256>}, {transform_indices = @transform_2, window_bounds = array<i64: 1, 256>}, {transform_indices = @transform_3, window_bounds = array<i64: 256, 256>}]} {
    %c0_i32 = arith.constant 0 : i32
    %0 = arith.cmpi eq, %arg2, %c0_i32 : i32
    %1 = arith.extui %0 : i1 to i32
    %c0_i32_0 = arith.constant 0 : i32
    %2 = arith.cmpi ne, %1, %c0_i32_0 : i32
    scf.if %2 {
      %cst_10 = arith.constant 0.000000e+00 : f32
      %12 = vector.broadcast %cst_10 : f32 to vector<256x256xf32>
      %c0_11 = arith.constant 0 : index
      %c0_12 = arith.constant 0 : index
      %13 = vector.load %arg7[%c0_11, %c0_12] : memref<256x256xf32, #tpu.memory_space<vmem>>, vector<256x256xf32>
      tpu.vector_store %arg7[%c0_11, %c0_12], %12 {strides = array<i32>} : memref<256x256xf32, #tpu.memory_space<vmem>>, vector<256x256xf32>,
    } else {
    }
    %c0 = arith.constant 0 : index
    %c0_1 = arith.constant 0 : index
    %3 = vector.load %arg7[%c0, %c0_1] : memref<256x256xf32, #tpu.memory_space<vmem>>, vector<256x256xf32>
    %c0_2 = arith.constant 0 : index
    %c0_3 = arith.constant 0 : index
    %4 = vector.load %arg3[%c0_2, %c0_3] : memref<256x9xbf16, #tpu.memory_space<vmem>>, vector<256x9xbf16>
    %c0_4 = arith.constant 0 : index
    %c0_5 = arith.constant 0 : index
    %5 = vector.load %arg4[%c0_4, %c0_5] : memref<9x256xbf16, #tpu.memory_space<vmem>>, vector<9x256xbf16>
    %cst = arith.constant dense<0.000000e+00> : vector<256x256xf32>
    %6 = tpu.matmul %4, %5, %cst {dimension_numbers = #tpu.dot_dimension_numbers<[1], [0], [0], [1], [0, 0, 1, 1], [], []>} : vector<256x9xbf16>, vector<9x256xbf16>, vector<256x256xf32> -> vector<256x256xf32>
    %7 = arith.addf %3, %6 : vector<256x256xf32>
    %c0_6 = arith.constant 0 : index
    %c0_7 = arith.constant 0 : index
    %8 = vector.load %arg7[%c0_6, %c0_7] : memref<256x256xf32, #tpu.memory_space<vmem>>, vector<256x256xf32>
    tpu.vector_store %arg7[%c0_6, %c0_7], %7 {strides = array<i32>} : memref<256x256xf32, #tpu.memory_space<vmem>>, vector<256x256xf32>,
    %c0_i32_8 = arith.constant 0 : i32
    %9 = arith.cmpi eq, %arg2, %c0_i32_8 : i32
    %10 = arith.extui %9 : i1 to i32
    %c0_i32_9 = arith.constant 0 : i32
    %11 = arith.cmpi ne, %10, %c0_i32_9 : i32
    scf.if %11 {
      %c0_10 = arith.constant 0 : index
      %c0_11 = arith.constant 0 : index
      %12 = vector.load %arg7[%c0_10, %c0_11] : memref<256x256xf32, #tpu.memory_space<vmem>>, vector<256x256xf32>
      %c0_12 = arith.constant 0 : index
      %c0_13 = arith.constant 0 : index
      %13 = vector.load %arg5[%c0_12, %c0_13] : memref<1x256xf32, #tpu.memory_space<vmem>>, vector<1x256xf32>
      %14 = vector.broadcast %13 : vector<1x256xf32> to vector<256x256xf32>
      %15 = arith.addf %12, %14 : vector<256x256xf32>
      %cst_14 = arith.constant 0.000000e+00 : f32
      %16 = vector.broadcast %cst_14 : f32 to vector<256x256xf32>
      %17 = arith.maximumf %15, %16 : vector<256x256xf32>
      %18 = arith.truncf %17 : vector<256x256xf32> to vector<256x256xbf16>
      %c0_15 = arith.constant 0 : index
      %c0_16 = arith.constant 0 : index
      %19 = vector.load %arg6[%c0_15, %c0_16] : memref<256x256xbf16, #tpu.memory_space<vmem>>, vector<256x256xbf16>
      tpu.vector_store %arg6[%c0_15, %c0_16], %18 {strides = array<i32>} : memref<256x256xbf16, #tpu.memory_space<vmem>>, vector<256x256xbf16>,
    } else {
    }
    return
  }
  func.func @transform_0(%arg0: i32, %arg1: i32, %arg2: i32) -> (i32, i32) {
    %c0_i32 = arith.constant 0 : i32
    return %arg0, %arg2 : i32, i32
  }
  func.func @transform_1(%arg0: i32, %arg1: i32, %arg2: i32) -> (i32, i32) {
    %c0_i32 = arith.constant 0 : i32
    return %arg2, %arg1 : i32, i32
  }
  func.func @transform_2(%arg0: i32, %arg1: i32, %arg2: i32) -> (i32, i32) {
    %c0_i32 = arith.constant 0 : i32
    %c0_i32_0 = arith.constant 0 : i32
    return %c0_i32, %arg1 : i32, i32
  }
  func.func @transform_3(%arg0: i32, %arg1: i32, %arg2: i32) -> (i32, i32) {
    %c0_i32 = arith.constant 0 : i32
    return %arg0, %arg1 : i32, i32
  }
}

module attributes {stable_mosaic.version = 11 : i64} {
  func.func @_matmul_kernel(%arg0: i32, %arg1: i32, %arg2: i32, %arg3: memref<56x512xbf16, #tpu.memory_space<vmem>>, %arg4: memref<512x256xbf16, #tpu.memory_space<vmem>>, %arg5: memref<1x256xf32, #tpu.memory_space<vmem>>, %arg6: memref<56x256xbf16, #tpu.memory_space<vmem>>, %arg7: memref<56x256xf32, #tpu.memory_space<vmem>>) attributes {dimension_semantics = [#tpu.dimension_semantics<parallel>, #tpu.dimension_semantics<parallel>, #tpu.dimension_semantics<arbitrary>], iteration_bounds = array<i64: 1, 1, 5>, scalar_prefetch = 0 : i64, scratch_operands = 1 : i64, tpu.core_type = #tpu.core_type<tc>, window_params = [{transform_indices = @transform_0, window_bounds = array<i64: 56, 512>}, {transform_indices = @transform_1, window_bounds = array<i64: 512, 256>}, {transform_indices = @transform_2, window_bounds = array<i64: 1, 256>}, {transform_indices = @transform_3, window_bounds = array<i64: 56, 256>}]} {
    %c0_i32 = arith.constant 0 : i32
    %0 = arith.cmpi eq, %arg2, %c0_i32 : i32
    %1 = arith.extui %0 : i1 to i32
    %c0_i32_0 = arith.constant 0 : i32
    %2 = arith.cmpi ne, %1, %c0_i32_0 : i32
    scf.if %2 {
      %cst_9 = arith.constant 0.000000e+00 : f32
      %12 = vector.broadcast %cst_9 : f32 to vector<56x256xf32>
      %c0_10 = arith.constant 0 : index
      %c0_11 = arith.constant 0 : index
      %13 = vector.load %arg7[%c0_10, %c0_11] : memref<56x256xf32, #tpu.memory_space<vmem>>, vector<56x256xf32>
      tpu.vector_store %arg7[%c0_10, %c0_11], %12 {strides = array<i32>} : memref<56x256xf32, #tpu.memory_space<vmem>>, vector<56x256xf32>,
    } else {
    }
    %c0 = arith.constant 0 : index
    %c0_1 = arith.constant 0 : index
    %3 = vector.load %arg7[%c0, %c0_1] : memref<56x256xf32, #tpu.memory_space<vmem>>, vector<56x256xf32>
    %c0_2 = arith.constant 0 : index
    %c0_3 = arith.constant 0 : index
    %4 = vector.load %arg3[%c0_2, %c0_3] : memref<56x512xbf16, #tpu.memory_space<vmem>>, vector<56x512xbf16>
    %c0_4 = arith.constant 0 : index
    %c0_5 = arith.constant 0 : index
    %5 = vector.load %arg4[%c0_4, %c0_5] : memref<512x256xbf16, #tpu.memory_space<vmem>>, vector<512x256xbf16>
    %cst = arith.constant dense<0.000000e+00> : vector<56x256xf32>
    %6 = tpu.matmul %4, %5, %cst {dimension_numbers = #tpu.dot_dimension_numbers<[1], [0], [0], [1], [0, 0, 1, 1], [], []>} : vector<56x512xbf16>, vector<512x256xbf16>, vector<56x256xf32> -> vector<56x256xf32>
    %7 = arith.addf %3, %6 : vector<56x256xf32>
    %c0_6 = arith.constant 0 : index
    %c0_7 = arith.constant 0 : index
    %8 = vector.load %arg7[%c0_6, %c0_7] : memref<56x256xf32, #tpu.memory_space<vmem>>, vector<56x256xf32>
    tpu.vector_store %arg7[%c0_6, %c0_7], %7 {strides = array<i32>} : memref<56x256xf32, #tpu.memory_space<vmem>>, vector<56x256xf32>,
    %c4_i32 = arith.constant 4 : i32
    %9 = arith.cmpi eq, %arg2, %c4_i32 : i32
    %10 = arith.extui %9 : i1 to i32
    %c0_i32_8 = arith.constant 0 : i32
    %11 = arith.cmpi ne, %10, %c0_i32_8 : i32
    scf.if %11 {
      %c0_9 = arith.constant 0 : index
      %c0_10 = arith.constant 0 : index
      %12 = vector.load %arg7[%c0_9, %c0_10] : memref<56x256xf32, #tpu.memory_space<vmem>>, vector<56x256xf32>
      %c0_11 = arith.constant 0 : index
      %c0_12 = arith.constant 0 : index
      %13 = vector.load %arg5[%c0_11, %c0_12] : memref<1x256xf32, #tpu.memory_space<vmem>>, vector<1x256xf32>
      %14 = vector.broadcast %13 : vector<1x256xf32> to vector<56x256xf32>
      %15 = arith.addf %12, %14 : vector<56x256xf32>
      %cst_13 = arith.constant 0.000000e+00 : f32
      %16 = vector.broadcast %cst_13 : f32 to vector<56x256xf32>
      %17 = arith.maximumf %15, %16 : vector<56x256xf32>
      %18 = arith.truncf %17 : vector<56x256xf32> to vector<56x256xbf16>
      %c0_14 = arith.constant 0 : index
      %c0_15 = arith.constant 0 : index
      %19 = vector.load %arg6[%c0_14, %c0_15] : memref<56x256xbf16, #tpu.memory_space<vmem>>, vector<56x256xbf16>
      tpu.vector_store %arg6[%c0_14, %c0_15], %18 {strides = array<i32>} : memref<56x256xbf16, #tpu.memory_space<vmem>>, vector<56x256xbf16>,
    } else {
    }
    return
  }
  func.func @transform_0(%arg0: i32, %arg1: i32, %arg2: i32) -> (i32, i32) {
    %c0_i32 = arith.constant 0 : i32
    return %arg0, %arg2 : i32, i32
  }
  func.func @transform_1(%arg0: i32, %arg1: i32, %arg2: i32) -> (i32, i32) {
    %c0_i32 = arith.constant 0 : i32
    return %arg2, %arg1 : i32, i32
  }
  func.func @transform_2(%arg0: i32, %arg1: i32, %arg2: i32) -> (i32, i32) {
    %c0_i32 = arith.constant 0 : i32
    %c0_i32_0 = arith.constant 0 : i32
    return %c0_i32, %arg1 : i32, i32
  }
  func.func @transform_3(%arg0: i32, %arg1: i32, %arg2: i32) -> (i32, i32) {
    %c0_i32 = arith.constant 0 : i32
    return %arg0, %arg1 : i32, i32
  }
}

module attributes {stable_mosaic.version = 11 : i64} {
  func.func @_matmul_kernel(%arg0: i32, %arg1: i32, %arg2: i32, %arg3: memref<16x1024xbf16, #tpu.memory_space<vmem>>, %arg4: memref<1024x256xbf16, #tpu.memory_space<vmem>>, %arg5: memref<1x256xf32, #tpu.memory_space<vmem>>, %arg6: memref<16x256xbf16, #tpu.memory_space<vmem>>, %arg7: memref<16x256xf32, #tpu.memory_space<vmem>>) attributes {dimension_semantics = [#tpu.dimension_semantics<parallel>, #tpu.dimension_semantics<parallel>, #tpu.dimension_semantics<arbitrary>], iteration_bounds = array<i64: 1, 1, 1>, scalar_prefetch = 0 : i64, scratch_operands = 1 : i64, tpu.core_type = #tpu.core_type<tc>, window_params = [{transform_indices = @transform_0, window_bounds = array<i64: 16, 1024>}, {transform_indices = @transform_1, window_bounds = array<i64: 1024, 256>}, {transform_indices = @transform_2, window_bounds = array<i64: 1, 256>}, {transform_indices = @transform_3, window_bounds = array<i64: 16, 256>}]} {
    %c0_i32 = arith.constant 0 : i32
    %0 = arith.cmpi eq, %arg2, %c0_i32 : i32
    %1 = arith.extui %0 : i1 to i32
    %c0_i32_0 = arith.constant 0 : i32
    %2 = arith.cmpi ne, %1, %c0_i32_0 : i32
    scf.if %2 {
      %cst_10 = arith.constant 0.000000e+00 : f32
      %12 = vector.broadcast %cst_10 : f32 to vector<16x256xf32>
      %c0_11 = arith.constant 0 : index
      %c0_12 = arith.constant 0 : index
      %13 = vector.load %arg7[%c0_11, %c0_12] : memref<16x256xf32, #tpu.memory_space<vmem>>, vector<16x256xf32>
      tpu.vector_store %arg7[%c0_11, %c0_12], %12 {strides = array<i32>} : memref<16x256xf32, #tpu.memory_space<vmem>>, vector<16x256xf32>,
    } else {
    }
    %c0 = arith.constant 0 : index
    %c0_1 = arith.constant 0 : index
    %3 = vector.load %arg7[%c0, %c0_1] : memref<16x256xf32, #tpu.memory_space<vmem>>, vector<16x256xf32>
    %c0_2 = arith.constant 0 : index
    %c0_3 = arith.constant 0 : index
    %4 = vector.load %arg3[%c0_2, %c0_3] : memref<16x1024xbf16, #tpu.memory_space<vmem>>, vector<16x1024xbf16>
    %c0_4 = arith.constant 0 : index
    %c0_5 = arith.constant 0 : index
    %5 = vector.load %arg4[%c0_4, %c0_5] : memref<1024x256xbf16, #tpu.memory_space<vmem>>, vector<1024x256xbf16>
    %cst = arith.constant dense<0.000000e+00> : vector<16x256xf32>
    %6 = tpu.matmul %4, %5, %cst {dimension_numbers = #tpu.dot_dimension_numbers<[1], [0], [0], [1], [0, 0, 1, 1], [], []>} : vector<16x1024xbf16>, vector<1024x256xbf16>, vector<16x256xf32> -> vector<16x256xf32>
    %7 = arith.addf %3, %6 : vector<16x256xf32>
    %c0_6 = arith.constant 0 : index
    %c0_7 = arith.constant 0 : index
    %8 = vector.load %arg7[%c0_6, %c0_7] : memref<16x256xf32, #tpu.memory_space<vmem>>, vector<16x256xf32>
    tpu.vector_store %arg7[%c0_6, %c0_7], %7 {strides = array<i32>} : memref<16x256xf32, #tpu.memory_space<vmem>>, vector<16x256xf32>,
    %c0_i32_8 = arith.constant 0 : i32
    %9 = arith.cmpi eq, %arg2, %c0_i32_8 : i32
    %10 = arith.extui %9 : i1 to i32
    %c0_i32_9 = arith.constant 0 : i32
    %11 = arith.cmpi ne, %10, %c0_i32_9 : i32
    scf.if %11 {
      %c0_10 = arith.constant 0 : index
      %c0_11 = arith.constant 0 : index
      %12 = vector.load %arg7[%c0_10, %c0_11] : memref<16x256xf32, #tpu.memory_space<vmem>>, vector<16x256xf32>
      %c0_12 = arith.constant 0 : index
      %c0_13 = arith.constant 0 : index
      %13 = vector.load %arg5[%c0_12, %c0_13] : memref<1x256xf32, #tpu.memory_space<vmem>>, vector<1x256xf32>
      %14 = vector.broadcast %13 : vector<1x256xf32> to vector<16x256xf32>
      %15 = arith.addf %12, %14 : vector<16x256xf32>
      %16 = arith.truncf %15 : vector<16x256xf32> to vector<16x256xbf16>
      %c0_14 = arith.constant 0 : index
      %c0_15 = arith.constant 0 : index
      %17 = vector.load %arg6[%c0_14, %c0_15] : memref<16x256xbf16, #tpu.memory_space<vmem>>, vector<16x256xbf16>
      tpu.vector_store %arg6[%c0_14, %c0_15], %16 {strides = array<i32>} : memref<16x256xbf16, #tpu.memory_space<vmem>>, vector<16x256xbf16>,
    } else {
    }
    return
  }
  func.func @transform_0(%arg0: i32, %arg1: i32, %arg2: i32) -> (i32, i32) {
    %c0_i32 = arith.constant 0 : i32
    return %arg0, %arg2 : i32, i32
  }
  func.func @transform_1(%arg0: i32, %arg1: i32, %arg2: i32) -> (i32, i32) {
    %c0_i32 = arith.constant 0 : i32
    return %arg2, %arg1 : i32, i32
  }
  func.func @transform_2(%arg0: i32, %arg1: i32, %arg2: i32) -> (i32, i32) {
    %c0_i32 = arith.constant 0 : i32
    %c0_i32_0 = arith.constant 0 : i32
    return %c0_i32, %arg1 : i32, i32
  }
  func.func @transform_3(%arg0: i32, %arg1: i32, %arg2: i32) -> (i32, i32) {
    %c0_i32 = arith.constant 0 : i32
    return %arg0, %arg1 : i32, i32
  }
}

module attributes {stable_mosaic.version = 11 : i64} {
  func.func @_ln_matmul_kernel(%arg0: i32, %arg1: memref<16x256xbf16, #tpu.memory_space<vmem>>, %arg2: memref<1x256xf32, #tpu.memory_space<vmem>>, %arg3: memref<1x256xf32, #tpu.memory_space<vmem>>, %arg4: memref<256x768xbf16, #tpu.memory_space<vmem>>, %arg5: memref<1x768xf32, #tpu.memory_space<vmem>>, %arg6: memref<16x768xbf16, #tpu.memory_space<vmem>>) attributes {dimension_semantics = [#tpu.dimension_semantics<parallel>], iteration_bounds = array<i64: 1>, scalar_prefetch = 0 : i64, scratch_operands = 0 : i64, tpu.core_type = #tpu.core_type<tc>, window_params = [{transform_indices = @transform_0, window_bounds = array<i64: 16, 256>}, {pipeline_mode = #tpu.pipeline_mode<synchronous>, transform_indices = @transform_1, window_bounds = array<i64: 1, 256>}, {pipeline_mode = #tpu.pipeline_mode<synchronous>, transform_indices = @transform_2, window_bounds = array<i64: 1, 256>}, {pipeline_mode = #tpu.pipeline_mode<synchronous>, transform_indices = @transform_3, window_bounds = array<i64: 256, 768>}, {pipeline_mode = #tpu.pipeline_mode<synchronous>, transform_indices = @transform_4, window_bounds = array<i64: 1, 768>}, {transform_indices = @transform_5, window_bounds = array<i64: 16, 768>}]} {
    %c0 = arith.constant 0 : index
    %c0_0 = arith.constant 0 : index
    %0 = vector.load %arg1[%c0, %c0_0] : memref<16x256xbf16, #tpu.memory_space<vmem>>, vector<16x256xbf16>
    %1 = arith.extf %0 : vector<16x256xbf16> to vector<16x256xf32>
    %c0_1 = arith.constant 0 : index
    %c0_2 = arith.constant 0 : index
    %2 = vector.load %arg2[%c0_1, %c0_2] : memref<1x256xf32, #tpu.memory_space<vmem>>, vector<1x256xf32>
    %c0_3 = arith.constant 0 : index
    %c0_4 = arith.constant 0 : index
    %3 = vector.load %arg3[%c0_3, %c0_4] : memref<1x256xf32, #tpu.memory_space<vmem>>, vector<1x256xf32>
    %cst = arith.constant dense<0.000000e+00> : vector<16xf32>
    %4 = vector.multi_reduction <add>, %1, %cst [1] : vector<16x256xf32> to vector<16xf32>
    %5 = vector.shape_cast %4 : vector<16xf32> to vector<16x1xf32>
    %cst_5 = arith.constant 2.560000e+02 : f32
    %6 = vector.broadcast %cst_5 : f32 to vector<16x1xf32>
    %7 = arith.divf %5, %6 : vector<16x1xf32>
    %8 = vector.broadcast %7 : vector<16x1xf32> to vector<16x256xf32>
    %9 = arith.subf %1, %8 : vector<16x256xf32>
    %10 = arith.mulf %9, %9 : vector<16x256xf32>
    %cst_6 = arith.constant dense<0.000000e+00> : vector<16xf32>
    %11 = vector.multi_reduction <add>, %10, %cst_6 [1] : vector<16x256xf32> to vector<16xf32>
    %12 = vector.shape_cast %11 : vector<16xf32> to vector<16x1xf32>
    %cst_7 = arith.constant 2.560000e+02 : f32
    %13 = vector.broadcast %cst_7 : f32 to vector<16x1xf32>
    %14 = arith.divf %12, %13 : vector<16x1xf32>
    %15 = vector.broadcast %7 : vector<16x1xf32> to vector<16x256xf32>
    %16 = arith.subf %1, %15 : vector<16x256xf32>
    %cst_8 = arith.constant 9.99999974E-6 : f32
    %17 = vector.broadcast %cst_8 : f32 to vector<16x1xf32>
    %18 = arith.addf %14, %17 : vector<16x1xf32>
    %19 = math.rsqrt %18 : vector<16x1xf32>
    %20 = vector.broadcast %19 : vector<16x1xf32> to vector<16x256xf32>
    %21 = arith.mulf %16, %20 : vector<16x256xf32>
    %22 = vector.broadcast %2 : vector<1x256xf32> to vector<16x256xf32>
    %23 = arith.mulf %21, %22 : vector<16x256xf32>
    %24 = vector.broadcast %3 : vector<1x256xf32> to vector<16x256xf32>
    %25 = arith.addf %23, %24 : vector<16x256xf32>
    %26 = arith.truncf %25 : vector<16x256xf32> to vector<16x256xbf16>
    %c0_9 = arith.constant 0 : index
    %c0_10 = arith.constant 0 : index
    %27 = vector.load %arg4[%c0_9, %c0_10] : memref<256x768xbf16, #tpu.memory_space<vmem>>, vector<256x768xbf16>
    %cst_11 = arith.constant dense<0.000000e+00> : vector<16x768xf32>
    %28 = tpu.matmul %26, %27, %cst_11 {dimension_numbers = #tpu.dot_dimension_numbers<[1], [0], [0], [1], [0, 0, 1, 1], [], []>} : vector<16x256xbf16>, vector<256x768xbf16>, vector<16x768xf32> -> vector<16x768xf32>
    %c0_12 = arith.constant 0 : index
    %c0_13 = arith.constant 0 : index
    %29 = vector.load %arg5[%c0_12, %c0_13] : memref<1x768xf32, #tpu.memory_space<vmem>>, vector<1x768xf32>
    %30 = vector.broadcast %29 : vector<1x768xf32> to vector<16x768xf32>
    %31 = arith.addf %28, %30 : vector<16x768xf32>
    %32 = arith.truncf %31 : vector<16x768xf32> to vector<16x768xbf16>
    %c0_14 = arith.constant 0 : index
    %c0_15 = arith.constant 0 : index
    %33 = vector.load %arg6[%c0_14, %c0_15] : memref<16x768xbf16, #tpu.memory_space<vmem>>, vector<16x768xbf16>
    tpu.vector_store %arg6[%c0_14, %c0_15], %32 {strides = array<i32>} : memref<16x768xbf16, #tpu.memory_space<vmem>>, vector<16x768xbf16>,
    return
  }
  func.func @transform_0(%arg0: i32) -> (i32, i32) {
    %c0_i32 = arith.constant 0 : i32
    %c0_i32_0 = arith.constant 0 : i32
    return %arg0, %c0_i32 : i32, i32
  }
  func.func @transform_1(%arg0: i32) -> (i32, i32) {
    %c0_i32 = arith.constant 0 : i32
    %c0_i32_0 = arith.constant 0 : i32
    %c0_i32_1 = arith.constant 0 : i32
    return %c0_i32, %c0_i32_0 : i32, i32
  }
  func.func @transform_2(%arg0: i32) -> (i32, i32) {
    %c0_i32 = arith.constant 0 : i32
    %c0_i32_0 = arith.constant 0 : i32
    %c0_i32_1 = arith.constant 0 : i32
    return %c0_i32, %c0_i32_0 : i32, i32
  }
  func.func @transform_3(%arg0: i32) -> (i32, i32) {
    %c0_i32 = arith.constant 0 : i32
    %c0_i32_0 = arith.constant 0 : i32
    %c0_i32_1 = arith.constant 0 : i32
    return %c0_i32, %c0_i32_0 : i32, i32
  }
  func.func @transform_4(%arg0: i32) -> (i32, i32) {
    %c0_i32 = arith.constant 0 : i32
    %c0_i32_0 = arith.constant 0 : i32
    %c0_i32_1 = arith.constant 0 : i32
    return %c0_i32, %c0_i32_0 : i32, i32
  }
  func.func @transform_5(%arg0: i32) -> (i32, i32) {
    %c0_i32 = arith.constant 0 : i32
    %c0_i32_0 = arith.constant 0 : i32
    return %arg0, %c0_i32 : i32, i32
  }
}

module attributes {stable_mosaic.version = 11 : i64} {
  func.func @_flash_attn_kernel(%arg0: i32, %arg1: i32, %arg2: i32, %arg3: memref<2xi32, #tpu.memory_space<smem>>, %arg4: memref<1x8x256xbf16, #tpu.memory_space<vmem>>, %arg5: memref<1x8x256xbf16, #tpu.memory_space<vmem>>, %arg6: memref<1x8x256xbf16, #tpu.memory_space<vmem>>, %arg7: memref<1x8x256xbf16, #tpu.memory_space<vmem>>, %arg8: memref<2x8x1xf32, #tpu.memory_space<vmem>>, %arg9: memref<2x8x1xf32, #tpu.memory_space<vmem>>, %arg10: memref<2x8x128xf32, #tpu.memory_space<vmem>>) attributes {dimension_semantics = [#tpu.dimension_semantics<parallel>, #tpu.dimension_semantics<parallel>, #tpu.dimension_semantics<arbitrary>], iteration_bounds = array<i64: 2, 1, 1>, scalar_prefetch = 1 : i64, scratch_operands = 3 : i64, tpu.core_type = #tpu.core_type<tc>, window_params = [{transform_indices = @transform_0, window_bounds = array<i64: 1, 8, 256>}, {transform_indices = @transform_1, window_bounds = array<i64: 1, 8, 256>}, {transform_indices = @transform_2, window_bounds = array<i64: 1, 8, 256>}, {transform_indices = @transform_3, window_bounds = array<i64: 1, 8, 256>}]} {
    %c0_i32 = arith.constant 0 : i32
    %0 = arith.cmpi eq, %arg2, %c0_i32 : i32
    %1 = arith.extui %0 : i1 to i32
    %c0_i32_0 = arith.constant 0 : i32
    %2 = arith.cmpi ne, %1, %c0_i32_0 : i32
    scf.if %2 {
      %cst_60 = arith.constant 0xFF800000 : f32
      %110 = vector.broadcast %cst_60 : f32 to vector<2x8x1xf32>
      %c0_61 = arith.constant 0 : index
      %c0_62 = arith.constant 0 : index
      %c0_63 = arith.constant 0 : index
      %111 = vector.load %arg8[%c0_61, %c0_62, %c0_63] : memref<2x8x1xf32, #tpu.memory_space<vmem>>, vector<2x8x1xf32>
      tpu.vector_store %arg8[%c0_61, %c0_62, %c0_63], %110 {strides = array<i32>} : memref<2x8x1xf32, #tpu.memory_space<vmem>>, vector<2x8x1xf32>,
      %cst_64 = arith.constant 0.000000e+00 : f32
      %112 = vector.broadcast %cst_64 : f32 to vector<2x8x1xf32>
      %c0_65 = arith.constant 0 : index
      %c0_66 = arith.constant 0 : index
      %c0_67 = arith.constant 0 : index
      %113 = vector.load %arg9[%c0_65, %c0_66, %c0_67] : memref<2x8x1xf32, #tpu.memory_space<vmem>>, vector<2x8x1xf32>
      tpu.vector_store %arg9[%c0_65, %c0_66, %c0_67], %112 {strides = array<i32>} : memref<2x8x1xf32, #tpu.memory_space<vmem>>, vector<2x8x1xf32>,
      %cst_68 = arith.constant 0.000000e+00 : f32
      %114 = vector.broadcast %cst_68 : f32 to vector<2x8x128xf32>
      %c0_69 = arith.constant 0 : index
      %c0_70 = arith.constant 0 : index
      %c0_71 = arith.constant 0 : index
      %115 = vector.load %arg10[%c0_69, %c0_70, %c0_71] : memref<2x8x128xf32, #tpu.memory_space<vmem>>, vector<2x8x128xf32>
      tpu.vector_store %arg10[%c0_69, %c0_70, %c0_71], %114 {strides = array<i32>} : memref<2x8x128xf32, #tpu.memory_space<vmem>>, vector<2x8x128xf32>,
    } else {
    }
    %3 = arith.index_cast %arg0 : i32 to index
    %4 = memref.load %arg3[%3] : memref<2xi32, #tpu.memory_space<smem>>
    %c8_i32 = arith.constant 8 : i32
    %5 = arith.muli %arg2, %c8_i32 : i32
    %6 = tpu.iota {dimensions = array<i32: 1>} : vector<8x8xi32>
    %7 = vector.broadcast %5 : i32 to vector<8x8xi32>
    %8 = arith.addi %7, %6 : vector<8x8xi32>
    %9 = vector.broadcast %4 : i32 to vector<8x8xi32>
    %10 = arith.cmpi slt, %8, %9 : vector<8x8xi32>
    %c8_i32_1 = arith.constant 8 : i32
    %11 = arith.muli %arg1, %c8_i32_1 : i32
    %12 = tpu.iota {dimensions = array<i32: 0>} : vector<8x8xi32>
    %13 = vector.broadcast %11 : i32 to vector<8x8xi32>
    %14 = arith.addi %13, %12 : vector<8x8xi32>
    %15 = arith.cmpi sle, %8, %14 : vector<8x8xi32>
    %16 = arith.andi %10, %15 : vector<8x8xi1>
    %c0 = arith.constant 0 : index
    %c0_2 = arith.constant 0 : index
    %c0_3 = arith.constant 0 : index
    %17 = vector.load %arg4[%c0, %c0_2, %c0_3] : memref<1x8x256xbf16, #tpu.memory_space<vmem>>, vector<1x8x256xbf16>
    %18 = vector.shape_cast %17 : vector<1x8x256xbf16> to vector<8x256xbf16>
    %c0_4 = arith.constant 0 : index
    %c0_5 = arith.constant 0 : index
    %c0_6 = arith.constant 0 : index
    %19 = vector.load %arg5[%c0_4, %c0_5, %c0_6] : memref<1x8x256xbf16, #tpu.memory_space<vmem>>, vector<1x8x256xbf16>
    %20 = vector.shape_cast %19 : vector<1x8x256xbf16> to vector<8x256xbf16>
    %c0_7 = arith.constant 0 : index
    %c0_8 = arith.constant 0 : index
    %c0_9 = arith.constant 0 : index
    %21 = vector.load %arg6[%c0_7, %c0_8, %c0_9] : memref<1x8x256xbf16, #tpu.memory_space<vmem>>, vector<1x8x256xbf16>
    %22 = vector.shape_cast %21 : vector<1x8x256xbf16> to vector<8x256xbf16>
    %23 = vector.extract_strided_slice %18 {offsets = [0, 0], sizes = [8, 128], strides = [1, 1]} : vector<8x256xbf16> to vector<8x128xbf16>
    %24 = vector.extract_strided_slice %20 {offsets = [0, 0], sizes = [8, 128], strides = [1, 1]} : vector<8x256xbf16> to vector<8x128xbf16>
    %cst = arith.constant dense<0.000000e+00> : vector<8x8xf32>
    %25 = tpu.matmul %23, %24, %cst {dimension_numbers = #tpu.dot_dimension_numbers<[1], [1], [0], [0], [0, 0, 1, 0], [], []>} : vector<8x128xbf16>, vector<8x128xbf16>, vector<8x8xf32> -> vector<8x8xf32>
    %cst_10 = arith.constant 0.0883883461 : f32
    %26 = vector.broadcast %cst_10 : f32 to vector<8x8xf32>
    %27 = arith.mulf %25, %26 : vector<8x8xf32>
    %cst_11 = arith.constant -1.000000e+30 : f32
    %28 = vector.broadcast %cst_11 : f32 to vector<8x8xf32>
    %29 = arith.select %16, %27, %28 : vector<8x8xi1>, vector<8x8xf32>
    %c0_12 = arith.constant 0 : index
    %c0_13 = arith.constant 0 : index
    %c0_14 = arith.constant 0 : index
    %30 = vector.load %arg8[%c0_12, %c0_13, %c0_14] : memref<2x8x1xf32, #tpu.memory_space<vmem>>, vector<1x8x1xf32>
    %31 = vector.shape_cast %30 : vector<1x8x1xf32> to vector<8x1xf32>
    %cst_15 = arith.constant dense<0xFF800000> : vector<8xf32>
    %32 = vector.multi_reduction <maximumf>, %29, %cst_15 [1] : vector<8x8xf32> to vector<8xf32>
    %33 = vector.shape_cast %32 : vector<8xf32> to vector<8x1xf32>
    %34 = arith.maximumf %31, %33 : vector<8x1xf32>
    %35 = arith.subf %31, %34 : vector<8x1xf32>
    %36 = math.exp %35 : vector<8x1xf32>
    %37 = vector.broadcast %34 : vector<8x1xf32> to vector<8x8xf32>
    %38 = arith.subf %29, %37 : vector<8x8xf32>
    %39 = math.exp %38 : vector<8x8xf32>
    %cst_16 = arith.constant 0.000000e+00 : f32
    %40 = vector.broadcast %cst_16 : f32 to vector<8x8xf32>
    %41 = arith.select %16, %39, %40 : vector<8x8xi1>, vector<8x8xf32>
    %c0_17 = arith.constant 0 : index
    %c0_18 = arith.constant 0 : index
    %c0_19 = arith.constant 0 : index
    %42 = vector.load %arg9[%c0_17, %c0_18, %c0_19] : memref<2x8x1xf32, #tpu.memory_space<vmem>>, vector<1x8x1xf32>
    %43 = vector.shape_cast %42 : vector<1x8x1xf32> to vector<8x1xf32>
    %44 = arith.mulf %36, %43 : vector<8x1xf32>
    %cst_20 = arith.constant dense<0.000000e+00> : vector<8xf32>
    %45 = vector.multi_reduction <add>, %41, %cst_20 [1] : vector<8x8xf32> to vector<8xf32>
    %46 = vector.shape_cast %45 : vector<8xf32> to vector<8x1xf32>
    %47 = arith.addf %44, %46 : vector<8x1xf32>
    %c0_21 = arith.constant 0 : index
    %c0_22 = arith.constant 0 : index
    %c0_23 = arith.constant 0 : index
    %48 = vector.load %arg9[%c0_21, %c0_22, %c0_23] : memref<2x8x1xf32, #tpu.memory_space<vmem>>, vector<1x8x1xf32>
    %49 = vector.shape_cast %48 : vector<1x8x1xf32> to vector<8x1xf32>
    %50 = vector.shape_cast %47 : vector<8x1xf32> to vector<1x8x1xf32>
    tpu.vector_store %arg9[%c0_21, %c0_22, %c0_23], %50 {strides = array<i32>} : memref<2x8x1xf32, #tpu.memory_space<vmem>>, vector<1x8x1xf32>,
    %c0_24 = arith.constant 0 : index
    %c0_25 = arith.constant 0 : index
    %c0_26 = arith.constant 0 : index
    %51 = vector.load %arg10[%c0_24, %c0_25, %c0_26] : memref<2x8x128xf32, #tpu.memory_space<vmem>>, vector<1x8x128xf32>
    %52 = vector.shape_cast %51 : vector<1x8x128xf32> to vector<8x128xf32>
    %53 = vector.broadcast %36 : vector<8x1xf32> to vector<8x128xf32>
    %54 = arith.mulf %53, %52 : vector<8x128xf32>
    %55 = arith.truncf %41 : vector<8x8xf32> to vector<8x8xbf16>
    %56 = vector.extract_strided_slice %22 {offsets = [0, 0], sizes = [8, 128], strides = [1, 1]} : vector<8x256xbf16> to vector<8x128xbf16>
    %cst_27 = arith.constant dense<0.000000e+00> : vector<8x128xf32>
    %57 = tpu.matmul %55, %56, %cst_27 {dimension_numbers = #tpu.dot_dimension_numbers<[1], [0], [0], [1], [0, 0, 1, 1], [], []>} : vector<8x8xbf16>, vector<8x128xbf16>, vector<8x128xf32> -> vector<8x128xf32>
    %58 = arith.addf %54, %57 : vector<8x128xf32>
    %c0_28 = arith.constant 0 : index
    %c0_29 = arith.constant 0 : index
    %c0_30 = arith.constant 0 : index
    %59 = vector.load %arg10[%c0_28, %c0_29, %c0_30] : memref<2x8x128xf32, #tpu.memory_space<vmem>>, vector<1x8x128xf32>
    %60 = vector.shape_cast %59 : vector<1x8x128xf32> to vector<8x128xf32>
    %61 = vector.shape_cast %58 : vector<8x128xf32> to vector<1x8x128xf32>
    tpu.vector_store %arg10[%c0_28, %c0_29, %c0_30], %61 {strides = array<i32>} : memref<2x8x128xf32, #tpu.memory_space<vmem>>, vector<1x8x128xf32>,
    %c0_31 = arith.constant 0 : index
    %c0_32 = arith.constant 0 : index
    %c0_33 = arith.constant 0 : index
    %62 = vector.load %arg8[%c0_31, %c0_32, %c0_33] : memref<2x8x1xf32, #tpu.memory_space<vmem>>, vector<1x8x1xf32>
    %63 = vector.shape_cast %62 : vector<1x8x1xf32> to vector<8x1xf32>
    %64 = vector.shape_cast %34 : vector<8x1xf32> to vector<1x8x1xf32>
    tpu.vector_store %arg8[%c0_31, %c0_32, %c0_33], %64 {strides = array<i32>} : memref<2x8x1xf32, #tpu.memory_space<vmem>>, vector<1x8x1xf32>,
    %65 = vector.extract_strided_slice %18 {offsets = [0, 128], sizes = [8, 128], strides = [1, 1]} : vector<8x256xbf16> to vector<8x128xbf16>
    %66 = vector.extract_strided_slice %20 {offsets = [0, 128], sizes = [8, 128], strides = [1, 1]} : vector<8x256xbf16> to vector<8x128xbf16>
    %cst_34 = arith.constant dense<0.000000e+00> : vector<8x8xf32>
    %67 = tpu.matmul %65, %66, %cst_34 {dimension_numbers = #tpu.dot_dimension_numbers<[1], [1], [0], [0], [0, 0, 1, 0], [], []>} : vector<8x128xbf16>, vector<8x128xbf16>, vector<8x8xf32> -> vector<8x8xf32>
    %cst_35 = arith.constant 0.0883883461 : f32
    %68 = vector.broadcast %cst_35 : f32 to vector<8x8xf32>
    %69 = arith.mulf %67, %68 : vector<8x8xf32>
    %cst_36 = arith.constant -1.000000e+30 : f32
    %70 = vector.broadcast %cst_36 : f32 to vector<8x8xf32>
    %71 = arith.select %16, %69, %70 : vector<8x8xi1>, vector<8x8xf32>
    %c1 = arith.constant 1 : index
    %c0_37 = arith.constant 0 : index
    %c0_38 = arith.constant 0 : index
    %72 = vector.load %arg8[%c1, %c0_37, %c0_38] : memref<2x8x1xf32, #tpu.memory_space<vmem>>, vector<1x8x1xf32>
    %73 = vector.shape_cast %72 : vector<1x8x1xf32> to vector<8x1xf32>
    %cst_39 = arith.constant dense<0xFF800000> : vector<8xf32>
    %74 = vector.multi_reduction <maximumf>, %71, %cst_39 [1] : vector<8x8xf32> to vector<8xf32>
    %75 = vector.shape_cast %74 : vector<8xf32> to vector<8x1xf32>
    %76 = arith.maximumf %73, %75 : vector<8x1xf32>
    %77 = arith.subf %73, %76 : vector<8x1xf32>
    %78 = math.exp %77 : vector<8x1xf32>
    %79 = vector.broadcast %76 : vector<8x1xf32> to vector<8x8xf32>
    %80 = arith.subf %71, %79 : vector<8x8xf32>
    %81 = math.exp %80 : vector<8x8xf32>
    %cst_40 = arith.constant 0.000000e+00 : f32
    %82 = vector.broadcast %cst_40 : f32 to vector<8x8xf32>
    %83 = arith.select %16, %81, %82 : vector<8x8xi1>, vector<8x8xf32>
    %c1_41 = arith.constant 1 : index
    %c0_42 = arith.constant 0 : index
    %c0_43 = arith.constant 0 : index
    %84 = vector.load %arg9[%c1_41, %c0_42, %c0_43] : memref<2x8x1xf32, #tpu.memory_space<vmem>>, vector<1x8x1xf32>
    %85 = vector.shape_cast %84 : vector<1x8x1xf32> to vector<8x1xf32>
    %86 = arith.mulf %78, %85 : vector<8x1xf32>
    %cst_44 = arith.constant dense<0.000000e+00> : vector<8xf32>
    %87 = vector.multi_reduction <add>, %83, %cst_44 [1] : vector<8x8xf32> to vector<8xf32>
    %88 = vector.shape_cast %87 : vector<8xf32> to vector<8x1xf32>
    %89 = arith.addf %86, %88 : vector<8x1xf32>
    %c1_45 = arith.constant 1 : index
    %c0_46 = arith.constant 0 : index
    %c0_47 = arith.constant 0 : index
    %90 = vector.load %arg9[%c1_45, %c0_46, %c0_47] : memref<2x8x1xf32, #tpu.memory_space<vmem>>, vector<1x8x1xf32>
    %91 = vector.shape_cast %90 : vector<1x8x1xf32> to vector<8x1xf32>
    %92 = vector.shape_cast %89 : vector<8x1xf32> to vector<1x8x1xf32>
    tpu.vector_store %arg9[%c1_45, %c0_46, %c0_47], %92 {strides = array<i32>} : memref<2x8x1xf32, #tpu.memory_space<vmem>>, vector<1x8x1xf32>,
    %c1_48 = arith.constant 1 : index
    %c0_49 = arith.constant 0 : index
    %c0_50 = arith.constant 0 : index
    %93 = vector.load %arg10[%c1_48, %c0_49, %c0_50] : memref<2x8x128xf32, #tpu.memory_space<vmem>>, vector<1x8x128xf32>
    %94 = vector.shape_cast %93 : vector<1x8x128xf32> to vector<8x128xf32>
    %95 = vector.broadcast %78 : vector<8x1xf32> to vector<8x128xf32>
    %96 = arith.mulf %95, %94 : vector<8x128xf32>
    %97 = arith.truncf %83 : vector<8x8xf32> to vector<8x8xbf16>
    %98 = vector.extract_strided_slice %22 {offsets = [0, 128], sizes = [8, 128], strides = [1, 1]} : vector<8x256xbf16> to vector<8x128xbf16>
    %cst_51 = arith.constant dense<0.000000e+00> : vector<8x128xf32>
    %99 = tpu.matmul %97, %98, %cst_51 {dimension_numbers = #tpu.dot_dimension_numbers<[1], [0], [0], [1], [0, 0, 1, 1], [], []>} : vector<8x8xbf16>, vector<8x128xbf16>, vector<8x128xf32> -> vector<8x128xf32>
    %100 = arith.addf %96, %99 : vector<8x128xf32>
    %c1_52 = arith.constant 1 : index
    %c0_53 = arith.constant 0 : index
    %c0_54 = arith.constant 0 : index
    %101 = vector.load %arg10[%c1_52, %c0_53, %c0_54] : memref<2x8x128xf32, #tpu.memory_space<vmem>>, vector<1x8x128xf32>
    %102 = vector.shape_cast %101 : vector<1x8x128xf32> to vector<8x128xf32>
    %103 = vector.shape_cast %100 : vector<8x128xf32> to vector<1x8x128xf32>
    tpu.vector_store %arg10[%c1_52, %c0_53, %c0_54], %103 {strides = array<i32>} : memref<2x8x128xf32, #tpu.memory_space<vmem>>, vector<1x8x128xf32>,
    %c1_55 = arith.constant 1 : index
    %c0_56 = arith.constant 0 : index
    %c0_57 = arith.constant 0 : index
    %104 = vector.load %arg8[%c1_55, %c0_56, %c0_57] : memref<2x8x1xf32, #tpu.memory_space<vmem>>, vector<1x8x1xf32>
    %105 = vector.shape_cast %104 : vector<1x8x1xf32> to vector<8x1xf32>
    %106 = vector.shape_cast %76 : vector<8x1xf32> to vector<1x8x1xf32>
    tpu.vector_store %arg8[%c1_55, %c0_56, %c0_57], %106 {strides = array<i32>} : memref<2x8x1xf32, #tpu.memory_space<vmem>>, vector<1x8x1xf32>,
    %c0_i32_58 = arith.constant 0 : i32
    %107 = arith.cmpi eq, %arg2, %c0_i32_58 : i32
    %108 = arith.extui %107 : i1 to i32
    %c0_i32_59 = arith.constant 0 : i32
    %109 = arith.cmpi ne, %108, %c0_i32_59 : i32
    scf.if %109 {
      %c0_60 = arith.constant 0 : index
      %c0_61 = arith.constant 0 : index
      %c0_62 = arith.constant 0 : index
      %110 = vector.load %arg9[%c0_60, %c0_61, %c0_62] : memref<2x8x1xf32, #tpu.memory_space<vmem>>, vector<1x8x1xf32>
      %111 = vector.shape_cast %110 : vector<1x8x1xf32> to vector<8x1xf32>
      %cst_63 = arith.constant 0.000000e+00 : f32
      %112 = vector.broadcast %cst_63 : f32 to vector<8x1xf32>
      %113 = arith.cmpf ogt, %111, %112 : vector<8x1xf32>
      %cst_64 = arith.constant 1.000000e-30 : f32
      %114 = vector.broadcast %cst_64 : f32 to vector<8x1xf32>
      %115 = arith.maximumf %111, %114 : vector<8x1xf32>
      %116 = tpu.reciprocal %115 {approx = true} : vector<8x1xf32> -> vector<8x1xf32>
      %cst_65 = arith.constant 0.000000e+00 : f32
      %117 = vector.broadcast %cst_65 : f32 to vector<8x1xf32>
      %118 = arith.select %113, %116, %117 : vector<8x1xi1>, vector<8x1xf32>
      %c0_66 = arith.constant 0 : index
      %c0_67 = arith.constant 0 : index
      %c0_68 = arith.constant 0 : index
      %119 = vector.load %arg10[%c0_66, %c0_67, %c0_68] : memref<2x8x128xf32, #tpu.memory_space<vmem>>, vector<1x8x128xf32>
      %120 = vector.shape_cast %119 : vector<1x8x128xf32> to vector<8x128xf32>
      %121 = vector.broadcast %118 : vector<8x1xf32> to vector<8x128xf32>
      %122 = arith.mulf %120, %121 : vector<8x128xf32>
      %123 = arith.truncf %122 : vector<8x128xf32> to vector<8x128xbf16>
      %c1_69 = arith.constant 1 : index
      %c0_70 = arith.constant 0 : index
      %c0_71 = arith.constant 0 : index
      %124 = vector.load %arg9[%c1_69, %c0_70, %c0_71] : memref<2x8x1xf32, #tpu.memory_space<vmem>>, vector<1x8x1xf32>
      %125 = vector.shape_cast %124 : vector<1x8x1xf32> to vector<8x1xf32>
      %cst_72 = arith.constant 0.000000e+00 : f32
      %126 = vector.broadcast %cst_72 : f32 to vector<8x1xf32>
      %127 = arith.cmpf ogt, %125, %126 : vector<8x1xf32>
      %cst_73 = arith.constant 1.000000e-30 : f32
      %128 = vector.broadcast %cst_73 : f32 to vector<8x1xf32>
      %129 = arith.maximumf %125, %128 : vector<8x1xf32>
      %130 = tpu.reciprocal %129 {approx = true} : vector<8x1xf32> -> vector<8x1xf32>
      %cst_74 = arith.constant 0.000000e+00 : f32
      %131 = vector.broadcast %cst_74 : f32 to vector<8x1xf32>
      %132 = arith.select %127, %130, %131 : vector<8x1xi1>, vector<8x1xf32>
      %c1_75 = arith.constant 1 : index
      %c0_76 = arith.constant 0 : index
      %c0_77 = arith.constant 0 : index
      %133 = vector.load %arg10[%c1_75, %c0_76, %c0_77] : memref<2x8x128xf32, #tpu.memory_space<vmem>>, vector<1x8x128xf32>
      %134 = vector.shape_cast %133 : vector<1x8x128xf32> to vector<8x128xf32>
      %135 = vector.broadcast %132 : vector<8x1xf32> to vector<8x128xf32>
      %136 = arith.mulf %134, %135 : vector<8x128xf32>
      %137 = arith.truncf %136 : vector<8x128xf32> to vector<8x128xbf16>
      %138 = tpu.concatenate %123, %137 in 1 : vector<8x128xbf16>, vector<8x128xbf16> -> vector<8x256xbf16>
      %c0_78 = arith.constant 0 : index
      %c0_79 = arith.constant 0 : index
      %c0_80 = arith.constant 0 : index
      %139 = vector.load %arg7[%c0_78, %c0_79, %c0_80] : memref<1x8x256xbf16, #tpu.memory_space<vmem>>, vector<1x8x256xbf16>
      %140 = vector.shape_cast %139 : vector<1x8x256xbf16> to vector<8x256xbf16>
      %141 = vector.shape_cast %138 : vector<8x256xbf16> to vector<1x8x256xbf16>
      tpu.vector_store %arg7[%c0_78, %c0_79, %c0_80], %141 {strides = array<i32>} : memref<1x8x256xbf16, #tpu.memory_space<vmem>>, vector<1x8x256xbf16>,
    } else {
    }
    return
  }
  func.func @transform_0(%arg0: i32, %arg1: i32, %arg2: i32, %arg3: memref<2xi32, #tpu.memory_space<smem>>) -> (i32, i32, i32) {
    %c0_i32 = arith.constant 0 : i32
    %c0_i32_0 = arith.constant 0 : i32
    return %arg0, %arg1, %c0_i32 : i32, i32, i32
  }
  func.func @transform_1(%arg0: i32, %arg1: i32, %arg2: i32, %arg3: memref<2xi32, #tpu.memory_space<smem>>) -> (i32, i32, i32) {
    %c1_i32 = arith.constant 1 : i32
    %c0_i32 = arith.constant 0 : i32
    return %arg0, %arg2, %c1_i32 : i32, i32, i32
  }
  func.func @transform_2(%arg0: i32, %arg1: i32, %arg2: i32, %arg3: memref<2xi32, #tpu.memory_space<smem>>) -> (i32, i32, i32) {
    %c2_i32 = arith.constant 2 : i32
    %c0_i32 = arith.constant 0 : i32
    return %arg0, %arg2, %c2_i32 : i32, i32, i32
  }
  func.func @transform_3(%arg0: i32, %arg1: i32, %arg2: i32, %arg3: memref<2xi32, #tpu.memory_space<smem>>) -> (i32, i32, i32) {
    %c0_i32 = arith.constant 0 : i32
    %c0_i32_0 = arith.constant 0 : i32
    return %arg0, %arg1, %c0_i32 : i32, i32, i32
  }
}

module attributes {stable_mosaic.version = 11 : i64} {
  func.func @_matmul_kernel(%arg0: i32, %arg1: i32, %arg2: i32, %arg3: memref<16x256xbf16, #tpu.memory_space<vmem>>, %arg4: memref<256x256xbf16, #tpu.memory_space<vmem>>, %arg5: memref<1x256xf32, #tpu.memory_space<vmem>>, %arg6: memref<16x256xbf16, #tpu.memory_space<vmem>>, %arg7: memref<16x256xbf16, #tpu.memory_space<vmem>>, %arg8: memref<16x256xf32, #tpu.memory_space<vmem>>) attributes {dimension_semantics = [#tpu.dimension_semantics<parallel>, #tpu.dimension_semantics<parallel>, #tpu.dimension_semantics<arbitrary>], iteration_bounds = array<i64: 1, 1, 1>, scalar_prefetch = 0 : i64, scratch_operands = 1 : i64, tpu.core_type = #tpu.core_type<tc>, window_params = [{transform_indices = @transform_0, window_bounds = array<i64: 16, 256>}, {transform_indices = @transform_1, window_bounds = array<i64: 256, 256>}, {transform_indices = @transform_2, window_bounds = array<i64: 1, 256>}, {transform_indices = @transform_3, window_bounds = array<i64: 16, 256>}, {transform_indices = @transform_4, window_bounds = array<i64: 16, 256>}]} {
    %c0_i32 = arith.constant 0 : i32
    %0 = arith.cmpi eq, %arg2, %c0_i32 : i32
    %1 = arith.extui %0 : i1 to i32
    %c0_i32_0 = arith.constant 0 : i32
    %2 = arith.cmpi ne, %1, %c0_i32_0 : i32
    scf.if %2 {
      %cst_10 = arith.constant 0.000000e+00 : f32
      %12 = vector.broadcast %cst_10 : f32 to vector<16x256xf32>
      %c0_11 = arith.constant 0 : index
      %c0_12 = arith.constant 0 : index
      %13 = vector.load %arg8[%c0_11, %c0_12] : memref<16x256xf32, #tpu.memory_space<vmem>>, vector<16x256xf32>
      tpu.vector_store %arg8[%c0_11, %c0_12], %12 {strides = array<i32>} : memref<16x256xf32, #tpu.memory_space<vmem>>, vector<16x256xf32>,
    } else {
    }
    %c0 = arith.constant 0 : index
    %c0_1 = arith.constant 0 : index
    %3 = vector.load %arg8[%c0, %c0_1] : memref<16x256xf32, #tpu.memory_space<vmem>>, vector<16x256xf32>
    %c0_2 = arith.constant 0 : index
    %c0_3 = arith.constant 0 : index
    %4 = vector.load %arg3[%c0_2, %c0_3] : memref<16x256xbf16, #tpu.memory_space<vmem>>, vector<16x256xbf16>
    %c0_4 = arith.constant 0 : index
    %c0_5 = arith.constant 0 : index
    %5 = vector.load %arg4[%c0_4, %c0_5] : memref<256x256xbf16, #tpu.memory_space<vmem>>, vector<256x256xbf16>
    %cst = arith.constant dense<0.000000e+00> : vector<16x256xf32>
    %6 = tpu.matmul %4, %5, %cst {dimension_numbers = #tpu.dot_dimension_numbers<[1], [0], [0], [1], [0, 0, 1, 1], [], []>} : vector<16x256xbf16>, vector<256x256xbf16>, vector<16x256xf32> -> vector<16x256xf32>
    %7 = arith.addf %3, %6 : vector<16x256xf32>
    %c0_6 = arith.constant 0 : index
    %c0_7 = arith.constant 0 : index
    %8 = vector.load %arg8[%c0_6, %c0_7] : memref<16x256xf32, #tpu.memory_space<vmem>>, vector<16x256xf32>
    tpu.vector_store %arg8[%c0_6, %c0_7], %7 {strides = array<i32>} : memref<16x256xf32, #tpu.memory_space<vmem>>, vector<16x256xf32>,
    %c0_i32_8 = arith.constant 0 : i32
    %9 = arith.cmpi eq, %arg2, %c0_i32_8 : i32
    %10 = arith.extui %9 : i1 to i32
    %c0_i32_9 = arith.constant 0 : i32
    %11 = arith.cmpi ne, %10, %c0_i32_9 : i32
    scf.if %11 {
      %c0_10 = arith.constant 0 : index
      %c0_11 = arith.constant 0 : index
      %12 = vector.load %arg8[%c0_10, %c0_11] : memref<16x256xf32, #tpu.memory_space<vmem>>, vector<16x256xf32>
      %c0_12 = arith.constant 0 : index
      %c0_13 = arith.constant 0 : index
      %13 = vector.load %arg5[%c0_12, %c0_13] : memref<1x256xf32, #tpu.memory_space<vmem>>, vector<1x256xf32>
      %14 = vector.broadcast %13 : vector<1x256xf32> to vector<16x256xf32>
      %15 = arith.addf %12, %14 : vector<16x256xf32>
      %c0_14 = arith.constant 0 : index
      %c0_15 = arith.constant 0 : index
      %16 = vector.load %arg6[%c0_14, %c0_15] : memref<16x256xbf16, #tpu.memory_space<vmem>>, vector<16x256xbf16>
      %17 = arith.extf %16 : vector<16x256xbf16> to vector<16x256xf32>
      %18 = arith.addf %15, %17 : vector<16x256xf32>
      %19 = arith.truncf %18 : vector<16x256xf32> to vector<16x256xbf16>
      %c0_16 = arith.constant 0 : index
      %c0_17 = arith.constant 0 : index
      %20 = vector.load %arg7[%c0_16, %c0_17] : memref<16x256xbf16, #tpu.memory_space<vmem>>, vector<16x256xbf16>
      tpu.vector_store %arg7[%c0_16, %c0_17], %19 {strides = array<i32>} : memref<16x256xbf16, #tpu.memory_space<vmem>>, vector<16x256xbf16>,
    } else {
    }
    return
  }
  func.func @transform_0(%arg0: i32, %arg1: i32, %arg2: i32) -> (i32, i32) {
    %c0_i32 = arith.constant 0 : i32
    return %arg0, %arg2 : i32, i32
  }
  func.func @transform_1(%arg0: i32, %arg1: i32, %arg2: i32) -> (i32, i32) {
    %c0_i32 = arith.constant 0 : i32
    return %arg2, %arg1 : i32, i32
  }
  func.func @transform_2(%arg0: i32, %arg1: i32, %arg2: i32) -> (i32, i32) {
    %c0_i32 = arith.constant 0 : i32
    %c0_i32_0 = arith.constant 0 : i32
    return %c0_i32, %arg1 : i32, i32
  }
  func.func @transform_3(%arg0: i32, %arg1: i32, %arg2: i32) -> (i32, i32) {
    %c0_i32 = arith.constant 0 : i32
    return %arg0, %arg1 : i32, i32
  }
  func.func @transform_4(%arg0: i32, %arg1: i32, %arg2: i32) -> (i32, i32) {
    %c0_i32 = arith.constant 0 : i32
    return %arg0, %arg1 : i32, i32
  }
}

module attributes {stable_mosaic.version = 11 : i64} {
  func.func @_ln_matmul_kernel(%arg0: i32, %arg1: memref<16x256xbf16, #tpu.memory_space<vmem>>, %arg2: memref<1x256xf32, #tpu.memory_space<vmem>>, %arg3: memref<1x256xf32, #tpu.memory_space<vmem>>, %arg4: memref<256x256xbf16, #tpu.memory_space<vmem>>, %arg5: memref<1x256xf32, #tpu.memory_space<vmem>>, %arg6: memref<16x256xbf16, #tpu.memory_space<vmem>>) attributes {dimension_semantics = [#tpu.dimension_semantics<parallel>], iteration_bounds = array<i64: 1>, scalar_prefetch = 0 : i64, scratch_operands = 0 : i64, tpu.core_type = #tpu.core_type<tc>, window_params = [{transform_indices = @transform_0, window_bounds = array<i64: 16, 256>}, {pipeline_mode = #tpu.pipeline_mode<synchronous>, transform_indices = @transform_1, window_bounds = array<i64: 1, 256>}, {pipeline_mode = #tpu.pipeline_mode<synchronous>, transform_indices = @transform_2, window_bounds = array<i64: 1, 256>}, {pipeline_mode = #tpu.pipeline_mode<synchronous>, transform_indices = @transform_3, window_bounds = array<i64: 256, 256>}, {pipeline_mode = #tpu.pipeline_mode<synchronous>, transform_indices = @transform_4, window_bounds = array<i64: 1, 256>}, {transform_indices = @transform_5, window_bounds = array<i64: 16, 256>}]} {
    %c0 = arith.constant 0 : index
    %c0_0 = arith.constant 0 : index
    %0 = vector.load %arg1[%c0, %c0_0] : memref<16x256xbf16, #tpu.memory_space<vmem>>, vector<16x256xbf16>
    %1 = arith.extf %0 : vector<16x256xbf16> to vector<16x256xf32>
    %c0_1 = arith.constant 0 : index
    %c0_2 = arith.constant 0 : index
    %2 = vector.load %arg2[%c0_1, %c0_2] : memref<1x256xf32, #tpu.memory_space<vmem>>, vector<1x256xf32>
    %c0_3 = arith.constant 0 : index
    %c0_4 = arith.constant 0 : index
    %3 = vector.load %arg3[%c0_3, %c0_4] : memref<1x256xf32, #tpu.memory_space<vmem>>, vector<1x256xf32>
    %cst = arith.constant dense<0.000000e+00> : vector<16xf32>
    %4 = vector.multi_reduction <add>, %1, %cst [1] : vector<16x256xf32> to vector<16xf32>
    %5 = vector.shape_cast %4 : vector<16xf32> to vector<16x1xf32>
    %cst_5 = arith.constant 2.560000e+02 : f32
    %6 = vector.broadcast %cst_5 : f32 to vector<16x1xf32>
    %7 = arith.divf %5, %6 : vector<16x1xf32>
    %8 = vector.broadcast %7 : vector<16x1xf32> to vector<16x256xf32>
    %9 = arith.subf %1, %8 : vector<16x256xf32>
    %10 = arith.mulf %9, %9 : vector<16x256xf32>
    %cst_6 = arith.constant dense<0.000000e+00> : vector<16xf32>
    %11 = vector.multi_reduction <add>, %10, %cst_6 [1] : vector<16x256xf32> to vector<16xf32>
    %12 = vector.shape_cast %11 : vector<16xf32> to vector<16x1xf32>
    %cst_7 = arith.constant 2.560000e+02 : f32
    %13 = vector.broadcast %cst_7 : f32 to vector<16x1xf32>
    %14 = arith.divf %12, %13 : vector<16x1xf32>
    %15 = vector.broadcast %7 : vector<16x1xf32> to vector<16x256xf32>
    %16 = arith.subf %1, %15 : vector<16x256xf32>
    %cst_8 = arith.constant 9.99999974E-6 : f32
    %17 = vector.broadcast %cst_8 : f32 to vector<16x1xf32>
    %18 = arith.addf %14, %17 : vector<16x1xf32>
    %19 = math.rsqrt %18 : vector<16x1xf32>
    %20 = vector.broadcast %19 : vector<16x1xf32> to vector<16x256xf32>
    %21 = arith.mulf %16, %20 : vector<16x256xf32>
    %22 = vector.broadcast %2 : vector<1x256xf32> to vector<16x256xf32>
    %23 = arith.mulf %21, %22 : vector<16x256xf32>
    %24 = vector.broadcast %3 : vector<1x256xf32> to vector<16x256xf32>
    %25 = arith.addf %23, %24 : vector<16x256xf32>
    %26 = arith.truncf %25 : vector<16x256xf32> to vector<16x256xbf16>
    %c0_9 = arith.constant 0 : index
    %c0_10 = arith.constant 0 : index
    %27 = vector.load %arg4[%c0_9, %c0_10] : memref<256x256xbf16, #tpu.memory_space<vmem>>, vector<256x256xbf16>
    %cst_11 = arith.constant dense<0.000000e+00> : vector<16x256xf32>
    %28 = tpu.matmul %26, %27, %cst_11 {dimension_numbers = #tpu.dot_dimension_numbers<[1], [0], [0], [1], [0, 0, 1, 1], [], []>} : vector<16x256xbf16>, vector<256x256xbf16>, vector<16x256xf32> -> vector<16x256xf32>
    %c0_12 = arith.constant 0 : index
    %c0_13 = arith.constant 0 : index
    %29 = vector.load %arg5[%c0_12, %c0_13] : memref<1x256xf32, #tpu.memory_space<vmem>>, vector<1x256xf32>
    %30 = vector.broadcast %29 : vector<1x256xf32> to vector<16x256xf32>
    %31 = arith.addf %28, %30 : vector<16x256xf32>
    %32 = arith.truncf %31 : vector<16x256xf32> to vector<16x256xbf16>
    %c0_14 = arith.constant 0 : index
    %c0_15 = arith.constant 0 : index
    %33 = vector.load %arg6[%c0_14, %c0_15] : memref<16x256xbf16, #tpu.memory_space<vmem>>, vector<16x256xbf16>
    tpu.vector_store %arg6[%c0_14, %c0_15], %32 {strides = array<i32>} : memref<16x256xbf16, #tpu.memory_space<vmem>>, vector<16x256xbf16>,
    return
  }
  func.func @transform_0(%arg0: i32) -> (i32, i32) {
    %c0_i32 = arith.constant 0 : i32
    %c0_i32_0 = arith.constant 0 : i32
    return %arg0, %c0_i32 : i32, i32
  }
  func.func @transform_1(%arg0: i32) -> (i32, i32) {
    %c0_i32 = arith.constant 0 : i32
    %c0_i32_0 = arith.constant 0 : i32
    %c0_i32_1 = arith.constant 0 : i32
    return %c0_i32, %c0_i32_0 : i32, i32
  }
  func.func @transform_2(%arg0: i32) -> (i32, i32) {
    %c0_i32 = arith.constant 0 : i32
    %c0_i32_0 = arith.constant 0 : i32
    %c0_i32_1 = arith.constant 0 : i32
    return %c0_i32, %c0_i32_0 : i32, i32
  }
  func.func @transform_3(%arg0: i32) -> (i32, i32) {
    %c0_i32 = arith.constant 0 : i32
    %c0_i32_0 = arith.constant 0 : i32
    %c0_i32_1 = arith.constant 0 : i32
    return %c0_i32, %c0_i32_0 : i32, i32
  }
  func.func @transform_4(%arg0: i32) -> (i32, i32) {
    %c0_i32 = arith.constant 0 : i32
    %c0_i32_0 = arith.constant 0 : i32
    %c0_i32_1 = arith.constant 0 : i32
    return %c0_i32, %c0_i32_0 : i32, i32
  }
  func.func @transform_5(%arg0: i32) -> (i32, i32) {
    %c0_i32 = arith.constant 0 : i32
    %c0_i32_0 = arith.constant 0 : i32
    return %arg0, %c0_i32 : i32, i32
  }
}

module attributes {stable_mosaic.version = 11 : i64} {
  func.func @_ffn_kernel(%arg0: i32, %arg1: memref<16x256xbf16, #tpu.memory_space<vmem>>, %arg2: memref<1x256xf32, #tpu.memory_space<vmem>>, %arg3: memref<1x256xf32, #tpu.memory_space<vmem>>, %arg4: memref<256x512xbf16, #tpu.memory_space<vmem>>, %arg5: memref<1x512xf32, #tpu.memory_space<vmem>>, %arg6: memref<512x256xbf16, #tpu.memory_space<vmem>>, %arg7: memref<1x256xf32, #tpu.memory_space<vmem>>, %arg8: memref<16x256xbf16, #tpu.memory_space<vmem>>) attributes {dimension_semantics = [#tpu.dimension_semantics<parallel>], iteration_bounds = array<i64: 1>, scalar_prefetch = 0 : i64, scratch_operands = 0 : i64, tpu.core_type = #tpu.core_type<tc>, window_params = [{transform_indices = @transform_0, window_bounds = array<i64: 16, 256>}, {pipeline_mode = #tpu.pipeline_mode<synchronous>, transform_indices = @transform_1, window_bounds = array<i64: 1, 256>}, {pipeline_mode = #tpu.pipeline_mode<synchronous>, transform_indices = @transform_2, window_bounds = array<i64: 1, 256>}, {pipeline_mode = #tpu.pipeline_mode<synchronous>, transform_indices = @transform_3, window_bounds = array<i64: 256, 512>}, {pipeline_mode = #tpu.pipeline_mode<synchronous>, transform_indices = @transform_4, window_bounds = array<i64: 1, 512>}, {pipeline_mode = #tpu.pipeline_mode<synchronous>, transform_indices = @transform_5, window_bounds = array<i64: 512, 256>}, {pipeline_mode = #tpu.pipeline_mode<synchronous>, transform_indices = @transform_6, window_bounds = array<i64: 1, 256>}, {transform_indices = @transform_7, window_bounds = array<i64: 16, 256>}]} {
    %c0 = arith.constant 0 : index
    %c0_0 = arith.constant 0 : index
    %0 = vector.load %arg1[%c0, %c0_0] : memref<16x256xbf16, #tpu.memory_space<vmem>>, vector<16x256xbf16>
    %1 = arith.extf %0 : vector<16x256xbf16> to vector<16x256xf32>
    %c0_1 = arith.constant 0 : index
    %c0_2 = arith.constant 0 : index
    %2 = vector.load %arg2[%c0_1, %c0_2] : memref<1x256xf32, #tpu.memory_space<vmem>>, vector<1x256xf32>
    %c0_3 = arith.constant 0 : index
    %c0_4 = arith.constant 0 : index
    %3 = vector.load %arg3[%c0_3, %c0_4] : memref<1x256xf32, #tpu.memory_space<vmem>>, vector<1x256xf32>
    %cst = arith.constant dense<0.000000e+00> : vector<16xf32>
    %4 = vector.multi_reduction <add>, %1, %cst [1] : vector<16x256xf32> to vector<16xf32>
    %5 = vector.shape_cast %4 : vector<16xf32> to vector<16x1xf32>
    %cst_5 = arith.constant 2.560000e+02 : f32
    %6 = vector.broadcast %cst_5 : f32 to vector<16x1xf32>
    %7 = arith.divf %5, %6 : vector<16x1xf32>
    %8 = vector.broadcast %7 : vector<16x1xf32> to vector<16x256xf32>
    %9 = arith.subf %1, %8 : vector<16x256xf32>
    %10 = arith.mulf %9, %9 : vector<16x256xf32>
    %cst_6 = arith.constant dense<0.000000e+00> : vector<16xf32>
    %11 = vector.multi_reduction <add>, %10, %cst_6 [1] : vector<16x256xf32> to vector<16xf32>
    %12 = vector.shape_cast %11 : vector<16xf32> to vector<16x1xf32>
    %cst_7 = arith.constant 2.560000e+02 : f32
    %13 = vector.broadcast %cst_7 : f32 to vector<16x1xf32>
    %14 = arith.divf %12, %13 : vector<16x1xf32>
    %15 = vector.broadcast %7 : vector<16x1xf32> to vector<16x256xf32>
    %16 = arith.subf %1, %15 : vector<16x256xf32>
    %cst_8 = arith.constant 9.99999974E-6 : f32
    %17 = vector.broadcast %cst_8 : f32 to vector<16x1xf32>
    %18 = arith.addf %14, %17 : vector<16x1xf32>
    %19 = math.rsqrt %18 : vector<16x1xf32>
    %20 = vector.broadcast %19 : vector<16x1xf32> to vector<16x256xf32>
    %21 = arith.mulf %16, %20 : vector<16x256xf32>
    %22 = vector.broadcast %2 : vector<1x256xf32> to vector<16x256xf32>
    %23 = arith.mulf %21, %22 : vector<16x256xf32>
    %24 = vector.broadcast %3 : vector<1x256xf32> to vector<16x256xf32>
    %25 = arith.addf %23, %24 : vector<16x256xf32>
    %26 = arith.truncf %25 : vector<16x256xf32> to vector<16x256xbf16>
    %cst_9 = arith.constant 0.000000e+00 : f32
    %27 = vector.broadcast %cst_9 : f32 to vector<16x256xf32>
    %c0_10 = arith.constant 0 : index
    %c0_11 = arith.constant 0 : index
    %28 = vector.load %arg4[%c0_10, %c0_11] : memref<256x512xbf16, #tpu.memory_space<vmem>>, vector<256x512xbf16>
    %cst_12 = arith.constant dense<0.000000e+00> : vector<16x512xf32>
    %29 = tpu.matmul %26, %28, %cst_12 {dimension_numbers = #tpu.dot_dimension_numbers<[1], [0], [0], [1], [0, 0, 1, 1], [], []>} : vector<16x256xbf16>, vector<256x512xbf16>, vector<16x512xf32> -> vector<16x512xf32>
    %c0_13 = arith.constant 0 : index
    %c0_14 = arith.constant 0 : index
    %30 = vector.load %arg5[%c0_13, %c0_14] : memref<1x512xf32, #tpu.memory_space<vmem>>, vector<1x512xf32>
    %31 = vector.broadcast %30 : vector<1x512xf32> to vector<16x512xf32>
    %32 = arith.addf %29, %31 : vector<16x512xf32>
    %33 = arith.negf %32 : vector<16x512xf32>
    %34 = math.exp %33 : vector<16x512xf32>
    %cst_15 = arith.constant 1.000000e+00 : f32
    %35 = vector.broadcast %cst_15 : f32 to vector<16x512xf32>
    %36 = arith.addf %35, %34 : vector<16x512xf32>
    %37 = arith.divf %35, %36 : vector<16x512xf32>
    %38 = arith.mulf %32, %37 : vector<16x512xf32>
    %39 = arith.truncf %38 : vector<16x512xf32> to vector<16x512xbf16>
    %c0_16 = arith.constant 0 : index
    %c0_17 = arith.constant 0 : index
    %40 = vector.load %arg6[%c0_16, %c0_17] : memref<512x256xbf16, #tpu.memory_space<vmem>>, vector<512x256xbf16>
    %cst_18 = arith.constant dense<0.000000e+00> : vector<16x256xf32>
    %41 = tpu.matmul %39, %40, %cst_18 {dimension_numbers = #tpu.dot_dimension_numbers<[1], [0], [0], [1], [0, 0, 1, 1], [], []>} : vector<16x512xbf16>, vector<512x256xbf16>, vector<16x256xf32> -> vector<16x256xf32>
    %42 = arith.addf %27, %41 : vector<16x256xf32>
    %c0_19 = arith.constant 0 : index
    %c0_20 = arith.constant 0 : index
    %43 = vector.load %arg7[%c0_19, %c0_20] : memref<1x256xf32, #tpu.memory_space<vmem>>, vector<1x256xf32>
    %44 = vector.broadcast %43 : vector<1x256xf32> to vector<16x256xf32>
    %45 = arith.addf %42, %44 : vector<16x256xf32>
    %cst_21 = arith.constant 5.000000e-01 : f32
    %46 = vector.broadcast %cst_21 : f32 to vector<16x256xf32>
    %47 = arith.mulf %46, %45 : vector<16x256xf32>
    %48 = arith.addf %1, %47 : vector<16x256xf32>
    %49 = arith.truncf %48 : vector<16x256xf32> to vector<16x256xbf16>
    %c0_22 = arith.constant 0 : index
    %c0_23 = arith.constant 0 : index
    %50 = vector.load %arg8[%c0_22, %c0_23] : memref<16x256xbf16, #tpu.memory_space<vmem>>, vector<16x256xbf16>
    tpu.vector_store %arg8[%c0_22, %c0_23], %49 {strides = array<i32>} : memref<16x256xbf16, #tpu.memory_space<vmem>>, vector<16x256xbf16>,
    return
  }
  func.func @transform_0(%arg0: i32) -> (i32, i32) {
    %c0_i32 = arith.constant 0 : i32
    %c0_i32_0 = arith.constant 0 : i32
    return %arg0, %c0_i32 : i32, i32
  }
  func.func @transform_1(%arg0: i32) -> (i32, i32) {
    %c0_i32 = arith.constant 0 : i32
    %c0_i32_0 = arith.constant 0 : i32
    %c0_i32_1 = arith.constant 0 : i32
    return %c0_i32, %c0_i32_0 : i32, i32
  }
  func.func @transform_2(%arg0: i32) -> (i32, i32) {
    %c0_i32 = arith.constant 0 : i32
    %c0_i32_0 = arith.constant 0 : i32
    %c0_i32_1 = arith.constant 0 : i32
    return %c0_i32, %c0_i32_0 : i32, i32
  }
  func.func @transform_3(%arg0: i32) -> (i32, i32) {
    %c0_i32 = arith.constant 0 : i32
    %c0_i32_0 = arith.constant 0 : i32
    %c0_i32_1 = arith.constant 0 : i32
    return %c0_i32, %c0_i32_0 : i32, i32
  }
  func.func @transform_4(%arg0: i32) -> (i32, i32) {
    %c0_i32 = arith.constant 0 : i32
    %c0_i32_0 = arith.constant 0 : i32
    %c0_i32_1 = arith.constant 0 : i32
    return %c0_i32, %c0_i32_0 : i32, i32
  }
  func.func @transform_5(%arg0: i32) -> (i32, i32) {
    %c0_i32 = arith.constant 0 : i32
    %c0_i32_0 = arith.constant 0 : i32
    %c0_i32_1 = arith.constant 0 : i32
    return %c0_i32, %c0_i32_0 : i32, i32
  }
  func.func @transform_6(%arg0: i32) -> (i32, i32) {
    %c0_i32 = arith.constant 0 : i32
    %c0_i32_0 = arith.constant 0 : i32
    %c0_i32_1 = arith.constant 0 : i32
    return %c0_i32, %c0_i32_0 : i32, i32
  }
  func.func @transform_7(%arg0: i32) -> (i32, i32) {
    %c0_i32 = arith.constant 0 : i32
    %c0_i32_0 = arith.constant 0 : i32
    return %arg0, %c0_i32 : i32, i32
  }
}

module attributes {stable_mosaic.version = 11 : i64} {
  func.func @_flash_attn_kernel(%arg0: i32, %arg1: i32, %arg2: i32, %arg3: memref<2xi32, #tpu.memory_space<smem>>, %arg4: memref<1x8x256xbf16, #tpu.memory_space<vmem>>, %arg5: memref<1x8x256xbf16, #tpu.memory_space<vmem>>, %arg6: memref<1x8x256xbf16, #tpu.memory_space<vmem>>, %arg7: memref<1x8x256xbf16, #tpu.memory_space<vmem>>, %arg8: memref<2x8x1xf32, #tpu.memory_space<vmem>>, %arg9: memref<2x8x1xf32, #tpu.memory_space<vmem>>, %arg10: memref<2x8x128xf32, #tpu.memory_space<vmem>>) attributes {dimension_semantics = [#tpu.dimension_semantics<parallel>, #tpu.dimension_semantics<parallel>, #tpu.dimension_semantics<arbitrary>], iteration_bounds = array<i64: 2, 1, 1>, scalar_prefetch = 1 : i64, scratch_operands = 3 : i64, tpu.core_type = #tpu.core_type<tc>, window_params = [{transform_indices = @transform_0, window_bounds = array<i64: 1, 8, 256>}, {transform_indices = @transform_1, window_bounds = array<i64: 1, 8, 256>}, {transform_indices = @transform_2, window_bounds = array<i64: 1, 8, 256>}, {transform_indices = @transform_3, window_bounds = array<i64: 1, 8, 256>}]} {
    %c0_i32 = arith.constant 0 : i32
    %0 = arith.cmpi eq, %arg2, %c0_i32 : i32
    %1 = arith.extui %0 : i1 to i32
    %c0_i32_0 = arith.constant 0 : i32
    %2 = arith.cmpi ne, %1, %c0_i32_0 : i32
    scf.if %2 {
      %cst_59 = arith.constant 0xFF800000 : f32
      %104 = vector.broadcast %cst_59 : f32 to vector<2x8x1xf32>
      %c0_60 = arith.constant 0 : index
      %c0_61 = arith.constant 0 : index
      %c0_62 = arith.constant 0 : index
      %105 = vector.load %arg8[%c0_60, %c0_61, %c0_62] : memref<2x8x1xf32, #tpu.memory_space<vmem>>, vector<2x8x1xf32>
      tpu.vector_store %arg8[%c0_60, %c0_61, %c0_62], %104 {strides = array<i32>} : memref<2x8x1xf32, #tpu.memory_space<vmem>>, vector<2x8x1xf32>,
      %cst_63 = arith.constant 0.000000e+00 : f32
      %106 = vector.broadcast %cst_63 : f32 to vector<2x8x1xf32>
      %c0_64 = arith.constant 0 : index
      %c0_65 = arith.constant 0 : index
      %c0_66 = arith.constant 0 : index
      %107 = vector.load %arg9[%c0_64, %c0_65, %c0_66] : memref<2x8x1xf32, #tpu.memory_space<vmem>>, vector<2x8x1xf32>
      tpu.vector_store %arg9[%c0_64, %c0_65, %c0_66], %106 {strides = array<i32>} : memref<2x8x1xf32, #tpu.memory_space<vmem>>, vector<2x8x1xf32>,
      %cst_67 = arith.constant 0.000000e+00 : f32
      %108 = vector.broadcast %cst_67 : f32 to vector<2x8x128xf32>
      %c0_68 = arith.constant 0 : index
      %c0_69 = arith.constant 0 : index
      %c0_70 = arith.constant 0 : index
      %109 = vector.load %arg10[%c0_68, %c0_69, %c0_70] : memref<2x8x128xf32, #tpu.memory_space<vmem>>, vector<2x8x128xf32>
      tpu.vector_store %arg10[%c0_68, %c0_69, %c0_70], %108 {strides = array<i32>} : memref<2x8x128xf32, #tpu.memory_space<vmem>>, vector<2x8x128xf32>,
    } else {
    }
    %3 = arith.index_cast %arg0 : i32 to index
    %4 = memref.load %arg3[%3] : memref<2xi32, #tpu.memory_space<smem>>
    %c8_i32 = arith.constant 8 : i32
    %5 = arith.muli %arg2, %c8_i32 : i32
    %6 = tpu.iota {dimensions = array<i32: 1>} : vector<8x8xi32>
    %7 = vector.broadcast %5 : i32 to vector<8x8xi32>
    %8 = arith.addi %7, %6 : vector<8x8xi32>
    %9 = vector.broadcast %4 : i32 to vector<8x8xi32>
    %10 = arith.cmpi slt, %8, %9 : vector<8x8xi32>
    %c0 = arith.constant 0 : index
    %c0_1 = arith.constant 0 : index
    %c0_2 = arith.constant 0 : index
    %11 = vector.load %arg4[%c0, %c0_1, %c0_2] : memref<1x8x256xbf16, #tpu.memory_space<vmem>>, vector<1x8x256xbf16>
    %12 = vector.shape_cast %11 : vector<1x8x256xbf16> to vector<8x256xbf16>
    %c0_3 = arith.constant 0 : index
    %c0_4 = arith.constant 0 : index
    %c0_5 = arith.constant 0 : index
    %13 = vector.load %arg5[%c0_3, %c0_4, %c0_5] : memref<1x8x256xbf16, #tpu.memory_space<vmem>>, vector<1x8x256xbf16>
    %14 = vector.shape_cast %13 : vector<1x8x256xbf16> to vector<8x256xbf16>
    %c0_6 = arith.constant 0 : index
    %c0_7 = arith.constant 0 : index
    %c0_8 = arith.constant 0 : index
    %15 = vector.load %arg6[%c0_6, %c0_7, %c0_8] : memref<1x8x256xbf16, #tpu.memory_space<vmem>>, vector<1x8x256xbf16>
    %16 = vector.shape_cast %15 : vector<1x8x256xbf16> to vector<8x256xbf16>
    %17 = vector.extract_strided_slice %12 {offsets = [0, 0], sizes = [8, 128], strides = [1, 1]} : vector<8x256xbf16> to vector<8x128xbf16>
    %18 = vector.extract_strided_slice %14 {offsets = [0, 0], sizes = [8, 128], strides = [1, 1]} : vector<8x256xbf16> to vector<8x128xbf16>
    %cst = arith.constant dense<0.000000e+00> : vector<8x8xf32>
    %19 = tpu.matmul %17, %18, %cst {dimension_numbers = #tpu.dot_dimension_numbers<[1], [1], [0], [0], [0, 0, 1, 0], [], []>} : vector<8x128xbf16>, vector<8x128xbf16>, vector<8x8xf32> -> vector<8x8xf32>
    %cst_9 = arith.constant 0.0883883461 : f32
    %20 = vector.broadcast %cst_9 : f32 to vector<8x8xf32>
    %21 = arith.mulf %19, %20 : vector<8x8xf32>
    %cst_10 = arith.constant -1.000000e+30 : f32
    %22 = vector.broadcast %cst_10 : f32 to vector<8x8xf32>
    %23 = arith.select %10, %21, %22 : vector<8x8xi1>, vector<8x8xf32>
    %c0_11 = arith.constant 0 : index
    %c0_12 = arith.constant 0 : index
    %c0_13 = arith.constant 0 : index
    %24 = vector.load %arg8[%c0_11, %c0_12, %c0_13] : memref<2x8x1xf32, #tpu.memory_space<vmem>>, vector<1x8x1xf32>
    %25 = vector.shape_cast %24 : vector<1x8x1xf32> to vector<8x1xf32>
    %cst_14 = arith.constant dense<0xFF800000> : vector<8xf32>
    %26 = vector.multi_reduction <maximumf>, %23, %cst_14 [1] : vector<8x8xf32> to vector<8xf32>
    %27 = vector.shape_cast %26 : vector<8xf32> to vector<8x1xf32>
    %28 = arith.maximumf %25, %27 : vector<8x1xf32>
    %29 = arith.subf %25, %28 : vector<8x1xf32>
    %30 = math.exp %29 : vector<8x1xf32>
    %31 = vector.broadcast %28 : vector<8x1xf32> to vector<8x8xf32>
    %32 = arith.subf %23, %31 : vector<8x8xf32>
    %33 = math.exp %32 : vector<8x8xf32>
    %cst_15 = arith.constant 0.000000e+00 : f32
    %34 = vector.broadcast %cst_15 : f32 to vector<8x8xf32>
    %35 = arith.select %10, %33, %34 : vector<8x8xi1>, vector<8x8xf32>
    %c0_16 = arith.constant 0 : index
    %c0_17 = arith.constant 0 : index
    %c0_18 = arith.constant 0 : index
    %36 = vector.load %arg9[%c0_16, %c0_17, %c0_18] : memref<2x8x1xf32, #tpu.memory_space<vmem>>, vector<1x8x1xf32>
    %37 = vector.shape_cast %36 : vector<1x8x1xf32> to vector<8x1xf32>
    %38 = arith.mulf %30, %37 : vector<8x1xf32>
    %cst_19 = arith.constant dense<0.000000e+00> : vector<8xf32>
    %39 = vector.multi_reduction <add>, %35, %cst_19 [1] : vector<8x8xf32> to vector<8xf32>
    %40 = vector.shape_cast %39 : vector<8xf32> to vector<8x1xf32>
    %41 = arith.addf %38, %40 : vector<8x1xf32>
    %c0_20 = arith.constant 0 : index
    %c0_21 = arith.constant 0 : index
    %c0_22 = arith.constant 0 : index
    %42 = vector.load %arg9[%c0_20, %c0_21, %c0_22] : memref<2x8x1xf32, #tpu.memory_space<vmem>>, vector<1x8x1xf32>
    %43 = vector.shape_cast %42 : vector<1x8x1xf32> to vector<8x1xf32>
    %44 = vector.shape_cast %41 : vector<8x1xf32> to vector<1x8x1xf32>
    tpu.vector_store %arg9[%c0_20, %c0_21, %c0_22], %44 {strides = array<i32>} : memref<2x8x1xf32, #tpu.memory_space<vmem>>, vector<1x8x1xf32>,
    %c0_23 = arith.constant 0 : index
    %c0_24 = arith.constant 0 : index
    %c0_25 = arith.constant 0 : index
    %45 = vector.load %arg10[%c0_23, %c0_24, %c0_25] : memref<2x8x128xf32, #tpu.memory_space<vmem>>, vector<1x8x128xf32>
    %46 = vector.shape_cast %45 : vector<1x8x128xf32> to vector<8x128xf32>
    %47 = vector.broadcast %30 : vector<8x1xf32> to vector<8x128xf32>
    %48 = arith.mulf %47, %46 : vector<8x128xf32>
    %49 = arith.truncf %35 : vector<8x8xf32> to vector<8x8xbf16>
    %50 = vector.extract_strided_slice %16 {offsets = [0, 0], sizes = [8, 128], strides = [1, 1]} : vector<8x256xbf16> to vector<8x128xbf16>
    %cst_26 = arith.constant dense<0.000000e+00> : vector<8x128xf32>
    %51 = tpu.matmul %49, %50, %cst_26 {dimension_numbers = #tpu.dot_dimension_numbers<[1], [0], [0], [1], [0, 0, 1, 1], [], []>} : vector<8x8xbf16>, vector<8x128xbf16>, vector<8x128xf32> -> vector<8x128xf32>
    %52 = arith.addf %48, %51 : vector<8x128xf32>
    %c0_27 = arith.constant 0 : index
    %c0_28 = arith.constant 0 : index
    %c0_29 = arith.constant 0 : index
    %53 = vector.load %arg10[%c0_27, %c0_28, %c0_29] : memref<2x8x128xf32, #tpu.memory_space<vmem>>, vector<1x8x128xf32>
    %54 = vector.shape_cast %53 : vector<1x8x128xf32> to vector<8x128xf32>
    %55 = vector.shape_cast %52 : vector<8x128xf32> to vector<1x8x128xf32>
    tpu.vector_store %arg10[%c0_27, %c0_28, %c0_29], %55 {strides = array<i32>} : memref<2x8x128xf32, #tpu.memory_space<vmem>>, vector<1x8x128xf32>,
    %c0_30 = arith.constant 0 : index
    %c0_31 = arith.constant 0 : index
    %c0_32 = arith.constant 0 : index
    %56 = vector.load %arg8[%c0_30, %c0_31, %c0_32] : memref<2x8x1xf32, #tpu.memory_space<vmem>>, vector<1x8x1xf32>
    %57 = vector.shape_cast %56 : vector<1x8x1xf32> to vector<8x1xf32>
    %58 = vector.shape_cast %28 : vector<8x1xf32> to vector<1x8x1xf32>
    tpu.vector_store %arg8[%c0_30, %c0_31, %c0_32], %58 {strides = array<i32>} : memref<2x8x1xf32, #tpu.memory_space<vmem>>, vector<1x8x1xf32>,
    %59 = vector.extract_strided_slice %12 {offsets = [0, 128], sizes = [8, 128], strides = [1, 1]} : vector<8x256xbf16> to vector<8x128xbf16>
    %60 = vector.extract_strided_slice %14 {offsets = [0, 128], sizes = [8, 128], strides = [1, 1]} : vector<8x256xbf16> to vector<8x128xbf16>
    %cst_33 = arith.constant dense<0.000000e+00> : vector<8x8xf32>
    %61 = tpu.matmul %59, %60, %cst_33 {dimension_numbers = #tpu.dot_dimension_numbers<[1], [1], [0], [0], [0, 0, 1, 0], [], []>} : vector<8x128xbf16>, vector<8x128xbf16>, vector<8x8xf32> -> vector<8x8xf32>
    %cst_34 = arith.constant 0.0883883461 : f32
    %62 = vector.broadcast %cst_34 : f32 to vector<8x8xf32>
    %63 = arith.mulf %61, %62 : vector<8x8xf32>
    %cst_35 = arith.constant -1.000000e+30 : f32
    %64 = vector.broadcast %cst_35 : f32 to vector<8x8xf32>
    %65 = arith.select %10, %63, %64 : vector<8x8xi1>, vector<8x8xf32>
    %c1 = arith.constant 1 : index
    %c0_36 = arith.constant 0 : index
    %c0_37 = arith.constant 0 : index
    %66 = vector.load %arg8[%c1, %c0_36, %c0_37] : memref<2x8x1xf32, #tpu.memory_space<vmem>>, vector<1x8x1xf32>
    %67 = vector.shape_cast %66 : vector<1x8x1xf32> to vector<8x1xf32>
    %cst_38 = arith.constant dense<0xFF800000> : vector<8xf32>
    %68 = vector.multi_reduction <maximumf>, %65, %cst_38 [1] : vector<8x8xf32> to vector<8xf32>
    %69 = vector.shape_cast %68 : vector<8xf32> to vector<8x1xf32>
    %70 = arith.maximumf %67, %69 : vector<8x1xf32>
    %71 = arith.subf %67, %70 : vector<8x1xf32>
    %72 = math.exp %71 : vector<8x1xf32>
    %73 = vector.broadcast %70 : vector<8x1xf32> to vector<8x8xf32>
    %74 = arith.subf %65, %73 : vector<8x8xf32>
    %75 = math.exp %74 : vector<8x8xf32>
    %cst_39 = arith.constant 0.000000e+00 : f32
    %76 = vector.broadcast %cst_39 : f32 to vector<8x8xf32>
    %77 = arith.select %10, %75, %76 : vector<8x8xi1>, vector<8x8xf32>
    %c1_40 = arith.constant 1 : index
    %c0_41 = arith.constant 0 : index
    %c0_42 = arith.constant 0 : index
    %78 = vector.load %arg9[%c1_40, %c0_41, %c0_42] : memref<2x8x1xf32, #tpu.memory_space<vmem>>, vector<1x8x1xf32>
    %79 = vector.shape_cast %78 : vector<1x8x1xf32> to vector<8x1xf32>
    %80 = arith.mulf %72, %79 : vector<8x1xf32>
    %cst_43 = arith.constant dense<0.000000e+00> : vector<8xf32>
    %81 = vector.multi_reduction <add>, %77, %cst_43 [1] : vector<8x8xf32> to vector<8xf32>
    %82 = vector.shape_cast %81 : vector<8xf32> to vector<8x1xf32>
    %83 = arith.addf %80, %82 : vector<8x1xf32>
    %c1_44 = arith.constant 1 : index
    %c0_45 = arith.constant 0 : index
    %c0_46 = arith.constant 0 : index
    %84 = vector.load %arg9[%c1_44, %c0_45, %c0_46] : memref<2x8x1xf32, #tpu.memory_space<vmem>>, vector<1x8x1xf32>
    %85 = vector.shape_cast %84 : vector<1x8x1xf32> to vector<8x1xf32>
    %86 = vector.shape_cast %83 : vector<8x1xf32> to vector<1x8x1xf32>
    tpu.vector_store %arg9[%c1_44, %c0_45, %c0_46], %86 {strides = array<i32>} : memref<2x8x1xf32, #tpu.memory_space<vmem>>, vector<1x8x1xf32>,
    %c1_47 = arith.constant 1 : index
    %c0_48 = arith.constant 0 : index
    %c0_49 = arith.constant 0 : index
    %87 = vector.load %arg10[%c1_47, %c0_48, %c0_49] : memref<2x8x128xf32, #tpu.memory_space<vmem>>, vector<1x8x128xf32>
    %88 = vector.shape_cast %87 : vector<1x8x128xf32> to vector<8x128xf32>
    %89 = vector.broadcast %72 : vector<8x1xf32> to vector<8x128xf32>
    %90 = arith.mulf %89, %88 : vector<8x128xf32>
    %91 = arith.truncf %77 : vector<8x8xf32> to vector<8x8xbf16>
    %92 = vector.extract_strided_slice %16 {offsets = [0, 128], sizes = [8, 128], strides = [1, 1]} : vector<8x256xbf16> to vector<8x128xbf16>
    %cst_50 = arith.constant dense<0.000000e+00> : vector<8x128xf32>
    %93 = tpu.matmul %91, %92, %cst_50 {dimension_numbers = #tpu.dot_dimension_numbers<[1], [0], [0], [1], [0, 0, 1, 1], [], []>} : vector<8x8xbf16>, vector<8x128xbf16>, vector<8x128xf32> -> vector<8x128xf32>
    %94 = arith.addf %90, %93 : vector<8x128xf32>
    %c1_51 = arith.constant 1 : index
    %c0_52 = arith.constant 0 : index
    %c0_53 = arith.constant 0 : index
    %95 = vector.load %arg10[%c1_51, %c0_52, %c0_53] : memref<2x8x128xf32, #tpu.memory_space<vmem>>, vector<1x8x128xf32>
    %96 = vector.shape_cast %95 : vector<1x8x128xf32> to vector<8x128xf32>
    %97 = vector.shape_cast %94 : vector<8x128xf32> to vector<1x8x128xf32>
    tpu.vector_store %arg10[%c1_51, %c0_52, %c0_53], %97 {strides = array<i32>} : memref<2x8x128xf32, #tpu.memory_space<vmem>>, vector<1x8x128xf32>,
    %c1_54 = arith.constant 1 : index
    %c0_55 = arith.constant 0 : index
    %c0_56 = arith.constant 0 : index
    %98 = vector.load %arg8[%c1_54, %c0_55, %c0_56] : memref<2x8x1xf32, #tpu.memory_space<vmem>>, vector<1x8x1xf32>
    %99 = vector.shape_cast %98 : vector<1x8x1xf32> to vector<8x1xf32>
    %100 = vector.shape_cast %70 : vector<8x1xf32> to vector<1x8x1xf32>
    tpu.vector_store %arg8[%c1_54, %c0_55, %c0_56], %100 {strides = array<i32>} : memref<2x8x1xf32, #tpu.memory_space<vmem>>, vector<1x8x1xf32>,
    %c0_i32_57 = arith.constant 0 : i32
    %101 = arith.cmpi eq, %arg2, %c0_i32_57 : i32
    %102 = arith.extui %101 : i1 to i32
    %c0_i32_58 = arith.constant 0 : i32
    %103 = arith.cmpi ne, %102, %c0_i32_58 : i32
    scf.if %103 {
      %c0_59 = arith.constant 0 : index
      %c0_60 = arith.constant 0 : index
      %c0_61 = arith.constant 0 : index
      %104 = vector.load %arg9[%c0_59, %c0_60, %c0_61] : memref<2x8x1xf32, #tpu.memory_space<vmem>>, vector<1x8x1xf32>
      %105 = vector.shape_cast %104 : vector<1x8x1xf32> to vector<8x1xf32>
      %cst_62 = arith.constant 0.000000e+00 : f32
      %106 = vector.broadcast %cst_62 : f32 to vector<8x1xf32>
      %107 = arith.cmpf ogt, %105, %106 : vector<8x1xf32>
      %cst_63 = arith.constant 1.000000e-30 : f32
      %108 = vector.broadcast %cst_63 : f32 to vector<8x1xf32>
      %109 = arith.maximumf %105, %108 : vector<8x1xf32>
      %110 = tpu.reciprocal %109 {approx = true} : vector<8x1xf32> -> vector<8x1xf32>
      %cst_64 = arith.constant 0.000000e+00 : f32
      %111 = vector.broadcast %cst_64 : f32 to vector<8x1xf32>
      %112 = arith.select %107, %110, %111 : vector<8x1xi1>, vector<8x1xf32>
      %c0_65 = arith.constant 0 : index
      %c0_66 = arith.constant 0 : index
      %c0_67 = arith.constant 0 : index
      %113 = vector.load %arg10[%c0_65, %c0_66, %c0_67] : memref<2x8x128xf32, #tpu.memory_space<vmem>>, vector<1x8x128xf32>
      %114 = vector.shape_cast %113 : vector<1x8x128xf32> to vector<8x128xf32>
      %115 = vector.broadcast %112 : vector<8x1xf32> to vector<8x128xf32>
      %116 = arith.mulf %114, %115 : vector<8x128xf32>
      %117 = arith.truncf %116 : vector<8x128xf32> to vector<8x128xbf16>
      %c1_68 = arith.constant 1 : index
      %c0_69 = arith.constant 0 : index
      %c0_70 = arith.constant 0 : index
      %118 = vector.load %arg9[%c1_68, %c0_69, %c0_70] : memref<2x8x1xf32, #tpu.memory_space<vmem>>, vector<1x8x1xf32>
      %119 = vector.shape_cast %118 : vector<1x8x1xf32> to vector<8x1xf32>
      %cst_71 = arith.constant 0.000000e+00 : f32
      %120 = vector.broadcast %cst_71 : f32 to vector<8x1xf32>
      %121 = arith.cmpf ogt, %119, %120 : vector<8x1xf32>
      %cst_72 = arith.constant 1.000000e-30 : f32
      %122 = vector.broadcast %cst_72 : f32 to vector<8x1xf32>
      %123 = arith.maximumf %119, %122 : vector<8x1xf32>
      %124 = tpu.reciprocal %123 {approx = true} : vector<8x1xf32> -> vector<8x1xf32>
      %cst_73 = arith.constant 0.000000e+00 : f32
      %125 = vector.broadcast %cst_73 : f32 to vector<8x1xf32>
      %126 = arith.select %121, %124, %125 : vector<8x1xi1>, vector<8x1xf32>
      %c1_74 = arith.constant 1 : index
      %c0_75 = arith.constant 0 : index
      %c0_76 = arith.constant 0 : index
      %127 = vector.load %arg10[%c1_74, %c0_75, %c0_76] : memref<2x8x128xf32, #tpu.memory_space<vmem>>, vector<1x8x128xf32>
      %128 = vector.shape_cast %127 : vector<1x8x128xf32> to vector<8x128xf32>
      %129 = vector.broadcast %126 : vector<8x1xf32> to vector<8x128xf32>
      %130 = arith.mulf %128, %129 : vector<8x128xf32>
      %131 = arith.truncf %130 : vector<8x128xf32> to vector<8x128xbf16>
      %132 = tpu.concatenate %117, %131 in 1 : vector<8x128xbf16>, vector<8x128xbf16> -> vector<8x256xbf16>
      %c0_77 = arith.constant 0 : index
      %c0_78 = arith.constant 0 : index
      %c0_79 = arith.constant 0 : index
      %133 = vector.load %arg7[%c0_77, %c0_78, %c0_79] : memref<1x8x256xbf16, #tpu.memory_space<vmem>>, vector<1x8x256xbf16>
      %134 = vector.shape_cast %133 : vector<1x8x256xbf16> to vector<8x256xbf16>
      %135 = vector.shape_cast %132 : vector<8x256xbf16> to vector<1x8x256xbf16>
      tpu.vector_store %arg7[%c0_77, %c0_78, %c0_79], %135 {strides = array<i32>} : memref<1x8x256xbf16, #tpu.memory_space<vmem>>, vector<1x8x256xbf16>,
    } else {
    }
    return
  }
  func.func @transform_0(%arg0: i32, %arg1: i32, %arg2: i32, %arg3: memref<2xi32, #tpu.memory_space<smem>>) -> (i32, i32, i32) {
    %c0_i32 = arith.constant 0 : i32
    %c0_i32_0 = arith.constant 0 : i32
    return %arg0, %arg1, %c0_i32 : i32, i32, i32
  }
  func.func @transform_1(%arg0: i32, %arg1: i32, %arg2: i32, %arg3: memref<2xi32, #tpu.memory_space<smem>>) -> (i32, i32, i32) {
    %c1_i32 = arith.constant 1 : i32
    %c0_i32 = arith.constant 0 : i32
    return %arg0, %arg2, %c1_i32 : i32, i32, i32
  }
  func.func @transform_2(%arg0: i32, %arg1: i32, %arg2: i32, %arg3: memref<2xi32, #tpu.memory_space<smem>>) -> (i32, i32, i32) {
    %c2_i32 = arith.constant 2 : i32
    %c0_i32 = arith.constant 0 : i32
    return %arg0, %arg2, %c2_i32 : i32, i32, i32
  }
  func.func @transform_3(%arg0: i32, %arg1: i32, %arg2: i32, %arg3: memref<2xi32, #tpu.memory_space<smem>>) -> (i32, i32, i32) {
    %c0_i32 = arith.constant 0 : i32
    %c0_i32_0 = arith.constant 0 : i32
    return %arg0, %arg1, %c0_i32 : i32, i32, i32
  }
}

module attributes {stable_mosaic.version = 11 : i64} {
  func.func @_ln_matmul_kernel(%arg0: i32, %arg1: memref<16x256xbf16, #tpu.memory_space<vmem>>, %arg2: memref<1x256xf32, #tpu.memory_space<vmem>>, %arg3: memref<1x256xf32, #tpu.memory_space<vmem>>, %arg4: memref<16x1xf32, #tpu.memory_space<vmem>>, %arg5: memref<256x512xbf16, #tpu.memory_space<vmem>>, %arg6: memref<1x512xf32, #tpu.memory_space<vmem>>, %arg7: memref<16x256xbf16, #tpu.memory_space<vmem>>) attributes {dimension_semantics = [#tpu.dimension_semantics<parallel>], iteration_bounds = array<i64: 1>, scalar_prefetch = 0 : i64, scratch_operands = 0 : i64, tpu.core_type = #tpu.core_type<tc>, window_params = [{transform_indices = @transform_0, window_bounds = array<i64: 16, 256>}, {pipeline_mode = #tpu.pipeline_mode<synchronous>, transform_indices = @transform_1, window_bounds = array<i64: 1, 256>}, {pipeline_mode = #tpu.pipeline_mode<synchronous>, transform_indices = @transform_2, window_bounds = array<i64: 1, 256>}, {transform_indices = @transform_3, window_bounds = array<i64: 16, 1>}, {pipeline_mode = #tpu.pipeline_mode<synchronous>, transform_indices = @transform_4, window_bounds = array<i64: 256, 512>}, {pipeline_mode = #tpu.pipeline_mode<synchronous>, transform_indices = @transform_5, window_bounds = array<i64: 1, 512>}, {transform_indices = @transform_6, window_bounds = array<i64: 16, 256>}]} {
    %c0 = arith.constant 0 : index
    %c0_0 = arith.constant 0 : index
    %0 = vector.load %arg1[%c0, %c0_0] : memref<16x256xbf16, #tpu.memory_space<vmem>>, vector<16x256xbf16>
    %1 = arith.extf %0 : vector<16x256xbf16> to vector<16x256xf32>
    %c0_1 = arith.constant 0 : index
    %c0_2 = arith.constant 0 : index
    %2 = vector.load %arg2[%c0_1, %c0_2] : memref<1x256xf32, #tpu.memory_space<vmem>>, vector<1x256xf32>
    %c0_3 = arith.constant 0 : index
    %c0_4 = arith.constant 0 : index
    %3 = vector.load %arg3[%c0_3, %c0_4] : memref<1x256xf32, #tpu.memory_space<vmem>>, vector<1x256xf32>
    %cst = arith.constant dense<0.000000e+00> : vector<16xf32>
    %4 = vector.multi_reduction <add>, %1, %cst [1] : vector<16x256xf32> to vector<16xf32>
    %5 = vector.shape_cast %4 : vector<16xf32> to vector<16x1xf32>
    %cst_5 = arith.constant 2.560000e+02 : f32
    %6 = vector.broadcast %cst_5 : f32 to vector<16x1xf32>
    %7 = arith.divf %5, %6 : vector<16x1xf32>
    %8 = vector.broadcast %7 : vector<16x1xf32> to vector<16x256xf32>
    %9 = arith.subf %1, %8 : vector<16x256xf32>
    %10 = arith.mulf %9, %9 : vector<16x256xf32>
    %cst_6 = arith.constant dense<0.000000e+00> : vector<16xf32>
    %11 = vector.multi_reduction <add>, %10, %cst_6 [1] : vector<16x256xf32> to vector<16xf32>
    %12 = vector.shape_cast %11 : vector<16xf32> to vector<16x1xf32>
    %cst_7 = arith.constant 2.560000e+02 : f32
    %13 = vector.broadcast %cst_7 : f32 to vector<16x1xf32>
    %14 = arith.divf %12, %13 : vector<16x1xf32>
    %15 = vector.broadcast %7 : vector<16x1xf32> to vector<16x256xf32>
    %16 = arith.subf %1, %15 : vector<16x256xf32>
    %cst_8 = arith.constant 9.99999974E-6 : f32
    %17 = vector.broadcast %cst_8 : f32 to vector<16x1xf32>
    %18 = arith.addf %14, %17 : vector<16x1xf32>
    %19 = math.rsqrt %18 : vector<16x1xf32>
    %20 = vector.broadcast %19 : vector<16x1xf32> to vector<16x256xf32>
    %21 = arith.mulf %16, %20 : vector<16x256xf32>
    %22 = vector.broadcast %2 : vector<1x256xf32> to vector<16x256xf32>
    %23 = arith.mulf %21, %22 : vector<16x256xf32>
    %24 = vector.broadcast %3 : vector<1x256xf32> to vector<16x256xf32>
    %25 = arith.addf %23, %24 : vector<16x256xf32>
    %c0_9 = arith.constant 0 : index
    %c0_10 = arith.constant 0 : index
    %26 = vector.load %arg4[%c0_9, %c0_10] : memref<16x1xf32, #tpu.memory_space<vmem>>, vector<16x1xf32>
    %27 = vector.broadcast %26 : vector<16x1xf32> to vector<16x256xf32>
    %28 = arith.mulf %25, %27 : vector<16x256xf32>
    %29 = arith.truncf %28 : vector<16x256xf32> to vector<16x256xbf16>
    %c0_11 = arith.constant 0 : index
    %c0_12 = arith.constant 0 : index
    %30 = vector.load %arg5[%c0_11, %c0_12] : memref<256x512xbf16, #tpu.memory_space<vmem>>, vector<256x512xbf16>
    %cst_13 = arith.constant dense<0.000000e+00> : vector<16x512xf32>
    %31 = tpu.matmul %29, %30, %cst_13 {dimension_numbers = #tpu.dot_dimension_numbers<[1], [0], [0], [1], [0, 0, 1, 1], [], []>} : vector<16x256xbf16>, vector<256x512xbf16>, vector<16x512xf32> -> vector<16x512xf32>
    %c0_14 = arith.constant 0 : index
    %c0_15 = arith.constant 0 : index
    %32 = vector.load %arg6[%c0_14, %c0_15] : memref<1x512xf32, #tpu.memory_space<vmem>>, vector<1x512xf32>
    %33 = vector.broadcast %32 : vector<1x512xf32> to vector<16x512xf32>
    %34 = arith.addf %31, %33 : vector<16x512xf32>
    %35 = vector.extract_strided_slice %34 {offsets = [0, 0], sizes = [16, 256], strides = [1, 1]} : vector<16x512xf32> to vector<16x256xf32>
    %36 = vector.extract_strided_slice %34 {offsets = [0, 256], sizes = [16, 256], strides = [1, 1]} : vector<16x512xf32> to vector<16x256xf32>
    %37 = arith.negf %36 : vector<16x256xf32>
    %38 = math.exp %37 : vector<16x256xf32>
    %cst_16 = arith.constant 1.000000e+00 : f32
    %39 = vector.broadcast %cst_16 : f32 to vector<16x256xf32>
    %40 = arith.addf %39, %38 : vector<16x256xf32>
    %41 = arith.divf %39, %40 : vector<16x256xf32>
    %42 = arith.mulf %35, %41 : vector<16x256xf32>
    %43 = arith.truncf %42 : vector<16x256xf32> to vector<16x256xbf16>
    %c0_17 = arith.constant 0 : index
    %c0_18 = arith.constant 0 : index
    %44 = vector.load %arg7[%c0_17, %c0_18] : memref<16x256xbf16, #tpu.memory_space<vmem>>, vector<16x256xbf16>
    tpu.vector_store %arg7[%c0_17, %c0_18], %43 {strides = array<i32>} : memref<16x256xbf16, #tpu.memory_space<vmem>>, vector<16x256xbf16>,
    return
  }
  func.func @transform_0(%arg0: i32) -> (i32, i32) {
    %c0_i32 = arith.constant 0 : i32
    %c0_i32_0 = arith.constant 0 : i32
    return %arg0, %c0_i32 : i32, i32
  }
  func.func @transform_1(%arg0: i32) -> (i32, i32) {
    %c0_i32 = arith.constant 0 : i32
    %c0_i32_0 = arith.constant 0 : i32
    %c0_i32_1 = arith.constant 0 : i32
    return %c0_i32, %c0_i32_0 : i32, i32
  }
  func.func @transform_2(%arg0: i32) -> (i32, i32) {
    %c0_i32 = arith.constant 0 : i32
    %c0_i32_0 = arith.constant 0 : i32
    %c0_i32_1 = arith.constant 0 : i32
    return %c0_i32, %c0_i32_0 : i32, i32
  }
  func.func @transform_3(%arg0: i32) -> (i32, i32) {
    %c0_i32 = arith.constant 0 : i32
    %c0_i32_0 = arith.constant 0 : i32
    return %arg0, %c0_i32 : i32, i32
  }
  func.func @transform_4(%arg0: i32) -> (i32, i32) {
    %c0_i32 = arith.constant 0 : i32
    %c0_i32_0 = arith.constant 0 : i32
    %c0_i32_1 = arith.constant 0 : i32
    return %c0_i32, %c0_i32_0 : i32, i32
  }
  func.func @transform_5(%arg0: i32) -> (i32, i32) {
    %c0_i32 = arith.constant 0 : i32
    %c0_i32_0 = arith.constant 0 : i32
    %c0_i32_1 = arith.constant 0 : i32
    return %c0_i32, %c0_i32_0 : i32, i32
  }
  func.func @transform_6(%arg0: i32) -> (i32, i32) {
    %c0_i32 = arith.constant 0 : i32
    %c0_i32_0 = arith.constant 0 : i32
    return %arg0, %c0_i32 : i32, i32
  }
}

module attributes {stable_mosaic.version = 11 : i64} {
  func.func @_dwconv_kernel(%arg0: i32, %arg1: memref<1x24x256xbf16, #tpu.memory_space<vmem>>, %arg2: memref<15x256xf32, #tpu.memory_space<vmem>>, %arg3: memref<1x256xf32, #tpu.memory_space<vmem>>, %arg4: memref<1x8x256xbf16, #tpu.memory_space<vmem>>) attributes {dimension_semantics = [#tpu.dimension_semantics<parallel>], iteration_bounds = array<i64: 2>, scalar_prefetch = 0 : i64, scratch_operands = 0 : i64, tpu.core_type = #tpu.core_type<tc>, window_params = [{transform_indices = @transform_0, window_bounds = array<i64: 1, 24, 256>}, {pipeline_mode = #tpu.pipeline_mode<synchronous>, transform_indices = @transform_1, window_bounds = array<i64: 15, 256>}, {pipeline_mode = #tpu.pipeline_mode<synchronous>, transform_indices = @transform_2, window_bounds = array<i64: 1, 256>}, {transform_indices = @transform_3, window_bounds = array<i64: 1, 8, 256>}]} {
    %c0 = arith.constant 0 : index
    %c0_0 = arith.constant 0 : index
    %c0_1 = arith.constant 0 : index
    %0 = vector.load %arg1[%c0, %c0_0, %c0_1] : memref<1x24x256xbf16, #tpu.memory_space<vmem>>, vector<1x24x256xbf16>
    %1 = vector.shape_cast %0 : vector<1x24x256xbf16> to vector<24x256xbf16>
    %2 = arith.extf %1 : vector<24x256xbf16> to vector<24x256xf32>
    %cst = arith.constant 0.000000e+00 : f32
    %3 = vector.broadcast %cst : f32 to vector<24x256xf32>
    %c0_2 = arith.constant 0 : index
    %c0_3 = arith.constant 0 : index
    %4 = vector.load %arg2[%c0_2, %c0_3] : memref<15x256xf32, #tpu.memory_space<vmem>>, vector<1x256xf32>
    %5 = vector.broadcast %4 : vector<1x256xf32> to vector<24x256xf32>
    %6 = arith.mulf %2, %5 : vector<24x256xf32>
    %7 = arith.addf %3, %6 : vector<24x256xf32>
    %c23_i32 = arith.constant 23 : i32
    %8 = tpu.dynamic_rotate %2 by %c23_i32 dim 0 : vector<24x256xf32>, i32 -> vector<24x256xf32>
    %c1 = arith.constant 1 : index
    %c0_4 = arith.constant 0 : index
    %9 = vector.load %arg2[%c1, %c0_4] : memref<15x256xf32, #tpu.memory_space<vmem>>, vector<1x256xf32>
    %10 = vector.broadcast %9 : vector<1x256xf32> to vector<24x256xf32>
    %11 = arith.mulf %8, %10 : vector<24x256xf32>
    %12 = arith.addf %7, %11 : vector<24x256xf32>
    %c22_i32 = arith.constant 22 : i32
    %13 = tpu.dynamic_rotate %2 by %c22_i32 dim 0 : vector<24x256xf32>, i32 -> vector<24x256xf32>
    %c2 = arith.constant 2 : index
    %c0_5 = arith.constant 0 : index
    %14 = vector.load %arg2[%c2, %c0_5] : memref<15x256xf32, #tpu.memory_space<vmem>>, vector<1x256xf32>
    %15 = vector.broadcast %14 : vector<1x256xf32> to vector<24x256xf32>
    %16 = arith.mulf %13, %15 : vector<24x256xf32>
    %17 = arith.addf %12, %16 : vector<24x256xf32>
    %c21_i32 = arith.constant 21 : i32
    %18 = tpu.dynamic_rotate %2 by %c21_i32 dim 0 : vector<24x256xf32>, i32 -> vector<24x256xf32>
    %c3 = arith.constant 3 : index
    %c0_6 = arith.constant 0 : index
    %19 = vector.load %arg2[%c3, %c0_6] : memref<15x256xf32, #tpu.memory_space<vmem>>, vector<1x256xf32>
    %20 = vector.broadcast %19 : vector<1x256xf32> to vector<24x256xf32>
    %21 = arith.mulf %18, %20 : vector<24x256xf32>
    %22 = arith.addf %17, %21 : vector<24x256xf32>
    %c20_i32 = arith.constant 20 : i32
    %23 = tpu.dynamic_rotate %2 by %c20_i32 dim 0 : vector<24x256xf32>, i32 -> vector<24x256xf32>
    %c4 = arith.constant 4 : index
    %c0_7 = arith.constant 0 : index
    %24 = vector.load %arg2[%c4, %c0_7] : memref<15x256xf32, #tpu.memory_space<vmem>>, vector<1x256xf32>
    %25 = vector.broadcast %24 : vector<1x256xf32> to vector<24x256xf32>
    %26 = arith.mulf %23, %25 : vector<24x256xf32>
    %27 = arith.addf %22, %26 : vector<24x256xf32>
    %c19_i32 = arith.constant 19 : i32
    %28 = tpu.dynamic_rotate %2 by %c19_i32 dim 0 : vector<24x256xf32>, i32 -> vector<24x256xf32>
    %c5 = arith.constant 5 : index
    %c0_8 = arith.constant 0 : index
    %29 = vector.load %arg2[%c5, %c0_8] : memref<15x256xf32, #tpu.memory_space<vmem>>, vector<1x256xf32>
    %30 = vector.broadcast %29 : vector<1x256xf32> to vector<24x256xf32>
    %31 = arith.mulf %28, %30 : vector<24x256xf32>
    %32 = arith.addf %27, %31 : vector<24x256xf32>
    %c18_i32 = arith.constant 18 : i32
    %33 = tpu.dynamic_rotate %2 by %c18_i32 dim 0 : vector<24x256xf32>, i32 -> vector<24x256xf32>
    %c6 = arith.constant 6 : index
    %c0_9 = arith.constant 0 : index
    %34 = vector.load %arg2[%c6, %c0_9] : memref<15x256xf32, #tpu.memory_space<vmem>>, vector<1x256xf32>
    %35 = vector.broadcast %34 : vector<1x256xf32> to vector<24x256xf32>
    %36 = arith.mulf %33, %35 : vector<24x256xf32>
    %37 = arith.addf %32, %36 : vector<24x256xf32>
    %c17_i32 = arith.constant 17 : i32
    %38 = tpu.dynamic_rotate %2 by %c17_i32 dim 0 : vector<24x256xf32>, i32 -> vector<24x256xf32>
    %c7 = arith.constant 7 : index
    %c0_10 = arith.constant 0 : index
    %39 = vector.load %arg2[%c7, %c0_10] : memref<15x256xf32, #tpu.memory_space<vmem>>, vector<1x256xf32>
    %40 = vector.broadcast %39 : vector<1x256xf32> to vector<24x256xf32>
    %41 = arith.mulf %38, %40 : vector<24x256xf32>
    %42 = arith.addf %37, %41 : vector<24x256xf32>
    %c16_i32 = arith.constant 16 : i32
    %43 = tpu.dynamic_rotate %2 by %c16_i32 dim 0 : vector<24x256xf32>, i32 -> vector<24x256xf32>
    %c8 = arith.constant 8 : index
    %c0_11 = arith.constant 0 : index
    %44 = vector.load %arg2[%c8, %c0_11] : memref<15x256xf32, #tpu.memory_space<vmem>>, vector<1x256xf32>
    %45 = vector.broadcast %44 : vector<1x256xf32> to vector<24x256xf32>
    %46 = arith.mulf %43, %45 : vector<24x256xf32>
    %47 = arith.addf %42, %46 : vector<24x256xf32>
    %c15_i32 = arith.constant 15 : i32
    %48 = tpu.dynamic_rotate %2 by %c15_i32 dim 0 : vector<24x256xf32>, i32 -> vector<24x256xf32>
    %c9 = arith.constant 9 : index
    %c0_12 = arith.constant 0 : index
    %49 = vector.load %arg2[%c9, %c0_12] : memref<15x256xf32, #tpu.memory_space<vmem>>, vector<1x256xf32>
    %50 = vector.broadcast %49 : vector<1x256xf32> to vector<24x256xf32>
    %51 = arith.mulf %48, %50 : vector<24x256xf32>
    %52 = arith.addf %47, %51 : vector<24x256xf32>
    %c14_i32 = arith.constant 14 : i32
    %53 = tpu.dynamic_rotate %2 by %c14_i32 dim 0 : vector<24x256xf32>, i32 -> vector<24x256xf32>
    %c10 = arith.constant 10 : index
    %c0_13 = arith.constant 0 : index
    %54 = vector.load %arg2[%c10, %c0_13] : memref<15x256xf32, #tpu.memory_space<vmem>>, vector<1x256xf32>
    %55 = vector.broadcast %54 : vector<1x256xf32> to vector<24x256xf32>
    %56 = arith.mulf %53, %55 : vector<24x256xf32>
    %57 = arith.addf %52, %56 : vector<24x256xf32>
    %c13_i32 = arith.constant 13 : i32
    %58 = tpu.dynamic_rotate %2 by %c13_i32 dim 0 : vector<24x256xf32>, i32 -> vector<24x256xf32>
    %c11 = arith.constant 11 : index
    %c0_14 = arith.constant 0 : index
    %59 = vector.load %arg2[%c11, %c0_14] : memref<15x256xf32, #tpu.memory_space<vmem>>, vector<1x256xf32>
    %60 = vector.broadcast %59 : vector<1x256xf32> to vector<24x256xf32>
    %61 = arith.mulf %58, %60 : vector<24x256xf32>
    %62 = arith.addf %57, %61 : vector<24x256xf32>
    %c12_i32 = arith.constant 12 : i32
    %63 = tpu.dynamic_rotate %2 by %c12_i32 dim 0 : vector<24x256xf32>, i32 -> vector<24x256xf32>
    %c12 = arith.constant 12 : index
    %c0_15 = arith.constant 0 : index
    %64 = vector.load %arg2[%c12, %c0_15] : memref<15x256xf32, #tpu.memory_space<vmem>>, vector<1x256xf32>
    %65 = vector.broadcast %64 : vector<1x256xf32> to vector<24x256xf32>
    %66 = arith.mulf %63, %65 : vector<24x256xf32>
    %67 = arith.addf %62, %66 : vector<24x256xf32>
    %c11_i32 = arith.constant 11 : i32
    %68 = tpu.dynamic_rotate %2 by %c11_i32 dim 0 : vector<24x256xf32>, i32 -> vector<24x256xf32>
    %c13 = arith.constant 13 : index
    %c0_16 = arith.constant 0 : index
    %69 = vector.load %arg2[%c13, %c0_16] : memref<15x256xf32, #tpu.memory_space<vmem>>, vector<1x256xf32>
    %70 = vector.broadcast %69 : vector<1x256xf32> to vector<24x256xf32>
    %71 = arith.mulf %68, %70 : vector<24x256xf32>
    %72 = arith.addf %67, %71 : vector<24x256xf32>
    %c10_i32 = arith.constant 10 : i32
    %73 = tpu.dynamic_rotate %2 by %c10_i32 dim 0 : vector<24x256xf32>, i32 -> vector<24x256xf32>
    %c14 = arith.constant 14 : index
    %c0_17 = arith.constant 0 : index
    %74 = vector.load %arg2[%c14, %c0_17] : memref<15x256xf32, #tpu.memory_space<vmem>>, vector<1x256xf32>
    %75 = vector.broadcast %74 : vector<1x256xf32> to vector<24x256xf32>
    %76 = arith.mulf %73, %75 : vector<24x256xf32>
    %77 = arith.addf %72, %76 : vector<24x256xf32>
    %78 = vector.extract_strided_slice %77 {offsets = [0, 0], sizes = [8, 256], strides = [1, 1]} : vector<24x256xf32> to vector<8x256xf32>
    %c0_18 = arith.constant 0 : index
    %c0_19 = arith.constant 0 : index
    %79 = vector.load %arg3[%c0_18, %c0_19] : memref<1x256xf32, #tpu.memory_space<vmem>>, vector<1x256xf32>
    %80 = vector.broadcast %79 : vector<1x256xf32> to vector<8x256xf32>
    %81 = arith.addf %78, %80 : vector<8x256xf32>
    %cst_20 = arith.constant 0.999994993 : f32
    %82 = vector.broadcast %cst_20 : f32 to vector<8x256xf32>
    %83 = arith.mulf %81, %82 : vector<8x256xf32>
    %84 = arith.negf %83 : vector<8x256xf32>
    %85 = math.exp %84 : vector<8x256xf32>
    %cst_21 = arith.constant 1.000000e+00 : f32
    %86 = vector.broadcast %cst_21 : f32 to vector<8x256xf32>
    %87 = arith.addf %86, %85 : vector<8x256xf32>
    %88 = arith.divf %86, %87 : vector<8x256xf32>
    %89 = arith.mulf %83, %88 : vector<8x256xf32>
    %90 = arith.truncf %89 : vector<8x256xf32> to vector<8x256xbf16>
    %c0_22 = arith.constant 0 : index
    %c0_23 = arith.constant 0 : index
    %c0_24 = arith.constant 0 : index
    %91 = vector.load %arg4[%c0_22, %c0_23, %c0_24] : memref<1x8x256xbf16, #tpu.memory_space<vmem>>, vector<1x8x256xbf16>
    %92 = vector.shape_cast %91 : vector<1x8x256xbf16> to vector<8x256xbf16>
    %93 = vector.shape_cast %90 : vector<8x256xbf16> to vector<1x8x256xbf16>
    tpu.vector_store %arg4[%c0_22, %c0_23, %c0_24], %93 {strides = array<i32>} : memref<1x8x256xbf16, #tpu.memory_space<vmem>>, vector<1x8x256xbf16>,
    return
  }
  func.func @transform_0(%arg0: i32) -> (i32, i32, i32) {
    %c0_i32 = arith.constant 0 : i32
    %c0_i32_0 = arith.constant 0 : i32
    %c0_i32_1 = arith.constant 0 : i32
    return %arg0, %c0_i32, %c0_i32_0 : i32, i32, i32
  }
  func.func @transform_1(%arg0: i32) -> (i32, i32) {
    %c0_i32 = arith.constant 0 : i32
    %c0_i32_0 = arith.constant 0 : i32
    %c0_i32_1 = arith.constant 0 : i32
    return %c0_i32, %c0_i32_0 : i32, i32
  }
  func.func @transform_2(%arg0: i32) -> (i32, i32) {
    %c0_i32 = arith.constant 0 : i32
    %c0_i32_0 = arith.constant 0 : i32
    %c0_i32_1 = arith.constant 0 : i32
    return %c0_i32, %c0_i32_0 : i32, i32
  }
  func.func @transform_3(%arg0: i32) -> (i32, i32, i32) {
    %c0_i32 = arith.constant 0 : i32
    %c0_i32_0 = arith.constant 0 : i32
    %c0_i32_1 = arith.constant 0 : i32
    return %arg0, %c0_i32, %c0_i32_0 : i32, i32, i32
  }
}

module attributes {stable_mosaic.version = 11 : i64} {
  func.func @_matmul_kernel(%arg0: i32, %arg1: i32, %arg2: i32, %arg3: memref<16x256xbf16, #tpu.memory_space<vmem>>, %arg4: memref<256x256xbf16, #tpu.memory_space<vmem>>, %arg5: memref<1x256xf32, #tpu.memory_space<vmem>>, %arg6: memref<16x1xf32, #tpu.memory_space<vmem>>, %arg7: memref<16x256xbf16, #tpu.memory_space<vmem>>, %arg8: memref<16x256xbf16, #tpu.memory_space<vmem>>, %arg9: memref<16x256xf32, #tpu.memory_space<vmem>>) attributes {dimension_semantics = [#tpu.dimension_semantics<parallel>, #tpu.dimension_semantics<parallel>, #tpu.dimension_semantics<arbitrary>], iteration_bounds = array<i64: 1, 1, 1>, scalar_prefetch = 0 : i64, scratch_operands = 1 : i64, tpu.core_type = #tpu.core_type<tc>, window_params = [{transform_indices = @transform_0, window_bounds = array<i64: 16, 256>}, {transform_indices = @transform_1, window_bounds = array<i64: 256, 256>}, {transform_indices = @transform_2, window_bounds = array<i64: 1, 256>}, {transform_indices = @transform_3, window_bounds = array<i64: 16, 1>}, {transform_indices = @transform_4, window_bounds = array<i64: 16, 256>}, {transform_indices = @transform_5, window_bounds = array<i64: 16, 256>}]} {
    %c0_i32 = arith.constant 0 : i32
    %0 = arith.cmpi eq, %arg2, %c0_i32 : i32
    %1 = arith.extui %0 : i1 to i32
    %c0_i32_0 = arith.constant 0 : i32
    %2 = arith.cmpi ne, %1, %c0_i32_0 : i32
    scf.if %2 {
      %cst_10 = arith.constant 0.000000e+00 : f32
      %12 = vector.broadcast %cst_10 : f32 to vector<16x256xf32>
      %c0_11 = arith.constant 0 : index
      %c0_12 = arith.constant 0 : index
      %13 = vector.load %arg9[%c0_11, %c0_12] : memref<16x256xf32, #tpu.memory_space<vmem>>, vector<16x256xf32>
      tpu.vector_store %arg9[%c0_11, %c0_12], %12 {strides = array<i32>} : memref<16x256xf32, #tpu.memory_space<vmem>>, vector<16x256xf32>,
    } else {
    }
    %c0 = arith.constant 0 : index
    %c0_1 = arith.constant 0 : index
    %3 = vector.load %arg9[%c0, %c0_1] : memref<16x256xf32, #tpu.memory_space<vmem>>, vector<16x256xf32>
    %c0_2 = arith.constant 0 : index
    %c0_3 = arith.constant 0 : index
    %4 = vector.load %arg3[%c0_2, %c0_3] : memref<16x256xbf16, #tpu.memory_space<vmem>>, vector<16x256xbf16>
    %c0_4 = arith.constant 0 : index
    %c0_5 = arith.constant 0 : index
    %5 = vector.load %arg4[%c0_4, %c0_5] : memref<256x256xbf16, #tpu.memory_space<vmem>>, vector<256x256xbf16>
    %cst = arith.constant dense<0.000000e+00> : vector<16x256xf32>
    %6 = tpu.matmul %4, %5, %cst {dimension_numbers = #tpu.dot_dimension_numbers<[1], [0], [0], [1], [0, 0, 1, 1], [], []>} : vector<16x256xbf16>, vector<256x256xbf16>, vector<16x256xf32> -> vector<16x256xf32>
    %7 = arith.addf %3, %6 : vector<16x256xf32>
    %c0_6 = arith.constant 0 : index
    %c0_7 = arith.constant 0 : index
    %8 = vector.load %arg9[%c0_6, %c0_7] : memref<16x256xf32, #tpu.memory_space<vmem>>, vector<16x256xf32>
    tpu.vector_store %arg9[%c0_6, %c0_7], %7 {strides = array<i32>} : memref<16x256xf32, #tpu.memory_space<vmem>>, vector<16x256xf32>,
    %c0_i32_8 = arith.constant 0 : i32
    %9 = arith.cmpi eq, %arg2, %c0_i32_8 : i32
    %10 = arith.extui %9 : i1 to i32
    %c0_i32_9 = arith.constant 0 : i32
    %11 = arith.cmpi ne, %10, %c0_i32_9 : i32
    scf.if %11 {
      %c0_10 = arith.constant 0 : index
      %c0_11 = arith.constant 0 : index
      %12 = vector.load %arg9[%c0_10, %c0_11] : memref<16x256xf32, #tpu.memory_space<vmem>>, vector<16x256xf32>
      %c0_12 = arith.constant 0 : index
      %c0_13 = arith.constant 0 : index
      %13 = vector.load %arg5[%c0_12, %c0_13] : memref<1x256xf32, #tpu.memory_space<vmem>>, vector<1x256xf32>
      %14 = vector.broadcast %13 : vector<1x256xf32> to vector<16x256xf32>
      %15 = arith.addf %12, %14 : vector<16x256xf32>
      %c0_14 = arith.constant 0 : index
      %c0_15 = arith.constant 0 : index
      %16 = vector.load %arg6[%c0_14, %c0_15] : memref<16x1xf32, #tpu.memory_space<vmem>>, vector<16x1xf32>
      %17 = vector.broadcast %16 : vector<16x1xf32> to vector<16x256xf32>
      %18 = arith.mulf %15, %17 : vector<16x256xf32>
      %c0_16 = arith.constant 0 : index
      %c0_17 = arith.constant 0 : index
      %19 = vector.load %arg7[%c0_16, %c0_17] : memref<16x256xbf16, #tpu.memory_space<vmem>>, vector<16x256xbf16>
      %20 = arith.extf %19 : vector<16x256xbf16> to vector<16x256xf32>
      %21 = arith.addf %18, %20 : vector<16x256xf32>
      %22 = arith.truncf %21 : vector<16x256xf32> to vector<16x256xbf16>
      %c0_18 = arith.constant 0 : index
      %c0_19 = arith.constant 0 : index
      %23 = vector.load %arg8[%c0_18, %c0_19] : memref<16x256xbf16, #tpu.memory_space<vmem>>, vector<16x256xbf16>
      tpu.vector_store %arg8[%c0_18, %c0_19], %22 {strides = array<i32>} : memref<16x256xbf16, #tpu.memory_space<vmem>>, vector<16x256xbf16>,
    } else {
    }
    return
  }
  func.func @transform_0(%arg0: i32, %arg1: i32, %arg2: i32) -> (i32, i32) {
    %c0_i32 = arith.constant 0 : i32
    return %arg0, %arg2 : i32, i32
  }
  func.func @transform_1(%arg0: i32, %arg1: i32, %arg2: i32) -> (i32, i32) {
    %c0_i32 = arith.constant 0 : i32
    return %arg2, %arg1 : i32, i32
  }
  func.func @transform_2(%arg0: i32, %arg1: i32, %arg2: i32) -> (i32, i32) {
    %c0_i32 = arith.constant 0 : i32
    %c0_i32_0 = arith.constant 0 : i32
    return %c0_i32, %arg1 : i32, i32
  }
  func.func @transform_3(%arg0: i32, %arg1: i32, %arg2: i32) -> (i32, i32) {
    %c0_i32 = arith.constant 0 : i32
    %c0_i32_0 = arith.constant 0 : i32
    return %arg0, %c0_i32 : i32, i32
  }
  func.func @transform_4(%arg0: i32, %arg1: i32, %arg2: i32) -> (i32, i32) {
    %c0_i32 = arith.constant 0 : i32
    return %arg0, %arg1 : i32, i32
  }
  func.func @transform_5(%arg0: i32, %arg1: i32, %arg2: i32) -> (i32, i32) {
    %c0_i32 = arith.constant 0 : i32
    return %arg0, %arg1 : i32, i32
  }
}

module attributes {stable_mosaic.version = 11 : i64} {
  func.func @_ln_kernel(%arg0: i32, %arg1: memref<16x256xbf16, #tpu.memory_space<vmem>>, %arg2: memref<1x256xf32, #tpu.memory_space<vmem>>, %arg3: memref<1x256xf32, #tpu.memory_space<vmem>>, %arg4: memref<16x256xbf16, #tpu.memory_space<vmem>>) attributes {dimension_semantics = [#tpu.dimension_semantics<parallel>], iteration_bounds = array<i64: 1>, scalar_prefetch = 0 : i64, scratch_operands = 0 : i64, tpu.core_type = #tpu.core_type<tc>, window_params = [{transform_indices = @transform_0, window_bounds = array<i64: 16, 256>}, {pipeline_mode = #tpu.pipeline_mode<synchronous>, transform_indices = @transform_1, window_bounds = array<i64: 1, 256>}, {pipeline_mode = #tpu.pipeline_mode<synchronous>, transform_indices = @transform_2, window_bounds = array<i64: 1, 256>}, {transform_indices = @transform_3, window_bounds = array<i64: 16, 256>}]} {
    %c0 = arith.constant 0 : index
    %c0_0 = arith.constant 0 : index
    %0 = vector.load %arg1[%c0, %c0_0] : memref<16x256xbf16, #tpu.memory_space<vmem>>, vector<16x256xbf16>
    %1 = arith.extf %0 : vector<16x256xbf16> to vector<16x256xf32>
    %c0_1 = arith.constant 0 : index
    %c0_2 = arith.constant 0 : index
    %2 = vector.load %arg2[%c0_1, %c0_2] : memref<1x256xf32, #tpu.memory_space<vmem>>, vector<1x256xf32>
    %c0_3 = arith.constant 0 : index
    %c0_4 = arith.constant 0 : index
    %3 = vector.load %arg3[%c0_3, %c0_4] : memref<1x256xf32, #tpu.memory_space<vmem>>, vector<1x256xf32>
    %cst = arith.constant dense<0.000000e+00> : vector<16xf32>
    %4 = vector.multi_reduction <add>, %1, %cst [1] : vector<16x256xf32> to vector<16xf32>
    %5 = vector.shape_cast %4 : vector<16xf32> to vector<16x1xf32>
    %cst_5 = arith.constant 2.560000e+02 : f32
    %6 = vector.broadcast %cst_5 : f32 to vector<16x1xf32>
    %7 = arith.divf %5, %6 : vector<16x1xf32>
    %8 = vector.broadcast %7 : vector<16x1xf32> to vector<16x256xf32>
    %9 = arith.subf %1, %8 : vector<16x256xf32>
    %10 = arith.mulf %9, %9 : vector<16x256xf32>
    %cst_6 = arith.constant dense<0.000000e+00> : vector<16xf32>
    %11 = vector.multi_reduction <add>, %10, %cst_6 [1] : vector<16x256xf32> to vector<16xf32>
    %12 = vector.shape_cast %11 : vector<16xf32> to vector<16x1xf32>
    %cst_7 = arith.constant 2.560000e+02 : f32
    %13 = vector.broadcast %cst_7 : f32 to vector<16x1xf32>
    %14 = arith.divf %12, %13 : vector<16x1xf32>
    %15 = vector.broadcast %7 : vector<16x1xf32> to vector<16x256xf32>
    %16 = arith.subf %1, %15 : vector<16x256xf32>
    %cst_8 = arith.constant 9.99999974E-6 : f32
    %17 = vector.broadcast %cst_8 : f32 to vector<16x1xf32>
    %18 = arith.addf %14, %17 : vector<16x1xf32>
    %19 = math.rsqrt %18 : vector<16x1xf32>
    %20 = vector.broadcast %19 : vector<16x1xf32> to vector<16x256xf32>
    %21 = arith.mulf %16, %20 : vector<16x256xf32>
    %22 = vector.broadcast %2 : vector<1x256xf32> to vector<16x256xf32>
    %23 = arith.mulf %21, %22 : vector<16x256xf32>
    %24 = vector.broadcast %3 : vector<1x256xf32> to vector<16x256xf32>
    %25 = arith.addf %23, %24 : vector<16x256xf32>
    %26 = arith.truncf %25 : vector<16x256xf32> to vector<16x256xbf16>
    %c0_9 = arith.constant 0 : index
    %c0_10 = arith.constant 0 : index
    %27 = vector.load %arg4[%c0_9, %c0_10] : memref<16x256xbf16, #tpu.memory_space<vmem>>, vector<16x256xbf16>
    tpu.vector_store %arg4[%c0_9, %c0_10], %26 {strides = array<i32>} : memref<16x256xbf16, #tpu.memory_space<vmem>>, vector<16x256xbf16>,
    return
  }
  func.func @transform_0(%arg0: i32) -> (i32, i32) {
    %c0_i32 = arith.constant 0 : i32
    %c0_i32_0 = arith.constant 0 : i32
    return %arg0, %c0_i32 : i32, i32
  }
  func.func @transform_1(%arg0: i32) -> (i32, i32) {
    %c0_i32 = arith.constant 0 : i32
    %c0_i32_0 = arith.constant 0 : i32
    %c0_i32_1 = arith.constant 0 : i32
    return %c0_i32, %c0_i32_0 : i32, i32
  }
  func.func @transform_2(%arg0: i32) -> (i32, i32) {
    %c0_i32 = arith.constant 0 : i32
    %c0_i32_0 = arith.constant 0 : i32
    %c0_i32_1 = arith.constant 0 : i32
    return %c0_i32, %c0_i32_0 : i32, i32
  }
  func.func @transform_3(%arg0: i32) -> (i32, i32) {
    %c0_i32 = arith.constant 0 : i32
    %c0_i32_0 = arith.constant 0 : i32
    return %arg0, %c0_i32 : i32, i32
  }
}

module attributes {stable_mosaic.version = 11 : i64} {
  func.func @_dwconv_kernel(%arg0: i32, %arg1: memref<1x24x256xbf16, #tpu.memory_space<vmem>>, %arg2: memref<15x256xf32, #tpu.memory_space<vmem>>, %arg3: memref<1x256xf32, #tpu.memory_space<vmem>>, %arg4: memref<1x8x256xbf16, #tpu.memory_space<vmem>>) attributes {dimension_semantics = [#tpu.dimension_semantics<parallel>], iteration_bounds = array<i64: 2>, scalar_prefetch = 0 : i64, scratch_operands = 0 : i64, tpu.core_type = #tpu.core_type<tc>, window_params = [{transform_indices = @transform_0, window_bounds = array<i64: 1, 24, 256>}, {pipeline_mode = #tpu.pipeline_mode<synchronous>, transform_indices = @transform_1, window_bounds = array<i64: 15, 256>}, {pipeline_mode = #tpu.pipeline_mode<synchronous>, transform_indices = @transform_2, window_bounds = array<i64: 1, 256>}, {transform_indices = @transform_3, window_bounds = array<i64: 1, 8, 256>}]} {
    %c0 = arith.constant 0 : index
    %c0_0 = arith.constant 0 : index
    %c0_1 = arith.constant 0 : index
    %0 = vector.load %arg1[%c0, %c0_0, %c0_1] : memref<1x24x256xbf16, #tpu.memory_space<vmem>>, vector<1x24x256xbf16>
    %1 = vector.shape_cast %0 : vector<1x24x256xbf16> to vector<24x256xbf16>
    %2 = arith.extf %1 : vector<24x256xbf16> to vector<24x256xf32>
    %cst = arith.constant 0.000000e+00 : f32
    %3 = vector.broadcast %cst : f32 to vector<24x256xf32>
    %c0_2 = arith.constant 0 : index
    %c0_3 = arith.constant 0 : index
    %4 = vector.load %arg2[%c0_2, %c0_3] : memref<15x256xf32, #tpu.memory_space<vmem>>, vector<1x256xf32>
    %5 = vector.broadcast %4 : vector<1x256xf32> to vector<24x256xf32>
    %6 = arith.mulf %2, %5 : vector<24x256xf32>
    %7 = arith.addf %3, %6 : vector<24x256xf32>
    %c23_i32 = arith.constant 23 : i32
    %8 = tpu.dynamic_rotate %2 by %c23_i32 dim 0 : vector<24x256xf32>, i32 -> vector<24x256xf32>
    %c1 = arith.constant 1 : index
    %c0_4 = arith.constant 0 : index
    %9 = vector.load %arg2[%c1, %c0_4] : memref<15x256xf32, #tpu.memory_space<vmem>>, vector<1x256xf32>
    %10 = vector.broadcast %9 : vector<1x256xf32> to vector<24x256xf32>
    %11 = arith.mulf %8, %10 : vector<24x256xf32>
    %12 = arith.addf %7, %11 : vector<24x256xf32>
    %c22_i32 = arith.constant 22 : i32
    %13 = tpu.dynamic_rotate %2 by %c22_i32 dim 0 : vector<24x256xf32>, i32 -> vector<24x256xf32>
    %c2 = arith.constant 2 : index
    %c0_5 = arith.constant 0 : index
    %14 = vector.load %arg2[%c2, %c0_5] : memref<15x256xf32, #tpu.memory_space<vmem>>, vector<1x256xf32>
    %15 = vector.broadcast %14 : vector<1x256xf32> to vector<24x256xf32>
    %16 = arith.mulf %13, %15 : vector<24x256xf32>
    %17 = arith.addf %12, %16 : vector<24x256xf32>
    %c21_i32 = arith.constant 21 : i32
    %18 = tpu.dynamic_rotate %2 by %c21_i32 dim 0 : vector<24x256xf32>, i32 -> vector<24x256xf32>
    %c3 = arith.constant 3 : index
    %c0_6 = arith.constant 0 : index
    %19 = vector.load %arg2[%c3, %c0_6] : memref<15x256xf32, #tpu.memory_space<vmem>>, vector<1x256xf32>
    %20 = vector.broadcast %19 : vector<1x256xf32> to vector<24x256xf32>
    %21 = arith.mulf %18, %20 : vector<24x256xf32>
    %22 = arith.addf %17, %21 : vector<24x256xf32>
    %c20_i32 = arith.constant 20 : i32
    %23 = tpu.dynamic_rotate %2 by %c20_i32 dim 0 : vector<24x256xf32>, i32 -> vector<24x256xf32>
    %c4 = arith.constant 4 : index
    %c0_7 = arith.constant 0 : index
    %24 = vector.load %arg2[%c4, %c0_7] : memref<15x256xf32, #tpu.memory_space<vmem>>, vector<1x256xf32>
    %25 = vector.broadcast %24 : vector<1x256xf32> to vector<24x256xf32>
    %26 = arith.mulf %23, %25 : vector<24x256xf32>
    %27 = arith.addf %22, %26 : vector<24x256xf32>
    %c19_i32 = arith.constant 19 : i32
    %28 = tpu.dynamic_rotate %2 by %c19_i32 dim 0 : vector<24x256xf32>, i32 -> vector<24x256xf32>
    %c5 = arith.constant 5 : index
    %c0_8 = arith.constant 0 : index
    %29 = vector.load %arg2[%c5, %c0_8] : memref<15x256xf32, #tpu.memory_space<vmem>>, vector<1x256xf32>
    %30 = vector.broadcast %29 : vector<1x256xf32> to vector<24x256xf32>
    %31 = arith.mulf %28, %30 : vector<24x256xf32>
    %32 = arith.addf %27, %31 : vector<24x256xf32>
    %c18_i32 = arith.constant 18 : i32
    %33 = tpu.dynamic_rotate %2 by %c18_i32 dim 0 : vector<24x256xf32>, i32 -> vector<24x256xf32>
    %c6 = arith.constant 6 : index
    %c0_9 = arith.constant 0 : index
    %34 = vector.load %arg2[%c6, %c0_9] : memref<15x256xf32, #tpu.memory_space<vmem>>, vector<1x256xf32>
    %35 = vector.broadcast %34 : vector<1x256xf32> to vector<24x256xf32>
    %36 = arith.mulf %33, %35 : vector<24x256xf32>
    %37 = arith.addf %32, %36 : vector<24x256xf32>
    %c17_i32 = arith.constant 17 : i32
    %38 = tpu.dynamic_rotate %2 by %c17_i32 dim 0 : vector<24x256xf32>, i32 -> vector<24x256xf32>
    %c7 = arith.constant 7 : index
    %c0_10 = arith.constant 0 : index
    %39 = vector.load %arg2[%c7, %c0_10] : memref<15x256xf32, #tpu.memory_space<vmem>>, vector<1x256xf32>
    %40 = vector.broadcast %39 : vector<1x256xf32> to vector<24x256xf32>
    %41 = arith.mulf %38, %40 : vector<24x256xf32>
    %42 = arith.addf %37, %41 : vector<24x256xf32>
    %c16_i32 = arith.constant 16 : i32
    %43 = tpu.dynamic_rotate %2 by %c16_i32 dim 0 : vector<24x256xf32>, i32 -> vector<24x256xf32>
    %c8 = arith.constant 8 : index
    %c0_11 = arith.constant 0 : index
    %44 = vector.load %arg2[%c8, %c0_11] : memref<15x256xf32, #tpu.memory_space<vmem>>, vector<1x256xf32>
    %45 = vector.broadcast %44 : vector<1x256xf32> to vector<24x256xf32>
    %46 = arith.mulf %43, %45 : vector<24x256xf32>
    %47 = arith.addf %42, %46 : vector<24x256xf32>
    %c15_i32 = arith.constant 15 : i32
    %48 = tpu.dynamic_rotate %2 by %c15_i32 dim 0 : vector<24x256xf32>, i32 -> vector<24x256xf32>
    %c9 = arith.constant 9 : index
    %c0_12 = arith.constant 0 : index
    %49 = vector.load %arg2[%c9, %c0_12] : memref<15x256xf32, #tpu.memory_space<vmem>>, vector<1x256xf32>
    %50 = vector.broadcast %49 : vector<1x256xf32> to vector<24x256xf32>
    %51 = arith.mulf %48, %50 : vector<24x256xf32>
    %52 = arith.addf %47, %51 : vector<24x256xf32>
    %c14_i32 = arith.constant 14 : i32
    %53 = tpu.dynamic_rotate %2 by %c14_i32 dim 0 : vector<24x256xf32>, i32 -> vector<24x256xf32>
    %c10 = arith.constant 10 : index
    %c0_13 = arith.constant 0 : index
    %54 = vector.load %arg2[%c10, %c0_13] : memref<15x256xf32, #tpu.memory_space<vmem>>, vector<1x256xf32>
    %55 = vector.broadcast %54 : vector<1x256xf32> to vector<24x256xf32>
    %56 = arith.mulf %53, %55 : vector<24x256xf32>
    %57 = arith.addf %52, %56 : vector<24x256xf32>
    %c13_i32 = arith.constant 13 : i32
    %58 = tpu.dynamic_rotate %2 by %c13_i32 dim 0 : vector<24x256xf32>, i32 -> vector<24x256xf32>
    %c11 = arith.constant 11 : index
    %c0_14 = arith.constant 0 : index
    %59 = vector.load %arg2[%c11, %c0_14] : memref<15x256xf32, #tpu.memory_space<vmem>>, vector<1x256xf32>
    %60 = vector.broadcast %59 : vector<1x256xf32> to vector<24x256xf32>
    %61 = arith.mulf %58, %60 : vector<24x256xf32>
    %62 = arith.addf %57, %61 : vector<24x256xf32>
    %c12_i32 = arith.constant 12 : i32
    %63 = tpu.dynamic_rotate %2 by %c12_i32 dim 0 : vector<24x256xf32>, i32 -> vector<24x256xf32>
    %c12 = arith.constant 12 : index
    %c0_15 = arith.constant 0 : index
    %64 = vector.load %arg2[%c12, %c0_15] : memref<15x256xf32, #tpu.memory_space<vmem>>, vector<1x256xf32>
    %65 = vector.broadcast %64 : vector<1x256xf32> to vector<24x256xf32>
    %66 = arith.mulf %63, %65 : vector<24x256xf32>
    %67 = arith.addf %62, %66 : vector<24x256xf32>
    %c11_i32 = arith.constant 11 : i32
    %68 = tpu.dynamic_rotate %2 by %c11_i32 dim 0 : vector<24x256xf32>, i32 -> vector<24x256xf32>
    %c13 = arith.constant 13 : index
    %c0_16 = arith.constant 0 : index
    %69 = vector.load %arg2[%c13, %c0_16] : memref<15x256xf32, #tpu.memory_space<vmem>>, vector<1x256xf32>
    %70 = vector.broadcast %69 : vector<1x256xf32> to vector<24x256xf32>
    %71 = arith.mulf %68, %70 : vector<24x256xf32>
    %72 = arith.addf %67, %71 : vector<24x256xf32>
    %c10_i32 = arith.constant 10 : i32
    %73 = tpu.dynamic_rotate %2 by %c10_i32 dim 0 : vector<24x256xf32>, i32 -> vector<24x256xf32>
    %c14 = arith.constant 14 : index
    %c0_17 = arith.constant 0 : index
    %74 = vector.load %arg2[%c14, %c0_17] : memref<15x256xf32, #tpu.memory_space<vmem>>, vector<1x256xf32>
    %75 = vector.broadcast %74 : vector<1x256xf32> to vector<24x256xf32>
    %76 = arith.mulf %73, %75 : vector<24x256xf32>
    %77 = arith.addf %72, %76 : vector<24x256xf32>
    %78 = vector.extract_strided_slice %77 {offsets = [0, 0], sizes = [8, 256], strides = [1, 1]} : vector<24x256xf32> to vector<8x256xf32>
    %c0_18 = arith.constant 0 : index
    %c0_19 = arith.constant 0 : index
    %79 = vector.load %arg3[%c0_18, %c0_19] : memref<1x256xf32, #tpu.memory_space<vmem>>, vector<1x256xf32>
    %80 = vector.broadcast %79 : vector<1x256xf32> to vector<8x256xf32>
    %81 = arith.addf %78, %80 : vector<8x256xf32>
    %cst_20 = arith.constant 0.999994993 : f32
    %82 = vector.broadcast %cst_20 : f32 to vector<8x256xf32>
    %83 = arith.mulf %81, %82 : vector<8x256xf32>
    %84 = arith.negf %83 : vector<8x256xf32>
    %85 = math.exp %84 : vector<8x256xf32>
    %cst_21 = arith.constant 1.000000e+00 : f32
    %86 = vector.broadcast %cst_21 : f32 to vector<8x256xf32>
    %87 = arith.addf %86, %85 : vector<8x256xf32>
    %88 = arith.divf %86, %87 : vector<8x256xf32>
    %89 = arith.mulf %83, %88 : vector<8x256xf32>
    %90 = arith.truncf %89 : vector<8x256xf32> to vector<8x256xbf16>
    %c0_22 = arith.constant 0 : index
    %c0_23 = arith.constant 0 : index
    %c0_24 = arith.constant 0 : index
    %91 = vector.load %arg4[%c0_22, %c0_23, %c0_24] : memref<1x8x256xbf16, #tpu.memory_space<vmem>>, vector<1x8x256xbf16>
    %92 = vector.shape_cast %91 : vector<1x8x256xbf16> to vector<8x256xbf16>
    %93 = vector.shape_cast %90 : vector<8x256xbf16> to vector<1x8x256xbf16>
    tpu.vector_store %arg4[%c0_22, %c0_23, %c0_24], %93 {strides = array<i32>} : memref<1x8x256xbf16, #tpu.memory_space<vmem>>, vector<1x8x256xbf16>,
    return
  }
  func.func @transform_0(%arg0: i32) -> (i32, i32, i32) {
    %c0_i32 = arith.constant 0 : i32
    %c0_i32_0 = arith.constant 0 : i32
    %c0_i32_1 = arith.constant 0 : i32
    return %arg0, %c0_i32, %c0_i32_0 : i32, i32, i32
  }
  func.func @transform_1(%arg0: i32) -> (i32, i32) {
    %c0_i32 = arith.constant 0 : i32
    %c0_i32_0 = arith.constant 0 : i32
    %c0_i32_1 = arith.constant 0 : i32
    return %c0_i32, %c0_i32_0 : i32, i32
  }
  func.func @transform_2(%arg0: i32) -> (i32, i32) {
    %c0_i32 = arith.constant 0 : i32
    %c0_i32_0 = arith.constant 0 : i32
    %c0_i32_1 = arith.constant 0 : i32
    return %c0_i32, %c0_i32_0 : i32, i32
  }
  func.func @transform_3(%arg0: i32) -> (i32, i32, i32) {
    %c0_i32 = arith.constant 0 : i32
    %c0_i32_0 = arith.constant 0 : i32
    %c0_i32_1 = arith.constant 0 : i32
    return %arg0, %c0_i32, %c0_i32_0 : i32, i32, i32
  }
}

module attributes {stable_mosaic.version = 11 : i64} {
  func.func @_ln_kernel(%arg0: i32, %arg1: memref<16x256xbf16, #tpu.memory_space<vmem>>, %arg2: memref<1x256xf32, #tpu.memory_space<vmem>>, %arg3: memref<1x256xf32, #tpu.memory_space<vmem>>, %arg4: memref<16x256xbf16, #tpu.memory_space<vmem>>) attributes {dimension_semantics = [#tpu.dimension_semantics<parallel>], iteration_bounds = array<i64: 1>, scalar_prefetch = 0 : i64, scratch_operands = 0 : i64, tpu.core_type = #tpu.core_type<tc>, window_params = [{transform_indices = @transform_0, window_bounds = array<i64: 16, 256>}, {pipeline_mode = #tpu.pipeline_mode<synchronous>, transform_indices = @transform_1, window_bounds = array<i64: 1, 256>}, {pipeline_mode = #tpu.pipeline_mode<synchronous>, transform_indices = @transform_2, window_bounds = array<i64: 1, 256>}, {transform_indices = @transform_3, window_bounds = array<i64: 16, 256>}]} {
    %c0 = arith.constant 0 : index
    %c0_0 = arith.constant 0 : index
    %0 = vector.load %arg1[%c0, %c0_0] : memref<16x256xbf16, #tpu.memory_space<vmem>>, vector<16x256xbf16>
    %1 = arith.extf %0 : vector<16x256xbf16> to vector<16x256xf32>
    %c0_1 = arith.constant 0 : index
    %c0_2 = arith.constant 0 : index
    %2 = vector.load %arg2[%c0_1, %c0_2] : memref<1x256xf32, #tpu.memory_space<vmem>>, vector<1x256xf32>
    %c0_3 = arith.constant 0 : index
    %c0_4 = arith.constant 0 : index
    %3 = vector.load %arg3[%c0_3, %c0_4] : memref<1x256xf32, #tpu.memory_space<vmem>>, vector<1x256xf32>
    %cst = arith.constant dense<0.000000e+00> : vector<16xf32>
    %4 = vector.multi_reduction <add>, %1, %cst [1] : vector<16x256xf32> to vector<16xf32>
    %5 = vector.shape_cast %4 : vector<16xf32> to vector<16x1xf32>
    %cst_5 = arith.constant 2.560000e+02 : f32
    %6 = vector.broadcast %cst_5 : f32 to vector<16x1xf32>
    %7 = arith.divf %5, %6 : vector<16x1xf32>
    %8 = vector.broadcast %7 : vector<16x1xf32> to vector<16x256xf32>
    %9 = arith.subf %1, %8 : vector<16x256xf32>
    %10 = arith.mulf %9, %9 : vector<16x256xf32>
    %cst_6 = arith.constant dense<0.000000e+00> : vector<16xf32>
    %11 = vector.multi_reduction <add>, %10, %cst_6 [1] : vector<16x256xf32> to vector<16xf32>
    %12 = vector.shape_cast %11 : vector<16xf32> to vector<16x1xf32>
    %cst_7 = arith.constant 2.560000e+02 : f32
    %13 = vector.broadcast %cst_7 : f32 to vector<16x1xf32>
    %14 = arith.divf %12, %13 : vector<16x1xf32>
    %15 = vector.broadcast %7 : vector<16x1xf32> to vector<16x256xf32>
    %16 = arith.subf %1, %15 : vector<16x256xf32>
    %cst_8 = arith.constant 9.99999974E-6 : f32
    %17 = vector.broadcast %cst_8 : f32 to vector<16x1xf32>
    %18 = arith.addf %14, %17 : vector<16x1xf32>
    %19 = math.rsqrt %18 : vector<16x1xf32>
    %20 = vector.broadcast %19 : vector<16x1xf32> to vector<16x256xf32>
    %21 = arith.mulf %16, %20 : vector<16x256xf32>
    %22 = vector.broadcast %2 : vector<1x256xf32> to vector<16x256xf32>
    %23 = arith.mulf %21, %22 : vector<16x256xf32>
    %24 = vector.broadcast %3 : vector<1x256xf32> to vector<16x256xf32>
    %25 = arith.addf %23, %24 : vector<16x256xf32>
    %26 = arith.truncf %25 : vector<16x256xf32> to vector<16x256xbf16>
    %c0_9 = arith.constant 0 : index
    %c0_10 = arith.constant 0 : index
    %27 = vector.load %arg4[%c0_9, %c0_10] : memref<16x256xbf16, #tpu.memory_space<vmem>>, vector<16x256xbf16>
    tpu.vector_store %arg4[%c0_9, %c0_10], %26 {strides = array<i32>} : memref<16x256xbf16, #tpu.memory_space<vmem>>, vector<16x256xbf16>,
    return
  }
  func.func @transform_0(%arg0: i32) -> (i32, i32) {
    %c0_i32 = arith.constant 0 : i32
    %c0_i32_0 = arith.constant 0 : i32
    return %arg0, %c0_i32 : i32, i32
  }
  func.func @transform_1(%arg0: i32) -> (i32, i32) {
    %c0_i32 = arith.constant 0 : i32
    %c0_i32_0 = arith.constant 0 : i32
    %c0_i32_1 = arith.constant 0 : i32
    return %c0_i32, %c0_i32_0 : i32, i32
  }
  func.func @transform_2(%arg0: i32) -> (i32, i32) {
    %c0_i32 = arith.constant 0 : i32
    %c0_i32_0 = arith.constant 0 : i32
    %c0_i32_1 = arith.constant 0 : i32
    return %c0_i32, %c0_i32_0 : i32, i32
  }
  func.func @transform_3(%arg0: i32) -> (i32, i32) {
    %c0_i32 = arith.constant 0 : i32
    %c0_i32_0 = arith.constant 0 : i32
    return %arg0, %c0_i32 : i32, i32
  }
}

module attributes {stable_mosaic.version = 11 : i64} {
  func.func @_matmul_kernel(%arg0: i32, %arg1: i32, %arg2: i32, %arg3: memref<16x256xbf16, #tpu.memory_space<vmem>>, %arg4: memref<256x512xbf16, #tpu.memory_space<vmem>>, %arg5: memref<1x512xf32, #tpu.memory_space<vmem>>, %arg6: memref<16x512xbf16, #tpu.memory_space<vmem>>, %arg7: memref<16x512xf32, #tpu.memory_space<vmem>>) attributes {dimension_semantics = [#tpu.dimension_semantics<parallel>, #tpu.dimension_semantics<parallel>, #tpu.dimension_semantics<arbitrary>], iteration_bounds = array<i64: 1, 1, 1>, scalar_prefetch = 0 : i64, scratch_operands = 1 : i64, tpu.core_type = #tpu.core_type<tc>, window_params = [{transform_indices = @transform_0, window_bounds = array<i64: 16, 256>}, {transform_indices = @transform_1, window_bounds = array<i64: 256, 512>}, {transform_indices = @transform_2, window_bounds = array<i64: 1, 512>}, {transform_indices = @transform_3, window_bounds = array<i64: 16, 512>}]} {
    %c0_i32 = arith.constant 0 : i32
    %0 = arith.cmpi eq, %arg2, %c0_i32 : i32
    %1 = arith.extui %0 : i1 to i32
    %c0_i32_0 = arith.constant 0 : i32
    %2 = arith.cmpi ne, %1, %c0_i32_0 : i32
    scf.if %2 {
      %cst_10 = arith.constant 0.000000e+00 : f32
      %12 = vector.broadcast %cst_10 : f32 to vector<16x512xf32>
      %c0_11 = arith.constant 0 : index
      %c0_12 = arith.constant 0 : index
      %13 = vector.load %arg7[%c0_11, %c0_12] : memref<16x512xf32, #tpu.memory_space<vmem>>, vector<16x512xf32>
      tpu.vector_store %arg7[%c0_11, %c0_12], %12 {strides = array<i32>} : memref<16x512xf32, #tpu.memory_space<vmem>>, vector<16x512xf32>,
    } else {
    }
    %c0 = arith.constant 0 : index
    %c0_1 = arith.constant 0 : index
    %3 = vector.load %arg7[%c0, %c0_1] : memref<16x512xf32, #tpu.memory_space<vmem>>, vector<16x512xf32>
    %c0_2 = arith.constant 0 : index
    %c0_3 = arith.constant 0 : index
    %4 = vector.load %arg3[%c0_2, %c0_3] : memref<16x256xbf16, #tpu.memory_space<vmem>>, vector<16x256xbf16>
    %c0_4 = arith.constant 0 : index
    %c0_5 = arith.constant 0 : index
    %5 = vector.load %arg4[%c0_4, %c0_5] : memref<256x512xbf16, #tpu.memory_space<vmem>>, vector<256x512xbf16>
    %cst = arith.constant dense<0.000000e+00> : vector<16x512xf32>
    %6 = tpu.matmul %4, %5, %cst {dimension_numbers = #tpu.dot_dimension_numbers<[1], [0], [0], [1], [0, 0, 1, 1], [], []>} : vector<16x256xbf16>, vector<256x512xbf16>, vector<16x512xf32> -> vector<16x512xf32>
    %7 = arith.addf %3, %6 : vector<16x512xf32>
    %c0_6 = arith.constant 0 : index
    %c0_7 = arith.constant 0 : index
    %8 = vector.load %arg7[%c0_6, %c0_7] : memref<16x512xf32, #tpu.memory_space<vmem>>, vector<16x512xf32>
    tpu.vector_store %arg7[%c0_6, %c0_7], %7 {strides = array<i32>} : memref<16x512xf32, #tpu.memory_space<vmem>>, vector<16x512xf32>,
    %c0_i32_8 = arith.constant 0 : i32
    %9 = arith.cmpi eq, %arg2, %c0_i32_8 : i32
    %10 = arith.extui %9 : i1 to i32
    %c0_i32_9 = arith.constant 0 : i32
    %11 = arith.cmpi ne, %10, %c0_i32_9 : i32
    scf.if %11 {
      %c0_10 = arith.constant 0 : index
      %c0_11 = arith.constant 0 : index
      %12 = vector.load %arg7[%c0_10, %c0_11] : memref<16x512xf32, #tpu.memory_space<vmem>>, vector<16x512xf32>
      %c0_12 = arith.constant 0 : index
      %c0_13 = arith.constant 0 : index
      %13 = vector.load %arg5[%c0_12, %c0_13] : memref<1x512xf32, #tpu.memory_space<vmem>>, vector<1x512xf32>
      %14 = vector.broadcast %13 : vector<1x512xf32> to vector<16x512xf32>
      %15 = arith.addf %12, %14 : vector<16x512xf32>
      %16 = arith.truncf %15 : vector<16x512xf32> to vector<16x512xbf16>
      %c0_14 = arith.constant 0 : index
      %c0_15 = arith.constant 0 : index
      %17 = vector.load %arg6[%c0_14, %c0_15] : memref<16x512xbf16, #tpu.memory_space<vmem>>, vector<16x512xbf16>
      tpu.vector_store %arg6[%c0_14, %c0_15], %16 {strides = array<i32>} : memref<16x512xbf16, #tpu.memory_space<vmem>>, vector<16x512xbf16>,
    } else {
    }
    return
  }
  func.func @transform_0(%arg0: i32, %arg1: i32, %arg2: i32) -> (i32, i32) {
    %c0_i32 = arith.constant 0 : i32
    return %arg0, %arg2 : i32, i32
  }
  func.func @transform_1(%arg0: i32, %arg1: i32, %arg2: i32) -> (i32, i32) {
    %c0_i32 = arith.constant 0 : i32
    return %arg2, %arg1 : i32, i32
  }
  func.func @transform_2(%arg0: i32, %arg1: i32, %arg2: i32) -> (i32, i32) {
    %c0_i32 = arith.constant 0 : i32
    %c0_i32_0 = arith.constant 0 : i32
    return %c0_i32, %arg1 : i32, i32
  }
  func.func @transform_3(%arg0: i32, %arg1: i32, %arg2: i32) -> (i32, i32) {
    %c0_i32 = arith.constant 0 : i32
    return %arg0, %arg1 : i32, i32
  }
}

module attributes {stable_mosaic.version = 11 : i64} {
  func.func @_flash_attn_kernel(%arg0: i32, %arg1: i32, %arg2: i32, %arg3: memref<2xi32, #tpu.memory_space<smem>>, %arg4: memref<1x8x256xbf16, #tpu.memory_space<vmem>>, %arg5: memref<1x8x256xbf16, #tpu.memory_space<vmem>>, %arg6: memref<1x8x256xbf16, #tpu.memory_space<vmem>>, %arg7: memref<1x8x256xbf16, #tpu.memory_space<vmem>>, %arg8: memref<2x8x1xf32, #tpu.memory_space<vmem>>, %arg9: memref<2x8x1xf32, #tpu.memory_space<vmem>>, %arg10: memref<2x8x128xf32, #tpu.memory_space<vmem>>) attributes {dimension_semantics = [#tpu.dimension_semantics<parallel>, #tpu.dimension_semantics<parallel>, #tpu.dimension_semantics<arbitrary>], iteration_bounds = array<i64: 2, 1, 1>, scalar_prefetch = 1 : i64, scratch_operands = 3 : i64, tpu.core_type = #tpu.core_type<tc>, window_params = [{transform_indices = @transform_0, window_bounds = array<i64: 1, 8, 256>}, {transform_indices = @transform_1, window_bounds = array<i64: 1, 8, 256>}, {transform_indices = @transform_2, window_bounds = array<i64: 1, 8, 256>}, {transform_indices = @transform_3, window_bounds = array<i64: 1, 8, 256>}]} {
    %c0_i32 = arith.constant 0 : i32
    %0 = arith.cmpi eq, %arg2, %c0_i32 : i32
    %1 = arith.extui %0 : i1 to i32
    %c0_i32_0 = arith.constant 0 : i32
    %2 = arith.cmpi ne, %1, %c0_i32_0 : i32
    scf.if %2 {
      %cst_59 = arith.constant 0xFF800000 : f32
      %104 = vector.broadcast %cst_59 : f32 to vector<2x8x1xf32>
      %c0_60 = arith.constant 0 : index
      %c0_61 = arith.constant 0 : index
      %c0_62 = arith.constant 0 : index
      %105 = vector.load %arg8[%c0_60, %c0_61, %c0_62] : memref<2x8x1xf32, #tpu.memory_space<vmem>>, vector<2x8x1xf32>
      tpu.vector_store %arg8[%c0_60, %c0_61, %c0_62], %104 {strides = array<i32>} : memref<2x8x1xf32, #tpu.memory_space<vmem>>, vector<2x8x1xf32>,
      %cst_63 = arith.constant 0.000000e+00 : f32
      %106 = vector.broadcast %cst_63 : f32 to vector<2x8x1xf32>
      %c0_64 = arith.constant 0 : index
      %c0_65 = arith.constant 0 : index
      %c0_66 = arith.constant 0 : index
      %107 = vector.load %arg9[%c0_64, %c0_65, %c0_66] : memref<2x8x1xf32, #tpu.memory_space<vmem>>, vector<2x8x1xf32>
      tpu.vector_store %arg9[%c0_64, %c0_65, %c0_66], %106 {strides = array<i32>} : memref<2x8x1xf32, #tpu.memory_space<vmem>>, vector<2x8x1xf32>,
      %cst_67 = arith.constant 0.000000e+00 : f32
      %108 = vector.broadcast %cst_67 : f32 to vector<2x8x128xf32>
      %c0_68 = arith.constant 0 : index
      %c0_69 = arith.constant 0 : index
      %c0_70 = arith.constant 0 : index
      %109 = vector.load %arg10[%c0_68, %c0_69, %c0_70] : memref<2x8x128xf32, #tpu.memory_space<vmem>>, vector<2x8x128xf32>
      tpu.vector_store %arg10[%c0_68, %c0_69, %c0_70], %108 {strides = array<i32>} : memref<2x8x128xf32, #tpu.memory_space<vmem>>, vector<2x8x128xf32>,
    } else {
    }
    %3 = arith.index_cast %arg0 : i32 to index
    %4 = memref.load %arg3[%3] : memref<2xi32, #tpu.memory_space<smem>>
    %c8_i32 = arith.constant 8 : i32
    %5 = arith.muli %arg2, %c8_i32 : i32
    %6 = tpu.iota {dimensions = array<i32: 1>} : vector<8x8xi32>
    %7 = vector.broadcast %5 : i32 to vector<8x8xi32>
    %8 = arith.addi %7, %6 : vector<8x8xi32>
    %9 = vector.broadcast %4 : i32 to vector<8x8xi32>
    %10 = arith.cmpi slt, %8, %9 : vector<8x8xi32>
    %c0 = arith.constant 0 : index
    %c0_1 = arith.constant 0 : index
    %c0_2 = arith.constant 0 : index
    %11 = vector.load %arg4[%c0, %c0_1, %c0_2] : memref<1x8x256xbf16, #tpu.memory_space<vmem>>, vector<1x8x256xbf16>
    %12 = vector.shape_cast %11 : vector<1x8x256xbf16> to vector<8x256xbf16>
    %c0_3 = arith.constant 0 : index
    %c0_4 = arith.constant 0 : index
    %c0_5 = arith.constant 0 : index
    %13 = vector.load %arg5[%c0_3, %c0_4, %c0_5] : memref<1x8x256xbf16, #tpu.memory_space<vmem>>, vector<1x8x256xbf16>
    %14 = vector.shape_cast %13 : vector<1x8x256xbf16> to vector<8x256xbf16>
    %c0_6 = arith.constant 0 : index
    %c0_7 = arith.constant 0 : index
    %c0_8 = arith.constant 0 : index
    %15 = vector.load %arg6[%c0_6, %c0_7, %c0_8] : memref<1x8x256xbf16, #tpu.memory_space<vmem>>, vector<1x8x256xbf16>
    %16 = vector.shape_cast %15 : vector<1x8x256xbf16> to vector<8x256xbf16>
    %17 = vector.extract_strided_slice %12 {offsets = [0, 0], sizes = [8, 128], strides = [1, 1]} : vector<8x256xbf16> to vector<8x128xbf16>
    %18 = vector.extract_strided_slice %14 {offsets = [0, 0], sizes = [8, 128], strides = [1, 1]} : vector<8x256xbf16> to vector<8x128xbf16>
    %cst = arith.constant dense<0.000000e+00> : vector<8x8xf32>
    %19 = tpu.matmul %17, %18, %cst {dimension_numbers = #tpu.dot_dimension_numbers<[1], [1], [0], [0], [0, 0, 1, 0], [], []>} : vector<8x128xbf16>, vector<8x128xbf16>, vector<8x8xf32> -> vector<8x8xf32>
    %cst_9 = arith.constant 0.0883883461 : f32
    %20 = vector.broadcast %cst_9 : f32 to vector<8x8xf32>
    %21 = arith.mulf %19, %20 : vector<8x8xf32>
    %cst_10 = arith.constant -1.000000e+30 : f32
    %22 = vector.broadcast %cst_10 : f32 to vector<8x8xf32>
    %23 = arith.select %10, %21, %22 : vector<8x8xi1>, vector<8x8xf32>
    %c0_11 = arith.constant 0 : index
    %c0_12 = arith.constant 0 : index
    %c0_13 = arith.constant 0 : index
    %24 = vector.load %arg8[%c0_11, %c0_12, %c0_13] : memref<2x8x1xf32, #tpu.memory_space<vmem>>, vector<1x8x1xf32>
    %25 = vector.shape_cast %24 : vector<1x8x1xf32> to vector<8x1xf32>
    %cst_14 = arith.constant dense<0xFF800000> : vector<8xf32>
    %26 = vector.multi_reduction <maximumf>, %23, %cst_14 [1] : vector<8x8xf32> to vector<8xf32>
    %27 = vector.shape_cast %26 : vector<8xf32> to vector<8x1xf32>
    %28 = arith.maximumf %25, %27 : vector<8x1xf32>
    %29 = arith.subf %25, %28 : vector<8x1xf32>
    %30 = math.exp %29 : vector<8x1xf32>
    %31 = vector.broadcast %28 : vector<8x1xf32> to vector<8x8xf32>
    %32 = arith.subf %23, %31 : vector<8x8xf32>
    %33 = math.exp %32 : vector<8x8xf32>
    %cst_15 = arith.constant 0.000000e+00 : f32
    %34 = vector.broadcast %cst_15 : f32 to vector<8x8xf32>
    %35 = arith.select %10, %33, %34 : vector<8x8xi1>, vector<8x8xf32>
    %c0_16 = arith.constant 0 : index
    %c0_17 = arith.constant 0 : index
    %c0_18 = arith.constant 0 : index
    %36 = vector.load %arg9[%c0_16, %c0_17, %c0_18] : memref<2x8x1xf32, #tpu.memory_space<vmem>>, vector<1x8x1xf32>
    %37 = vector.shape_cast %36 : vector<1x8x1xf32> to vector<8x1xf32>
    %38 = arith.mulf %30, %37 : vector<8x1xf32>
    %cst_19 = arith.constant dense<0.000000e+00> : vector<8xf32>
    %39 = vector.multi_reduction <add>, %35, %cst_19 [1] : vector<8x8xf32> to vector<8xf32>
    %40 = vector.shape_cast %39 : vector<8xf32> to vector<8x1xf32>
    %41 = arith.addf %38, %40 : vector<8x1xf32>
    %c0_20 = arith.constant 0 : index
    %c0_21 = arith.constant 0 : index
    %c0_22 = arith.constant 0 : index
    %42 = vector.load %arg9[%c0_20, %c0_21, %c0_22] : memref<2x8x1xf32, #tpu.memory_space<vmem>>, vector<1x8x1xf32>
    %43 = vector.shape_cast %42 : vector<1x8x1xf32> to vector<8x1xf32>
    %44 = vector.shape_cast %41 : vector<8x1xf32> to vector<1x8x1xf32>
    tpu.vector_store %arg9[%c0_20, %c0_21, %c0_22], %44 {strides = array<i32>} : memref<2x8x1xf32, #tpu.memory_space<vmem>>, vector<1x8x1xf32>,
    %c0_23 = arith.constant 0 : index
    %c0_24 = arith.constant 0 : index
    %c0_25 = arith.constant 0 : index
    %45 = vector.load %arg10[%c0_23, %c0_24, %c0_25] : memref<2x8x128xf32, #tpu.memory_space<vmem>>, vector<1x8x128xf32>
    %46 = vector.shape_cast %45 : vector<1x8x128xf32> to vector<8x128xf32>
    %47 = vector.broadcast %30 : vector<8x1xf32> to vector<8x128xf32>
    %48 = arith.mulf %47, %46 : vector<8x128xf32>
    %49 = arith.truncf %35 : vector<8x8xf32> to vector<8x8xbf16>
    %50 = vector.extract_strided_slice %16 {offsets = [0, 0], sizes = [8, 128], strides = [1, 1]} : vector<8x256xbf16> to vector<8x128xbf16>
    %cst_26 = arith.constant dense<0.000000e+00> : vector<8x128xf32>
    %51 = tpu.matmul %49, %50, %cst_26 {dimension_numbers = #tpu.dot_dimension_numbers<[1], [0], [0], [1], [0, 0, 1, 1], [], []>} : vector<8x8xbf16>, vector<8x128xbf16>, vector<8x128xf32> -> vector<8x128xf32>
    %52 = arith.addf %48, %51 : vector<8x128xf32>
    %c0_27 = arith.constant 0 : index
    %c0_28 = arith.constant 0 : index
    %c0_29 = arith.constant 0 : index
    %53 = vector.load %arg10[%c0_27, %c0_28, %c0_29] : memref<2x8x128xf32, #tpu.memory_space<vmem>>, vector<1x8x128xf32>
    %54 = vector.shape_cast %53 : vector<1x8x128xf32> to vector<8x128xf32>
    %55 = vector.shape_cast %52 : vector<8x128xf32> to vector<1x8x128xf32>
    tpu.vector_store %arg10[%c0_27, %c0_28, %c0_29], %55 {strides = array<i32>} : memref<2x8x128xf32, #tpu.memory_space<vmem>>, vector<1x8x128xf32>,
    %c0_30 = arith.constant 0 : index
    %c0_31 = arith.constant 0 : index
    %c0_32 = arith.constant 0 : index
    %56 = vector.load %arg8[%c0_30, %c0_31, %c0_32] : memref<2x8x1xf32, #tpu.memory_space<vmem>>, vector<1x8x1xf32>
    %57 = vector.shape_cast %56 : vector<1x8x1xf32> to vector<8x1xf32>
    %58 = vector.shape_cast %28 : vector<8x1xf32> to vector<1x8x1xf32>
    tpu.vector_store %arg8[%c0_30, %c0_31, %c0_32], %58 {strides = array<i32>} : memref<2x8x1xf32, #tpu.memory_space<vmem>>, vector<1x8x1xf32>,
    %59 = vector.extract_strided_slice %12 {offsets = [0, 128], sizes = [8, 128], strides = [1, 1]} : vector<8x256xbf16> to vector<8x128xbf16>
    %60 = vector.extract_strided_slice %14 {offsets = [0, 128], sizes = [8, 128], strides = [1, 1]} : vector<8x256xbf16> to vector<8x128xbf16>
    %cst_33 = arith.constant dense<0.000000e+00> : vector<8x8xf32>
    %61 = tpu.matmul %59, %60, %cst_33 {dimension_numbers = #tpu.dot_dimension_numbers<[1], [1], [0], [0], [0, 0, 1, 0], [], []>} : vector<8x128xbf16>, vector<8x128xbf16>, vector<8x8xf32> -> vector<8x8xf32>
    %cst_34 = arith.constant 0.0883883461 : f32
    %62 = vector.broadcast %cst_34 : f32 to vector<8x8xf32>
    %63 = arith.mulf %61, %62 : vector<8x8xf32>
    %cst_35 = arith.constant -1.000000e+30 : f32
    %64 = vector.broadcast %cst_35 : f32 to vector<8x8xf32>
    %65 = arith.select %10, %63, %64 : vector<8x8xi1>, vector<8x8xf32>
    %c1 = arith.constant 1 : index
    %c0_36 = arith.constant 0 : index
    %c0_37 = arith.constant 0 : index
    %66 = vector.load %arg8[%c1, %c0_36, %c0_37] : memref<2x8x1xf32, #tpu.memory_space<vmem>>, vector<1x8x1xf32>
    %67 = vector.shape_cast %66 : vector<1x8x1xf32> to vector<8x1xf32>
    %cst_38 = arith.constant dense<0xFF800000> : vector<8xf32>
    %68 = vector.multi_reduction <maximumf>, %65, %cst_38 [1] : vector<8x8xf32> to vector<8xf32>
    %69 = vector.shape_cast %68 : vector<8xf32> to vector<8x1xf32>
    %70 = arith.maximumf %67, %69 : vector<8x1xf32>
    %71 = arith.subf %67, %70 : vector<8x1xf32>
    %72 = math.exp %71 : vector<8x1xf32>
    %73 = vector.broadcast %70 : vector<8x1xf32> to vector<8x8xf32>
    %74 = arith.subf %65, %73 : vector<8x8xf32>
    %75 = math.exp %74 : vector<8x8xf32>
    %cst_39 = arith.constant 0.000000e+00 : f32
    %76 = vector.broadcast %cst_39 : f32 to vector<8x8xf32>
    %77 = arith.select %10, %75, %76 : vector<8x8xi1>, vector<8x8xf32>
    %c1_40 = arith.constant 1 : index
    %c0_41 = arith.constant 0 : index
    %c0_42 = arith.constant 0 : index
    %78 = vector.load %arg9[%c1_40, %c0_41, %c0_42] : memref<2x8x1xf32, #tpu.memory_space<vmem>>, vector<1x8x1xf32>
    %79 = vector.shape_cast %78 : vector<1x8x1xf32> to vector<8x1xf32>
    %80 = arith.mulf %72, %79 : vector<8x1xf32>
    %cst_43 = arith.constant dense<0.000000e+00> : vector<8xf32>
    %81 = vector.multi_reduction <add>, %77, %cst_43 [1] : vector<8x8xf32> to vector<8xf32>
    %82 = vector.shape_cast %81 : vector<8xf32> to vector<8x1xf32>
    %83 = arith.addf %80, %82 : vector<8x1xf32>
    %c1_44 = arith.constant 1 : index
    %c0_45 = arith.constant 0 : index
    %c0_46 = arith.constant 0 : index
    %84 = vector.load %arg9[%c1_44, %c0_45, %c0_46] : memref<2x8x1xf32, #tpu.memory_space<vmem>>, vector<1x8x1xf32>
    %85 = vector.shape_cast %84 : vector<1x8x1xf32> to vector<8x1xf32>
    %86 = vector.shape_cast %83 : vector<8x1xf32> to vector<1x8x1xf32>
    tpu.vector_store %arg9[%c1_44, %c0_45, %c0_46], %86 {strides = array<i32>} : memref<2x8x1xf32, #tpu.memory_space<vmem>>, vector<1x8x1xf32>,
    %c1_47 = arith.constant 1 : index
    %c0_48 = arith.constant 0 : index
    %c0_49 = arith.constant 0 : index
    %87 = vector.load %arg10[%c1_47, %c0_48, %c0_49] : memref<2x8x128xf32, #tpu.memory_space<vmem>>, vector<1x8x128xf32>
    %88 = vector.shape_cast %87 : vector<1x8x128xf32> to vector<8x128xf32>
    %89 = vector.broadcast %72 : vector<8x1xf32> to vector<8x128xf32>
    %90 = arith.mulf %89, %88 : vector<8x128xf32>
    %91 = arith.truncf %77 : vector<8x8xf32> to vector<8x8xbf16>
    %92 = vector.extract_strided_slice %16 {offsets = [0, 128], sizes = [8, 128], strides = [1, 1]} : vector<8x256xbf16> to vector<8x128xbf16>
    %cst_50 = arith.constant dense<0.000000e+00> : vector<8x128xf32>
    %93 = tpu.matmul %91, %92, %cst_50 {dimension_numbers = #tpu.dot_dimension_numbers<[1], [0], [0], [1], [0, 0, 1, 1], [], []>} : vector<8x8xbf16>, vector<8x128xbf16>, vector<8x128xf32> -> vector<8x128xf32>
    %94 = arith.addf %90, %93 : vector<8x128xf32>
    %c1_51 = arith.constant 1 : index
    %c0_52 = arith.constant 0 : index
    %c0_53 = arith.constant 0 : index
    %95 = vector.load %arg10[%c1_51, %c0_52, %c0_53] : memref<2x8x128xf32, #tpu.memory_space<vmem>>, vector<1x8x128xf32>
    %96 = vector.shape_cast %95 : vector<1x8x128xf32> to vector<8x128xf32>
    %97 = vector.shape_cast %94 : vector<8x128xf32> to vector<1x8x128xf32>
    tpu.vector_store %arg10[%c1_51, %c0_52, %c0_53], %97 {strides = array<i32>} : memref<2x8x128xf32, #tpu.memory_space<vmem>>, vector<1x8x128xf32>,
    %c1_54 = arith.constant 1 : index
    %c0_55 = arith.constant 0 : index
    %c0_56 = arith.constant 0 : index
    %98 = vector.load %arg8[%c1_54, %c0_55, %c0_56] : memref<2x8x1xf32, #tpu.memory_space<vmem>>, vector<1x8x1xf32>
    %99 = vector.shape_cast %98 : vector<1x8x1xf32> to vector<8x1xf32>
    %100 = vector.shape_cast %70 : vector<8x1xf32> to vector<1x8x1xf32>
    tpu.vector_store %arg8[%c1_54, %c0_55, %c0_56], %100 {strides = array<i32>} : memref<2x8x1xf32, #tpu.memory_space<vmem>>, vector<1x8x1xf32>,
    %c0_i32_57 = arith.constant 0 : i32
    %101 = arith.cmpi eq, %arg2, %c0_i32_57 : i32
    %102 = arith.extui %101 : i1 to i32
    %c0_i32_58 = arith.constant 0 : i32
    %103 = arith.cmpi ne, %102, %c0_i32_58 : i32
    scf.if %103 {
      %c0_59 = arith.constant 0 : index
      %c0_60 = arith.constant 0 : index
      %c0_61 = arith.constant 0 : index
      %104 = vector.load %arg9[%c0_59, %c0_60, %c0_61] : memref<2x8x1xf32, #tpu.memory_space<vmem>>, vector<1x8x1xf32>
      %105 = vector.shape_cast %104 : vector<1x8x1xf32> to vector<8x1xf32>
      %cst_62 = arith.constant 0.000000e+00 : f32
      %106 = vector.broadcast %cst_62 : f32 to vector<8x1xf32>
      %107 = arith.cmpf ogt, %105, %106 : vector<8x1xf32>
      %cst_63 = arith.constant 1.000000e-30 : f32
      %108 = vector.broadcast %cst_63 : f32 to vector<8x1xf32>
      %109 = arith.maximumf %105, %108 : vector<8x1xf32>
      %110 = tpu.reciprocal %109 {approx = true} : vector<8x1xf32> -> vector<8x1xf32>
      %cst_64 = arith.constant 0.000000e+00 : f32
      %111 = vector.broadcast %cst_64 : f32 to vector<8x1xf32>
      %112 = arith.select %107, %110, %111 : vector<8x1xi1>, vector<8x1xf32>
      %c0_65 = arith.constant 0 : index
      %c0_66 = arith.constant 0 : index
      %c0_67 = arith.constant 0 : index
      %113 = vector.load %arg10[%c0_65, %c0_66, %c0_67] : memref<2x8x128xf32, #tpu.memory_space<vmem>>, vector<1x8x128xf32>
      %114 = vector.shape_cast %113 : vector<1x8x128xf32> to vector<8x128xf32>
      %115 = vector.broadcast %112 : vector<8x1xf32> to vector<8x128xf32>
      %116 = arith.mulf %114, %115 : vector<8x128xf32>
      %117 = arith.truncf %116 : vector<8x128xf32> to vector<8x128xbf16>
      %c1_68 = arith.constant 1 : index
      %c0_69 = arith.constant 0 : index
      %c0_70 = arith.constant 0 : index
      %118 = vector.load %arg9[%c1_68, %c0_69, %c0_70] : memref<2x8x1xf32, #tpu.memory_space<vmem>>, vector<1x8x1xf32>
      %119 = vector.shape_cast %118 : vector<1x8x1xf32> to vector<8x1xf32>
      %cst_71 = arith.constant 0.000000e+00 : f32
      %120 = vector.broadcast %cst_71 : f32 to vector<8x1xf32>
      %121 = arith.cmpf ogt, %119, %120 : vector<8x1xf32>
      %cst_72 = arith.constant 1.000000e-30 : f32
      %122 = vector.broadcast %cst_72 : f32 to vector<8x1xf32>
      %123 = arith.maximumf %119, %122 : vector<8x1xf32>
      %124 = tpu.reciprocal %123 {approx = true} : vector<8x1xf32> -> vector<8x1xf32>
      %cst_73 = arith.constant 0.000000e+00 : f32
      %125 = vector.broadcast %cst_73 : f32 to vector<8x1xf32>
      %126 = arith.select %121, %124, %125 : vector<8x1xi1>, vector<8x1xf32>
      %c1_74 = arith.constant 1 : index
      %c0_75 = arith.constant 0 : index
      %c0_76 = arith.constant 0 : index
      %127 = vector.load %arg10[%c1_74, %c0_75, %c0_76] : memref<2x8x128xf32, #tpu.memory_space<vmem>>, vector<1x8x128xf32>
      %128 = vector.shape_cast %127 : vector<1x8x128xf32> to vector<8x128xf32>
      %129 = vector.broadcast %126 : vector<8x1xf32> to vector<8x128xf32>
      %130 = arith.mulf %128, %129 : vector<8x128xf32>
      %131 = arith.truncf %130 : vector<8x128xf32> to vector<8x128xbf16>
      %132 = tpu.concatenate %117, %131 in 1 : vector<8x128xbf16>, vector<8x128xbf16> -> vector<8x256xbf16>
      %c0_77 = arith.constant 0 : index
      %c0_78 = arith.constant 0 : index
      %c0_79 = arith.constant 0 : index
      %133 = vector.load %arg7[%c0_77, %c0_78, %c0_79] : memref<1x8x256xbf16, #tpu.memory_space<vmem>>, vector<1x8x256xbf16>
      %134 = vector.shape_cast %133 : vector<1x8x256xbf16> to vector<8x256xbf16>
      %135 = vector.shape_cast %132 : vector<8x256xbf16> to vector<1x8x256xbf16>
      tpu.vector_store %arg7[%c0_77, %c0_78, %c0_79], %135 {strides = array<i32>} : memref<1x8x256xbf16, #tpu.memory_space<vmem>>, vector<1x8x256xbf16>,
    } else {
    }
    return
  }
  func.func @transform_0(%arg0: i32, %arg1: i32, %arg2: i32, %arg3: memref<2xi32, #tpu.memory_space<smem>>) -> (i32, i32, i32) {
    %c0_i32 = arith.constant 0 : i32
    %c0_i32_0 = arith.constant 0 : i32
    return %arg0, %arg1, %c0_i32 : i32, i32, i32
  }
  func.func @transform_1(%arg0: i32, %arg1: i32, %arg2: i32, %arg3: memref<2xi32, #tpu.memory_space<smem>>) -> (i32, i32, i32) {
    %c0_i32 = arith.constant 0 : i32
    %c0_i32_0 = arith.constant 0 : i32
    return %arg0, %arg2, %c0_i32 : i32, i32, i32
  }
  func.func @transform_2(%arg0: i32, %arg1: i32, %arg2: i32, %arg3: memref<2xi32, #tpu.memory_space<smem>>) -> (i32, i32, i32) {
    %c1_i32 = arith.constant 1 : i32
    %c0_i32 = arith.constant 0 : i32
    return %arg0, %arg2, %c1_i32 : i32, i32, i32
  }
  func.func @transform_3(%arg0: i32, %arg1: i32, %arg2: i32, %arg3: memref<2xi32, #tpu.memory_space<smem>>) -> (i32, i32, i32) {
    %c0_i32 = arith.constant 0 : i32
    %c0_i32_0 = arith.constant 0 : i32
    return %arg0, %arg1, %c0_i32 : i32, i32, i32
  }
}

module attributes {stable_mosaic.version = 11 : i64} {
  func.func @_ffn_kernel(%arg0: i32, %arg1: memref<16x256xbf16, #tpu.memory_space<vmem>>, %arg2: memref<1x256xf32, #tpu.memory_space<vmem>>, %arg3: memref<1x256xf32, #tpu.memory_space<vmem>>, %arg4: memref<256x512xbf16, #tpu.memory_space<vmem>>, %arg5: memref<1x512xf32, #tpu.memory_space<vmem>>, %arg6: memref<512x256xbf16, #tpu.memory_space<vmem>>, %arg7: memref<1x256xf32, #tpu.memory_space<vmem>>, %arg8: memref<16x256xbf16, #tpu.memory_space<vmem>>) attributes {dimension_semantics = [#tpu.dimension_semantics<parallel>], iteration_bounds = array<i64: 1>, scalar_prefetch = 0 : i64, scratch_operands = 0 : i64, tpu.core_type = #tpu.core_type<tc>, window_params = [{transform_indices = @transform_0, window_bounds = array<i64: 16, 256>}, {pipeline_mode = #tpu.pipeline_mode<synchronous>, transform_indices = @transform_1, window_bounds = array<i64: 1, 256>}, {pipeline_mode = #tpu.pipeline_mode<synchronous>, transform_indices = @transform_2, window_bounds = array<i64: 1, 256>}, {pipeline_mode = #tpu.pipeline_mode<synchronous>, transform_indices = @transform_3, window_bounds = array<i64: 256, 512>}, {pipeline_mode = #tpu.pipeline_mode<synchronous>, transform_indices = @transform_4, window_bounds = array<i64: 1, 512>}, {pipeline_mode = #tpu.pipeline_mode<synchronous>, transform_indices = @transform_5, window_bounds = array<i64: 512, 256>}, {pipeline_mode = #tpu.pipeline_mode<synchronous>, transform_indices = @transform_6, window_bounds = array<i64: 1, 256>}, {transform_indices = @transform_7, window_bounds = array<i64: 16, 256>}]} {
    %c0 = arith.constant 0 : index
    %c0_0 = arith.constant 0 : index
    %0 = vector.load %arg1[%c0, %c0_0] : memref<16x256xbf16, #tpu.memory_space<vmem>>, vector<16x256xbf16>
    %1 = arith.extf %0 : vector<16x256xbf16> to vector<16x256xf32>
    %c0_1 = arith.constant 0 : index
    %c0_2 = arith.constant 0 : index
    %2 = vector.load %arg2[%c0_1, %c0_2] : memref<1x256xf32, #tpu.memory_space<vmem>>, vector<1x256xf32>
    %c0_3 = arith.constant 0 : index
    %c0_4 = arith.constant 0 : index
    %3 = vector.load %arg3[%c0_3, %c0_4] : memref<1x256xf32, #tpu.memory_space<vmem>>, vector<1x256xf32>
    %cst = arith.constant dense<0.000000e+00> : vector<16xf32>
    %4 = vector.multi_reduction <add>, %1, %cst [1] : vector<16x256xf32> to vector<16xf32>
    %5 = vector.shape_cast %4 : vector<16xf32> to vector<16x1xf32>
    %cst_5 = arith.constant 2.560000e+02 : f32
    %6 = vector.broadcast %cst_5 : f32 to vector<16x1xf32>
    %7 = arith.divf %5, %6 : vector<16x1xf32>
    %8 = vector.broadcast %7 : vector<16x1xf32> to vector<16x256xf32>
    %9 = arith.subf %1, %8 : vector<16x256xf32>
    %10 = arith.mulf %9, %9 : vector<16x256xf32>
    %cst_6 = arith.constant dense<0.000000e+00> : vector<16xf32>
    %11 = vector.multi_reduction <add>, %10, %cst_6 [1] : vector<16x256xf32> to vector<16xf32>
    %12 = vector.shape_cast %11 : vector<16xf32> to vector<16x1xf32>
    %cst_7 = arith.constant 2.560000e+02 : f32
    %13 = vector.broadcast %cst_7 : f32 to vector<16x1xf32>
    %14 = arith.divf %12, %13 : vector<16x1xf32>
    %15 = vector.broadcast %7 : vector<16x1xf32> to vector<16x256xf32>
    %16 = arith.subf %1, %15 : vector<16x256xf32>
    %cst_8 = arith.constant 9.99999974E-6 : f32
    %17 = vector.broadcast %cst_8 : f32 to vector<16x1xf32>
    %18 = arith.addf %14, %17 : vector<16x1xf32>
    %19 = math.rsqrt %18 : vector<16x1xf32>
    %20 = vector.broadcast %19 : vector<16x1xf32> to vector<16x256xf32>
    %21 = arith.mulf %16, %20 : vector<16x256xf32>
    %22 = vector.broadcast %2 : vector<1x256xf32> to vector<16x256xf32>
    %23 = arith.mulf %21, %22 : vector<16x256xf32>
    %24 = vector.broadcast %3 : vector<1x256xf32> to vector<16x256xf32>
    %25 = arith.addf %23, %24 : vector<16x256xf32>
    %26 = arith.truncf %25 : vector<16x256xf32> to vector<16x256xbf16>
    %cst_9 = arith.constant 0.000000e+00 : f32
    %27 = vector.broadcast %cst_9 : f32 to vector<16x256xf32>
    %c0_10 = arith.constant 0 : index
    %c0_11 = arith.constant 0 : index
    %28 = vector.load %arg4[%c0_10, %c0_11] : memref<256x512xbf16, #tpu.memory_space<vmem>>, vector<256x512xbf16>
    %cst_12 = arith.constant dense<0.000000e+00> : vector<16x512xf32>
    %29 = tpu.matmul %26, %28, %cst_12 {dimension_numbers = #tpu.dot_dimension_numbers<[1], [0], [0], [1], [0, 0, 1, 1], [], []>} : vector<16x256xbf16>, vector<256x512xbf16>, vector<16x512xf32> -> vector<16x512xf32>
    %c0_13 = arith.constant 0 : index
    %c0_14 = arith.constant 0 : index
    %30 = vector.load %arg5[%c0_13, %c0_14] : memref<1x512xf32, #tpu.memory_space<vmem>>, vector<1x512xf32>
    %31 = vector.broadcast %30 : vector<1x512xf32> to vector<16x512xf32>
    %32 = arith.addf %29, %31 : vector<16x512xf32>
    %cst_15 = arith.constant 0.000000e+00 : f32
    %33 = vector.broadcast %cst_15 : f32 to vector<16x512xf32>
    %34 = arith.maximumf %32, %33 : vector<16x512xf32>
    %35 = arith.truncf %34 : vector<16x512xf32> to vector<16x512xbf16>
    %c0_16 = arith.constant 0 : index
    %c0_17 = arith.constant 0 : index
    %36 = vector.load %arg6[%c0_16, %c0_17] : memref<512x256xbf16, #tpu.memory_space<vmem>>, vector<512x256xbf16>
    %cst_18 = arith.constant dense<0.000000e+00> : vector<16x256xf32>
    %37 = tpu.matmul %35, %36, %cst_18 {dimension_numbers = #tpu.dot_dimension_numbers<[1], [0], [0], [1], [0, 0, 1, 1], [], []>} : vector<16x512xbf16>, vector<512x256xbf16>, vector<16x256xf32> -> vector<16x256xf32>
    %38 = arith.addf %27, %37 : vector<16x256xf32>
    %c0_19 = arith.constant 0 : index
    %c0_20 = arith.constant 0 : index
    %39 = vector.load %arg7[%c0_19, %c0_20] : memref<1x256xf32, #tpu.memory_space<vmem>>, vector<1x256xf32>
    %40 = vector.broadcast %39 : vector<1x256xf32> to vector<16x256xf32>
    %41 = arith.addf %38, %40 : vector<16x256xf32>
    %cst_21 = arith.constant 1.000000e+00 : f32
    %42 = vector.broadcast %cst_21 : f32 to vector<16x256xf32>
    %43 = arith.mulf %42, %41 : vector<16x256xf32>
    %44 = arith.addf %1, %43 : vector<16x256xf32>
    %45 = arith.truncf %44 : vector<16x256xf32> to vector<16x256xbf16>
    %c0_22 = arith.constant 0 : index
    %c0_23 = arith.constant 0 : index
    %46 = vector.load %arg8[%c0_22, %c0_23] : memref<16x256xbf16, #tpu.memory_space<vmem>>, vector<16x256xbf16>
    tpu.vector_store %arg8[%c0_22, %c0_23], %45 {strides = array<i32>} : memref<16x256xbf16, #tpu.memory_space<vmem>>, vector<16x256xbf16>,
    return
  }
  func.func @transform_0(%arg0: i32) -> (i32, i32) {
    %c0_i32 = arith.constant 0 : i32
    %c0_i32_0 = arith.constant 0 : i32
    return %arg0, %c0_i32 : i32, i32
  }
  func.func @transform_1(%arg0: i32) -> (i32, i32) {
    %c0_i32 = arith.constant 0 : i32
    %c0_i32_0 = arith.constant 0 : i32
    %c0_i32_1 = arith.constant 0 : i32
    return %c0_i32, %c0_i32_0 : i32, i32
  }
  func.func @transform_2(%arg0: i32) -> (i32, i32) {
    %c0_i32 = arith.constant 0 : i32
    %c0_i32_0 = arith.constant 0 : i32
    %c0_i32_1 = arith.constant 0 : i32
    return %c0_i32, %c0_i32_0 : i32, i32
  }
  func.func @transform_3(%arg0: i32) -> (i32, i32) {
    %c0_i32 = arith.constant 0 : i32
    %c0_i32_0 = arith.constant 0 : i32
    %c0_i32_1 = arith.constant 0 : i32
    return %c0_i32, %c0_i32_0 : i32, i32
  }
  func.func @transform_4(%arg0: i32) -> (i32, i32) {
    %c0_i32 = arith.constant 0 : i32
    %c0_i32_0 = arith.constant 0 : i32
    %c0_i32_1 = arith.constant 0 : i32
    return %c0_i32, %c0_i32_0 : i32, i32
  }
  func.func @transform_5(%arg0: i32) -> (i32, i32) {
    %c0_i32 = arith.constant 0 : i32
    %c0_i32_0 = arith.constant 0 : i32
    %c0_i32_1 = arith.constant 0 : i32
    return %c0_i32, %c0_i32_0 : i32, i32
  }
  func.func @transform_6(%arg0: i32) -> (i32, i32) {
    %c0_i32 = arith.constant 0 : i32
    %c0_i32_0 = arith.constant 0 : i32
    %c0_i32_1 = arith.constant 0 : i32
    return %c0_i32, %c0_i32_0 : i32, i32
  }
  func.func @transform_7(%arg0: i32) -> (i32, i32) {
    %c0_i32 = arith.constant 0 : i32
    %c0_i32_0 = arith.constant 0 : i32
    return %arg0, %c0_i32 : i32, i32
  }
}

module attributes {stable_mosaic.version = 11 : i64} {
  func.func @_matmul_kernel(%arg0: i32, %arg1: i32, %arg2: i32, %arg3: memref<16x256xbf16, #tpu.memory_space<vmem>>, %arg4: memref<256x128xbf16, #tpu.memory_space<vmem>>, %arg5: memref<1x128xf32, #tpu.memory_space<vmem>>, %arg6: memref<16x128xbf16, #tpu.memory_space<vmem>>, %arg7: memref<16x128xf32, #tpu.memory_space<vmem>>) attributes {dimension_semantics = [#tpu.dimension_semantics<parallel>, #tpu.dimension_semantics<parallel>, #tpu.dimension_semantics<arbitrary>], iteration_bounds = array<i64: 1, 1, 1>, scalar_prefetch = 0 : i64, scratch_operands = 1 : i64, tpu.core_type = #tpu.core_type<tc>, window_params = [{transform_indices = @transform_0, window_bounds = array<i64: 16, 256>}, {transform_indices = @transform_1, window_bounds = array<i64: 256, 128>}, {transform_indices = @transform_2, window_bounds = array<i64: 1, 128>}, {transform_indices = @transform_3, window_bounds = array<i64: 16, 128>}]} {
    %c0_i32 = arith.constant 0 : i32
    %0 = arith.cmpi eq, %arg2, %c0_i32 : i32
    %1 = arith.extui %0 : i1 to i32
    %c0_i32_0 = arith.constant 0 : i32
    %2 = arith.cmpi ne, %1, %c0_i32_0 : i32
    scf.if %2 {
      %cst_10 = arith.constant 0.000000e+00 : f32
      %12 = vector.broadcast %cst_10 : f32 to vector<16x128xf32>
      %c0_11 = arith.constant 0 : index
      %c0_12 = arith.constant 0 : index
      %13 = vector.load %arg7[%c0_11, %c0_12] : memref<16x128xf32, #tpu.memory_space<vmem>>, vector<16x128xf32>
      tpu.vector_store %arg7[%c0_11, %c0_12], %12 {strides = array<i32>} : memref<16x128xf32, #tpu.memory_space<vmem>>, vector<16x128xf32>,
    } else {
    }
    %c0 = arith.constant 0 : index
    %c0_1 = arith.constant 0 : index
    %3 = vector.load %arg7[%c0, %c0_1] : memref<16x128xf32, #tpu.memory_space<vmem>>, vector<16x128xf32>
    %c0_2 = arith.constant 0 : index
    %c0_3 = arith.constant 0 : index
    %4 = vector.load %arg3[%c0_2, %c0_3] : memref<16x256xbf16, #tpu.memory_space<vmem>>, vector<16x256xbf16>
    %c0_4 = arith.constant 0 : index
    %c0_5 = arith.constant 0 : index
    %5 = vector.load %arg4[%c0_4, %c0_5] : memref<256x128xbf16, #tpu.memory_space<vmem>>, vector<256x128xbf16>
    %cst = arith.constant dense<0.000000e+00> : vector<16x128xf32>
    %6 = tpu.matmul %4, %5, %cst {dimension_numbers = #tpu.dot_dimension_numbers<[1], [0], [0], [1], [0, 0, 1, 1], [], []>} : vector<16x256xbf16>, vector<256x128xbf16>, vector<16x128xf32> -> vector<16x128xf32>
    %7 = arith.addf %3, %6 : vector<16x128xf32>
    %c0_6 = arith.constant 0 : index
    %c0_7 = arith.constant 0 : index
    %8 = vector.load %arg7[%c0_6, %c0_7] : memref<16x128xf32, #tpu.memory_space<vmem>>, vector<16x128xf32>
    tpu.vector_store %arg7[%c0_6, %c0_7], %7 {strides = array<i32>} : memref<16x128xf32, #tpu.memory_space<vmem>>, vector<16x128xf32>,
    %c0_i32_8 = arith.constant 0 : i32
    %9 = arith.cmpi eq, %arg2, %c0_i32_8 : i32
    %10 = arith.extui %9 : i1 to i32
    %c0_i32_9 = arith.constant 0 : i32
    %11 = arith.cmpi ne, %10, %c0_i32_9 : i32
    scf.if %11 {
      %c0_10 = arith.constant 0 : index
      %c0_11 = arith.constant 0 : index
      %12 = vector.load %arg7[%c0_10, %c0_11] : memref<16x128xf32, #tpu.memory_space<vmem>>, vector<16x128xf32>
      %c0_12 = arith.constant 0 : index
      %c0_13 = arith.constant 0 : index
      %13 = vector.load %arg5[%c0_12, %c0_13] : memref<1x128xf32, #tpu.memory_space<vmem>>, vector<1x128xf32>
      %14 = vector.broadcast %13 : vector<1x128xf32> to vector<16x128xf32>
      %15 = arith.addf %12, %14 : vector<16x128xf32>
      %16 = arith.truncf %15 : vector<16x128xf32> to vector<16x128xbf16>
      %c0_14 = arith.constant 0 : index
      %c0_15 = arith.constant 0 : index
      %17 = vector.load %arg6[%c0_14, %c0_15] : memref<16x128xbf16, #tpu.memory_space<vmem>>, vector<16x128xbf16>
      tpu.vector_store %arg6[%c0_14, %c0_15], %16 {strides = array<i32>} : memref<16x128xbf16, #tpu.memory_space<vmem>>, vector<16x128xbf16>,
    } else {
    }
    return
  }
  func.func @transform_0(%arg0: i32, %arg1: i32, %arg2: i32) -> (i32, i32) {
    %c0_i32 = arith.constant 0 : i32
    return %arg0, %arg2 : i32, i32
  }
  func.func @transform_1(%arg0: i32, %arg1: i32, %arg2: i32) -> (i32, i32) {
    %c0_i32 = arith.constant 0 : i32
    return %arg2, %arg1 : i32, i32
  }
  func.func @transform_2(%arg0: i32, %arg1: i32, %arg2: i32) -> (i32, i32) {
    %c0_i32 = arith.constant 0 : i32
    %c0_i32_0 = arith.constant 0 : i32
    return %c0_i32, %arg1 : i32, i32
  }
  func.func @transform_3(%arg0: i32, %arg1: i32, %arg2: i32) -> (i32, i32) {
    %c0_i32 = arith.constant 0 : i32
    return %arg0, %arg1 : i32, i32
  }
}

module attributes {stable_mosaic.version = 11 : i64} {
  func.func @_log_softmax_kernel(%arg0: i32, %arg1: memref<16x128xbf16, #tpu.memory_space<vmem>>, %arg2: memref<16x128xf32, #tpu.memory_space<vmem>>) attributes {dimension_semantics = [#tpu.dimension_semantics<parallel>], iteration_bounds = array<i64: 1>, scalar_prefetch = 0 : i64, scratch_operands = 0 : i64, tpu.core_type = #tpu.core_type<tc>, window_params = [{transform_indices = @transform_0, window_bounds = array<i64: 16, 128>}, {transform_indices = @transform_1, window_bounds = array<i64: 16, 128>}]} {
    %c0 = arith.constant 0 : index
    %c0_0 = arith.constant 0 : index
    %0 = vector.load %arg1[%c0, %c0_0] : memref<16x128xbf16, #tpu.memory_space<vmem>>, vector<16x128xbf16>
    %1 = arith.extf %0 : vector<16x128xbf16> to vector<16x128xf32>
    %cst = arith.constant dense<0xFF800000> : vector<16xf32>
    %2 = vector.multi_reduction <maximumf>, %1, %cst [1] : vector<16x128xf32> to vector<16xf32>
    %3 = vector.shape_cast %2 : vector<16xf32> to vector<16x1xf32>
    %4 = vector.broadcast %3 : vector<16x1xf32> to vector<16x128xf32>
    %5 = arith.subf %1, %4 : vector<16x128xf32>
    %6 = math.exp %5 : vector<16x128xf32>
    %cst_1 = arith.constant dense<0.000000e+00> : vector<16xf32>
    %7 = vector.multi_reduction <add>, %6, %cst_1 [1] : vector<16x128xf32> to vector<16xf32>
    %8 = vector.shape_cast %7 : vector<16xf32> to vector<16x1xf32>
    %9 = math.log %8 : vector<16x1xf32>
    %10 = vector.broadcast %9 : vector<16x1xf32> to vector<16x128xf32>
    %11 = arith.subf %5, %10 : vector<16x128xf32>
    %c0_2 = arith.constant 0 : index
    %c0_3 = arith.constant 0 : index
    %12 = vector.load %arg2[%c0_2, %c0_3] : memref<16x128xf32, #tpu.memory_space<vmem>>, vector<16x128xf32>
    tpu.vector_store %arg2[%c0_2, %c0_3], %11 {strides = array<i32>} : memref<16x128xf32, #tpu.memory_space<vmem>>, vector<16x128xf32>,
    return
  }
  func.func @transform_0(%arg0: i32) -> (i32, i32) {
    %c0_i32 = arith.constant 0 : i32
    %c0_i32_0 = arith.constant 0 : i32
    return %arg0, %c0_i32 : i32, i32
  }
  func.func @transform_1(%arg0: i32) -> (i32, i32) {
    %c0_i32 = arith.constant 0 : i32
    %c0_i32_0 = arith.constant 0 : i32
    return %arg0, %c0_i32 : i32, i32
  }
}

</mosaic_0001>

<bundles_post_ra>
// kernel: _lambda_.35
= control target key start
LH: loop header
LB: loop body
LE: loop exit
PB: predicated region body
PF: predicated region fallthrough
CT: control target
= control target key end

     0   :  { %8 = vsyncpa [#allocation4], 0  ;;  %s2005_s0 = inlined_call_operand.vmem [shape: bf16[512,9], index: 0, kind: input, shape index: {}]   ;;  %s2006_s1 = inlined_call_operand.hbm [shape: bf16[9,256], index: 1, kind: input, shape index: {}]   ;;  %s2007_s2 = inlined_call_operand.hbm [shape: f32[1,256], index: 2, kind: input, shape index: {}]   ;;  %s2008_s3 = inlined_call_operand.vmem [shape: bf16[512,256], index: 3, kind: output, shape index: {}]  }
   0x1   :  { %9 = vsyncpa [#allocation6], 0  ;;  %s1753_s12 = smov 0   ;;  %s1755_s13 = smov 0  }
   0x2   :  { %s1757_s14 = smov 0  }
   0x3 LB: > { %s1454_s15 = sadd.s32 4294967295, %s1725_s14   ;;  %s34_s16 = sadd.s32 1, %s1721_s13  ;;  %s1725_s14 = sphi %s1757_s14, %s15_s14   ;;  %s1721_s13 = sphi %s1755_s13, %s2018_s13   ;;  %s1717_s12 = sphi %s1753_s12, %s2017_s12  }
   0x4   : > { %p36_p0 = scmp.ge.s32.totalorder %s34_s16, 2  ;;  %p1456_p1 = scmp.ge.s32.totalorder %s1725_s14, 1 }
   0x5   : > { %p149_p2 = scmp.lt.s32.totalorder %s1725_s14, 3  ;;  %p1778_p4 = scmp.eq.s32.totalorder %s1454_s15, 0 }
   0x6   : > { %s2020_s16 = smov (%p36_p0, %s34_s16), 0  ;;  %s1727_s19 = smov [#allocation3]  }
   0x7   : > { %p1774_p3 = pnand %p1456_p1, %p149_p2  ;;  %s167_s20 = sshll.u32 %s1727_s19, 4  ;;  %s168_s20 = int_to_ptr.vmem [resolvable:$true] %s167_s20 }
   0x8   : > { %s2013_s18 = scalar_select %p1778_p4, 1, 0 }
   0x9   : > { %s2012_s17 = scalar_select %p1774_p3, 1, 0 }
   0xa   : > { %p1579_p5 = pneg %p1774_p3  ;;  %s1728_s22 = smov [#allocation5]  }
   0xb   : > { %s184_s23 = sshll.u32 %s1728_s22, 4  ;;  %s1639_s26 = scalar_lea.hbm %s2006_s1, 256  ;;  %s1790_s23 = int_to_ptr.vmem [resolvable:$true] %s184_s23 }
   0xc   : > { %p1786_p6 = pnand %p1778_p4, %p1579_p5  ;;  %p1640_p7 = scmp.ne.s32.totalorder %s2006_s1, %s1639_s26 }
   0xd   : > { %p1646_p11 = scmp.lt.u32.totalorder %s1639_s26, %s2006_s1 }
   0xe   : > { %p1641_p8 = pneg %p1786_p6 }
  0x10   : > { %p1642_p9 = pnand %p1641_p8, %p1640_p7 }
  0x12   : > { %p1643_p10 = pneg %p1642_p9 }
  0x14   : > { %p1648_p12 = pnand %p1646_p11, %p1643_p10 }
  0x16   : > { %1651 = shalt.err (!%p1648_p12)
}
  0x17   : > { %s1652_s4 = scalar_lea.vmem %s168_s20, 256  ;;  %p1660_p2 = scmp.lt.s32.totalorder %s168_s20, %s168_s20 }
  0x18   : > { %p1653_p13 = scmp.ne.s32.totalorder %s168_s20, %s1652_s4  ;;  %p1661_p5 = scmp.lt.s32.totalorder %s1652_s4, %s1652_s4 }
  0x1a   : > { %p1655_p0 = pnand %p1653_p13, %p1641_p8  ;;  %p1662_p4 = por %p1661_p5, %p1660_p2 }
  0x1c   : > { %p1656_p1 = pneg %p1655_p0 }
  0x1e   : > { %p1663_p3 = pnand %p1662_p4, %p1656_p1 }
  0x20   : > { %1666 = shalt.err (!%p1663_p3)
}
  0x21   : > { %s1729_s5 = smov 128   ;;  %s1730_s6 = smov 8  }
  0x22   : > { %1582 = dma.hbm_to_vmem [thread:$0]  (!%p1786_p6), %s2006_s1, 256, %s168_s20, [#allocation4], %s1729_s5, %s1729_s5, %s1730_s6  }
  0x23   : > { %s1667_s11 = scalar_lea.hbm %s2007_s2, 32 }
  0x24   : > { %p1668_p7 = scmp.ne.s32.totalorder %s2007_s2, %s1667_s11  ;;  %p1674_p9 = scmp.lt.u32.totalorder %s1667_s11, %s2007_s2 }
  0x26   : > { %p1670_p3 = pnand %p1668_p7, %p1641_p8 }
  0x28   : > { %p1671_p4 = pneg %p1670_p3 }
  0x2a   : > { %p1676_p10 = pnand %p1674_p9, %p1671_p4 }
  0x2c   : > { %1679 = shalt.err (!%p1676_p10)
}
  0x2d   : > { %s1680_s20 = scalar_lea.vmem %s1790_s23, 32  ;;  %p1688_p0 = scmp.lt.s32.totalorder %s1790_s23, %s1790_s23 }
  0x2e   : > { %p1681_p11 = scmp.ne.s32.totalorder %s1790_s23, %s1680_s20  ;;  %p1689_p1 = scmp.lt.s32.totalorder %s1680_s20, %s1680_s20 }
  0x30   : > { %p1683_p12 = pnand %p1681_p11, %p1641_p8  ;;  %p1690_p2 = por %p1689_p1, %p1688_p0 }
  0x32   : > { %p1684_p13 = pneg %p1683_p12 }
  0x34   : > { %p1691_p5 = pnand %p1690_p2, %p1684_p13 }
  0x36   : > { %1694 = shalt.err (!%p1691_p5)
}
  0x37   : > { %1585 = dma.hbm_to_vmem [thread:$0]  (!%p1786_p6), %s2007_s2, 32, %s1790_s23, [#allocation6]  }
  0x38   : > { %p2015_p7 = scmp.ne.s32.totalorder %s2012_s17, 0 }
  0x39   : > { %p2016_p3 = scmp.ne.s32.totalorder (!%p2015_p7), %s2013_s18, 0 }
  0x3a   : > { %209 = sbr.rel (%p2015_p7) target bundleno = 356 (0x164), region = 32 }
  0x41   : > { %1708 = dma.done.wait (%p2016_p3), [#allocation4], 256  }
  0x42   : > { %1710 = vsyncadd (%p2016_p3), [#allocation4], 4294967040 }
  0x43   : > { %1712 = dma.done.wait (%p2016_p3), [#allocation6], 32  }
  0x44   : > { %1714 = vsyncadd (%p2016_p3), [#allocation6], 4294967264  ;;  %vm573_vm0 = vcmask 1043456   ;;  %v1731_v0 = vmov 0   ;;  %s1463_s21 = sshll.u32 %s1717_s12, 5  ;;  %vm574_vm1 = vcmask 1044480   ;;  %v973_v24 = vlaneseq }
  0x45   : > { %615 = vmatprep.mubr.bf16.mxu0 %v1731_v0  ;;  %695 = vmatprep.mubr.bf16.mxu1 %v1731_v0  ;;  %p246_p6 = scmp.lt.s32.totalorder %s1463_s21, 63  ;;  %v1732_v1 = vmov 65535   ;;  %v1620_v4 = vld [vmem:[#allocation3 + $0x4] ss:$8 sps:$4 sm:$0x1f]   ;;  %vm524_vm2 = vcmask 72704  }
  0x46   : > { %v575_v2 = vsel %vm573_vm0, 4294967295, %v1732_v1  ;;  %v1622_v5 = vld [vmem:[#allocation3] ss:$8 sps:$4 sm:$0x1f]   ;;  %v974_v25 = vshrl.u32 %v973_v24, 7 }
  0x47   : > { %s2022_s21 = smov (!%p246_p6, %s1463_s21), 63  ;;  %v576_v3 = vsel %vm574_vm1, %v575_v2, 0  ;;  %v971_v27 = vld [vmem:[#allocation5] sm:$0x3] }
  0x48   : > { %s1464_s17 = sshll.u32 %s2022_s21, 2  ;;  %v581_v6 = vand.u32 %v1620_v4, %v576_v3  ;;  %v578_v7 = vand.u32 %v1622_v5, %v576_v3  ;;  %v975_v26 = vsub.s32 0, %v974_v25  ;;  %v979_v28 = vsub.s32 1, %v974_v25  ;;  %s1536_s12 = sshll.u32 %s2022_s21, 3 }
  0x49   : > { %s1856_s18 = scalar_lea.vmem %s2005_s0, %s1464_s17  ;;  %s1906_s30 = scalar_lea.vmem %s2008_s3, %s1536_s12 }
  0x4a   : > { %v1623_v8 = vld [vmem:[%s1856_s18] sm:$0xff]   ;;  %583 = vmatprep.subr.bf16.mxu0 %v581_v6  ;;  %1569 = vmatprep.subr.bf16.mxu1 %v581_v6  ;;  %v1625_v10 = vld [vmem:[%s1856_s18 + $0x8] sm:$0xff]   ;;  %v1627_v12 = vld [vmem:[%s1856_s18 + $0x10] sm:$0xff]   ;;  %v1890_v29 = vrot.slane %v971_v27, %v975_v26  ;;  %v1892_v30 = vrot.slane %v971_v27, %v979_v28 }
  0x4b   : > { %v1624_v9 = vld [vmem:[%s1856_s18 + $0x40] sm:$0xff]   ;;  %584 = vmatpush1.bf16.msra.mxu0 %v578_v7  ;;  %1570 = vmatpush1.bf16.msra.mxu1 %v578_v7  ;;  %v1626_v11 = vld [vmem:[%s1856_s18 + $0x48] sm:$0xff]   ;;  %v1628_v13 = vld [vmem:[%s1856_s18 + $0x50] sm:$0xff]  }
  0x4c   : > { %v1629_v14 = vld [vmem:[%s1856_s18 + $0x18] sm:$0xff]   ;;  %v1631_v16 = vld [vmem:[%s1856_s18 + $0x20] sm:$0xff]   ;;  %v1633_v18 = vld [vmem:[%s1856_s18 + $0x28] sm:$0xff]  }
  0x4d   : > { %v1630_v15 = vld [vmem:[%s1856_s18 + $0x58] sm:$0xff]   ;;  %v1632_v17 = vld [vmem:[%s1856_s18 + $0x60] sm:$0xff]   ;;  %v1634_v19 = vld [vmem:[%s1856_s18 + $0x68] sm:$0xff]  }
  0x4e   : > { %1486 = vmatmul.mubr.msk.bf16.vlgmr.msra.gmra.mrb[0].mxu0 %vm524_vm2, %v1623_v8  ;;  %1494 = vmatmul.mubr.msk.bf16.vlgmr.msra.gmra.mrb[0].mxu1 %vm524_vm2, %v1624_v9  ;;  %v1635_v20 = vld [vmem:[%s1856_s18 + $0x30] sm:$0xff]   ;;  %v1637_v22 = vld [vmem:[%s1856_s18 + $0x38] sm:$0xff]  }
  0x4f   : > { %625 = vmatprep.mubr.bf16.mxu0 %v1731_v0  ;;  %705 = vmatprep.mubr.bf16.mxu1 %v1731_v0  ;;  %v1636_v21 = vld [vmem:[%s1856_s18 + $0x70] sm:$0xff]   ;;  %v1638_v23 = vld [vmem:[%s1856_s18 + $0x78] sm:$0xff]  }
  0x56   : > { %1487 = vmatmul.mubr.msk.bf16.gmra.mrb[4].mxu0 %vm524_vm2, %v1625_v10  ;;  %1495 = vmatmul.mubr.msk.bf16.gmra.mrb[4].mxu1 %vm524_vm2, %v1626_v11 }
  0x57   : > { %635 = vmatprep.mubr.bf16.mxu0 %v1731_v0  ;;  %715 = vmatprep.mubr.bf16.mxu1 %v1731_v0 }
  0x5e   : > { %1488 = vmatmul.mubr.msk.bf16.gmra.mrb[8].mxu0 %vm524_vm2, %v1627_v12  ;;  %1496 = vmatmul.mubr.msk.bf16.gmra.mrb[8].mxu1 %vm524_vm2, %v1628_v13 }
  0x5f   : > { %645 = vmatprep.mubr.bf16.mxu0 %v1731_v0  ;;  %725 = vmatprep.mubr.bf16.mxu1 %v1731_v0 }
  0x66   : > { %1489 = vmatmul.mubr.msk.bf16.gmra.mrb[12].mxu0 %vm524_vm2, %v1629_v14  ;;  %1497 = vmatmul.mubr.msk.bf16.gmra.mrb[12].mxu1 %vm524_vm2, %v1630_v15 }
  0x67   : > { %655 = vmatprep.mubr.bf16.mxu0 %v1731_v0  ;;  %735 = vmatprep.mubr.bf16.mxu1 %v1731_v0 }
  0x6e   : > { %1490 = vmatmul.mubr.msk.bf16.gmra.mrb[16].mxu0 %vm524_vm2, %v1631_v16  ;;  %1498 = vmatmul.mubr.msk.bf16.gmra.mrb[16].mxu1 %vm524_vm2, %v1632_v17 }
  0x6f   : > { %665 = vmatprep.mubr.bf16.mxu0 %v1731_v0  ;;  %745 = vmatprep.mubr.bf16.mxu1 %v1731_v0 }
  0x76   : > { %1491 = vmatmul.mubr.msk.bf16.gmra.mrb[20].mxu0 %vm524_vm2, %v1633_v18  ;;  %1499 = vmatmul.mubr.msk.bf16.gmra.mrb[20].mxu1 %vm524_vm2, %v1634_v19 }
  0x77   : > { %675 = vmatprep.mubr.bf16.mxu0 %v1731_v0  ;;  %755 = vmatprep.mubr.bf16.mxu1 %v1731_v0 }
  0x7e   : > { %1492 = vmatmul.mubr.msk.bf16.gmra.mrb[24].mxu0 %vm524_vm2, %v1635_v20  ;;  %1500 = vmatmul.mubr.msk.bf16.gmra.mrb[24].mxu1 %vm524_vm2, %v1636_v21 }
  0x7f   : > { %685 = vmatprep.mubr.bf16.mxu0 %v1731_v0  ;;  %765 = vmatprep.mubr.bf16.mxu1 %v1731_v0 }
  0x86   : > { %1493 = vmatmul.mubr.msk.bf16.gmra.mrb[28].mxu0 %vm524_vm2, %v1637_v22  ;;  %1501 = vmatmul.mubr.msk.bf16.gmra.mrb[28].mxu1 %vm524_vm2, %v1638_v23 }
 0x121   : > { %v617_v31 = vpop.f32.mrb[0].mxu0  ;;  %v697_v32 = vpop.f32.mrb[0].mxu1 }
 0x122   : > { %v983_v33 = vadd.f32 %v1890_v29, %v617_v31  ;;  %v1015_v34 = vadd.f32 %v1890_v29, %v697_v32  ;;  %v619_v35 = vpop.f32.mrb[1].mxu0  ;;  %v699_v36 = vpop.f32.mrb[1].mxu1 }
 0x123   : > { %v984_v37 = vadd.f32 %v1892_v30, %v619_v35  ;;  %v1016_v38 = vadd.f32 %v1892_v30, %v699_v36  ;;  %v621_v39 = vpop.f32.mrb[2].mxu0  ;;  %v701_v40 = vpop.f32.mrb[2].mxu1 }
 0x124   : > { %v1047_v41 = vmax.f32 %v983_v33, 0.0  ;;  %v1079_v42 = vmax.f32 %v1015_v34, 0.0  ;;  %v985_v43 = vadd.f32 %v1890_v29, %v621_v39  ;;  %v1017_v44 = vadd.f32 %v1890_v29, %v701_v40  ;;  %v623_v45 = vpop.f32.mrb[3].mxu0  ;;  %v703_v46 = vpop.f32.mrb[3].mxu1 }
 0x125   : > { %v1048_v47 = vmax.f32 %v984_v37, 0.0  ;;  %v1080_v48 = vmax.f32 %v1016_v38, 0.0  ;;  %v986_v49 = vadd.f32 %v1892_v30, %v623_v45  ;;  %v1018_v50 = vadd.f32 %v1892_v30, %v703_v46 }
 0x126   : > { %v1049_v51 = vmax.f32 %v985_v43, 0.0  ;;  %v1081_v52 = vmax.f32 %v1017_v44, 0.0 }
 0x127   : > { %v1537_v53 = vpack.c.bf16 %v1048_v47, %v1047_v41  ;;  %v1553_v54 = vpack.c.bf16 %v1080_v48, %v1079_v42  ;;  %v1050_v55 = vmax.f32 %v986_v49, 0.0  ;;  %v1082_v56 = vmax.f32 %v1018_v50, 0.0 }
 0x129   : > { %1303 = vst [vmem:[%s1906_s30] sm:$0xff] %v1537_v53  ;;  %1319 = vst [vmem:[%s1906_s30 + $0x80] sm:$0xff] %v1553_v54  ;;  %v1538_v57 = vpack.c.bf16 %v1050_v55, %v1049_v51  ;;  %v1554_v58 = vpack.c.bf16 %v1082_v56, %v1081_v52  ;;  %v627_v59 = vpop.f32.mrb[4].mxu0  ;;  %v707_v60 = vpop.f32.mrb[4].mxu1 }
 0x12a   : > { %v987_v61 = vadd.f32 %v1890_v29, %v627_v59  ;;  %v1019_v62 = vadd.f32 %v1890_v29, %v707_v60  ;;  %v629_v63 = vpop.f32.mrb[5].mxu0  ;;  %v709_v0 = vpop.f32.mrb[5].mxu1 }
 0x12b   : > { %1304 = vst [vmem:[%s1906_s30 + $0x8] sm:$0xff] %v1538_v57  ;;  %1320 = vst [vmem:[%s1906_s30 + $0x88] sm:$0xff] %v1554_v58  ;;  %v988_v1 = vadd.f32 %v1892_v30, %v629_v63  ;;  %v1020_v2 = vadd.f32 %v1892_v30, %v709_v0  ;;  %v631_v3 = vpop.f32.mrb[6].mxu0  ;;  %v711_v4 = vpop.f32.mrb[6].mxu1 }
 0x12c   : > { %v1051_v5 = vmax.f32 %v987_v61, 0.0  ;;  %v1083_v6 = vmax.f32 %v1019_v62, 0.0  ;;  %v989_v7 = vadd.f32 %v1890_v29, %v631_v3  ;;  %v1021_v8 = vadd.f32 %v1890_v29, %v711_v4  ;;  %v633_v9 = vpop.f32.mrb[7].mxu0  ;;  %v713_v10 = vpop.f32.mrb[7].mxu1 }
 0x12d   : > { %v1052_v11 = vmax.f32 %v988_v1, 0.0  ;;  %v1084_v12 = vmax.f32 %v1020_v2, 0.0  ;;  %v990_v13 = vadd.f32 %v1892_v30, %v633_v9  ;;  %v1022_v14 = vadd.f32 %v1892_v30, %v713_v10 }
 0x12e   : > { %v1053_v15 = vmax.f32 %v989_v7, 0.0  ;;  %v1085_v16 = vmax.f32 %v1021_v8, 0.0 }
 0x12f   : > { %v1539_v17 = vpack.c.bf16 %v1052_v11, %v1051_v5  ;;  %v1555_v18 = vpack.c.bf16 %v1084_v12, %v1083_v6  ;;  %v1054_v19 = vmax.f32 %v990_v13, 0.0  ;;  %v1086_v20 = vmax.f32 %v1022_v14, 0.0 }
 0x131   : > { %1305 = vst [vmem:[%s1906_s30 + $0x10] sm:$0xff] %v1539_v17  ;;  %1321 = vst [vmem:[%s1906_s30 + $0x90] sm:$0xff] %v1555_v18  ;;  %v1540_v21 = vpack.c.bf16 %v1054_v19, %v1053_v15  ;;  %v1556_v22 = vpack.c.bf16 %v1086_v20, %v1085_v16  ;;  %v637_v23 = vpop.f32.mrb[8].mxu0  ;;  %v717_v24 = vpop.f32.mrb[8].mxu1 }
 0x132   : > { %v991_v25 = vadd.f32 %v1890_v29, %v637_v23  ;;  %v1023_v26 = vadd.f32 %v1890_v29, %v717_v24  ;;  %v639_v27 = vpop.f32.mrb[9].mxu0  ;;  %v719_v28 = vpop.f32.mrb[9].mxu1 }
 0x133   : > { %1306 = vst [vmem:[%s1906_s30 + $0x18] sm:$0xff] %v1540_v21  ;;  %1322 = vst [vmem:[%s1906_s30 + $0x98] sm:$0xff] %v1556_v22  ;;  %v992_v31 = vadd.f32 %v1892_v30, %v639_v27  ;;  %v1024_v32 = vadd.f32 %v1892_v30, %v719_v28  ;;  %v641_v33 = vpop.f32.mrb[10].mxu0  ;;  %v721_v34 = vpop.f32.mrb[10].mxu1 }
 0x134   : > { %v1055_v35 = vmax.f32 %v991_v25, 0.0  ;;  %v1087_v36 = vmax.f32 %v1023_v26, 0.0  ;;  %v993_v37 = vadd.f32 %v1890_v29, %v641_v33  ;;  %v1025_v38 = vadd.f32 %v1890_v29, %v721_v34  ;;  %v643_v39 = vpop.f32.mrb[11].mxu0  ;;  %v723_v40 = vpop.f32.mrb[11].mxu1 }
 0x135   : > { %v1056_v41 = vmax.f32 %v992_v31, 0.0  ;;  %v1088_v42 = vmax.f32 %v1024_v32, 0.0  ;;  %v994_v43 = vadd.f32 %v1892_v30, %v643_v39  ;;  %v1026_v44 = vadd.f32 %v1892_v30, %v723_v40 }
 0x136   : > { %v1057_v45 = vmax.f32 %v993_v37, 0.0  ;;  %v1089_v46 = vmax.f32 %v1025_v38, 0.0 }
 0x137   : > { %v1541_v47 = vpack.c.bf16 %v1056_v41, %v1055_v35  ;;  %v1557_v48 = vpack.c.bf16 %v1088_v42, %v1087_v36  ;;  %v1058_v49 = vmax.f32 %v994_v43, 0.0  ;;  %v1090_v50 = vmax.f32 %v1026_v44, 0.0 }
 0x139   : > { %1307 = vst [vmem:[%s1906_s30 + $0x20] sm:$0xff] %v1541_v47  ;;  %1323 = vst [vmem:[%s1906_s30 + $0xa0] sm:$0xff] %v1557_v48  ;;  %v1542_v51 = vpack.c.bf16 %v1058_v49, %v1057_v45  ;;  %v1558_v52 = vpack.c.bf16 %v1090_v50, %v1089_v46  ;;  %v647_v53 = vpop.f32.mrb[12].mxu0  ;;  %v727_v54 = vpop.f32.mrb[12].mxu1 }
 0x13a   : > { %v995_v55 = vadd.f32 %v1890_v29, %v647_v53  ;;  %v1027_v56 = vadd.f32 %v1890_v29, %v727_v54  ;;  %v649_v57 = vpop.f32.mrb[13].mxu0  ;;  %v729_v58 = vpop.f32.mrb[13].mxu1 }
 0x13b   : > { %1308 = vst [vmem:[%s1906_s30 + $0x28] sm:$0xff] %v1542_v51  ;;  %1324 = vst [vmem:[%s1906_s30 + $0xa8] sm:$0xff] %v1558_v52  ;;  %v996_v59 = vadd.f32 %v1892_v30, %v649_v57  ;;  %v1028_v60 = vadd.f32 %v1892_v30, %v729_v58  ;;  %v651_v61 = vpop.f32.mrb[14].mxu0  ;;  %v731_v62 = vpop.f32.mrb[14].mxu1 }
 0x13c   : > { %v1059_v63 = vmax.f32 %v995_v55, 0.0  ;;  %v1091_v0 = vmax.f32 %v1027_v56, 0.0  ;;  %v997_v1 = vadd.f32 %v1890_v29, %v651_v61  ;;  %v1029_v2 = vadd.f32 %v1890_v29, %v731_v62  ;;  %v653_v3 = vpop.f32.mrb[15].mxu0  ;;  %v733_v4 = vpop.f32.mrb[15].mxu1 }
 0x13d   : > { %v1060_v5 = vmax.f32 %v996_v59, 0.0  ;;  %v1092_v6 = vmax.f32 %v1028_v60, 0.0  ;;  %v998_v7 = vadd.f32 %v1892_v30, %v653_v3  ;;  %v1030_v8 = vadd.f32 %v1892_v30, %v733_v4 }
 0x13e   : > { %v1061_v9 = vmax.f32 %v997_v1, 0.0  ;;  %v1093_v10 = vmax.f32 %v1029_v2, 0.0 }
 0x13f   : > { %v1543_v11 = vpack.c.bf16 %v1060_v5, %v1059_v63  ;;  %v1559_v12 = vpack.c.bf16 %v1092_v6, %v1091_v0  ;;  %v1062_v13 = vmax.f32 %v998_v7, 0.0  ;;  %v1094_v14 = vmax.f32 %v1030_v8, 0.0 }
 0x141   : > { %1309 = vst [vmem:[%s1906_s30 + $0x30] sm:$0xff] %v1543_v11  ;;  %1325 = vst [vmem:[%s1906_s30 + $0xb0] sm:$0xff] %v1559_v12  ;;  %v1544_v15 = vpack.c.bf16 %v1062_v13, %v1061_v9  ;;  %v1560_v16 = vpack.c.bf16 %v1094_v14, %v1093_v10  ;;  %v657_v17 = vpop.f32.mrb[16].mxu0  ;;  %v737_v18 = vpop.f32.mrb[16].mxu1 }
 0x142   : > { %v999_v19 = vadd.f32 %v1890_v29, %v657_v17  ;;  %v1031_v20 = vadd.f32 %v1890_v29, %v737_v18  ;;  %v659_v21 = vpop.f32.mrb[17].mxu0  ;;  %v739_v22 = vpop.f32.mrb[17].mxu1 }
 0x143   : > { %1310 = vst [vmem:[%s1906_s30 + $0x38] sm:$0xff] %v1544_v15  ;;  %1326 = vst [vmem:[%s1906_s30 + $0xb8] sm:$0xff] %v1560_v16  ;;  %v1000_v23 = vadd.f32 %v1892_v30, %v659_v21  ;;  %v1032_v24 = vadd.f32 %v1892_v30, %v739_v22  ;;  %v661_v25 = vpop.f32.mrb[18].mxu0  ;;  %v741_v26 = vpop.f32.mrb[18].mxu1 }
 0x144   : > { %v1063_v27 = vmax.f32 %v999_v19, 0.0  ;;  %v1095_v28 = vmax.f32 %v1031_v20, 0.0  ;;  %v1001_v31 = vadd.f32 %v1890_v29, %v661_v25  ;;  %v1033_v32 = vadd.f32 %v1890_v29, %v741_v26  ;;  %v663_v33 = vpop.f32.mrb[19].mxu0  ;;  %v743_v34 = vpop.f32.mrb[19].mxu1 }
 0x145   : > { %v1064_v35 = vmax.f32 %v1000_v23, 0.0  ;;  %v1096_v36 = vmax.f32 %v1032_v24, 0.0  ;;  %v1002_v37 = vadd.f32 %v1892_v30, %v663_v33  ;;  %v1034_v38 = vadd.f32 %v1892_v30, %v743_v34 }
 0x146   : > { %v1065_v39 = vmax.f32 %v1001_v31, 0.0  ;;  %v1097_v40 = vmax.f32 %v1033_v32, 0.0 }
 0x147   : > { %v1545_v41 = vpack.c.bf16 %v1064_v35, %v1063_v27  ;;  %v1561_v42 = vpack.c.bf16 %v1096_v36, %v1095_v28  ;;  %v1066_v43 = vmax.f32 %v1002_v37, 0.0  ;;  %v1098_v44 = vmax.f32 %v1034_v38, 0.0 }
 0x149   : > { %1311 = vst [vmem:[%s1906_s30 + $0x40] sm:$0xff] %v1545_v41  ;;  %1327 = vst [vmem:[%s1906_s30 + $0xc0] sm:$0xff] %v1561_v42  ;;  %v1546_v45 = vpack.c.bf16 %v1066_v43, %v1065_v39  ;;  %v1562_v46 = vpack.c.bf16 %v1098_v44, %v1097_v40  ;;  %v667_v47 = vpop.f32.mrb[20].mxu0  ;;  %v747_v48 = vpop.f32.mrb[20].mxu1 }
 0x14a   : > { %v1003_v49 = vadd.f32 %v1890_v29, %v667_v47  ;;  %v1035_v50 = vadd.f32 %v1890_v29, %v747_v48  ;;  %v669_v51 = vpop.f32.mrb[21].mxu0  ;;  %v749_v52 = vpop.f32.mrb[21].mxu1 }
 0x14b   : > { %1312 = vst [vmem:[%s1906_s30 + $0x48] sm:$0xff] %v1546_v45  ;;  %1328 = vst [vmem:[%s1906_s30 + $0xc8] sm:$0xff] %v1562_v46  ;;  %v1004_v53 = vadd.f32 %v1892_v30, %v669_v51  ;;  %v1036_v54 = vadd.f32 %v1892_v30, %v749_v52  ;;  %v671_v55 = vpop.f32.mrb[22].mxu0  ;;  %v751_v56 = vpop.f32.mrb[22].mxu1 }
 0x14c   : > { %v1067_v57 = vmax.f32 %v1003_v49, 0.0  ;;  %v1099_v58 = vmax.f32 %v1035_v50, 0.0  ;;  %v1005_v59 = vadd.f32 %v1890_v29, %v671_v55  ;;  %v1037_v60 = vadd.f32 %v1890_v29, %v751_v56  ;;  %v673_v61 = vpop.f32.mrb[23].mxu0  ;;  %v753_v62 = vpop.f32.mrb[23].mxu1 }
 0x14d   : > { %v1068_v63 = vmax.f32 %v1004_v53, 0.0  ;;  %v1100_v0 = vmax.f32 %v1036_v54, 0.0  ;;  %v1006_v1 = vadd.f32 %v1892_v30, %v673_v61  ;;  %v1038_v2 = vadd.f32 %v1892_v30, %v753_v62 }
 0x14e   : > { %v1069_v3 = vmax.f32 %v1005_v59, 0.0  ;;  %v1101_v4 = vmax.f32 %v1037_v60, 0.0 }
 0x14f   : > { %v1547_v5 = vpack.c.bf16 %v1068_v63, %v1067_v57  ;;  %v1563_v6 = vpack.c.bf16 %v1100_v0, %v1099_v58  ;;  %v1070_v7 = vmax.f32 %v1006_v1, 0.0  ;;  %v1102_v8 = vmax.f32 %v1038_v2, 0.0 }
 0x151   : > { %1313 = vst [vmem:[%s1906_s30 + $0x50] sm:$0xff] %v1547_v5  ;;  %1329 = vst [vmem:[%s1906_s30 + $0xd0] sm:$0xff] %v1563_v6  ;;  %v1548_v9 = vpack.c.bf16 %v1070_v7, %v1069_v3  ;;  %v1564_v10 = vpack.c.bf16 %v1102_v8, %v1101_v4  ;;  %v677_v11 = vpop.f32.mrb[24].mxu0  ;;  %v757_v12 = vpop.f32.mrb[24].mxu1 }
 0x152   : > { %v1007_v13 = vadd.f32 %v1890_v29, %v677_v11  ;;  %v1039_v14 = vadd.f32 %v1890_v29, %v757_v12  ;;  %v679_v15 = vpop.f32.mrb[25].mxu0  ;;  %v759_v16 = vpop.f32.mrb[25].mxu1 }
 0x153   : > { %1314 = vst [vmem:[%s1906_s30 + $0x58] sm:$0xff] %v1548_v9  ;;  %1330 = vst [vmem:[%s1906_s30 + $0xd8] sm:$0xff] %v1564_v10  ;;  %v1008_v17 = vadd.f32 %v1892_v30, %v679_v15  ;;  %v1040_v18 = vadd.f32 %v1892_v30, %v759_v16  ;;  %v681_v19 = vpop.f32.mrb[26].mxu0  ;;  %v761_v20 = vpop.f32.mrb[26].mxu1 }
 0x154   : > { %v1071_v21 = vmax.f32 %v1007_v13, 0.0  ;;  %v1103_v22 = vmax.f32 %v1039_v14, 0.0  ;;  %v1009_v23 = vadd.f32 %v1890_v29, %v681_v19  ;;  %v1041_v24 = vadd.f32 %v1890_v29, %v761_v20  ;;  %v683_v25 = vpop.f32.mrb[27].mxu0  ;;  %v763_v26 = vpop.f32.mrb[27].mxu1 }
 0x155   : > { %v1072_v27 = vmax.f32 %v1008_v17, 0.0  ;;  %v1104_v28 = vmax.f32 %v1040_v18, 0.0  ;;  %v1010_v31 = vadd.f32 %v1892_v30, %v683_v25  ;;  %v1042_v32 = vadd.f32 %v1892_v30, %v763_v26 }
 0x156   : > { %v1073_v33 = vmax.f32 %v1009_v23, 0.0  ;;  %v1105_v34 = vmax.f32 %v1041_v24, 0.0 }
 0x157   : > { %v1549_v35 = vpack.c.bf16 %v1072_v27, %v1071_v21  ;;  %v1565_v36 = vpack.c.bf16 %v1104_v28, %v1103_v22  ;;  %v1074_v37 = vmax.f32 %v1010_v31, 0.0  ;;  %v1106_v38 = vmax.f32 %v1042_v32, 0.0 }
 0x159   : > { %1315 = vst [vmem:[%s1906_s30 + $0x60] sm:$0xff] %v1549_v35  ;;  %1331 = vst [vmem:[%s1906_s30 + $0xe0] sm:$0xff] %v1565_v36  ;;  %v1550_v39 = vpack.c.bf16 %v1074_v37, %v1073_v33  ;;  %v1566_v40 = vpack.c.bf16 %v1106_v38, %v1105_v34  ;;  %v687_v41 = vpop.f32.mrb[28].mxu0  ;;  %v767_v42 = vpop.f32.mrb[28].mxu1 }
 0x15a   : > { %v1011_v43 = vadd.f32 %v1890_v29, %v687_v41  ;;  %v1043_v44 = vadd.f32 %v1890_v29, %v767_v42  ;;  %v689_v45 = vpop.f32.mrb[29].mxu0  ;;  %v769_v46 = vpop.f32.mrb[29].mxu1 }
 0x15b   : > { %1316 = vst [vmem:[%s1906_s30 + $0x68] sm:$0xff] %v1550_v39  ;;  %1332 = vst [vmem:[%s1906_s30 + $0xe8] sm:$0xff] %v1566_v40  ;;  %v1012_v47 = vadd.f32 %v1892_v30, %v689_v45  ;;  %v1044_v48 = vadd.f32 %v1892_v30, %v769_v46  ;;  %v691_v49 = vpop.f32.mrb[30].mxu0  ;;  %v771_v50 = vpop.f32.mrb[30].mxu1 }
 0x15c   : > { %v1075_v51 = vmax.f32 %v1011_v43, 0.0  ;;  %v1107_v52 = vmax.f32 %v1043_v44, 0.0  ;;  %v1013_v53 = vadd.f32 %v1890_v29, %v691_v49  ;;  %v1045_v54 = vadd.f32 %v1890_v29, %v771_v50  ;;  %v693_v55 = vpop.f32.mrb[31].mxu0  ;;  %v773_v56 = vpop.f32.mrb[31].mxu1 }
 0x15d   : > { %v1076_v57 = vmax.f32 %v1012_v47, 0.0  ;;  %v1108_v58 = vmax.f32 %v1044_v48, 0.0  ;;  %v1014_v59 = vadd.f32 %v1892_v30, %v693_v55  ;;  %v1046_v60 = vadd.f32 %v1892_v30, %v773_v56 }
 0x15e   : > { %v1077_v61 = vmax.f32 %v1013_v53, 0.0  ;;  %v1109_v62 = vmax.f32 %v1045_v54, 0.0 }
 0x15f   : > { %v1551_v63 = vpack.c.bf16 %v1076_v57, %v1075_v51  ;;  %v1567_v0 = vpack.c.bf16 %v1108_v58, %v1107_v52  ;;  %v1078_v1 = vmax.f32 %v1014_v59, 0.0  ;;  %v1110_v2 = vmax.f32 %v1046_v60, 0.0 }
 0x161   : > { %1317 = vst [vmem:[%s1906_s30 + $0x70] sm:$0xff] %v1551_v63  ;;  %1333 = vst [vmem:[%s1906_s30 + $0xf0] sm:$0xff] %v1567_v0  ;;  %v1552_v3 = vpack.c.bf16 %v1078_v1, %v1077_v61  ;;  %v1568_v29 = vpack.c.bf16 %v1110_v2, %v1109_v62 }
 0x163   : > { %1318 = vst [vmem:[%s1906_s30 + $0x78] sm:$0xff] %v1552_v3  ;;  %1334 = vst [vmem:[%s1906_s30 + $0xf8] sm:$0xff] %v1568_v29 }
 0x164 PF: > { %s15_s14 = sadd.s32 1, %s1725_s14   ;;  %s2017_s12 = smov %s1721_s13 }
 0x165   : > { %p12_p8 = scmp.ge.s32.totalorder %s15_s14, 4   ;;  %s2018_s13 = smov %s2020_s16 }
 0x167   :  { %14 = sbr.rel (!%p12_p8) target bundleno = 3 (0x3), region = 81 }
 0x16e   :  { %1368 = vsyncpa [#allocation4], 1 }
 0x16f   :  { %1370 = vsyncpa [#allocation4 + $0x1], 1 }
 0x170   :  { %1371 = vsyncpa [#allocation6], 1 }

// kernel: _lambda_.36
= control target key start
LH: loop header
LB: loop body
LE: loop exit
PB: predicated region body
PF: predicated region fallthrough
CT: control target
= control target key end

     0   :  { %s1569_s12 = smov 0   ;;  %s1571_s13 = smov 0   ;;  %s1742_s0 = inlined_call_operand.vmem [shape: bf16[56,2560], index: 0, kind: input, shape index: {}]   ;;  %s1743_s1 = inlined_call_operand.vmem [shape: bf16[2560,256], index: 1, kind: input, shape index: {}]   ;;  %s1744_s2 = inlined_call_operand.vmem [shape: f32[1,256], index: 2, kind: input, shape index: {}]   ;;  %s1745_s3 = inlined_call_operand.vmem [shape: bf16[56,256], index: 3, kind: output, shape index: {}]  }
   0x1   :  { %s1573_s14 = smov 0   ;;  %s1575_s15 = smov 0  }
   0x2   :  { %s1577_s16 = smov 0  }
   0x3 LB: > { %s25_s17 = sadd.s32 1, %s1542_s15  ;;  %p48_p1 = scmp.ne.s32.totalorder %s1534_s13, %s1530_s12  ;;  %s1546_s16 = sphi %s1577_s16, %s13_s16   ;;  %s1542_s15 = sphi %s1575_s15, %s1749_s15   ;;  %s1538_s14 = sphi %s1573_s14, %s1748_s14   ;;  %s1534_s13 = sphi %s1571_s13, %s1747_s13   ;;  %s1530_s12 = sphi %s1569_s12, %s1746_s12  }
   0x4   : > { %p26_p0 = scmp.ge.s32.totalorder %s25_s17, 5  ;;  %p49_p2 = scmp.eq.s32.totalorder %s1546_s16, 0 }
   0x5   : > { %s41_s19 = sadd.s32 1, %s1534_s13  ;;  %p1226_p5 = scmp.ge.s32.totalorder %s1546_s16, 5 }
   0x6   : > { %s1751_s17 = smov (%p26_p0, %s25_s17), 0  ;;  %p50_p3 = por %p49_p2, %p48_p1 }
   0x7   : > { %s37_s18 = ssub.s32 %s1542_s15, %s1751_s17  ;;  %164 = sbr.rel (%p1226_p5) target bundleno = 26 (0x1a), region = 20 }
   0x8   : > { %p39_p4 = scmp.eq.s32.totalorder %s37_s18, 0 }
   0xa   : > { %s1604_s20 = scalar_select %p39_p4, %s1534_s13, %s41_s19  }
   0xe   : > { %167 = sbr.rel (!%p50_p3) target bundleno = 26 (0x1a), region = 24  ;;  %s169_s21 = sand.u32 (%p50_p3), 1, %s1534_s13  }
   0xf   : > { %s1326_s22 = sshll.u32 (%p50_p3), %s1542_s15, 4  ;;  %s1347_s23 = smul.u32 (%p50_p3), 112, %s169_s21 }
  0x10   : > { %s177_s26 = scalar_lea.vmem (%p50_p3), %s1742_s0, %s1326_s22 }
  0x11   : > { %v190_v0 = vld [vmem:[%s177_s26] sm:$0xff] (%p50_p3)  ;;  %v192_v1 = vld [vmem:[%s177_s26 + $0x8] sm:$0xff] (%p50_p3)  ;;  %v194_v2 = vld [vmem:[%s177_s26 + $0x50] sm:$0xff] (%p50_p3)  ;;  %s171_s27 = scalar_lea.vmem (%p50_p3), [#allocation3], %s1347_s23 }
  0x12   : > { %v196_v3 = vld [vmem:[%s177_s26 + $0x58] sm:$0xff] (%p50_p3)  ;;  %v198_v4 = vld [vmem:[%s177_s26 + $0xa0] sm:$0xff] (%p50_p3)  ;;  %v200_v5 = vld [vmem:[%s177_s26 + $0xa8] sm:$0xff] (%p50_p3)  ;;  %191 = vst [vmem:[%s171_s27] sm:$0xff] (%p50_p3), %v190_v0 }
  0x13   : > { %193 = vst [vmem:[%s171_s27 + $0x8] sm:$0xff] (%p50_p3), %v192_v1  ;;  %195 = vst [vmem:[%s171_s27 + $0x10] sm:$0xff] (%p50_p3), %v194_v2  ;;  %v202_v6 = vld [vmem:[%s177_s26 + $0xf0] sm:$0xff] (%p50_p3)  ;;  %v204_v7 = vld [vmem:[%s177_s26 + $0xf8] sm:$0xff] (%p50_p3) }
  0x14   : > { %197 = vst [vmem:[%s171_s27 + $0x18] sm:$0xff] (%p50_p3), %v196_v3  ;;  %199 = vst [vmem:[%s171_s27 + $0x20] sm:$0xff] (%p50_p3), %v198_v4  ;;  %v206_v8 = vld [vmem:[%s177_s26 + $0x140] sm:$0xff] (%p50_p3)  ;;  %v208_v9 = vld [vmem:[%s177_s26 + $0x148] sm:$0xff] (%p50_p3) }
  0x15   : > { %201 = vst [vmem:[%s171_s27 + $0x28] sm:$0xff] %v200_v5  ;;  %203 = vst [vmem:[%s171_s27 + $0x30] sm:$0xff] %v202_v6  ;;  %v210_v10 = vld [vmem:[%s177_s26 + $0x190] sm:$0xff]  ;;  %v212_v11 = vld [vmem:[%s177_s26 + $0x198] sm:$0xff] }
  0x16   : > { %205 = vst [vmem:[%s171_s27 + $0x38] sm:$0xff] %v204_v7  ;;  %207 = vst [vmem:[%s171_s27 + $0x40] sm:$0xff] %v206_v8  ;;  %v214_v12 = vld [vmem:[%s177_s26 + $0x1e0] sm:$0xff]  ;;  %v216_v13 = vld [vmem:[%s177_s26 + $0x1e8] sm:$0xff] }
  0x17   : > { %209 = vst [vmem:[%s171_s27 + $0x48] sm:$0xff] %v208_v9  ;;  %211 = vst [vmem:[%s171_s27 + $0x50] sm:$0xff] %v210_v10 }
  0x18   : > { %213 = vst [vmem:[%s171_s27 + $0x58] sm:$0xff] %v212_v11  ;;  %215 = vst [vmem:[%s171_s27 + $0x60] sm:$0xff] %v214_v12 }
  0x19   : > { %217 = vst [vmem:[%s171_s27 + $0x68] sm:$0xff] %v216_v13 }
  0x1a PF: > { %p1229_p6 = scmp.ge.s32.totalorder %s1546_s16, 1  ;;  %p237_p7 = scmp.lt.s32.totalorder %s1546_s16, 6 }
  0x1c   : > { %p238_p8 = pnand %p1229_p6, %p237_p7 }
  0x1d   : > { %s244_s28 = sand.u32 (!%p238_p8), 1, %s1530_s12   ;;  %s1230_s29 = sshll.u32 (!%p238_p8), %s1538_s14, 6 }
  0x1e   : > { %241 = sbr.rel (%p238_p8) target bundleno = 368 (0x170), region = 51  ;;  %p290_p9 = scmp.lt.s32.totalorder (!%p238_p8), %s1230_s29, 319 }
  0x1f   : > { %s1348_s30 = smul.u32 (!%p238_p8), 112, %s244_s28  ;;  %p1233_p10 = scmp.ne.s32.totalorder (!%p238_p8), %s1538_s14, 0 }
  0x21   : > { %s1621_s8 = scalar_lea.vmem (!%p238_p8), [#allocation3], %s1348_s30 }
  0x25   : > { %s1753_s29 = smov (!%p290_p9, %s1230_s29), 319  ;;  %320 = sbr.rel (%p1233_p10) target bundleno = 46 (0x2e), region = 59 }
  0x26   : > { %s1327_s4 = sshll.u32 %s1753_s29, 3  ;;  %v1548_v14 = vmov (!%p1233_p10), 0.0  }
  0x27   : > { %s1619_s7 = scalar_lea.vmem %s1743_s1, %s1327_s4  ;;  %321 = vst [vmem:[#allocation2] sm:$0xff] (!%p1233_p10), %v1548_v14  ;;  %322 = vst [vmem:[#allocation2 + $0x8] sm:$0xff] (!%p1233_p10), %v1548_v14 }
  0x28   : > { %323 = vst [vmem:[#allocation2 + $0x10] sm:$0xff] (!%p1233_p10), %v1548_v14  ;;  %324 = vst [vmem:[#allocation2 + $0x18] sm:$0xff] (!%p1233_p10), %v1548_v14 }
  0x29   : > { %325 = vst [vmem:[#allocation2 + $0x20] sm:$0xff] (!%p1233_p10), %v1548_v14  ;;  %326 = vst [vmem:[#allocation2 + $0x28] sm:$0xff] (!%p1233_p10), %v1548_v14 }
  0x2a   : > { %327 = vst [vmem:[#allocation2 + $0x30] sm:$0xff] (!%p1233_p10), %v1548_v14  ;;  %328 = vst [vmem:[#allocation2 + $0x38] sm:$0xff] (!%p1233_p10), %v1548_v14 }
  0x2b   : > { %329 = vst [vmem:[#allocation2 + $0x40] sm:$0xff] (!%p1233_p10), %v1548_v14  ;;  %330 = vst [vmem:[#allocation2 + $0x48] sm:$0xff] (!%p1233_p10), %v1548_v14 }
  0x2c   : > { %331 = vst [vmem:[#allocation2 + $0x50] sm:$0xff] %v1548_v14  ;;  %332 = vst [vmem:[#allocation2 + $0x58] sm:$0xff] %v1548_v14 }
  0x2d   : > { %333 = vst [vmem:[#allocation2 + $0x60] sm:$0xff] %v1548_v14  ;;  %334 = vst [vmem:[#allocation2 + $0x68] sm:$0xff] %v1548_v14 }
  0x2e PF: > { %v1390_v15 = vld [vmem:[%s1619_s7 + $0x4] ss:$8 sps:$4 sm:$0xff]   ;;  %v1394_v17 = vld [vmem:[%s1619_s7] ss:$8 sps:$4 sm:$0xff]   ;;  %v1396_v19 = vld [vmem:[%s1619_s7 + $0x14] ss:$8 sps:$4 sm:$0xff]  }
  0x2f   : > { %v1392_v16 = vld [vmem:[%s1619_s7 + $0x104] ss:$8 sps:$4 sm:$0xff]   ;;  %821 = vmatprep.subr.bf16.mxu1 %v1390_v15  ;;  %v1395_v18 = vld [vmem:[%s1619_s7 + $0x100] ss:$8 sps:$4 sm:$0xff]   ;;  %v1398_v20 = vld [vmem:[%s1619_s7 + $0x114] ss:$8 sps:$4 sm:$0xff]  }
  0x30   : > { %892 = vmatprep.subr.bf16.mxu0 %v1392_v16  ;;  %822 = vmatpush1.bf16.msra.mxu1 %v1394_v17  ;;  %v1400_v21 = vld [vmem:[%s1619_s7 + $0x10] ss:$8 sps:$4 sm:$0xff]   ;;  %v1402_v23 = vld [vmem:[%s1619_s7 + $0x24] ss:$8 sps:$4 sm:$0xff]   ;;  %v1406_v25 = vld [vmem:[%s1619_s7 + $0x20] ss:$8 sps:$4 sm:$0xff]  }
  0x31   : > { %893 = vmatpush1.bf16.msra.mxu0 %v1395_v18  ;;  %823 = vmatprep.subr.bf16.mxu1 %v1396_v19  ;;  %v1401_v22 = vld [vmem:[%s1619_s7 + $0x110] ss:$8 sps:$4 sm:$0xff]   ;;  %v1404_v24 = vld [vmem:[%s1619_s7 + $0x124] ss:$8 sps:$4 sm:$0xff]   ;;  %v1407_v26 = vld [vmem:[%s1619_s7 + $0x120] ss:$8 sps:$4 sm:$0xff]  }
  0x32   : > { %894 = vmatprep.subr.bf16.mxu0 %v1398_v20  ;;  %v1408_v27 = vld [vmem:[%s1619_s7 + $0x34] ss:$8 sps:$4 sm:$0xff]   ;;  %v1412_v29 = vld [vmem:[%s1619_s7 + $0x30] ss:$8 sps:$4 sm:$0xff]   ;;  %v1414_v31 = vld [vmem:[%s1619_s7 + $0x44] ss:$8 sps:$4 sm:$0xff]  }
  0x33   : > { %v1410_v28 = vld [vmem:[%s1619_s7 + $0x134] ss:$8 sps:$4 sm:$0xff]   ;;  %v1413_v30 = vld [vmem:[%s1619_s7 + $0x130] ss:$8 sps:$4 sm:$0xff]   ;;  %v1416_v32 = vld [vmem:[%s1619_s7 + $0x144] ss:$8 sps:$4 sm:$0xff]  }
  0x34   : > { %824 = vmatpush1.bf16.msra.mxu1 %v1400_v21  ;;  %v1418_v33 = vld [vmem:[%s1619_s7 + $0x40] ss:$8 sps:$4 sm:$0xff]   ;;  %v1420_v35 = vld [vmem:[%s1619_s7 + $0x54] ss:$8 sps:$4 sm:$0xff]   ;;  %v1424_v37 = vld [vmem:[%s1619_s7 + $0x50] ss:$8 sps:$4 sm:$0xff]  }
  0x35   : > { %895 = vmatpush1.bf16.msra.mxu0 %v1401_v22  ;;  %825 = vmatprep.subr.bf16.mxu1 %v1402_v23  ;;  %v1419_v34 = vld [vmem:[%s1619_s7 + $0x140] ss:$8 sps:$4 sm:$0xff]   ;;  %v1422_v36 = vld [vmem:[%s1619_s7 + $0x154] ss:$8 sps:$4 sm:$0xff]   ;;  %v1425_v38 = vld [vmem:[%s1619_s7 + $0x150] ss:$8 sps:$4 sm:$0xff]  }
  0x36   : > { %896 = vmatprep.subr.bf16.mxu0 %v1404_v24  ;;  %v1426_v39 = vld [vmem:[%s1619_s7 + $0x64] ss:$8 sps:$4 sm:$0xff]   ;;  %v1430_v41 = vld [vmem:[%s1619_s7 + $0x60] ss:$8 sps:$4 sm:$0xff]   ;;  %v1432_v43 = vld [vmem:[%s1619_s7 + $0x74] ss:$8 sps:$4 sm:$0xff]  }
  0x37   : > { %v1428_v40 = vld [vmem:[%s1619_s7 + $0x164] ss:$8 sps:$4 sm:$0xff]   ;;  %v1431_v42 = vld [vmem:[%s1619_s7 + $0x160] ss:$8 sps:$4 sm:$0xff]   ;;  %v1434_v44 = vld [vmem:[%s1619_s7 + $0x174] ss:$8 sps:$4 sm:$0xff]  }
  0x38   : > { %826 = vmatpush1.bf16.msra.mxu1 %v1406_v25  ;;  %v1436_v45 = vld [vmem:[%s1619_s7 + $0x70] ss:$8 sps:$4 sm:$0xff]   ;;  %v1438_v47 = vld [vmem:[%s1619_s7 + $0x84] ss:$8 sps:$4 sm:$0xff]   ;;  %v1442_v49 = vld [vmem:[%s1619_s7 + $0x80] ss:$8 sps:$4 sm:$0xff]  }
  0x39   : > { %897 = vmatpush1.bf16.msra.mxu0 %v1407_v26  ;;  %827 = vmatprep.subr.bf16.mxu1 %v1408_v27  ;;  %v1437_v46 = vld [vmem:[%s1619_s7 + $0x170] ss:$8 sps:$4 sm:$0xff]   ;;  %v1440_v48 = vld [vmem:[%s1619_s7 + $0x184] ss:$8 sps:$4 sm:$0xff]   ;;  %v1443_v50 = vld [vmem:[%s1619_s7 + $0x180] ss:$8 sps:$4 sm:$0xff]  }
  0x3a   : > { %898 = vmatprep.subr.bf16.mxu0 %v1410_v28  ;;  %v1444_v51 = vld [vmem:[%s1619_s7 + $0x94] ss:$8 sps:$4 sm:$0xff]   ;;  %v1448_v53 = vld [vmem:[%s1619_s7 + $0x90] ss:$8 sps:$4 sm:$0xff]   ;;  %v1450_v55 = vld [vmem:[%s1619_s7 + $0xa4] ss:$8 sps:$4 sm:$0xff]  }
  0x3b   : > { %v1446_v52 = vld [vmem:[%s1619_s7 + $0x194] ss:$8 sps:$4 sm:$0xff]   ;;  %v1449_v54 = vld [vmem:[%s1619_s7 + $0x190] ss:$8 sps:$4 sm:$0xff]   ;;  %v1452_v56 = vld [vmem:[%s1619_s7 + $0x1a4] ss:$8 sps:$4 sm:$0xff]  }
  0x3c   : > { %828 = vmatpush1.bf16.msra.mxu1 %v1412_v29  ;;  %v1454_v57 = vld [vmem:[%s1619_s7 + $0xa0] ss:$8 sps:$4 sm:$0xff]   ;;  %v1456_v59 = vld [vmem:[%s1619_s7 + $0xb4] ss:$8 sps:$4 sm:$0xff]   ;;  %v1460_v61 = vld [vmem:[%s1619_s7 + $0xb0] ss:$8 sps:$4 sm:$0xff]  }
  0x3d   : > { %899 = vmatpush1.bf16.msra.mxu0 %v1413_v30  ;;  %829 = vmatprep.subr.bf16.mxu1 %v1414_v31  ;;  %v1455_v58 = vld [vmem:[%s1619_s7 + $0x1a0] ss:$8 sps:$4 sm:$0xff]   ;;  %v1458_v60 = vld [vmem:[%s1619_s7 + $0x1b4] ss:$8 sps:$4 sm:$0xff]   ;;  %v1461_v62 = vld [vmem:[%s1619_s7 + $0x1b0] ss:$8 sps:$4 sm:$0xff]  }
  0x3e   : > { %900 = vmatprep.subr.bf16.mxu0 %v1416_v32  ;;  %v1462_v63 = vld [vmem:[%s1619_s7 + $0xc4] ss:$8 sps:$4 sm:$0xff]   ;;  %v1466_v3 = vld [vmem:[%s1619_s7 + $0xc0] ss:$8 sps:$4 sm:$0xff]   ;;  %v1468_v5 = vld [vmem:[%s1619_s7 + $0xd4] ss:$8 sps:$4 sm:$0xff]  }
  0x3f   : > { %v1488_v0 = vld [vmem:[%s1621_s8 + $0x4] ss:$16 sps:$4 sm:$0xff]   ;;  %v1491_v2 = vld [vmem:[%s1621_s8 + $0xc] ss:$16 sps:$4 sm:$0xff]   ;;  %v1467_v4 = vld [vmem:[%s1619_s7 + $0x1c0] ss:$8 sps:$4 sm:$0xff]  }
  0x40   : > { %830 = vmatpush1.bf16.msra.mxu1 %v1418_v33  ;;  %v1464_v1 = vld [vmem:[%s1619_s7 + $0x1c4] ss:$8 sps:$4 sm:$0xff]   ;;  %853 = vmatprep.mubr.bf16.mxu1 %v1488_v0  ;;  %v1470_v6 = vld [vmem:[%s1619_s7 + $0x1d4] ss:$8 sps:$4 sm:$0xff]   ;;  %v1472_v7 = vld [vmem:[%s1619_s7 + $0xd0] ss:$8 sps:$4 sm:$0xff]  }
  0x41   : > { %901 = vmatpush1.bf16.msra.mxu0 %v1419_v34  ;;  %831 = vmatprep.subr.bf16.mxu1 %v1420_v35  ;;  %v1473_v8 = vld [vmem:[%s1619_s7 + $0x1d0] ss:$8 sps:$4 sm:$0xff]   ;;  %v1474_v9 = vld [vmem:[%s1619_s7 + $0xe4] ss:$8 sps:$4 sm:$0xff]   ;;  %v1478_v11 = vld [vmem:[%s1619_s7 + $0xe0] ss:$8 sps:$4 sm:$0xff]  }
  0x42   : > { %902 = vmatprep.subr.bf16.mxu0 %v1422_v36  ;;  %924 = vmatprep.mubr.bf16.mxu0 %v1491_v2  ;;  %v1476_v10 = vld [vmem:[%s1619_s7 + $0x1e4] ss:$8 sps:$4 sm:$0xff]   ;;  %v1479_v12 = vld [vmem:[%s1619_s7 + $0x1e0] ss:$8 sps:$4 sm:$0xff]   ;;  %v1480_v13 = vld [vmem:[%s1619_s7 + $0xf4] ss:$8 sps:$4 sm:$0xff]  }
  0x43   : > { %v1482_v14 = vld [vmem:[%s1619_s7 + $0x1f4] ss:$8 sps:$4 sm:$0xff]   ;;  %v1484_v15 = vld [vmem:[%s1619_s7 + $0xf0] ss:$8 sps:$4 sm:$0xff]   ;;  %v335_v34 = vld [vmem:[#allocation2] sm:$0xff]  ;;  %p1314_p11 = scmp.ne.s32.totalorder %s1538_s14, 4 }
  0x44   : > { %832 = vmatpush1.bf16.msra.mxu1 %v1424_v37  ;;  %v1485_v16 = vld [vmem:[%s1619_s7 + $0x1f0] ss:$8 sps:$4 sm:$0xff]   ;;  %v1492_v19 = vld [vmem:[%s1621_s8 + $0x24] ss:$16 sps:$4 sm:$0xff]   ;;  %v1494_v20 = vld [vmem:[%s1621_s8 + $0x2c] ss:$16 sps:$4 sm:$0xff]  }
  0x45   : > { %903 = vmatpush1.bf16.msra.mxu0 %v1425_v38  ;;  %833 = vmatprep.subr.bf16.mxu1 %v1426_v39  ;;  %v1486_v17 = vld [vmem:[%s1621_s8] ss:$16 sps:$4 sm:$0xff]   ;;  %v1489_v18 = vld [vmem:[%s1621_s8 + $0x8] ss:$16 sps:$4 sm:$0xff]   ;;  %v1498_v23 = vld [vmem:[%s1621_s8 + $0x44] ss:$16 sps:$4 sm:$0xff]  }
  0x46   : > { %904 = vmatprep.subr.bf16.mxu0 %v1428_v40  ;;  %v1496_v21 = vld [vmem:[%s1621_s8 + $0x20] ss:$16 sps:$4 sm:$0xff]   ;;  %v1497_v22 = vld [vmem:[%s1621_s8 + $0x28] ss:$16 sps:$4 sm:$0xff]   ;;  %v1500_v24 = vld [vmem:[%s1621_s8 + $0x4c] ss:$16 sps:$4 sm:$0xff]  }
  0x47   : > { %v361_v25 = vld [vmem:[%s1621_s8 + $0x60] sm:$0xff]  ;;  %v362_v26 = vld [vmem:[%s1621_s8 + $0x68] sm:$0xff] }
  0x48   : > { %834 = vmatpush1.bf16.msra.mxu1 %v1430_v41  ;;  %v1502_v27 = vld [vmem:[%s1621_s8 + $0x40] ss:$16 sps:$4 sm:$0xff]   ;;  %v1503_v28 = vld [vmem:[%s1621_s8 + $0x48] ss:$16 sps:$4 sm:$0xff]   ;;  %v1247_v29 = vcombine.high %v361_v25, %v361_v25  ;;  %v1249_v30 = vcombine.high %v362_v26, %v362_v26  ;;  %v1246_v31 = vcombine.low %v361_v25, %v361_v25  ;;  %v1248_v32 = vcombine.low %v362_v26, %v362_v26 }
  0x49   : > { %905 = vmatpush1.bf16.msra.mxu0 %v1431_v42  ;;  %835 = vmatprep.subr.bf16.mxu1 %v1432_v43  ;;  %v336_v38 = vld [vmem:[#allocation2 + $0x8] sm:$0xff]  ;;  %v337_v42 = vld [vmem:[#allocation2 + $0x10] sm:$0xff] }
  0x4a   : > { %906 = vmatprep.subr.bf16.mxu0 %v1434_v44 }
  0x4c   : > { %836 = vmatpush1.bf16.msra.mxu1 %v1436_v45 }
  0x4d   : > { %907 = vmatpush1.bf16.msra.mxu0 %v1437_v46  ;;  %837 = vmatprep.subr.bf16.mxu1 %v1438_v47  ;;  %v338_v47 = vld [vmem:[#allocation2 + $0x18] sm:$0xff] }
  0x4e   : > { %908 = vmatprep.subr.bf16.mxu0 %v1440_v48 }
  0x50   : > { %838 = vmatpush1.bf16.msra.mxu1 %v1442_v49 }
  0x51   : > { %909 = vmatpush1.bf16.msra.mxu0 %v1443_v50  ;;  %839 = vmatprep.subr.bf16.mxu1 %v1444_v51 }
  0x52   : > { %910 = vmatprep.subr.bf16.mxu0 %v1446_v52 }
  0x54   : > { %840 = vmatpush1.bf16.msra.mxu1 %v1448_v53 }
  0x55   : > { %911 = vmatpush1.bf16.msra.mxu0 %v1449_v54  ;;  %841 = vmatprep.subr.bf16.mxu1 %v1450_v55  ;;  %v339_v54 = vld [vmem:[#allocation2 + $0x20] sm:$0xff] }
  0x56   : > { %912 = vmatprep.subr.bf16.mxu0 %v1452_v56 }
  0x58   : > { %842 = vmatpush1.bf16.msra.mxu1 %v1454_v57 }
  0x59   : > { %913 = vmatpush1.bf16.msra.mxu0 %v1455_v58  ;;  %843 = vmatprep.subr.bf16.mxu1 %v1456_v59  ;;  %v340_v58 = vld [vmem:[#allocation2 + $0x28] sm:$0xff] }
  0x5a   : > { %914 = vmatprep.subr.bf16.mxu0 %v1458_v60 }
  0x5c   : > { %844 = vmatpush1.bf16.msra.mxu1 %v1460_v61 }
  0x5d   : > { %915 = vmatpush1.bf16.msra.mxu0 %v1461_v62  ;;  %845 = vmatprep.subr.bf16.mxu1 %v1462_v63  ;;  %v341_v62 = vld [vmem:[#allocation2 + $0x30] sm:$0xff] }
  0x5e   : > { %916 = vmatprep.subr.bf16.mxu0 %v1464_v1 }
  0x60   : > { %846 = vmatpush1.bf16.msra.mxu1 %v1466_v3  ;;  %v342_v3 = vld [vmem:[#allocation2 + $0x38] sm:$0xff] }
  0x61   : > { %917 = vmatpush1.bf16.msra.mxu0 %v1467_v4  ;;  %847 = vmatprep.subr.bf16.mxu1 %v1468_v5 }
  0x62   : > { %918 = vmatprep.subr.bf16.mxu0 %v1470_v6 }
  0x64   : > { %848 = vmatpush1.bf16.msra.mxu1 %v1472_v7 }
  0x65   : > { %919 = vmatpush1.bf16.msra.mxu0 %v1473_v8  ;;  %849 = vmatprep.subr.bf16.mxu1 %v1474_v9 }
  0x66   : > { %920 = vmatprep.subr.bf16.mxu0 %v1476_v10  ;;  %v343_v10 = vld [vmem:[#allocation2 + $0x40] sm:$0xff] }
  0x68   : > { %850 = vmatpush1.bf16.msra.mxu1 %v1478_v11 }
  0x69   : > { %921 = vmatpush1.bf16.msra.mxu0 %v1479_v12  ;;  %851 = vmatprep.subr.bf16.mxu1 %v1480_v13 }
  0x6a   : > { %922 = vmatprep.subr.bf16.mxu0 %v1482_v14  ;;  %v344_v14 = vld [vmem:[#allocation2 + $0x48] sm:$0xff] }
  0x6c   : > { %852 = vmatpush1.bf16.msra.mxu1 %v1484_v15 }
  0x6d   : > { %923 = vmatpush1.bf16.msra.mxu0 %v1485_v16 }
  0x6f   : > { %854 = vmatmul.mubr.bf16.vlgmr.msra.gmra.mrb[0].mxu1 %v1486_v17 }
  0x70   : > { %925 = vmatmul.mubr.bf16.vlgmr.msra.gmra.mrb[0].mxu0 %v1489_v18  ;;  %863 = vmatprep.mubr.bf16.mxu1 %v1492_v19  ;;  %v345_v18 = vld [vmem:[#allocation2 + $0x50] sm:$0xff] }
  0x71   : > { %934 = vmatprep.mubr.bf16.mxu0 %v1494_v20 }
  0x77   : > { %864 = vmatmul.mubr.bf16.gmra.mrb[4].mxu1 %v1496_v21 }
  0x78   : > { %935 = vmatmul.mubr.bf16.gmra.mrb[4].mxu0 %v1497_v22  ;;  %873 = vmatprep.mubr.bf16.mxu1 %v1498_v23  ;;  %v346_v23 = vld [vmem:[#allocation2 + $0x58] sm:$0xff] }
  0x79   : > { %944 = vmatprep.mubr.bf16.mxu0 %v1500_v24 }
  0x7f   : > { %874 = vmatmul.mubr.bf16.gmra.mrb[8].mxu1 %v1502_v27 }
  0x80   : > { %945 = vmatmul.mubr.bf16.gmra.mrb[8].mxu0 %v1503_v28  ;;  %883 = vmatprep.mubr.bf16.mxu1 %v1247_v29 }
  0x81   : > { %954 = vmatprep.mubr.bf16.mxu0 %v1249_v30  ;;  %v347_v30 = vld [vmem:[#allocation2 + $0x60] sm:$0xff] }
  0x87   : > { %884 = vmatmul.mubr.bf16.gmra.mrb[12].mxu1 %v1246_v31 }
  0x88   : > { %955 = vmatmul.mubr.bf16.gmra.mrb[12].mxu0 %v1248_v32 }
 0x142   : > { %v855_v33 = vpop.f32.mrb[0].mxu1 }
 0x143   : > { %v926_v35 = vpop.f32.mrb[0].mxu0  ;;  %v857_v37 = vpop.f32.mrb[1].mxu1 }
 0x144   : > { %v927_v36 = vadd.f32 %v926_v35, %v855_v33  ;;  %v928_v39 = vpop.f32.mrb[1].mxu0  ;;  %v859_v41 = vpop.f32.mrb[2].mxu1 }
 0x145   : > { %v929_v40 = vadd.f32 %v928_v39, %v857_v37  ;;  %v930_v43 = vpop.f32.mrb[2].mxu0  ;;  %v861_v46 = vpop.f32.mrb[3].mxu1 }
 0x146   : > { %v963_v44 = vadd.f32 %v927_v36, %v335_v34  ;;  %v931_v45 = vadd.f32 %v930_v43, %v859_v41  ;;  %v932_v48 = vpop.f32.mrb[3].mxu0  ;;  %v348_v34 = vld [vmem:[#allocation2 + $0x68] sm:$0xff]  ;;  %v1011_v43 = vlaneseq (!%p1314_p11) }
 0x147   : > { %v964_v49 = vadd.f32 %v929_v40, %v336_v38  ;;  %v933_v50 = vadd.f32 %v932_v48, %v861_v46 }
 0x148   : > { %977 = vst [vmem:[#allocation2] sm:$0xff] %v963_v44  ;;  %v965_v51 = vadd.f32 %v931_v45, %v337_v42  ;;  %v1012_v44 = vshrl.u32 (!%p1314_p11), %v1011_v43, 7  ;;  %v1009_v45 = vld [vmem:[%s1744_s2] sm:$0x3] (!%p1314_p11) }
 0x149   : > { %978 = vst [vmem:[#allocation2 + $0x8] sm:$0xff] %v964_v49  ;;  %v966_v52 = vadd.f32 %v933_v50, %v338_v47 }
 0x14a   : > { %979 = vst [vmem:[#allocation2 + $0x10] sm:$0xff] %v965_v51  ;;  %v865_v53 = vpop.f32.mrb[4].mxu1  ;;  %v1013_v48 = vsub.s32 (!%p1314_p11), 0, %v1012_v44  ;;  %v1017_v49 = vsub.s32 (!%p1314_p11), 1, %v1012_v44 }
 0x14b   : > { %980 = vst [vmem:[#allocation2 + $0x18] sm:$0xff] %v966_v52  ;;  %v936_v55 = vpop.f32.mrb[4].mxu0  ;;  %v867_v57 = vpop.f32.mrb[5].mxu1 }
 0x14c   : > { %v937_v56 = vadd.f32 %v936_v55, %v865_v53  ;;  %v938_v59 = vpop.f32.mrb[5].mxu0  ;;  %v869_v61 = vpop.f32.mrb[6].mxu1  ;;  %v1014_v53 = vrot.slane (!%p1314_p11), %v1009_v45, %v1013_v48 }
 0x14d   : > { %v939_v60 = vadd.f32 %v938_v59, %v867_v57  ;;  %v940_v63 = vpop.f32.mrb[6].mxu0  ;;  %v871_v2 = vpop.f32.mrb[7].mxu1 }
 0x14e   : > { %v967_v0 = vadd.f32 %v937_v56, %v339_v54  ;;  %v941_v1 = vadd.f32 %v940_v63, %v869_v61  ;;  %v942_v4 = vpop.f32.mrb[7].mxu0  ;;  %v1018_v54 = vrot.slane (!%p1314_p11), %v1009_v45, %v1017_v49 }
 0x14f   : > { %v968_v5 = vadd.f32 %v939_v60, %v340_v58  ;;  %v943_v6 = vadd.f32 %v942_v4, %v871_v2  ;;  %v995_v46 = vld [vmem:[#allocation2] sm:$0xff] (!%p1314_p11) }
 0x150   : > { %981 = vst [vmem:[#allocation2 + $0x20] sm:$0xff] %v967_v0  ;;  %v969_v7 = vadd.f32 %v941_v1, %v341_v62  ;;  %v996_v47 = vld [vmem:[#allocation2 + $0x8] sm:$0xff] (!%p1314_p11)  ;;  %v1021_v58 = vadd.f32 (!%p1314_p11), %v1014_v53, %v995_v46 }
 0x151   : > { %982 = vst [vmem:[#allocation2 + $0x28] sm:$0xff] %v968_v5  ;;  %v970_v8 = vadd.f32 %v943_v6, %v342_v3  ;;  %v997_v50 = vld [vmem:[#allocation2 + $0x10] sm:$0xff] (!%p1314_p11)  ;;  %v1022_v59 = vadd.f32 (!%p1314_p11), %v1018_v54, %v996_v47 }
 0x152   : > { %983 = vst [vmem:[#allocation2 + $0x30] sm:$0xff] %v969_v7  ;;  %v875_v9 = vpop.f32.mrb[8].mxu1  ;;  %v998_v51 = vld [vmem:[#allocation2 + $0x18] sm:$0xff] (!%p1314_p11)  ;;  %v1023_v60 = vadd.f32 (!%p1314_p11), %v1014_v53, %v997_v50  ;;  %v1035_v4 = vmax.f32 (!%p1314_p11), %v1021_v58, 0.0 }
 0x153   : > { %984 = vst [vmem:[#allocation2 + $0x38] sm:$0xff] %v970_v8  ;;  %v946_v11 = vpop.f32.mrb[8].mxu0  ;;  %v877_v13 = vpop.f32.mrb[9].mxu1  ;;  %v1024_v61 = vadd.f32 (!%p1314_p11), %v1018_v54, %v998_v51  ;;  %v1036_v5 = vmax.f32 (!%p1314_p11), %v1022_v59, 0.0 }
 0x154   : > { %v947_v12 = vadd.f32 %v946_v11, %v875_v9  ;;  %v948_v15 = vpop.f32.mrb[9].mxu0  ;;  %v879_v17 = vpop.f32.mrb[10].mxu1  ;;  %v1037_v6 = vmax.f32 (!%p1314_p11), %v1023_v60, 0.0 }
 0x155   : > { %v949_v16 = vadd.f32 %v948_v15, %v877_v13  ;;  %v950_v19 = vpop.f32.mrb[10].mxu0  ;;  %v881_v22 = vpop.f32.mrb[11].mxu1  ;;  %v1038_v7 = vmax.f32 (!%p1314_p11), %v1024_v61, 0.0 }
 0x156   : > { %v971_v20 = vadd.f32 %v947_v12, %v343_v10  ;;  %v951_v21 = vadd.f32 %v950_v19, %v879_v17  ;;  %v952_v24 = vpop.f32.mrb[11].mxu0 }
 0x157   : > { %v972_v25 = vadd.f32 %v949_v16, %v344_v14  ;;  %v953_v26 = vadd.f32 %v952_v24, %v881_v22  ;;  %v999_v52 = vld [vmem:[#allocation2 + $0x20] sm:$0xff] (!%p1314_p11)  ;;  %v1328_v16 = vpack.c.bf16 (!%p1314_p11), %v1036_v5, %v1035_v4  ;;  %v1329_v17 = vpack.c.bf16 (!%p1314_p11), %v1038_v7, %v1037_v6 }
 0x158   : > { %985 = vst [vmem:[#allocation2 + $0x40] sm:$0xff] %v971_v20  ;;  %v973_v27 = vadd.f32 %v951_v21, %v345_v18  ;;  %v1000_v55 = vld [vmem:[#allocation2 + $0x28] sm:$0xff] (!%p1314_p11)  ;;  %v1025_v62 = vadd.f32 (!%p1314_p11), %v1014_v53, %v999_v52 }
 0x159   : > { %986 = vst [vmem:[#allocation2 + $0x48] sm:$0xff] %v972_v25  ;;  %v974_v28 = vadd.f32 %v953_v26, %v346_v23  ;;  %v1001_v56 = vld [vmem:[#allocation2 + $0x30] sm:$0xff] (!%p1314_p11)  ;;  %v1026_v63 = vadd.f32 (!%p1314_p11), %v1018_v54, %v1000_v55  ;;  %1093 = vst [vmem:[%s1745_s3] sm:$0xff] (!%p1314_p11), %v1328_v16 }
 0x15a   : > { %987 = vst [vmem:[#allocation2 + $0x50] sm:$0xff] %v973_v27  ;;  %v885_v29 = vpop.f32.mrb[12].mxu1  ;;  %v1002_v57 = vld [vmem:[#allocation2 + $0x38] sm:$0xff] (!%p1314_p11)  ;;  %v1027_v0 = vadd.f32 (!%p1314_p11), %v1014_v53, %v1001_v56  ;;  %v1039_v10 = vmax.f32 (!%p1314_p11), %v1025_v62, 0.0  ;;  %1094 = vst [vmem:[%s1745_s3 + $0x8] sm:$0xff] (!%p1314_p11), %v1329_v17 }
 0x15b   : > { %988 = vst [vmem:[#allocation2 + $0x58] sm:$0xff] %v974_v28  ;;  %v956_v31 = vpop.f32.mrb[12].mxu0  ;;  %v887_v33 = vpop.f32.mrb[13].mxu1  ;;  %994 = sbr.rel (%p1314_p11) target bundleno = 368 (0x170), region = 63  ;;  %v1028_v1 = vadd.f32 (!%p1314_p11), %v1018_v54, %v1002_v57  ;;  %v1040_v11 = vmax.f32 (!%p1314_p11), %v1026_v63, 0.0 }
 0x15c   : > { %v957_v32 = vadd.f32 %v956_v31, %v885_v29  ;;  %v958_v35 = vpop.f32.mrb[13].mxu0  ;;  %v889_v37 = vpop.f32.mrb[14].mxu1  ;;  %v1041_v12 = vmax.f32 (!%p1314_p11), %v1027_v0, 0.0 }
 0x15d   : > { %v959_v36 = vadd.f32 %v958_v35, %v887_v33  ;;  %v960_v38 = vpop.f32.mrb[14].mxu0  ;;  %v890_v40 = vpop.f32.mrb[15].mxu1  ;;  %v1042_v13 = vmax.f32 (!%p1314_p11), %v1028_v1, 0.0  ;;  %v1330_v20 = vpack.c.bf16 (!%p1314_p11), %v1040_v11, %v1039_v10 }
 0x15e   : > { %v975_v39 = vadd.f32 %v957_v32, %v347_v30  ;;  %v961_v41 = vpop.f32.mrb[15].mxu0 }
 0x15f   : > { %v976_v42 = vadd.f32 %v959_v36, %v348_v34  ;;  %v1003_v2 = vld [vmem:[#allocation2 + $0x40] sm:$0xff] (!%p1314_p11)  ;;  %v1331_v21 = vpack.c.bf16 (!%p1314_p11), %v1042_v13, %v1041_v12  ;;  %1095 = vst [vmem:[%s1745_s3 + $0x10] sm:$0xff] (!%p1314_p11), %v1330_v20 }
 0x160   : > { %989 = vst [vmem:[#allocation2 + $0x60] sm:$0xff] %v975_v39  ;;  %v1004_v3 = vld [vmem:[#allocation2 + $0x48] sm:$0xff] (!%p1314_p11)  ;;  %v1029_v18 = vadd.f32 (!%p1314_p11), %v1014_v53, %v1003_v2 }
 0x161   : > { %990 = vst [vmem:[#allocation2 + $0x68] sm:$0xff] %v976_v42  ;;  %v1005_v8 = vld [vmem:[#allocation2 + $0x50] sm:$0xff] (!%p1314_p11)  ;;  %v1030_v19 = vadd.f32 (!%p1314_p11), %v1018_v54, %v1004_v3  ;;  %1096 = vst [vmem:[%s1745_s3 + $0x18] sm:$0xff] (!%p1314_p11), %v1331_v21 }
 0x162   : > { %v1006_v9 = vld [vmem:[#allocation2 + $0x58] sm:$0xff]  ;;  %v1031_v22 = vadd.f32 %v1014_v53, %v1005_v8  ;;  %v1043_v24 = vmax.f32 %v1029_v18, 0.0 }
 0x163   : > { %v1032_v23 = vadd.f32 %v1018_v54, %v1006_v9  ;;  %v1044_v25 = vmax.f32 %v1030_v19, 0.0 }
 0x164   : > { %v1045_v28 = vmax.f32 %v1031_v22, 0.0 }
 0x165   : > { %v1046_v29 = vmax.f32 %v1032_v23, 0.0  ;;  %v1332_v30 = vpack.c.bf16 %v1044_v25, %v1043_v24 }
 0x167   : > { %v1007_v14 = vld [vmem:[#allocation2 + $0x60] sm:$0xff]  ;;  %v1333_v33 = vpack.c.bf16 %v1046_v29, %v1045_v28  ;;  %1097 = vst [vmem:[%s1745_s3 + $0x20] sm:$0xff] %v1332_v30 }
 0x168   : > { %v1008_v15 = vld [vmem:[#allocation2 + $0x68] sm:$0xff]  ;;  %v1033_v26 = vadd.f32 %v1014_v53, %v1007_v14 }
 0x169   : > { %v1034_v27 = vadd.f32 %v1018_v54, %v1008_v15  ;;  %1098 = vst [vmem:[%s1745_s3 + $0x28] sm:$0xff] %v1333_v33 }
 0x16a   : > { %v1047_v31 = vmax.f32 %v1033_v26, 0.0 }
 0x16b   : > { %v1048_v32 = vmax.f32 %v1034_v27, 0.0 }
 0x16d   : > { %v1334_v34 = vpack.c.bf16 %v1048_v32, %v1047_v31 }
 0x16f   : > { %1099 = vst [vmem:[%s1745_s3 + $0x30] sm:$0xff] %v1334_v34 }
 0x170 PF: > { %s13_s16 = sadd.s32 1, %s1546_s16   ;;  %s1746_s12 = smov %s1534_s13 }
 0x171   : > { %p10_p12 = scmp.ge.s32.totalorder %s13_s16, 7   ;;  %s1747_s13 = smov %s1604_s20 }
 0x172   : > { %s1748_s14 = smov %s1542_s15  ;;  %s1749_s15 = smov %s1751_s17 }
 0x173   :  { %12 = sbr.rel (!%p10_p12) target bundleno = 3 (0x3), region = 104 }

// kernel: _lambda_.37
= control target key start
LH: loop header
LB: loop body
LE: loop exit
PB: predicated region body
PF: predicated region fallthrough
CT: control target
= control target key end

     0   :  { %s1860_s1 = inlined_call_operand.vmem [shape: bf16[1024,256], index: 1, kind: input, shape index: {}]   ;;  %s1861_s0 = inlined_call_operand.vmem [shape: bf16[16,1024], index: 0, kind: input, shape index: {}]   ;;  %s1862_s2 = inlined_call_operand.vmem [shape: f32[1,256], index: 2, kind: input, shape index: {}]   ;;  %s1863_s3 = inlined_call_operand.vmem [shape: bf16[16,256], index: 3, kind: output, shape index: {}]  }
   0x1   :  { %v1215_v0 = vld [vmem:[%s1860_s1 + $0x4] ss:$8 sps:$4 sm:$0xff]   ;;  %v1219_v2 = vld [vmem:[%s1860_s1] ss:$8 sps:$4 sm:$0xff]   ;;  %v1221_v4 = vld [vmem:[%s1860_s1 + $0x14] ss:$8 sps:$4 sm:$0xff]  }
   0x2   :  { %v1217_v1 = vld [vmem:[%s1860_s1 + $0x204] ss:$8 sps:$4 sm:$0xff]   ;;  %842 = vmatprep.subr.bf16.mxu1 %v1215_v0  ;;  %v1220_v3 = vld [vmem:[%s1860_s1 + $0x200] ss:$8 sps:$4 sm:$0xff]   ;;  %v1223_v5 = vld [vmem:[%s1860_s1 + $0x214] ss:$8 sps:$4 sm:$0xff]  }
   0x3   :  { %928 = vmatprep.subr.bf16.mxu0 %v1217_v1  ;;  %843 = vmatpush1.bf16.msra.mxu1 %v1219_v2  ;;  %v1225_v6 = vld [vmem:[%s1860_s1 + $0x10] ss:$8 sps:$4 sm:$0xff]   ;;  %v1227_v8 = vld [vmem:[%s1860_s1 + $0x24] ss:$8 sps:$4 sm:$0xff]   ;;  %v1231_v10 = vld [vmem:[%s1860_s1 + $0x20] ss:$8 sps:$4 sm:$0xff]  }
   0x4   :  { %929 = vmatpush1.bf16.msra.mxu0 %v1220_v3  ;;  %844 = vmatprep.subr.bf16.mxu1 %v1221_v4  ;;  %v1226_v7 = vld [vmem:[%s1860_s1 + $0x210] ss:$8 sps:$4 sm:$0xff]   ;;  %v1229_v9 = vld [vmem:[%s1860_s1 + $0x224] ss:$8 sps:$4 sm:$0xff]   ;;  %v1232_v11 = vld [vmem:[%s1860_s1 + $0x220] ss:$8 sps:$4 sm:$0xff]  }
   0x5   :  { %930 = vmatprep.subr.bf16.mxu0 %v1223_v5  ;;  %v1233_v12 = vld [vmem:[%s1860_s1 + $0x34] ss:$8 sps:$4 sm:$0xff]   ;;  %v1237_v14 = vld [vmem:[%s1860_s1 + $0x30] ss:$8 sps:$4 sm:$0xff]   ;;  %v1239_v16 = vld [vmem:[%s1860_s1 + $0x44] ss:$8 sps:$4 sm:$0xff]  }
   0x6   :  { %v1235_v13 = vld [vmem:[%s1860_s1 + $0x234] ss:$8 sps:$4 sm:$0xff]   ;;  %v1238_v15 = vld [vmem:[%s1860_s1 + $0x230] ss:$8 sps:$4 sm:$0xff]   ;;  %v1241_v17 = vld [vmem:[%s1860_s1 + $0x244] ss:$8 sps:$4 sm:$0xff]  }
   0x7   :  { %845 = vmatpush1.bf16.msra.mxu1 %v1225_v6  ;;  %v1243_v18 = vld [vmem:[%s1860_s1 + $0x40] ss:$8 sps:$4 sm:$0xff]   ;;  %v1245_v20 = vld [vmem:[%s1860_s1 + $0x54] ss:$8 sps:$4 sm:$0xff]   ;;  %v1249_v22 = vld [vmem:[%s1860_s1 + $0x50] ss:$8 sps:$4 sm:$0xff]  }
   0x8   :  { %931 = vmatpush1.bf16.msra.mxu0 %v1226_v7  ;;  %846 = vmatprep.subr.bf16.mxu1 %v1227_v8  ;;  %v1244_v19 = vld [vmem:[%s1860_s1 + $0x240] ss:$8 sps:$4 sm:$0xff]   ;;  %v1247_v21 = vld [vmem:[%s1860_s1 + $0x254] ss:$8 sps:$4 sm:$0xff]   ;;  %v1250_v23 = vld [vmem:[%s1860_s1 + $0x250] ss:$8 sps:$4 sm:$0xff]  }
   0x9   :  { %932 = vmatprep.subr.bf16.mxu0 %v1229_v9  ;;  %v1251_v24 = vld [vmem:[%s1860_s1 + $0x64] ss:$8 sps:$4 sm:$0xff]   ;;  %v1255_v26 = vld [vmem:[%s1860_s1 + $0x60] ss:$8 sps:$4 sm:$0xff]   ;;  %v1257_v28 = vld [vmem:[%s1860_s1 + $0x74] ss:$8 sps:$4 sm:$0xff]  }
   0xa   :  { %v1253_v25 = vld [vmem:[%s1860_s1 + $0x264] ss:$8 sps:$4 sm:$0xff]   ;;  %v1256_v27 = vld [vmem:[%s1860_s1 + $0x260] ss:$8 sps:$4 sm:$0xff]   ;;  %v1259_v29 = vld [vmem:[%s1860_s1 + $0x274] ss:$8 sps:$4 sm:$0xff]  }
   0xb   :  { %847 = vmatpush1.bf16.msra.mxu1 %v1231_v10  ;;  %v1261_v30 = vld [vmem:[%s1860_s1 + $0x70] ss:$8 sps:$4 sm:$0xff]   ;;  %v1263_v32 = vld [vmem:[%s1860_s1 + $0x84] ss:$8 sps:$4 sm:$0xff]   ;;  %v1267_v34 = vld [vmem:[%s1860_s1 + $0x80] ss:$8 sps:$4 sm:$0xff]  }
   0xc   :  { %933 = vmatpush1.bf16.msra.mxu0 %v1232_v11  ;;  %848 = vmatprep.subr.bf16.mxu1 %v1233_v12  ;;  %v1262_v31 = vld [vmem:[%s1860_s1 + $0x270] ss:$8 sps:$4 sm:$0xff]   ;;  %v1265_v33 = vld [vmem:[%s1860_s1 + $0x284] ss:$8 sps:$4 sm:$0xff]   ;;  %v1268_v35 = vld [vmem:[%s1860_s1 + $0x280] ss:$8 sps:$4 sm:$0xff]  }
   0xd   :  { %934 = vmatprep.subr.bf16.mxu0 %v1235_v13  ;;  %v1269_v36 = vld [vmem:[%s1860_s1 + $0x94] ss:$8 sps:$4 sm:$0xff]   ;;  %v1273_v38 = vld [vmem:[%s1860_s1 + $0x90] ss:$8 sps:$4 sm:$0xff]   ;;  %v1275_v40 = vld [vmem:[%s1860_s1 + $0xa4] ss:$8 sps:$4 sm:$0xff]  }
   0xe   :  { %v1271_v37 = vld [vmem:[%s1860_s1 + $0x294] ss:$8 sps:$4 sm:$0xff]   ;;  %v1274_v39 = vld [vmem:[%s1860_s1 + $0x290] ss:$8 sps:$4 sm:$0xff]   ;;  %v1277_v41 = vld [vmem:[%s1860_s1 + $0x2a4] ss:$8 sps:$4 sm:$0xff]  }
   0xf   :  { %849 = vmatpush1.bf16.msra.mxu1 %v1237_v14  ;;  %v1279_v42 = vld [vmem:[%s1860_s1 + $0xa0] ss:$8 sps:$4 sm:$0xff]   ;;  %v1281_v44 = vld [vmem:[%s1860_s1 + $0xb4] ss:$8 sps:$4 sm:$0xff]   ;;  %v1285_v46 = vld [vmem:[%s1860_s1 + $0xb0] ss:$8 sps:$4 sm:$0xff]  }
  0x10   :  { %935 = vmatpush1.bf16.msra.mxu0 %v1238_v15  ;;  %850 = vmatprep.subr.bf16.mxu1 %v1239_v16  ;;  %v1280_v43 = vld [vmem:[%s1860_s1 + $0x2a0] ss:$8 sps:$4 sm:$0xff]   ;;  %v1283_v45 = vld [vmem:[%s1860_s1 + $0x2b4] ss:$8 sps:$4 sm:$0xff]   ;;  %v1286_v47 = vld [vmem:[%s1860_s1 + $0x2b0] ss:$8 sps:$4 sm:$0xff]  }
  0x11   :  { %936 = vmatprep.subr.bf16.mxu0 %v1241_v17  ;;  %v26_v48 = vld [vmem:[%s1861_s0] sm:$0xff]  ;;  %v28_v53 = vld [vmem:[%s1861_s0 + $0x10] sm:$0xff] }
  0x12   :  { %v30_v49 = vld [vmem:[%s1861_s0 + $0x20] sm:$0xff]  ;;  %v32_v54 = vld [vmem:[%s1861_s0 + $0x30] sm:$0xff] }
  0x13   :  { %851 = vmatpush1.bf16.msra.mxu1 %v1243_v18  ;;  %v1287_v50 = vld [vmem:[%s1860_s1 + $0xc4] ss:$8 sps:$4 sm:$0xff]   ;;  %v1064_v52 = vcombine.high %v26_v48, %v30_v49  ;;  %v1068_v55 = vcombine.high %v28_v53, %v32_v54  ;;  %v1291_v56 = vld [vmem:[%s1860_s1 + $0xc0] ss:$8 sps:$4 sm:$0xff]   ;;  %v1293_v58 = vld [vmem:[%s1860_s1 + $0xd4] ss:$8 sps:$4 sm:$0xff]   ;;  %v1063_v8 = vcombine.low %v26_v48, %v30_v49  ;;  %v1067_v10 = vcombine.low %v28_v53, %v32_v54 }
  0x14   :  { %937 = vmatpush1.bf16.msra.mxu0 %v1244_v19  ;;  %852 = vmatprep.subr.bf16.mxu1 %v1245_v20  ;;  %v1289_v51 = vld [vmem:[%s1860_s1 + $0x2c4] ss:$8 sps:$4 sm:$0xff]   ;;  %v1292_v57 = vld [vmem:[%s1860_s1 + $0x2c0] ss:$8 sps:$4 sm:$0xff]   ;;  %v1295_v59 = vld [vmem:[%s1860_s1 + $0x2d4] ss:$8 sps:$4 sm:$0xff]  }
  0x15   :  { %938 = vmatprep.subr.bf16.mxu0 %v1247_v21  ;;  %874 = vmatprep.mubr.bf16.mxu1 %v1064_v52  ;;  %v1297_v60 = vld [vmem:[%s1860_s1 + $0xd0] ss:$8 sps:$4 sm:$0xff]   ;;  %v1299_v62 = vld [vmem:[%s1860_s1 + $0xe4] ss:$8 sps:$4 sm:$0xff]   ;;  %v1303_v0 = vld [vmem:[%s1860_s1 + $0xe0] ss:$8 sps:$4 sm:$0xff]  }
  0x16   :  { %960 = vmatprep.mubr.bf16.mxu0 %v1068_v55  ;;  %v1298_v61 = vld [vmem:[%s1860_s1 + $0x2d0] ss:$8 sps:$4 sm:$0xff]   ;;  %v1301_v63 = vld [vmem:[%s1860_s1 + $0x2e4] ss:$8 sps:$4 sm:$0xff]   ;;  %v1304_v1 = vld [vmem:[%s1860_s1 + $0x2e0] ss:$8 sps:$4 sm:$0xff]  }
  0x17   :  { %853 = vmatpush1.bf16.msra.mxu1 %v1249_v22  ;;  %v1305_v2 = vld [vmem:[%s1860_s1 + $0xf4] ss:$8 sps:$4 sm:$0xff]   ;;  %v1309_v4 = vld [vmem:[%s1860_s1 + $0xf0] ss:$8 sps:$4 sm:$0xff]   ;;  %v1313_v6 = vld [vmem:[%s1860_s1 + $0x104] ss:$8 sps:$4 sm:$0xff]  }
  0x18   :  { %939 = vmatpush1.bf16.msra.mxu0 %v1250_v23  ;;  %854 = vmatprep.subr.bf16.mxu1 %v1251_v24  ;;  %v1307_v3 = vld [vmem:[%s1860_s1 + $0x2f4] ss:$8 sps:$4 sm:$0xff]   ;;  %v1310_v5 = vld [vmem:[%s1860_s1 + $0x2f0] ss:$8 sps:$4 sm:$0xff]   ;;  %v1316_v7 = vld [vmem:[%s1860_s1 + $0x304] ss:$8 sps:$4 sm:$0xff]  }
  0x19   :  { %940 = vmatprep.subr.bf16.mxu0 %v1253_v25  ;;  %v1311_v9 = vld [vmem:[%s1860_s1 + $0x100] ss:$8 sps:$4 sm:$0xff]   ;;  %v1319_v12 = vld [vmem:[%s1860_s1 + $0x114] ss:$8 sps:$4 sm:$0xff]   ;;  %v1317_v14 = vld [vmem:[%s1860_s1 + $0x110] ss:$8 sps:$4 sm:$0xff]  }
  0x1a   :  { %v1314_v11 = vld [vmem:[%s1860_s1 + $0x300] ss:$8 sps:$4 sm:$0xff]   ;;  %v1322_v13 = vld [vmem:[%s1860_s1 + $0x314] ss:$8 sps:$4 sm:$0xff]   ;;  %v1320_v15 = vld [vmem:[%s1860_s1 + $0x310] ss:$8 sps:$4 sm:$0xff]  }
  0x1b   :  { %855 = vmatpush1.bf16.msra.mxu1 %v1255_v26  ;;  %v1325_v16 = vld [vmem:[%s1860_s1 + $0x124] ss:$8 sps:$4 sm:$0xff]   ;;  %v1323_v18 = vld [vmem:[%s1860_s1 + $0x120] ss:$8 sps:$4 sm:$0xff]   ;;  %v1331_v20 = vld [vmem:[%s1860_s1 + $0x134] ss:$8 sps:$4 sm:$0xff]  }
  0x1c   :  { %941 = vmatpush1.bf16.msra.mxu0 %v1256_v27  ;;  %856 = vmatprep.subr.bf16.mxu1 %v1257_v28  ;;  %v1328_v17 = vld [vmem:[%s1860_s1 + $0x324] ss:$8 sps:$4 sm:$0xff]   ;;  %v1326_v19 = vld [vmem:[%s1860_s1 + $0x320] ss:$8 sps:$4 sm:$0xff]   ;;  %v1334_v21 = vld [vmem:[%s1860_s1 + $0x334] ss:$8 sps:$4 sm:$0xff]  }
  0x1d   :  { %942 = vmatprep.subr.bf16.mxu0 %v1259_v29  ;;  %v1329_v22 = vld [vmem:[%s1860_s1 + $0x130] ss:$8 sps:$4 sm:$0xff]   ;;  %v1337_v24 = vld [vmem:[%s1860_s1 + $0x144] ss:$8 sps:$4 sm:$0xff]   ;;  %v1335_v26 = vld [vmem:[%s1860_s1 + $0x140] ss:$8 sps:$4 sm:$0xff]  }
  0x1e   :  { %v1332_v23 = vld [vmem:[%s1860_s1 + $0x330] ss:$8 sps:$4 sm:$0xff]   ;;  %v1340_v25 = vld [vmem:[%s1860_s1 + $0x344] ss:$8 sps:$4 sm:$0xff]   ;;  %v1338_v27 = vld [vmem:[%s1860_s1 + $0x340] ss:$8 sps:$4 sm:$0xff]  }
  0x1f   :  { %857 = vmatpush1.bf16.msra.mxu1 %v1261_v30  ;;  %v1343_v28 = vld [vmem:[%s1860_s1 + $0x154] ss:$8 sps:$4 sm:$0xff]   ;;  %v1341_v30 = vld [vmem:[%s1860_s1 + $0x150] ss:$8 sps:$4 sm:$0xff]   ;;  %v1359_v48 = vld [vmem:[%s1860_s1 + $0x180] ss:$8 sps:$4 sm:$0xff]  }
  0x20   :  { %943 = vmatpush1.bf16.msra.mxu0 %v1262_v31  ;;  %858 = vmatprep.subr.bf16.mxu1 %v1263_v32  ;;  %v1346_v29 = vld [vmem:[%s1860_s1 + $0x354] ss:$8 sps:$4 sm:$0xff]   ;;  %v1344_v31 = vld [vmem:[%s1860_s1 + $0x350] ss:$8 sps:$4 sm:$0xff]   ;;  %v1349_v32 = vld [vmem:[%s1860_s1 + $0x164] ss:$8 sps:$4 sm:$0xff]  }
  0x21   :  { %944 = vmatprep.subr.bf16.mxu0 %v1265_v33  ;;  %v1352_v33 = vld [vmem:[%s1860_s1 + $0x364] ss:$8 sps:$4 sm:$0xff]   ;;  %v1362_v49 = vld [vmem:[%s1860_s1 + $0x380] ss:$8 sps:$4 sm:$0xff]   ;;  %v1365_v52 = vld [vmem:[%s1860_s1 + $0x190] ss:$8 sps:$4 sm:$0xff]  }
  0x22   :  { %v1368_v53 = vld [vmem:[%s1860_s1 + $0x390] ss:$8 sps:$4 sm:$0xff]   ;;  %v1373_v54 = vld [vmem:[%s1860_s1 + $0x1a4] ss:$8 sps:$4 sm:$0xff]  }
  0x23   :  { %859 = vmatpush1.bf16.msra.mxu1 %v1267_v34  ;;  %v1712_v34 = vld [vmem:[%s1861_s0 + $0x8] sm:$0xff] }
  0x24   :  { %945 = vmatpush1.bf16.msra.mxu0 %v1268_v35  ;;  %860 = vmatprep.subr.bf16.mxu1 %v1269_v36  ;;  %v1717_v35 = vld [vmem:[%s1861_s0 + $0x28] sm:$0xff]  ;;  %v1722_v36 = vld [vmem:[%s1861_s0 + $0x18] sm:$0xff] }
  0x25   :  { %946 = vmatprep.subr.bf16.mxu0 %v1271_v37  ;;  %v1727_v37 = vld [vmem:[%s1861_s0 + $0x38] sm:$0xff]  ;;  %v1376_v55 = vld [vmem:[%s1860_s1 + $0x3a4] ss:$8 sps:$4 sm:$0xff]  }
  0x27   :  { %861 = vmatpush1.bf16.msra.mxu1 %v1273_v38  ;;  %v1347_v38 = vld [vmem:[%s1860_s1 + $0x160] ss:$8 sps:$4 sm:$0xff]  }
  0x28   :  { %947 = vmatpush1.bf16.msra.mxu0 %v1274_v39  ;;  %862 = vmatprep.subr.bf16.mxu1 %v1275_v40  ;;  %v1350_v39 = vld [vmem:[%s1860_s1 + $0x360] ss:$8 sps:$4 sm:$0xff]   ;;  %v1066_v40 = vcombine.high %v1712_v34, %v1717_v35 }
  0x29   :  { %948 = vmatprep.subr.bf16.mxu0 %v1277_v41  ;;  %v1355_v41 = vld [vmem:[%s1860_s1 + $0x174] ss:$8 sps:$4 sm:$0xff]  }
  0x2b   :  { %863 = vmatpush1.bf16.msra.mxu1 %v1279_v42  ;;  %v1358_v42 = vld [vmem:[%s1860_s1 + $0x374] ss:$8 sps:$4 sm:$0xff]  }
  0x2c   :  { %949 = vmatpush1.bf16.msra.mxu0 %v1280_v43  ;;  %864 = vmatprep.subr.bf16.mxu1 %v1281_v44  ;;  %v1070_v43 = vcombine.high %v1722_v36, %v1727_v37  ;;  %v1353_v44 = vld [vmem:[%s1860_s1 + $0x170] ss:$8 sps:$4 sm:$0xff]  }
  0x2d   :  { %950 = vmatprep.subr.bf16.mxu0 %v1283_v45  ;;  %v1356_v45 = vld [vmem:[%s1860_s1 + $0x370] ss:$8 sps:$4 sm:$0xff]  }
  0x2f   :  { %865 = vmatpush1.bf16.msra.mxu1 %v1285_v46  ;;  %v1361_v46 = vld [vmem:[%s1860_s1 + $0x184] ss:$8 sps:$4 sm:$0xff]  }
  0x30   :  { %951 = vmatpush1.bf16.msra.mxu0 %v1286_v47  ;;  %866 = vmatprep.subr.bf16.mxu1 %v1287_v50  ;;  %v1364_v47 = vld [vmem:[%s1860_s1 + $0x384] ss:$8 sps:$4 sm:$0xff]   ;;  %v1367_v50 = vld [vmem:[%s1860_s1 + $0x194] ss:$8 sps:$4 sm:$0xff]  }
  0x31   :  { %952 = vmatprep.subr.bf16.mxu0 %v1289_v51  ;;  %v1370_v51 = vld [vmem:[%s1860_s1 + $0x394] ss:$8 sps:$4 sm:$0xff]  }
  0x33   :  { %867 = vmatpush1.bf16.msra.mxu1 %v1291_v56  ;;  %v1371_v56 = vld [vmem:[%s1860_s1 + $0x1a0] ss:$8 sps:$4 sm:$0xff]  }
  0x34   :  { %953 = vmatpush1.bf16.msra.mxu0 %v1292_v57  ;;  %868 = vmatprep.subr.bf16.mxu1 %v1293_v58  ;;  %v1374_v57 = vld [vmem:[%s1860_s1 + $0x3a0] ss:$8 sps:$4 sm:$0xff]   ;;  %v1379_v58 = vld [vmem:[%s1860_s1 + $0x1b4] ss:$8 sps:$4 sm:$0xff]  }
  0x35   :  { %954 = vmatprep.subr.bf16.mxu0 %v1295_v59  ;;  %v1382_v59 = vld [vmem:[%s1860_s1 + $0x3b4] ss:$8 sps:$4 sm:$0xff]  }
  0x37   :  { %869 = vmatpush1.bf16.msra.mxu1 %v1297_v60  ;;  %v1377_v60 = vld [vmem:[%s1860_s1 + $0x1b0] ss:$8 sps:$4 sm:$0xff]  }
  0x38   :  { %955 = vmatpush1.bf16.msra.mxu0 %v1298_v61  ;;  %870 = vmatprep.subr.bf16.mxu1 %v1299_v62  ;;  %v1380_v61 = vld [vmem:[%s1860_s1 + $0x3b0] ss:$8 sps:$4 sm:$0xff]   ;;  %v1385_v62 = vld [vmem:[%s1860_s1 + $0x1c4] ss:$8 sps:$4 sm:$0xff]  }
  0x39   :  { %956 = vmatprep.subr.bf16.mxu0 %v1301_v63  ;;  %v1388_v63 = vld [vmem:[%s1860_s1 + $0x3c4] ss:$8 sps:$4 sm:$0xff]  }
  0x3b   :  { %871 = vmatpush1.bf16.msra.mxu1 %v1303_v0  ;;  %v1383_v0 = vld [vmem:[%s1860_s1 + $0x1c0] ss:$8 sps:$4 sm:$0xff]  }
  0x3c   :  { %957 = vmatpush1.bf16.msra.mxu0 %v1304_v1  ;;  %872 = vmatprep.subr.bf16.mxu1 %v1305_v2  ;;  %v1386_v1 = vld [vmem:[%s1860_s1 + $0x3c0] ss:$8 sps:$4 sm:$0xff]   ;;  %v1391_v2 = vld [vmem:[%s1860_s1 + $0x1d4] ss:$8 sps:$4 sm:$0xff]  }
  0x3d   :  { %958 = vmatprep.subr.bf16.mxu0 %v1307_v3  ;;  %v1394_v3 = vld [vmem:[%s1860_s1 + $0x3d4] ss:$8 sps:$4 sm:$0xff]  }
  0x3f   :  { %873 = vmatpush1.bf16.msra.mxu1 %v1309_v4  ;;  %v1389_v4 = vld [vmem:[%s1860_s1 + $0x1d0] ss:$8 sps:$4 sm:$0xff]  }
  0x40   :  { %959 = vmatpush1.bf16.msra.mxu0 %v1310_v5  ;;  %885 = vmatprep.subr.bf16.mxu1 %v1313_v6  ;;  %v1392_v5 = vld [vmem:[%s1860_s1 + $0x3d0] ss:$8 sps:$4 sm:$0xff]   ;;  %v1397_v6 = vld [vmem:[%s1860_s1 + $0x1e4] ss:$8 sps:$4 sm:$0xff]  }
  0x41   :  { %971 = vmatprep.subr.bf16.mxu0 %v1316_v7  ;;  %v1400_v7 = vld [vmem:[%s1860_s1 + $0x3e4] ss:$8 sps:$4 sm:$0xff]  }
  0x42   :  { %875 = vmatmul.mubr.bf16.vlgmr.msra.gmra.mrb[0].mxu1 %v1063_v8  ;;  %v1395_v8 = vld [vmem:[%s1860_s1 + $0x1e0] ss:$8 sps:$4 sm:$0xff]  }
  0x43   :  { %961 = vmatmul.mubr.bf16.vlgmr.msra.gmra.mrb[0].mxu0 %v1067_v10  ;;  %886 = vmatpush1.bf16.msra.mxu1 %v1311_v9  ;;  %v1398_v9 = vld [vmem:[%s1860_s1 + $0x3e0] ss:$8 sps:$4 sm:$0xff]   ;;  %v1403_v10 = vld [vmem:[%s1860_s1 + $0x1f4] ss:$8 sps:$4 sm:$0xff]  }
  0x44   :  { %972 = vmatpush1.bf16.msra.mxu0 %v1314_v11  ;;  %887 = vmatprep.subr.bf16.mxu1 %v1319_v12  ;;  %v1406_v11 = vld [vmem:[%s1860_s1 + $0x3f4] ss:$8 sps:$4 sm:$0xff]   ;;  %v1401_v12 = vld [vmem:[%s1860_s1 + $0x1f0] ss:$8 sps:$4 sm:$0xff]  }
  0x45   :  { %973 = vmatprep.subr.bf16.mxu0 %v1322_v13  ;;  %917 = vmatprep.mubr.bf16.mxu1 %v1066_v40  ;;  %v1404_v13 = vld [vmem:[%s1860_s1 + $0x3f0] ss:$8 sps:$4 sm:$0xff]  }
  0x46   :  { %1003 = vmatprep.mubr.bf16.mxu0 %v1070_v43 }
  0x47   :  { %888 = vmatpush1.bf16.msra.mxu1 %v1317_v14  ;;  %v1065_v14 = vcombine.low %v1712_v34, %v1717_v35 }
  0x48   :  { %974 = vmatpush1.bf16.msra.mxu0 %v1320_v15  ;;  %889 = vmatprep.subr.bf16.mxu1 %v1325_v16  ;;  %v1069_v15 = vcombine.low %v1722_v36, %v1727_v37  ;;  %v1031_v16 = vlaneseq }
  0x49   :  { %975 = vmatprep.subr.bf16.mxu0 %v1328_v17 }
  0x4a   :  { %v1032_v17 = vshrl.u32 %v1031_v16, 7 }
  0x4b   :  { %890 = vmatpush1.bf16.msra.mxu1 %v1323_v18 }
  0x4c   :  { %976 = vmatpush1.bf16.msra.mxu0 %v1326_v19  ;;  %891 = vmatprep.subr.bf16.mxu1 %v1331_v20  ;;  %v1033_v18 = vsub.s32 0, %v1032_v17  ;;  %v1029_v19 = vld [vmem:[%s1862_s2] sm:$0x3]  ;;  %v1037_v20 = vsub.s32 1, %v1032_v17 }
  0x4d   :  { %977 = vmatprep.subr.bf16.mxu0 %v1334_v21 }
  0x4e   :  { %v1034_v21 = vrot.slane %v1029_v19, %v1033_v18 }
  0x4f   :  { %892 = vmatpush1.bf16.msra.mxu1 %v1329_v22 }
  0x50   :  { %978 = vmatpush1.bf16.msra.mxu0 %v1332_v23  ;;  %893 = vmatprep.subr.bf16.mxu1 %v1337_v24  ;;  %v1038_v24 = vrot.slane %v1029_v19, %v1037_v20 }
  0x51   :  { %979 = vmatprep.subr.bf16.mxu0 %v1340_v25 }
  0x53   :  { %894 = vmatpush1.bf16.msra.mxu1 %v1335_v26 }
  0x54   :  { %980 = vmatpush1.bf16.msra.mxu0 %v1338_v27  ;;  %895 = vmatprep.subr.bf16.mxu1 %v1343_v28 }
  0x55   :  { %981 = vmatprep.subr.bf16.mxu0 %v1346_v29 }
  0x57   :  { %896 = vmatpush1.bf16.msra.mxu1 %v1341_v30 }
  0x58   :  { %982 = vmatpush1.bf16.msra.mxu0 %v1344_v31  ;;  %897 = vmatprep.subr.bf16.mxu1 %v1349_v32 }
  0x59   :  { %983 = vmatprep.subr.bf16.mxu0 %v1352_v33 }
  0x5b   :  { %898 = vmatpush1.bf16.msra.mxu1 %v1347_v38 }
  0x5c   :  { %984 = vmatpush1.bf16.msra.mxu0 %v1350_v39  ;;  %899 = vmatprep.subr.bf16.mxu1 %v1355_v41 }
  0x5d   :  { %985 = vmatprep.subr.bf16.mxu0 %v1358_v42 }
  0x5f   :  { %900 = vmatpush1.bf16.msra.mxu1 %v1353_v44 }
  0x60   :  { %986 = vmatpush1.bf16.msra.mxu0 %v1356_v45  ;;  %901 = vmatprep.subr.bf16.mxu1 %v1361_v46 }
  0x61   :  { %987 = vmatprep.subr.bf16.mxu0 %v1364_v47 }
  0x63   :  { %902 = vmatpush1.bf16.msra.mxu1 %v1359_v48 }
  0x64   :  { %988 = vmatpush1.bf16.msra.mxu0 %v1362_v49  ;;  %903 = vmatprep.subr.bf16.mxu1 %v1367_v50 }
  0x65   :  { %989 = vmatprep.subr.bf16.mxu0 %v1370_v51 }
  0x67   :  { %904 = vmatpush1.bf16.msra.mxu1 %v1365_v52 }
  0x68   :  { %990 = vmatpush1.bf16.msra.mxu0 %v1368_v53  ;;  %905 = vmatprep.subr.bf16.mxu1 %v1373_v54 }
  0x69   :  { %991 = vmatprep.subr.bf16.mxu0 %v1376_v55 }
  0x6b   :  { %906 = vmatpush1.bf16.msra.mxu1 %v1371_v56 }
  0x6c   :  { %992 = vmatpush1.bf16.msra.mxu0 %v1374_v57  ;;  %907 = vmatprep.subr.bf16.mxu1 %v1379_v58 }
  0x6d   :  { %993 = vmatprep.subr.bf16.mxu0 %v1382_v59 }
  0x6f   :  { %908 = vmatpush1.bf16.msra.mxu1 %v1377_v60 }
  0x70   :  { %994 = vmatpush1.bf16.msra.mxu0 %v1380_v61  ;;  %909 = vmatprep.subr.bf16.mxu1 %v1385_v62 }
  0x71   :  { %995 = vmatprep.subr.bf16.mxu0 %v1388_v63 }
  0x73   :  { %910 = vmatpush1.bf16.msra.mxu1 %v1383_v0 }
  0x74   :  { %996 = vmatpush1.bf16.msra.mxu0 %v1386_v1  ;;  %911 = vmatprep.subr.bf16.mxu1 %v1391_v2 }
  0x75   :  { %997 = vmatprep.subr.bf16.mxu0 %v1394_v3 }
  0x77   :  { %912 = vmatpush1.bf16.msra.mxu1 %v1389_v4 }
  0x78   :  { %998 = vmatpush1.bf16.msra.mxu0 %v1392_v5  ;;  %913 = vmatprep.subr.bf16.mxu1 %v1397_v6 }
  0x79   :  { %999 = vmatprep.subr.bf16.mxu0 %v1400_v7 }
  0x7b   :  { %914 = vmatpush1.bf16.msra.mxu1 %v1395_v8 }
  0x7c   :  { %1000 = vmatpush1.bf16.msra.mxu0 %v1398_v9  ;;  %915 = vmatprep.subr.bf16.mxu1 %v1403_v10 }
  0x7d   :  { %1001 = vmatprep.subr.bf16.mxu0 %v1406_v11 }
  0x7f   :  { %916 = vmatpush1.bf16.msra.mxu1 %v1401_v12 }
  0x80   :  { %1002 = vmatpush1.bf16.msra.mxu0 %v1404_v13 }
  0x82   :  { %918 = vmatmul.mubr.bf16.vlgmr.msra.gmra.mrb[0].mxu1 %v1065_v14 }
  0x83   :  { %1004 = vmatmul.mubr.bf16.vlgmr.msra.gmra.mrb[0].mxu0 %v1069_v15 }
 0x155   :  { %v919_v22 = vpop.f32.mrb[0].mxu1 }
 0x156   :  { %v1005_v23 = vpop.f32.mrb[0].mxu0  ;;  %v921_v26 = vpop.f32.mrb[1].mxu1 }
 0x157   :  { %v1203_v25 = vadd.f32 %v1005_v23, %v919_v22  ;;  %v1007_v27 = vpop.f32.mrb[1].mxu0  ;;  %v923_v29 = vpop.f32.mrb[2].mxu1 }
 0x158   :  { %v1204_v28 = vadd.f32 %v1007_v27, %v921_v26  ;;  %v1009_v30 = vpop.f32.mrb[2].mxu0  ;;  %v925_v33 = vpop.f32.mrb[3].mxu1 }
 0x159   :  { %v1041_v31 = vadd.f32 %v1203_v25, %v1034_v21  ;;  %v1205_v32 = vadd.f32 %v1009_v30, %v923_v29  ;;  %v1011_v34 = vpop.f32.mrb[3].mxu0 }
 0x15a   :  { %v1042_v35 = vadd.f32 %v1204_v28, %v1038_v24  ;;  %v1206_v36 = vadd.f32 %v1011_v34, %v925_v33 }
 0x15b   :  { %v1043_v37 = vadd.f32 %v1205_v32, %v1034_v21 }
 0x15c   :  { %v1201_v38 = vpack.c.bf16 %v1042_v35, %v1041_v31  ;;  %v1044_v39 = vadd.f32 %v1206_v36, %v1038_v24 }
 0x15e   :  { %1057 = vst [vmem:[%s1863_s3] sm:$0xff] %v1201_v38  ;;  %v1202_v40 = vpack.c.bf16 %v1044_v39, %v1043_v37 }
 0x160   :  { %1058 = vst [vmem:[%s1863_s3 + $0x8] sm:$0xff] %v1202_v40 }

// kernel: _lambda_.59
= control target key start
LH: loop header
LB: loop body
LE: loop exit
PB: predicated region body
PF: predicated region fallthrough
CT: control target
= control target key end

     0   :  { %s1550_s0 = inlined_call_operand.vmem [shape: bf16[16,256], index: 0, kind: input, shape index: {}]   ;;  %s1551_s3 = inlined_call_operand.vmem [shape: bf16[256,768], index: 3, kind: input, shape index: {}]   ;;  %s1552_s1 = inlined_call_operand.vmem [shape: f32[1,256], index: 1, kind: input, shape index: {}]   ;;  %s1553_s2 = inlined_call_operand.vmem [shape: f32[1,256], index: 2, kind: input, shape index: {}]   ;;  %s1554_s4 = inlined_call_operand.vmem [shape: f32[1,768], index: 4, kind: input, shape index: {}]   ;;  %s1555_s5 = inlined_call_operand.vmem [shape: bf16[16,768], index: 5, kind: output, shape index: {}]  }
   0x1   :  { %v1165_v0 = vld [vmem:[%s1550_s0] sm:$0xff]  ;;  %v1170_v1 = vld [vmem:[%s1550_s0 + $0x8] sm:$0xff]  ;;  %v993_v14 = vld [vmem:[%s1551_s3 + $0x3c] ss:$24 sps:$4 sm:$0xff]  }
   0x2   :  { %v22_v2 = vunpack.c.l.bf16 %v1165_v0  ;;  %v23_v3 = vunpack.c.h.bf16 %v1165_v0  ;;  %v24_v4 = vunpack.c.l.bf16 %v1170_v1  ;;  %v25_v5 = vunpack.c.h.bf16 %v1170_v1  ;;  %v984_v8 = vld [vmem:[%s1551_s3 + $0x4] ss:$24 sps:$4 sm:$0xff]   ;;  %v986_v9 = vld [vmem:[%s1551_s3] ss:$24 sps:$4 sm:$0xff]   ;;  %v990_v12 = vld [vmem:[%s1551_s3 + $0x34] ss:$24 sps:$4 sm:$0xff]  }
   0x3   :  { %701 = vmatprep.subr.bf16.mxu0 %v984_v8  ;;  %v987_v10 = vld [vmem:[%s1551_s3 + $0xc] ss:$24 sps:$4 sm:$0xff]   ;;  %v989_v11 = vld [vmem:[%s1551_s3 + $0x8] ss:$24 sps:$4 sm:$0xff]   ;;  %v995_v15 = vld [vmem:[%s1551_s3 + $0x38] ss:$24 sps:$4 sm:$0xff]  }
   0x4   :  { %v28_v6 = vadd.f32 %v23_v3, %v22_v2  ;;  %v31_v7 = vadd.f32 %v25_v5, %v24_v4  ;;  %702 = vmatpush1.bf16.msra.mxu0 %v986_v9  ;;  %v992_v13 = vld [vmem:[%s1551_s3 + $0x30] ss:$24 sps:$4 sm:$0xff]   ;;  %744 = vmatprep.subr.bf16.mxu1 %v987_v10  ;;  %v996_v16 = vld [vmem:[%s1551_s3 + $0x64] ss:$24 sps:$4 sm:$0xff]   ;;  %v998_v17 = vld [vmem:[%s1551_s3 + $0x60] ss:$24 sps:$4 sm:$0xff]  }
   0x5   :  { %745 = vmatpush1.bf16.msra.mxu1 %v989_v11  ;;  %703 = vmatprep.subr.bf16.mxu0 %v990_v12  ;;  %v999_v18 = vld [vmem:[%s1551_s3 + $0x6c] ss:$24 sps:$4 sm:$0xff]   ;;  %v1001_v20 = vld [vmem:[%s1551_s3 + $0x68] ss:$24 sps:$4 sm:$0xff]   ;;  %v1005_v21 = vld [vmem:[%s1551_s3 + $0x9c] ss:$24 sps:$4 sm:$0xff]  }
   0x6   :  { %29 = vadd.xlane.f32.xlu0 %v28_v6  ;;  %746 = vmatprep.subr.bf16.mxu1 %v993_v14  ;;  %v1002_v19 = vld [vmem:[%s1551_s3 + $0x94] ss:$24 sps:$4 sm:$0xff]   ;;  %v1004_v22 = vld [vmem:[%s1551_s3 + $0x90] ss:$24 sps:$4 sm:$0xff]   ;;  %v1008_v23 = vld [vmem:[%s1551_s3 + $0xc4] ss:$24 sps:$4 sm:$0xff]  }
   0x7   :  { %v1007_v24 = vld [vmem:[%s1551_s3 + $0x98] ss:$24 sps:$4 sm:$0xff]   ;;  %v1011_v25 = vld [vmem:[%s1551_s3 + $0xcc] ss:$24 sps:$4 sm:$0xff]   ;;  %v1013_v28 = vld [vmem:[%s1551_s3 + $0xc8] ss:$24 sps:$4 sm:$0xff]  }
   0x8   :  { %704 = vmatpush1.bf16.msra.mxu0 %v992_v13  ;;  %v1010_v26 = vld [vmem:[%s1551_s3 + $0xc0] ss:$24 sps:$4 sm:$0xff]   ;;  %v1014_v27 = vld [vmem:[%s1551_s3 + $0xf4] ss:$24 sps:$4 sm:$0xff]   ;;  %v1016_v30 = vld [vmem:[%s1551_s3 + $0xf0] ss:$24 sps:$4 sm:$0xff]  }
   0x9   :  { %705 = vmatprep.subr.bf16.mxu0 %v996_v16  ;;  %747 = vmatpush1.bf16.msra.mxu1 %v995_v15  ;;  %v1017_v29 = vld [vmem:[%s1551_s3 + $0xfc] ss:$24 sps:$4 sm:$0xff]   ;;  %v1019_v32 = vld [vmem:[%s1551_s3 + $0xf8] ss:$24 sps:$4 sm:$0xff]   ;;  %v1023_v34 = vld [vmem:[%s1551_s3 + $0x12c] ss:$24 sps:$4 sm:$0xff]  }
   0xa   :  { %32 = vadd.xlane.f32.xlu0 %v31_v7  ;;  %748 = vmatprep.subr.bf16.mxu1 %v999_v18  ;;  %v1020_v31 = vld [vmem:[%s1551_s3 + $0x124] ss:$24 sps:$4 sm:$0xff]   ;;  %v1022_v33 = vld [vmem:[%s1551_s3 + $0x120] ss:$24 sps:$4 sm:$0xff]   ;;  %v1026_v36 = vld [vmem:[%s1551_s3 + $0x154] ss:$24 sps:$4 sm:$0xff]  }
   0xb   :  { %v1025_v35 = vld [vmem:[%s1551_s3 + $0x128] ss:$24 sps:$4 sm:$0xff]   ;;  %v1029_v37 = vld [vmem:[%s1551_s3 + $0x15c] ss:$24 sps:$4 sm:$0xff]   ;;  %v1031_v40 = vld [vmem:[%s1551_s3 + $0x158] ss:$24 sps:$4 sm:$0xff]  }
   0xc   :  { %706 = vmatpush1.bf16.msra.mxu0 %v998_v17  ;;  %v1028_v38 = vld [vmem:[%s1551_s3 + $0x150] ss:$24 sps:$4 sm:$0xff]   ;;  %v1032_v39 = vld [vmem:[%s1551_s3 + $0x184] ss:$24 sps:$4 sm:$0xff]   ;;  %v1034_v42 = vld [vmem:[%s1551_s3 + $0x180] ss:$24 sps:$4 sm:$0xff]  }
   0xd   :  { %707 = vmatprep.subr.bf16.mxu0 %v1002_v19  ;;  %749 = vmatpush1.bf16.msra.mxu1 %v1001_v20  ;;  %v1035_v41 = vld [vmem:[%s1551_s3 + $0x18c] ss:$24 sps:$4 sm:$0xff]   ;;  %v1037_v44 = vld [vmem:[%s1551_s3 + $0x188] ss:$24 sps:$4 sm:$0xff]   ;;  %v1041_v60 = vld [vmem:[%s1551_s3 + $0x1bc] ss:$24 sps:$4 sm:$0xff]  }
   0xe   :  { %750 = vmatprep.subr.bf16.mxu1 %v1005_v21  ;;  %v1038_v43 = vld [vmem:[%s1551_s3 + $0x1b4] ss:$24 sps:$4 sm:$0xff]   ;;  %v1040_v59 = vld [vmem:[%s1551_s3 + $0x1b0] ss:$24 sps:$4 sm:$0xff]   ;;  %v1044_v62 = vld [vmem:[%s1551_s3 + $0x1e4] ss:$24 sps:$4 sm:$0xff]  }
   0xf   :  { %v1043_v61 = vld [vmem:[%s1551_s3 + $0x1b8] ss:$24 sps:$4 sm:$0xff]   ;;  %v1047_v0 = vld [vmem:[%s1551_s3 + $0x1ec] ss:$24 sps:$4 sm:$0xff]   ;;  %v1049_v1 = vld [vmem:[%s1551_s3 + $0x1e8] ss:$24 sps:$4 sm:$0xff]  }
  0x10   :  { %708 = vmatpush1.bf16.msra.mxu0 %v1004_v22  ;;  %v1046_v63 = vld [vmem:[%s1551_s3 + $0x1e0] ss:$24 sps:$4 sm:$0xff]   ;;  %v1056_v6 = vld [vmem:[%s1551_s3 + $0x244] ss:$24 sps:$4 sm:$0xff]   ;;  %v1062_v10 = vld [vmem:[%s1551_s3 + $0x274] ss:$24 sps:$4 sm:$0xff]  }
  0x11   :  { %709 = vmatprep.subr.bf16.mxu0 %v1008_v23  ;;  %751 = vmatpush1.bf16.msra.mxu1 %v1007_v24  ;;  %v1058_v7 = vld [vmem:[%s1551_s3 + $0x240] ss:$24 sps:$4 sm:$0xff]   ;;  %v1059_v8 = vld [vmem:[%s1551_s3 + $0x24c] ss:$24 sps:$4 sm:$0xff]   ;;  %v1065_v11 = vld [vmem:[%s1551_s3 + $0x27c] ss:$24 sps:$4 sm:$0xff]  }
  0x12   :  { %752 = vmatprep.subr.bf16.mxu1 %v1011_v25  ;;  %v1061_v9 = vld [vmem:[%s1551_s3 + $0x248] ss:$24 sps:$4 sm:$0xff]   ;;  %v1067_v13 = vld [vmem:[%s1551_s3 + $0x278] ss:$24 sps:$4 sm:$0xff]   ;;  %v1068_v14 = vld [vmem:[%s1551_s3 + $0x2a4] ss:$24 sps:$4 sm:$0xff]  }
  0x13   :  { %v1064_v12 = vld [vmem:[%s1551_s3 + $0x270] ss:$24 sps:$4 sm:$0xff]   ;;  %v1071_v15 = vld [vmem:[%s1551_s3 + $0x2ac] ss:$24 sps:$4 sm:$0xff]   ;;  %v1070_v16 = vld [vmem:[%s1551_s3 + $0x2a0] ss:$24 sps:$4 sm:$0xff]  }
  0x14   :  { %710 = vmatpush1.bf16.msra.mxu0 %v1010_v26  ;;  %v1073_v17 = vld [vmem:[%s1551_s3 + $0x2a8] ss:$24 sps:$4 sm:$0xff]   ;;  %v1074_v18 = vld [vmem:[%s1551_s3 + $0x2d4] ss:$24 sps:$4 sm:$0xff]   ;;  %v1079_v21 = vld [vmem:[%s1551_s3 + $0x2d8] ss:$24 sps:$4 sm:$0xff]  }
  0x15   :  { %711 = vmatprep.subr.bf16.mxu0 %v1014_v27  ;;  %753 = vmatpush1.bf16.msra.mxu1 %v1013_v28  ;;  %v1077_v19 = vld [vmem:[%s1551_s3 + $0x2dc] ss:$24 sps:$4 sm:$0xff]   ;;  %v1076_v20 = vld [vmem:[%s1551_s3 + $0x2d0] ss:$24 sps:$4 sm:$0xff]   ;;  %v62_v27 = vlaneseq }
  0x16   :  { %754 = vmatprep.subr.bf16.mxu1 %v1017_v29  ;;  %v1082_v22 = vld [vmem:[%s1551_s3 + $0x14] ss:$24 sps:$4 sm:$0xff]  }
  0x18   :  { %712 = vmatpush1.bf16.msra.mxu0 %v1016_v30  ;;  %v1403_v30 = vshrl.u32 %v62_v27, 7 }
  0x19   :  { %713 = vmatprep.subr.bf16.mxu0 %v1020_v31  ;;  %755 = vmatpush1.bf16.msra.mxu1 %v1019_v32 }
  0x1a   :  { %756 = vmatprep.subr.bf16.mxu1 %v1023_v34  ;;  %v1406_v31 = vsub.s32 1, %v1403_v30  ;;  %v1409_v32 = vsub.s32 0, %v1403_v30 }
  0x1c   :  { %714 = vmatpush1.bf16.msra.mxu0 %v1022_v33  ;;  %v26_v33 = vld [vmem:[%s1552_s1] sm:$0x3] }
  0x1d   :  { %715 = vmatprep.subr.bf16.mxu0 %v1026_v36  ;;  %757 = vmatpush1.bf16.msra.mxu1 %v1025_v35  ;;  %v27_v35 = vld [vmem:[%s1553_s2] sm:$0x3] }
  0x1e   :  { %758 = vmatprep.subr.bf16.mxu1 %v1029_v37  ;;  %v69_v37 = vrot.slane %v26_v33, %v1406_v31 }
  0x20   :  { %716 = vmatpush1.bf16.msra.mxu0 %v1028_v38 }
  0x21   :  { %717 = vmatprep.subr.bf16.mxu0 %v1032_v39  ;;  %759 = vmatpush1.bf16.msra.mxu1 %v1031_v40  ;;  %v65_v39 = vrot.slane %v26_v33, %v1409_v32 }
  0x22   :  { %760 = vmatprep.subr.bf16.mxu1 %v1035_v41  ;;  %v84_v41 = vrot.slane %v27_v35, %v1406_v31 }
  0x24   :  { %718 = vmatpush1.bf16.msra.mxu0 %v1034_v42  ;;  %v80_v42 = vrot.slane %v27_v35, %v1409_v32 }
  0x25   :  { %719 = vmatprep.subr.bf16.mxu0 %v1038_v43  ;;  %761 = vmatpush1.bf16.msra.mxu1 %v1037_v44 }
  0x26   :  { %762 = vmatprep.subr.bf16.mxu1 %v1041_v60  ;;  %v1091_v60 = vld [vmem:[%s1551_s3 + $0xa4] ss:$24 sps:$4 sm:$0xff]  }
  0x28   :  { %720 = vmatpush1.bf16.msra.mxu0 %v1040_v59  ;;  %v1086_v59 = vld [vmem:[%s1551_s3 + $0x70] ss:$24 sps:$4 sm:$0xff]  }
  0x29   :  { %763 = vmatpush1.bf16.msra.mxu1 %v1043_v61  ;;  %721 = vmatprep.subr.bf16.mxu0 %v1044_v62  ;;  %v1089_v61 = vld [vmem:[%s1551_s3 + $0xa0] ss:$24 sps:$4 sm:$0xff]   ;;  %v1094_v62 = vld [vmem:[%s1551_s3 + $0xd4] ss:$24 sps:$4 sm:$0xff]  }
  0x2a   :  { %764 = vmatprep.subr.bf16.mxu1 %v1047_v0  ;;  %v1097_v0 = vld [vmem:[%s1551_s3 + $0x104] ss:$24 sps:$4 sm:$0xff]  }
  0x2c   :  { %722 = vmatpush1.bf16.msra.mxu0 %v1046_v63  ;;  %v1092_v63 = vld [vmem:[%s1551_s3 + $0xd0] ss:$24 sps:$4 sm:$0xff]  }
  0x2d   :  { %765 = vmatpush1.bf16.msra.mxu1 %v1049_v1  ;;  %v1095_v1 = vld [vmem:[%s1551_s3 + $0x100] ss:$24 sps:$4 sm:$0xff]  }
  0x93   :  { %v30_v45 = vpop.xlane.xlu0 %29 }
  0x94   :  { %v35_v46 = vmul.f32 0.00390625, %v30_v45 }
  0x96   :  { %v1297_v47 = vsub.f32 %v22_v2, %v35_v46  ;;  %v1301_v48 = vsub.f32 %v23_v3, %v35_v46  ;;  %v1050_v2 = vld [vmem:[%s1551_s3 + $0x214] ss:$24 sps:$4 sm:$0xff]   ;;  %v1052_v3 = vld [vmem:[%s1551_s3 + $0x210] ss:$24 sps:$4 sm:$0xff]  }
  0x97   :  { %v33_v49 = vpop.xlane.xlu0 %32  ;;  %723 = vmatprep.subr.bf16.mxu0 %v1050_v2  ;;  %v1100_v2 = vld [vmem:[%s1551_s3 + $0x134] ss:$24 sps:$4 sm:$0xff]  }
  0x98   :  { %v36_v50 = vmul.f32 0.00390625, %v33_v49  ;;  %v41_v51 = vmul.f32 %v1297_v47, %v1297_v47  ;;  %v42_v52 = vmul.f32 %v1301_v48, %v1301_v48  ;;  %724 = vmatpush1.bf16.msra.mxu0 %v1052_v3  ;;  %v1098_v3 = vld [vmem:[%s1551_s3 + $0x130] ss:$24 sps:$4 sm:$0xff]  }
  0x99   :  { %725 = vmatprep.subr.bf16.mxu0 %v1056_v6  ;;  %v1106_v6 = vld [vmem:[%s1551_s3 + $0x194] ss:$24 sps:$4 sm:$0xff]  }
  0x9a   :  { %v1309_v53 = vsub.f32 %v24_v4, %v36_v50  ;;  %v1313_v54 = vsub.f32 %v25_v5, %v36_v50  ;;  %v45_v55 = vadd.f32 %v42_v52, %v41_v51  ;;  %v1053_v4 = vld [vmem:[%s1551_s3 + $0x21c] ss:$24 sps:$4 sm:$0xff]   ;;  %v1055_v5 = vld [vmem:[%s1551_s3 + $0x218] ss:$24 sps:$4 sm:$0xff]  }
  0x9b   :  { %766 = vmatprep.subr.bf16.mxu1 %v1053_v4  ;;  %v1103_v4 = vld [vmem:[%s1551_s3 + $0x164] ss:$24 sps:$4 sm:$0xff]  }
  0x9c   :  { %46 = vadd.xlane.f32.xlu1 %v45_v55  ;;  %v43_v56 = vmul.f32 %v1309_v53, %v1309_v53  ;;  %v44_v57 = vmul.f32 %v1313_v54, %v1313_v54  ;;  %767 = vmatpush1.bf16.msra.mxu1 %v1055_v5  ;;  %v1101_v5 = vld [vmem:[%s1551_s3 + $0x160] ss:$24 sps:$4 sm:$0xff]  }
  0x9d   :  { %768 = vmatprep.subr.bf16.mxu1 %v1059_v8  ;;  %726 = vmatpush1.bf16.msra.mxu0 %v1058_v7  ;;  %v1104_v7 = vld [vmem:[%s1551_s3 + $0x190] ss:$24 sps:$4 sm:$0xff]   ;;  %v1109_v8 = vld [vmem:[%s1551_s3 + $0x1c4] ss:$24 sps:$4 sm:$0xff]  }
  0x9e   :  { %v48_v58 = vadd.f32 %v44_v57, %v43_v56  ;;  %727 = vmatprep.subr.bf16.mxu0 %v1062_v10  ;;  %v1080_v56 = vld [vmem:[%s1551_s3 + $0x10] ss:$24 sps:$4 sm:$0xff]   ;;  %v1112_v10 = vld [vmem:[%s1551_s3 + $0x1f4] ss:$24 sps:$4 sm:$0xff]  }
  0xa0   :  { %49 = vadd.xlane.f32.xlu1 %v48_v58  ;;  %769 = vmatpush1.bf16.msra.mxu1 %v1061_v9  ;;  %v1088_v58 = vld [vmem:[%s1551_s3 + $0x74] ss:$24 sps:$4 sm:$0xff]   ;;  %v1107_v9 = vld [vmem:[%s1551_s3 + $0x1c0] ss:$24 sps:$4 sm:$0xff]  }
  0xa1   :  { %770 = vmatprep.subr.bf16.mxu1 %v1065_v11  ;;  %728 = vmatpush1.bf16.msra.mxu0 %v1064_v12  ;;  %v1110_v11 = vld [vmem:[%s1551_s3 + $0x1f0] ss:$24 sps:$4 sm:$0xff]   ;;  %v1115_v12 = vld [vmem:[%s1551_s3 + $0x224] ss:$24 sps:$4 sm:$0xff]  }
  0xa2   :  { %729 = vmatprep.subr.bf16.mxu0 %v1068_v14  ;;  %v1118_v14 = vld [vmem:[%s1551_s3 + $0x254] ss:$24 sps:$4 sm:$0xff]  }
  0xa4   :  { %771 = vmatpush1.bf16.msra.mxu1 %v1067_v13  ;;  %v1113_v13 = vld [vmem:[%s1551_s3 + $0x220] ss:$24 sps:$4 sm:$0xff]  }
  0xa5   :  { %772 = vmatprep.subr.bf16.mxu1 %v1071_v15  ;;  %730 = vmatpush1.bf16.msra.mxu0 %v1070_v16  ;;  %v1116_v15 = vld [vmem:[%s1551_s3 + $0x250] ss:$24 sps:$4 sm:$0xff]   ;;  %v1121_v16 = vld [vmem:[%s1551_s3 + $0x284] ss:$24 sps:$4 sm:$0xff]  }
  0xa6   :  { %731 = vmatprep.subr.bf16.mxu0 %v1074_v18  ;;  %v1124_v18 = vld [vmem:[%s1551_s3 + $0x2b4] ss:$24 sps:$4 sm:$0xff]  }
  0xa8   :  { %773 = vmatpush1.bf16.msra.mxu1 %v1073_v17  ;;  %v1119_v17 = vld [vmem:[%s1551_s3 + $0x280] ss:$24 sps:$4 sm:$0xff]  }
  0xa9   :  { %774 = vmatprep.subr.bf16.mxu1 %v1077_v19  ;;  %732 = vmatpush1.bf16.msra.mxu0 %v1076_v20  ;;  %v1122_v19 = vld [vmem:[%s1551_s3 + $0x2b0] ss:$24 sps:$4 sm:$0xff]   ;;  %v1127_v20 = vld [vmem:[%s1551_s3 + $0x2e4] ss:$24 sps:$4 sm:$0xff]  }
  0xaa   :  { %787 = vmatprep.subr.bf16.mxu0 %v1082_v22  ;;  %v201_v22 = vsub.s32 2, %v1403_v30 }
  0xac   :  { %775 = vmatpush1.bf16.msra.mxu1 %v1079_v21  ;;  %v1125_v21 = vld [vmem:[%s1551_s3 + $0x2e0] ss:$24 sps:$4 sm:$0xff]  }
 0x129   :  { %v47_v23 = vpop.xlane.xlu1 %46 }
 0x12a   :  { %v51_v24 = vmul.f32 0.00390625, %v47_v23  ;;  %v189_v23 = vld [vmem:[%s1554_s4] sm:$0x3f] }
 0x12b   :  { %v198_v27 = vrot.slane %v189_v23, %v1406_v31 }
 0x12c   :  { %v53_v25 = vadd.f32 1e-05, %v51_v24  ;;  %v205_v24 = vsub.s32 3, %v1403_v30 }
 0x12d   :  { %v50_v26 = vpop.xlane.xlu1 %49 }
 0x12e   :  { %1128 = vrsqrt.f32 %v53_v25  ;;  %v52_v28 = vmul.f32 0.00390625, %v50_v26  ;;  %v194_v25 = vrot.slane %v189_v23, %v1409_v32  ;;  %v202_v26 = vrot.slane %v189_v23, %v201_v22 }
 0x130   :  { %v54_v29 = vadd.f32 1e-05, %v52_v28  ;;  %v206_v28 = vrot.slane %v189_v23, %v205_v24 }
 0x132   :  { %1130 = vrsqrt.f32 %v54_v29 }
 0x138   :  { %v1129_v34 = vpop.eup %1128 }
 0x139   :  { %v58_v36 = vmul.f32 %v1129_v34, %v1301_v48  ;;  %v57_v38 = vmul.f32 %v1129_v34, %v1297_v47 }
 0x13b   :  { %v73_v44 = vmul.f32 %v69_v37, %v58_v36  ;;  %v72_v46 = vmul.f32 %v65_v39, %v57_v38 }
 0x13c   :  { %v1131_v40 = vpop.eup %1130 }
 0x13d   :  { %v60_v43 = vmul.f32 %v1131_v40, %v1313_v54  ;;  %v59_v45 = vmul.f32 %v1131_v40, %v1309_v53  ;;  %v88_v48 = vadd.f32 %v84_v41, %v73_v44  ;;  %v87_v52 = vadd.f32 %v80_v42, %v72_v46  ;;  %v1085_v54 = vld [vmem:[%s1551_s3 + $0x44] ss:$24 sps:$4 sm:$0xff]   ;;  %v1083_v53 = vld [vmem:[%s1551_s3 + $0x40] ss:$24 sps:$4 sm:$0xff]  }
 0x13f   :  { %v75_v49 = vmul.f32 %v69_v37, %v60_v43  ;;  %v74_v50 = vmul.f32 %v65_v39, %v59_v45 }
 0x141   :  { %v90_v51 = vadd.f32 %v84_v41, %v75_v49  ;;  %v89_v55 = vadd.f32 %v80_v42, %v74_v50 }
 0x143   :  { %v92_v47 = vpack.c.bf16 %v90_v51, %v88_v48  ;;  %v1428_v57 = vpack.c.bf16 %v89_v55, %v87_v52  ;;  %v209_v51 = vsub.s32 4, %v1403_v30  ;;  %v213_v52 = vsub.s32 5, %v1403_v30 }
 0x145   :  { %733 = vmatprep.mubr.bf16.mxu0 %v92_v47  ;;  %776 = vmatprep.mubr.bf16.mxu1 %v92_v47  ;;  %v210_v55 = vrot.slane %v189_v23, %v209_v51 }
 0x146   :  { %734 = vmatmul.mubr.bf16.vlgmr.msra.gmra.mrb[0].mxu0 %v1428_v57  ;;  %777 = vmatmul.mubr.bf16.vlgmr.msra.gmra.mrb[0].mxu1 %v1428_v57 }
 0x147   :  { %788 = vmatpush1.bf16.msra.mxu0 %v1080_v56  ;;  %819 = vmatprep.mubr.bf16.mxu0 %v92_v47  ;;  %v214_v47 = vrot.slane %v189_v23, %v213_v52 }
 0x148   :  { %789 = vmatprep.subr.bf16.mxu0 %v1085_v54 }
 0x14b   :  { %790 = vmatpush1.bf16.msra.mxu0 %v1083_v53 }
 0x14c   :  { %791 = vmatprep.subr.bf16.mxu0 %v1088_v58 }
 0x14f   :  { %792 = vmatpush1.bf16.msra.mxu0 %v1086_v59 }
 0x150   :  { %793 = vmatprep.subr.bf16.mxu0 %v1091_v60 }
 0x153   :  { %794 = vmatpush1.bf16.msra.mxu0 %v1089_v61 }
 0x154   :  { %795 = vmatprep.subr.bf16.mxu0 %v1094_v62 }
 0x157   :  { %796 = vmatpush1.bf16.msra.mxu0 %v1092_v63 }
 0x158   :  { %797 = vmatprep.subr.bf16.mxu0 %v1097_v0 }
 0x15b   :  { %798 = vmatpush1.bf16.msra.mxu0 %v1095_v1 }
 0x15c   :  { %799 = vmatprep.subr.bf16.mxu0 %v1100_v2 }
 0x15f   :  { %800 = vmatpush1.bf16.msra.mxu0 %v1098_v3 }
 0x160   :  { %801 = vmatprep.subr.bf16.mxu0 %v1103_v4 }
 0x163   :  { %802 = vmatpush1.bf16.msra.mxu0 %v1101_v5 }
 0x164   :  { %803 = vmatprep.subr.bf16.mxu0 %v1106_v6 }
 0x167   :  { %804 = vmatpush1.bf16.msra.mxu0 %v1104_v7 }
 0x168   :  { %805 = vmatprep.subr.bf16.mxu0 %v1109_v8 }
 0x16b   :  { %806 = vmatpush1.bf16.msra.mxu0 %v1107_v9 }
 0x16c   :  { %807 = vmatprep.subr.bf16.mxu0 %v1112_v10 }
 0x16f   :  { %808 = vmatpush1.bf16.msra.mxu0 %v1110_v11 }
 0x170   :  { %809 = vmatprep.subr.bf16.mxu0 %v1115_v12 }
 0x173   :  { %810 = vmatpush1.bf16.msra.mxu0 %v1113_v13 }
 0x174   :  { %811 = vmatprep.subr.bf16.mxu0 %v1118_v14 }
 0x177   :  { %812 = vmatpush1.bf16.msra.mxu0 %v1116_v15 }
 0x178   :  { %813 = vmatprep.subr.bf16.mxu0 %v1121_v16 }
 0x17b   :  { %814 = vmatpush1.bf16.msra.mxu0 %v1119_v17 }
 0x17c   :  { %815 = vmatprep.subr.bf16.mxu0 %v1124_v18 }
 0x17f   :  { %816 = vmatpush1.bf16.msra.mxu0 %v1122_v19 }
 0x180   :  { %817 = vmatprep.subr.bf16.mxu0 %v1127_v20 }
 0x183   :  { %818 = vmatpush1.bf16.msra.mxu0 %v1125_v21 }
 0x186   :  { %820 = vmatmul.mubr.bf16.vlgmr.msra.gmra.mrb[4].mxu0 %v1428_v57 }
 0x219   :  { %v735_v29 = vpop.f32.mrb[0].mxu0  ;;  %v778_v33 = vpop.f32.mrb[0].mxu1 }
 0x21a   :  { %v736_v34 = vadd.f32 %v735_v29, %v194_v25  ;;  %v779_v35 = vadd.f32 %v778_v33, %v202_v26  ;;  %v737_v36 = vpop.f32.mrb[1].mxu0  ;;  %v780_v37 = vpop.f32.mrb[1].mxu1 }
 0x21b   :  { %v738_v38 = vadd.f32 %v737_v36, %v198_v27  ;;  %v781_v39 = vadd.f32 %v780_v37, %v206_v28  ;;  %v739_v40 = vpop.f32.mrb[2].mxu0  ;;  %v782_v41 = vpop.f32.mrb[2].mxu1 }
 0x21c   :  { %v740_v42 = vadd.f32 %v739_v40, %v194_v25  ;;  %v783_v43 = vadd.f32 %v782_v41, %v202_v26  ;;  %v741_v44 = vpop.f32.mrb[3].mxu0  ;;  %v784_v45 = vpop.f32.mrb[3].mxu1 }
 0x21d   :  { %v978_v46 = vpack.c.bf16 %v738_v38, %v736_v34  ;;  %v979_v32 = vpack.c.bf16 %v781_v39, %v779_v35  ;;  %v742_v49 = vadd.f32 %v741_v44, %v198_v27  ;;  %v785_v50 = vadd.f32 %v784_v45, %v206_v28 }
 0x21f   :  { %866 = vst [vmem:[%s1555_s5] sm:$0xff] %v978_v46  ;;  %867 = vst [vmem:[%s1555_s5 + $0x8] sm:$0xff] %v979_v32  ;;  %v981_v31 = vpack.c.bf16 %v742_v49, %v740_v42  ;;  %v982_v48 = vpack.c.bf16 %v785_v50, %v783_v43 }
 0x221   :  { %869 = vst [vmem:[%s1555_s5 + $0x18] sm:$0xff] %v981_v31  ;;  %870 = vst [vmem:[%s1555_s5 + $0x20] sm:$0xff] %v982_v48 }
 0x259   :  { %v821_v56 = vpop.f32.mrb[4].mxu0 }
 0x25a   :  { %v822_v57 = vadd.f32 %v821_v56, %v210_v55  ;;  %v823_v54 = vpop.f32.mrb[5].mxu0 }
 0x25b   :  { %v824_v53 = vadd.f32 %v823_v54, %v214_v47  ;;  %v825_v58 = vpop.f32.mrb[6].mxu0 }
 0x25c   :  { %v826_v59 = vadd.f32 %v825_v58, %v210_v55  ;;  %v827_v60 = vpop.f32.mrb[7].mxu0 }
 0x25d   :  { %v980_v61 = vpack.c.bf16 %v824_v53, %v822_v57  ;;  %v828_v62 = vadd.f32 %v827_v60, %v214_v47 }
 0x25f   :  { %868 = vst [vmem:[%s1555_s5 + $0x10] sm:$0xff] %v980_v61  ;;  %v983_v63 = vpack.c.bf16 %v828_v62, %v826_v59 }
 0x261   :  { %871 = vst [vmem:[%s1555_s5 + $0x28] sm:$0xff] %v983_v63 }

// kernel: _lambda_.60
= control target key start
LH: loop header
LB: loop body
LE: loop exit
PB: predicated region body
PF: predicated region fallthrough
CT: control target
= control target key end

     0   :  { %s1035_s0 = inlined_call_operand.vmem [shape: s32[2], index: 0, kind: input, shape index: {}]   ;;  %s1036_s1 = inlined_call_operand.vmem [shape: bf16[2,8,768], index: 1, kind: input, shape index: {}, may-alias: {1,2,3}]   ;;  %s1037_s2 = inlined_call_operand.vmem [shape: bf16[2,8,768], index: 2, kind: input, shape index: {}, may-alias: {1,2,3}]   ;;  %s1038_s3 = inlined_call_operand.vmem [shape: bf16[2,8,768], index: 3, kind: input, shape index: {}, may-alias: {1,2,3}]   ;;  %s1039_s4 = inlined_call_operand.vmem [shape: bf16[2,8,256], index: 4, kind: output, shape index: {}]  }
   0x1   :  { %s9_s17 = sshll.u32 %s1035_s0, 4  ;;  %s10_s17 = int_to_ptr.vmem [resolvable:$true] %s9_s17 }
   0x2   :  { %s868_s18 = scalar_lea.vmem %s10_s17, 16  ;;  %p873_p1 = scmp.lt.s32.totalorder %s10_s17, %s10_s17 }
   0x3   :  { %p869_p0 = scmp.ne.s32.totalorder %s10_s17, %s868_s18  ;;  %p874_p2 = scmp.lt.s32.totalorder %s868_s18, %s868_s18 }
   0x5   :  { %p875_p3 = por %p874_p2, %p873_p1 }
   0x7   :  { %p876_p4 = pnand %p875_p3, %p869_p0 }
   0x9   :  { %879 = shalt.err (!%p876_p4)  }
   0xa   :  { %s906_s19 = smov [#allocation6]  }
   0xb   :  { %12 = dma.vmem_to_smem %s10_s17, 16, %s906_s19, [#allocation5] }
   0xc   :  { %892 = dma.done.wait [#allocation5], 16 }
   0xd   :  { %893 = vsyncadd [#allocation5], 4294967280 }
   0xe   :  { %14 = sfence }
   0xf   :  { %s939_s20 = smov 0   ;;  %s941_s21 = smov 0  }
  0x10   :  { %s943_s22 = smov 0  }
  0x11 LB: > { %s39_s0 = sadd.s32 1, %s900_s21  ;;  %p771_p5 = scmp.ge.s32.totalorder %s904_s22, 1  ;;  %s904_s22 = sphi %s943_s22, %s20_s22   ;;  %s900_s21 = sphi %s941_s21, %s1043_s21   ;;  %s896_s20 = sphi %s939_s20, %s1042_s20  }
  0x12   : > { %p41_p6 = scmp.ge.s32.totalorder %s39_s0, 2  ;;  %p205_p7 = scmp.lt.s32.totalorder %s904_s22, 3 }
  0x14   : > { %s1045_s0 = smov (%p41_p6, %s39_s0), 0  ;;  %p206_p8 = pnand %p771_p5, %p205_p7 }
  0x15   : > { %p257_p9 = scmp.lt.s32.totalorder (!%p206_p8), %s896_s20, 1  ;;  %v907_v0 = vmov (!%p206_p8), 0.0   ;;  %vm908_vm0 = vmmov (!%p206_p8), 0   ;;  %vm300_vm1 = vcmask (!%p206_p8), 7168   ;;  %v909_v3 = vmov (!%p206_p8), -inf   ;;  %s307_s5 = sld [smem:[#allocation6 + %s896_s20]] (!%p206_p8) }
  0x16   : > { %209 = sbr.rel (%p206_p8) target bundleno = 1360 (0x550), region = 32  ;;  %797 = vmatprep.subr.bf16.mxu0 (!%p206_p8), %v907_v0  ;;  %799 = vmatprep.mubr.msk.bf16.mxu0 (!%p206_p8), %vm908_vm0, %v907_v0  ;;  %301 = vst.msk [vmem:[#allocation2] sm:$0xff] (!%p206_p8), %vm300_vm1, %v909_v3  ;;  %302 = vst.msk [vmem:[#allocation2 + $0x8] sm:$0xff] (!%p206_p8), %vm300_vm1, %v909_v3  ;;  %v309_v4 = vlaneseq (!%p206_p8)  ;;  %vm368_vm5 = vcmask (!%p206_p8), 64512   ;;  %v910_v16 = vmov (!%p206_p8), 0   ;;  %vm404_vm6 = vcmask (!%p206_p8), 1043456  }
  0x17   : > { %803 = vmatprep.subr.bf16.mxu1 (!%p206_p8), %v907_v0  ;;  %805 = vmatprep.mubr.msk.bf16.mxu1 (!%p206_p8), %vm908_vm0, %v907_v0  ;;  %303 = vst.msk [vmem:[#allocation3] sm:$0xff] (!%p206_p8), %vm300_vm1, %v907_v0  ;;  %304 = vst.msk [vmem:[#allocation3 + $0x8] sm:$0xff] (!%p206_p8), %vm300_vm1, %v907_v0 }
  0x18   : > { %v310_v5 = vand.u32 (!%p206_p8), 127, %v309_v4  ;;  %v317_v6 = vshrl.u32 (!%p206_p8), %v309_v4, 7  ;;  %851 = vset.pattern.permute.xlu0 (!%p206_p8), %v910_v16  ;;  %852 = vset.pattern.permute.xlu1 (!%p206_p8), %v910_v16 }
  0x1a   : > { %vm320_vm3 = vcmp.le.s32.totalorder (!%p206_p8), %v310_v5, %v317_v6 }
  0x1b   : > { %v313_v7 = vstv (!%p206_p8), %s307_s5 }
  0x1c   : > { %vm314_vm2 = vcmp.lt.s32.totalorder (!%p206_p8), %v310_v5, %v313_v7 }
  0x1d   : > { %s964_s23 = scalar_select %p257_p9, %s896_s20, 1  ;;  %vm990_vm4 = vmand %vm314_vm2, %vm320_vm3  ;;  %v367_v17 = vld [vmem:[#allocation2] sm:$0xff]  ;;  %v502_v44 = vld [vmem:[#allocation2 + $0x8] sm:$0xff] }
  0x1e   : > { %v385_v60 = vld [vmem:[#allocation3] sm:$0xff]  ;;  %v520_v4 = vld [vmem:[#allocation3 + $0x8] sm:$0xff] }
  0x1f   : > { %s970_s24 = smul.u32 24, %s964_s23  ;;  %s787_s9 = sshll.u32 %s964_s23, 3 }
  0x20   : > { %s294_s12 = scalar_lea.vmem %s1039_s4, %s787_s9 }
  0x21   : > { %s701_s27 = scalar_lea.vmem %s1037_s2, %s970_s24  ;;  %s265_s30 = scalar_lea.vmem %s1036_s1, %s970_s24 }
  0x22   : > { %v777_v1 = vld [vmem:[%s701_s27 + $0x8] sm:$0xff]  ;;  %v322_v2 = vld [vmem:[%s265_s30] sm:$0xff]  ;;  %s707_s8 = scalar_lea.vmem %s1038_s3, %s970_s24 }
  0x23   : > { %798 = vmatpush3.bf16.xpose.msra.mxu0 %v777_v1  ;;  %v778_v21 = vld [vmem:[%s707_s8 + $0x10] sm:$0xff]  ;;  %v781_v29 = vcombine.high %v777_v1, %v777_v1  ;;  %v780_v32 = vcombine.high %v322_v2, %v322_v2 }
  0x24   : > { %815 = vmatprep.subr.bf16.mxu0 %v907_v0  ;;  %v406_v22 = vsel %vm404_vm6, %v778_v21, 0  ;;  %v782_v23 = vcombine.high %v778_v21, %v778_v21 }
  0x25   : > { %804 = vmatpush3.bf16.msra.mxu1 %v406_v22 }
  0x26   : > { %v543_v24 = vsel %vm404_vm6, %v782_v23, 0  ;;  %809 = vmatprep.subr.bf16.mxu1 %v907_v0 }
  0x2a   : > { %800 = vmatmul.mubr.bf16.vlgmr.msra.gmra.mrb[0].mxu0 %v322_v2 }
  0x2b   : > { %817 = vmatprep.mubr.msk.bf16.mxu0 %vm908_vm0, %v907_v0  ;;  %816 = vmatpush3.bf16.msra.mxu0 %v543_v24 }
  0xfd   : > { %v359_v8 = vpop.f32.mrb[0].mxu0 }
  0xfe   : > { %v365_v10 = vmul.f32 0.088388346, %v359_v8  ;;  %v801_v11 = vpop.f32.mrb[1].mxu0 }
  0xff   : > { %v362_v12 = vpop.f32.mrb[2].mxu0 }
 0x100   : > { %v802_v13 = vpop.f32.mrb[3].mxu0  ;;  %v366_v14 = vsel %vm990_vm4, %v365_v10, -1e+30 }
 0x101   : > { %v369_v15 = vsel %vm368_vm5, %v366_v14, -inf }
 0x102   : > { %370 = vmax.xlane.f32.xlu0 %v369_v15 }
 0x18f   : > { %v371_v18 = vpop.xlane.xlu0 %370 }
 0x190   : > { %v372_v19 = vmax.f32 %v367_v17, %v371_v18 }
 0x192   : > { %v373_v20 = vsub.f32 %v367_v17, %v372_v19  ;;  %450 = vst.msk [vmem:[#allocation2] sm:$0xff] %vm300_vm1, %v372_v19  ;;  %378 = vperm.xlu0 %851, %v372_v19  }
 0x194   : > { %v374_v48 = vmul.f32 1.442695, %v373_v20 }
 0x211   : > { %v379_v25 = vpop.permute.xlu0 %378 }
 0x212   : > { %v381_v26 = vsub.f32 %v366_v14, %v379_v25 }
 0x214   : > { %v382_v27 = vmul.f32 1.442695, %v381_v26 }
 0x216   : > { %856 = vpow2.f32 %v382_v27 }
 0x217   : > { %858 = vpow2.f32 %v374_v48 }
 0x220   : > { %v857_v28 = vpop.eup %856 }
 0x221   : > { %v384_v30 = vsel %vm990_vm4, %v857_v28, 0.0  ;;  %v859_v51 = vpop.eup %858 }
 0x222   : > { %v400_v31 = vpack.c.bf16 %v384_v30, %v384_v30  ;;  %v387_v47 = vsel %vm368_vm5, %v384_v30, 0.0  ;;  %v386_v61 = vmul.f32 %v859_v51, %v385_v60 }
 0x224   : > { %806 = vmatmul.mubr.msk.bf16.vlgmr.msra.gmra.mrb[0].mxu1 %vm368_vm5, %v400_v31 }
 0x225   : > { %810 = vmatpush3.bf16.xpose.msra.mxu1 %v781_v29  ;;  %811 = vmatprep.mubr.msk.bf16.mxu1 %vm908_vm0, %v907_v0 }
 0x22c   : > { %812 = vmatmul.mubr.bf16.vlgmr.msra.gmra.mrb[4].mxu1 %v780_v32 }
 0x2f7   : > { %v1008_v33 = vpop.f32.mrb[0].mxu1 }
 0x2f8   : > { %v807_v34 = vpop.f32.mrb[1].mxu1 }
 0x2f9   : > { %v445_v35 = vpop.f32.mrb[2].mxu1 }
 0x2fa   : > { %v808_v36 = vpop.f32.mrb[3].mxu1 }
 0x2ff   : > { %v493_v37 = vpop.f32.mrb[4].mxu1 }
 0x300   : > { %v499_v38 = vmul.f32 0.088388346, %v493_v37  ;;  %v813_v39 = vpop.f32.mrb[5].mxu1 }
 0x301   : > { %v496_v40 = vpop.f32.mrb[6].mxu1 }
 0x302   : > { %v814_v41 = vpop.f32.mrb[7].mxu1  ;;  %v500_v42 = vsel %vm990_vm4, %v499_v38, -1e+30 }
 0x303   : > { %v503_v43 = vsel %vm368_vm5, %v500_v42, -inf }
 0x304   : > { %504 = vmax.xlane.f32.xlu1 %v503_v43 }
 0x391   : > { %v505_v45 = vpop.xlane.xlu1 %504 }
 0x392   : > { %v506_v46 = vmax.f32 %v502_v44, %v505_v45 }
 0x394   : > { %587 = vst.msk [vmem:[#allocation2 + $0x8] sm:$0xff] %vm300_vm1, %v506_v46  ;;  %512 = vperm.xlu1 %852, %v506_v46   ;;  %v507_v49 = vsub.f32 %v502_v44, %v506_v46 }
 0x396   : > { %v508_v50 = vmul.f32 1.442695, %v507_v49 }
 0x398   : > { %860 = vpow2.f32 %v508_v50 }
 0x3a2   : > { %v861_v52 = vpop.eup %860 }
 0x3a3   : > { %v521_v5 = vmul.f32 %v861_v52, %v520_v4 }
 0x3b8   : > { %388 = vadd.xlane.f32.xlu1 %v387_v47 }
 0x3c9   : > { %396 = vperm.xlu1 %852, %v859_v51  }
 0x3cd   : > { %531 = vperm.xlu1 %852, %v861_v52  }
 0x413   : > { %v513_v53 = vpop.permute.xlu1 %512 }
 0x414   : > { %v515_v54 = vsub.f32 %v500_v42, %v513_v53 }
 0x416   : > { %v516_v55 = vmul.f32 1.442695, %v515_v54 }
 0x418   : > { %862 = vpow2.f32 %v516_v55 }
 0x422   : > { %v863_v56 = vpop.eup %862 }
 0x423   : > { %v518_v57 = vsel %vm990_vm4, %v863_v56, 0.0 }
 0x424   : > { %v522_v58 = vsel %vm368_vm5, %v518_v57, 0.0  ;;  %v535_v59 = vpack.c.bf16 %v518_v57, %v518_v57 }
 0x425   : > { %523 = vadd.xlane.f32.xlu0 %v522_v58 }
 0x426   : > { %818 = vmatmul.mubr.msk.bf16.vlgmr.msra.gmra.mrb[4].mxu0 %vm368_vm5, %v535_v59 }
 0x445   : > { %v389_v62 = vpop.xlane.xlu1 %388 }
 0x446   : > { %v390_v63 = vadd.f32 %v389_v62, %v386_v61 }
 0x448   : > { %392 = vst.msk [vmem:[#allocation3] sm:$0xff] %vm300_vm1, %v390_v63 }
 0x449   : > { %v397_v16 = vpop.permute.xlu1 %396 }
 0x44a   : > { %v399_v18 = vmul.f32 0.0, %v397_v16 }
 0x44c   : > { %v448_v21 = vadd.f32 %v1008_v33, %v399_v18 }
 0x44d   : > { %v532_v17 = vpop.permute.xlu1 %531 }
 0x44e   : > { %v534_v19 = vmul.f32 0.0, %v532_v17 }
 0x44f   : > { %v591_v0 = vld [vmem:[#allocation3] sm:$0xff] }
 0x450   : > { %v593_v1 = vmax.f32 %v591_v0, 1e-30  ;;  %vm592_vm7 = vcmp.gt.f32.partialorder %v591_v0, 0.0 }
 0x452   : > { %864 = vrcp.f32 %v593_v1 }
 0x45c   : > { %v865_v2 = vpop.eup %864 }
 0x45d   : > { %v595_v3 = vsel %vm592_vm7, %v865_v2, 0.0 }
 0x45e   : > { %599 = vperm.xlu1 %852, %v595_v3  }
 0x4b2   : > { %v524_v6 = vpop.xlane.xlu0 %523 }
 0x4b3   : > { %v525_v7 = vadd.f32 %v524_v6, %v521_v5 }
 0x4b5   : > { %526 = vst.msk [vmem:[#allocation3 + $0x8] sm:$0xff] %vm300_vm1, %v525_v7 }
 0x4bc   : > { %v604_v8 = vld [vmem:[#allocation3 + $0x8] sm:$0xff] }
 0x4bd   : > { %v606_v9 = vmax.f32 %v604_v8, 1e-30  ;;  %vm605_vm8 = vcmp.gt.f32.partialorder %v604_v8, 0.0 }
 0x4bf   : > { %866 = vrcp.f32 %v606_v9 }
 0x4c9   : > { %v867_v10 = vpop.eup %866 }
 0x4ca   : > { %v608_v11 = vsel %vm605_vm8, %v867_v10, 0.0 }
 0x4cb   : > { %612 = vperm.xlu0 %851, %v608_v11  }
 0x4dd   : > { %v600_v20 = vpop.permute.xlu1 %599 }
 0x4de   : > { %v602_v24 = vmul.f32 %v600_v20, %v448_v21 }
 0x4f9   : > { %v579_v12 = vpop.f32.mrb[4].mxu0 }
 0x4fa   : > { %v819_v13 = vpop.f32.mrb[5].mxu0  ;;  %v585_v22 = vadd.f32 %v579_v12, %v534_v19 }
 0x4fb   : > { %v582_v14 = vpop.f32.mrb[6].mxu0 }
 0x4fc   : > { %v820_v15 = vpop.f32.mrb[7].mxu0 }
 0x54a   : > { %v613_v23 = vpop.permute.xlu0 %612 }
 0x54b   : > { %v615_v25 = vmul.f32 %v613_v23, %v585_v22 }
 0x54d   : > { %v788_v26 = vpack.c.bf16 %v615_v25, %v602_v24 }
 0x54f   : > { %623 = vst [vmem:[%s294_s12] sm:$0xff] %v788_v26 }
 0x550 PF: > { %s20_s22 = sadd.s32 1, %s904_s22   ;;  %s1042_s20 = smov %s900_s21 }
 0x551   : > { %p17_p10 = scmp.ge.s32.totalorder %s20_s22, 4   ;;  %s1043_s21 = smov %s1045_s0 }
 0x553   :  { %19 = sbr.rel (!%p17_p10) target bundleno = 17 (0x11), region = 79 }

// kernel: _lambda_.61
= control target key start
LH: loop header
LB: loop body
LE: loop exit
PB: predicated region body
PF: predicated region fallthrough
CT: control target
= control target key end

     0   :  { %v293_v34 = vlaneseq  ;;  %s566_s1 = inlined_call_operand.vmem [shape: bf16[256,256], index: 1, kind: input, shape index: {}]   ;;  %s567_s0 = inlined_call_operand.vmem [shape: bf16[16,256], index: 0, kind: input, shape index: {}]   ;;  %s568_s2 = inlined_call_operand.vmem [shape: f32[1,256], index: 2, kind: input, shape index: {}]   ;;  %s569_s3 = inlined_call_operand.vmem [shape: bf16[16,256], index: 3, kind: input, shape index: {}]   ;;  %s570_s4 = inlined_call_operand.vmem [shape: bf16[16,256], index: 4, kind: output, shape index: {}]  }
   0x1   :  { %v373_v0 = vld [vmem:[%s566_s1 + $0x4] ss:$8 sps:$4 sm:$0xff]   ;;  %v375_v1 = vld [vmem:[%s566_s1] ss:$8 sps:$4 sm:$0xff]   ;;  %v376_v2 = vld [vmem:[%s566_s1 + $0x14] ss:$8 sps:$4 sm:$0xff]  }
   0x2   :  { %233 = vmatprep.subr.bf16.mxu0 %v373_v0  ;;  %v378_v3 = vld [vmem:[%s566_s1 + $0x10] ss:$8 sps:$4 sm:$0xff]   ;;  %v379_v4 = vld [vmem:[%s566_s1 + $0x24] ss:$8 sps:$4 sm:$0xff]   ;;  %v381_v5 = vld [vmem:[%s566_s1 + $0x20] ss:$8 sps:$4 sm:$0xff]  }
   0x3   :  { %234 = vmatpush1.bf16.msra.mxu0 %v375_v1  ;;  %v382_v6 = vld [vmem:[%s566_s1 + $0x34] ss:$8 sps:$4 sm:$0xff]   ;;  %v384_v7 = vld [vmem:[%s566_s1 + $0x30] ss:$8 sps:$4 sm:$0xff]   ;;  %v385_v8 = vld [vmem:[%s566_s1 + $0x44] ss:$8 sps:$4 sm:$0xff]  }
   0x4   :  { %235 = vmatprep.subr.bf16.mxu0 %v376_v2  ;;  %v387_v9 = vld [vmem:[%s566_s1 + $0x40] ss:$8 sps:$4 sm:$0xff]   ;;  %v388_v10 = vld [vmem:[%s566_s1 + $0x54] ss:$8 sps:$4 sm:$0xff]   ;;  %v390_v11 = vld [vmem:[%s566_s1 + $0x50] ss:$8 sps:$4 sm:$0xff]  }
   0x5   :  { %v391_v12 = vld [vmem:[%s566_s1 + $0x64] ss:$8 sps:$4 sm:$0xff]   ;;  %v393_v14 = vld [vmem:[%s566_s1 + $0x60] ss:$8 sps:$4 sm:$0xff]   ;;  %v394_v15 = vld [vmem:[%s566_s1 + $0x74] ss:$8 sps:$4 sm:$0xff]  }
   0x6   :  { %v423_v13 = vld [vmem:[%s567_s0 + $0x4] ss:$8 sps:$4 sm:$0xff]   ;;  %v396_v16 = vld [vmem:[%s566_s1 + $0x70] ss:$8 sps:$4 sm:$0xff]   ;;  %v399_v18 = vld [vmem:[%s566_s1 + $0x80] ss:$8 sps:$4 sm:$0xff]  }
   0x7   :  { %236 = vmatpush1.bf16.msra.mxu0 %v378_v3  ;;  %265 = vmatprep.mubr.bf16.mxu0 %v423_v13  ;;  %v397_v17 = vld [vmem:[%s566_s1 + $0x84] ss:$8 sps:$4 sm:$0xff]   ;;  %v400_v19 = vld [vmem:[%s566_s1 + $0x94] ss:$8 sps:$4 sm:$0xff]   ;;  %v402_v20 = vld [vmem:[%s566_s1 + $0x90] ss:$8 sps:$4 sm:$0xff]  }
   0x8   :  { %237 = vmatprep.subr.bf16.mxu0 %v379_v4  ;;  %v403_v21 = vld [vmem:[%s566_s1 + $0xa4] ss:$8 sps:$4 sm:$0xff]   ;;  %v405_v22 = vld [vmem:[%s566_s1 + $0xa0] ss:$8 sps:$4 sm:$0xff]   ;;  %v406_v23 = vld [vmem:[%s566_s1 + $0xb4] ss:$8 sps:$4 sm:$0xff]  }
   0x9   :  { %v408_v24 = vld [vmem:[%s566_s1 + $0xb0] ss:$8 sps:$4 sm:$0xff]   ;;  %v409_v25 = vld [vmem:[%s566_s1 + $0xc4] ss:$8 sps:$4 sm:$0xff]   ;;  %v411_v26 = vld [vmem:[%s566_s1 + $0xc0] ss:$8 sps:$4 sm:$0xff]  }
   0xa   :  { %v412_v27 = vld [vmem:[%s566_s1 + $0xd4] ss:$8 sps:$4 sm:$0xff]   ;;  %v414_v28 = vld [vmem:[%s566_s1 + $0xd0] ss:$8 sps:$4 sm:$0xff]   ;;  %v415_v29 = vld [vmem:[%s566_s1 + $0xe4] ss:$8 sps:$4 sm:$0xff]  }
   0xb   :  { %238 = vmatpush1.bf16.msra.mxu0 %v381_v5  ;;  %v417_v30 = vld [vmem:[%s566_s1 + $0xe0] ss:$8 sps:$4 sm:$0xff]   ;;  %v418_v31 = vld [vmem:[%s566_s1 + $0xf4] ss:$8 sps:$4 sm:$0xff]   ;;  %v420_v32 = vld [vmem:[%s566_s1 + $0xf0] ss:$8 sps:$4 sm:$0xff]  }
   0xc   :  { %239 = vmatprep.subr.bf16.mxu0 %v382_v6  ;;  %v421_v33 = vld [vmem:[%s567_s0] ss:$8 sps:$4 sm:$0xff]   ;;  %v294_v35 = vshrl.u32 %v293_v34, 7 }
   0xd   :  { %v291_v37 = vld [vmem:[%s568_s2] sm:$0x3]  ;;  %v308_v42 = vld [vmem:[%s569_s3 + $0x8] sm:$0xff] }
   0xe   :  { %v295_v36 = vsub.s32 0, %v294_v35  ;;  %v299_v38 = vsub.s32 1, %v294_v35  ;;  %v307_v39 = vld [vmem:[%s569_s3] sm:$0xff]  ;;  %v311_v48 = vunpack.c.l.bf16 %v308_v42  ;;  %v312_v51 = vunpack.c.h.bf16 %v308_v42 }
   0xf   :  { %240 = vmatpush1.bf16.msra.mxu0 %v384_v7  ;;  %v309_v43 = vunpack.c.l.bf16 %v307_v39  ;;  %v310_v45 = vunpack.c.h.bf16 %v307_v39 }
  0x10   :  { %241 = vmatprep.subr.bf16.mxu0 %v385_v8  ;;  %v296_v40 = vrot.slane %v291_v37, %v295_v36  ;;  %v300_v41 = vrot.slane %v291_v37, %v299_v38 }
  0x13   :  { %242 = vmatpush1.bf16.msra.mxu0 %v387_v9 }
  0x14   :  { %243 = vmatprep.subr.bf16.mxu0 %v388_v10 }
  0x17   :  { %244 = vmatpush1.bf16.msra.mxu0 %v390_v11 }
  0x18   :  { %245 = vmatprep.subr.bf16.mxu0 %v391_v12 }
  0x1b   :  { %246 = vmatpush1.bf16.msra.mxu0 %v393_v14 }
  0x1c   :  { %247 = vmatprep.subr.bf16.mxu0 %v394_v15 }
  0x1f   :  { %248 = vmatpush1.bf16.msra.mxu0 %v396_v16 }
  0x20   :  { %249 = vmatprep.subr.bf16.mxu0 %v397_v17 }
  0x23   :  { %250 = vmatpush1.bf16.msra.mxu0 %v399_v18 }
  0x24   :  { %251 = vmatprep.subr.bf16.mxu0 %v400_v19 }
  0x27   :  { %252 = vmatpush1.bf16.msra.mxu0 %v402_v20 }
  0x28   :  { %253 = vmatprep.subr.bf16.mxu0 %v403_v21 }
  0x2b   :  { %254 = vmatpush1.bf16.msra.mxu0 %v405_v22 }
  0x2c   :  { %255 = vmatprep.subr.bf16.mxu0 %v406_v23 }
  0x2f   :  { %256 = vmatpush1.bf16.msra.mxu0 %v408_v24 }
  0x30   :  { %257 = vmatprep.subr.bf16.mxu0 %v409_v25 }
  0x33   :  { %258 = vmatpush1.bf16.msra.mxu0 %v411_v26 }
  0x34   :  { %259 = vmatprep.subr.bf16.mxu0 %v412_v27 }
  0x37   :  { %260 = vmatpush1.bf16.msra.mxu0 %v414_v28 }
  0x38   :  { %261 = vmatprep.subr.bf16.mxu0 %v415_v29 }
  0x3b   :  { %262 = vmatpush1.bf16.msra.mxu0 %v417_v30 }
  0x3c   :  { %263 = vmatprep.subr.bf16.mxu0 %v418_v31 }
  0x3f   :  { %264 = vmatpush1.bf16.msra.mxu0 %v420_v32 }
  0x42   :  { %266 = vmatmul.mubr.bf16.vlgmr.msra.gmra.mrb[0].mxu0 %v421_v33 }
 0x115   :  { %v267_v44 = vpop.f32.mrb[0].mxu0 }
 0x116   :  { %v303_v46 = vadd.f32 %v296_v40, %v267_v44  ;;  %v269_v47 = vpop.f32.mrb[1].mxu0 }
 0x117   :  { %v304_v49 = vadd.f32 %v300_v41, %v269_v47  ;;  %v271_v50 = vpop.f32.mrb[2].mxu0 }
 0x118   :  { %v313_v52 = vadd.f32 %v309_v43, %v303_v46  ;;  %v305_v53 = vadd.f32 %v296_v40, %v271_v50  ;;  %v273_v54 = vpop.f32.mrb[3].mxu0 }
 0x119   :  { %v314_v55 = vadd.f32 %v310_v45, %v304_v49  ;;  %v306_v56 = vadd.f32 %v300_v41, %v273_v54 }
 0x11a   :  { %v315_v57 = vadd.f32 %v311_v48, %v305_v53 }
 0x11b   :  { %v371_v58 = vpack.c.bf16 %v314_v55, %v313_v52  ;;  %v316_v59 = vadd.f32 %v312_v51, %v306_v56 }
 0x11d   :  { %329 = vst [vmem:[%s570_s4] sm:$0xff] %v371_v58  ;;  %v372_v60 = vpack.c.bf16 %v316_v59, %v315_v57 }
 0x11f   :  { %330 = vst [vmem:[%s570_s4 + $0x8] sm:$0xff] %v372_v60 }

// kernel: _lambda_.62
= control target key start
LH: loop header
LB: loop body
LE: loop exit
PB: predicated region body
PF: predicated region fallthrough
CT: control target
= control target key end

     0   :  { %v62_v58 = vlaneseq  ;;  %s593_s0 = inlined_call_operand.vmem [shape: bf16[16,256], index: 0, kind: input, shape index: {}]   ;;  %s594_s3 = inlined_call_operand.vmem [shape: bf16[256,256], index: 3, kind: input, shape index: {}]   ;;  %s595_s1 = inlined_call_operand.vmem [shape: f32[1,256], index: 1, kind: input, shape index: {}]   ;;  %s596_s2 = inlined_call_operand.vmem [shape: f32[1,256], index: 2, kind: input, shape index: {}]   ;;  %s597_s4 = inlined_call_operand.vmem [shape: f32[1,256], index: 4, kind: input, shape index: {}]   ;;  %s598_s5 = inlined_call_operand.vmem [shape: bf16[16,256], index: 5, kind: output, shape index: {}]  }
   0x1   :  { %v20_v0 = vld [vmem:[%s593_s0] sm:$0xff]  ;;  %v21_v1 = vld [vmem:[%s593_s0 + $0x8] sm:$0xff]  ;;  %v397_v10 = vld [vmem:[%s594_s3 + $0x14] ss:$8 sps:$4 sm:$0xff]  }
   0x2   :  { %v22_v2 = vunpack.c.l.bf16 %v20_v0  ;;  %v23_v3 = vunpack.c.h.bf16 %v20_v0  ;;  %v24_v4 = vunpack.c.l.bf16 %v21_v1  ;;  %v25_v5 = vunpack.c.h.bf16 %v21_v1  ;;  %v394_v8 = vld [vmem:[%s594_s3 + $0x4] ss:$8 sps:$4 sm:$0xff]   ;;  %v396_v9 = vld [vmem:[%s594_s3] ss:$8 sps:$4 sm:$0xff]   ;;  %v399_v11 = vld [vmem:[%s594_s3 + $0x10] ss:$8 sps:$4 sm:$0xff]  }
   0x3   :  { %297 = vmatprep.subr.bf16.mxu0 %v394_v8  ;;  %v400_v12 = vld [vmem:[%s594_s3 + $0x24] ss:$8 sps:$4 sm:$0xff]   ;;  %v402_v13 = vld [vmem:[%s594_s3 + $0x20] ss:$8 sps:$4 sm:$0xff]   ;;  %v403_v14 = vld [vmem:[%s594_s3 + $0x34] ss:$8 sps:$4 sm:$0xff]  }
   0x4   :  { %v28_v6 = vadd.f32 %v23_v3, %v22_v2  ;;  %v31_v7 = vadd.f32 %v25_v5, %v24_v4  ;;  %298 = vmatpush1.bf16.msra.mxu0 %v396_v9  ;;  %v405_v15 = vld [vmem:[%s594_s3 + $0x30] ss:$8 sps:$4 sm:$0xff]   ;;  %v406_v16 = vld [vmem:[%s594_s3 + $0x44] ss:$8 sps:$4 sm:$0xff]   ;;  %v408_v17 = vld [vmem:[%s594_s3 + $0x40] ss:$8 sps:$4 sm:$0xff]  }
   0x5   :  { %299 = vmatprep.subr.bf16.mxu0 %v397_v10  ;;  %v409_v18 = vld [vmem:[%s594_s3 + $0x54] ss:$8 sps:$4 sm:$0xff]   ;;  %v411_v19 = vld [vmem:[%s594_s3 + $0x50] ss:$8 sps:$4 sm:$0xff]   ;;  %v412_v20 = vld [vmem:[%s594_s3 + $0x64] ss:$8 sps:$4 sm:$0xff]  }
   0x6   :  { %29 = vadd.xlane.f32.xlu0 %v28_v6  ;;  %v414_v21 = vld [vmem:[%s594_s3 + $0x60] ss:$8 sps:$4 sm:$0xff]   ;;  %v415_v22 = vld [vmem:[%s594_s3 + $0x74] ss:$8 sps:$4 sm:$0xff]   ;;  %v417_v23 = vld [vmem:[%s594_s3 + $0x70] ss:$8 sps:$4 sm:$0xff]  }
   0x7   :  { %v418_v24 = vld [vmem:[%s594_s3 + $0x84] ss:$8 sps:$4 sm:$0xff]   ;;  %v420_v25 = vld [vmem:[%s594_s3 + $0x80] ss:$8 sps:$4 sm:$0xff]   ;;  %v421_v40 = vld [vmem:[%s594_s3 + $0x94] ss:$8 sps:$4 sm:$0xff]  }
   0x8   :  { %300 = vmatpush1.bf16.msra.mxu0 %v399_v11  ;;  %v423_v41 = vld [vmem:[%s594_s3 + $0x90] ss:$8 sps:$4 sm:$0xff]   ;;  %v424_v42 = vld [vmem:[%s594_s3 + $0xa4] ss:$8 sps:$4 sm:$0xff]   ;;  %v426_v43 = vld [vmem:[%s594_s3 + $0xa0] ss:$8 sps:$4 sm:$0xff]  }
   0x9   :  { %301 = vmatprep.subr.bf16.mxu0 %v400_v12  ;;  %v427_v44 = vld [vmem:[%s594_s3 + $0xb4] ss:$8 sps:$4 sm:$0xff]   ;;  %v429_v45 = vld [vmem:[%s594_s3 + $0xb0] ss:$8 sps:$4 sm:$0xff]   ;;  %v430_v46 = vld [vmem:[%s594_s3 + $0xc4] ss:$8 sps:$4 sm:$0xff]  }
   0xa   :  { %32 = vadd.xlane.f32.xlu0 %v31_v7  ;;  %v432_v47 = vld [vmem:[%s594_s3 + $0xc0] ss:$8 sps:$4 sm:$0xff]   ;;  %v433_v48 = vld [vmem:[%s594_s3 + $0xd4] ss:$8 sps:$4 sm:$0xff]   ;;  %v435_v49 = vld [vmem:[%s594_s3 + $0xd0] ss:$8 sps:$4 sm:$0xff]  }
   0xb   :  { %v436_v50 = vld [vmem:[%s594_s3 + $0xe4] ss:$8 sps:$4 sm:$0xff]   ;;  %v438_v51 = vld [vmem:[%s594_s3 + $0xe0] ss:$8 sps:$4 sm:$0xff]   ;;  %v439_v52 = vld [vmem:[%s594_s3 + $0xf4] ss:$8 sps:$4 sm:$0xff]  }
   0xc   :  { %302 = vmatpush1.bf16.msra.mxu0 %v402_v13  ;;  %v441_v53 = vld [vmem:[%s594_s3 + $0xf0] ss:$8 sps:$4 sm:$0xff]   ;;  %v63_v61 = vshrl.u32 %v62_v58, 7  ;;  %v26_v0 = vld [vmem:[%s595_s1] sm:$0x3] }
   0xd   :  { %303 = vmatprep.subr.bf16.mxu0 %v403_v14 }
   0xe   :  { %v64_v62 = vsub.s32 0, %v63_v61  ;;  %v68_v63 = vsub.s32 1, %v63_v61 }
  0x10   :  { %304 = vmatpush1.bf16.msra.mxu0 %v405_v15 }
  0x11   :  { %305 = vmatprep.subr.bf16.mxu0 %v406_v16 }
  0x14   :  { %306 = vmatpush1.bf16.msra.mxu0 %v408_v17 }
  0x15   :  { %307 = vmatprep.subr.bf16.mxu0 %v409_v18 }
  0x18   :  { %308 = vmatpush1.bf16.msra.mxu0 %v411_v19 }
  0x19   :  { %309 = vmatprep.subr.bf16.mxu0 %v412_v20 }
  0x1c   :  { %310 = vmatpush1.bf16.msra.mxu0 %v414_v21 }
  0x1d   :  { %311 = vmatprep.subr.bf16.mxu0 %v415_v22  ;;  %v125_v22 = vld [vmem:[%s597_s4] sm:$0x3] }
  0x20   :  { %312 = vmatpush1.bf16.msra.mxu0 %v417_v23  ;;  %v130_v23 = vrot.slane %v125_v22, %v64_v62 }
  0x21   :  { %313 = vmatprep.subr.bf16.mxu0 %v418_v24  ;;  %v134_v24 = vrot.slane %v125_v22, %v68_v63 }
  0x24   :  { %314 = vmatpush1.bf16.msra.mxu0 %v420_v25 }
  0x25   :  { %315 = vmatprep.subr.bf16.mxu0 %v421_v40 }
  0x28   :  { %316 = vmatpush1.bf16.msra.mxu0 %v423_v41 }
  0x29   :  { %317 = vmatprep.subr.bf16.mxu0 %v424_v42 }
  0x2c   :  { %318 = vmatpush1.bf16.msra.mxu0 %v426_v43 }
  0x2d   :  { %319 = vmatprep.subr.bf16.mxu0 %v427_v44 }
  0x30   :  { %320 = vmatpush1.bf16.msra.mxu0 %v429_v45 }
  0x31   :  { %321 = vmatprep.subr.bf16.mxu0 %v430_v46 }
  0x34   :  { %322 = vmatpush1.bf16.msra.mxu0 %v432_v47 }
  0x35   :  { %323 = vmatprep.subr.bf16.mxu0 %v433_v48 }
  0x38   :  { %324 = vmatpush1.bf16.msra.mxu0 %v435_v49 }
  0x39   :  { %325 = vmatprep.subr.bf16.mxu0 %v436_v50 }
  0x3c   :  { %326 = vmatpush1.bf16.msra.mxu0 %v438_v51 }
  0x3d   :  { %327 = vmatprep.subr.bf16.mxu0 %v439_v52 }
  0x40   :  { %328 = vmatpush1.bf16.msra.mxu0 %v441_v53 }
  0x93   :  { %v30_v26 = vpop.xlane.xlu0 %29 }
  0x94   :  { %v35_v27 = vmul.f32 0.00390625, %v30_v26 }
  0x96   :  { %v37_v28 = vsub.f32 %v22_v2, %v35_v27  ;;  %v38_v29 = vsub.f32 %v23_v3, %v35_v27  ;;  %v27_v2 = vld [vmem:[%s596_s2] sm:$0x3] }
  0x97   :  { %v33_v30 = vpop.xlane.xlu0 %32  ;;  %v80_v8 = vrot.slane %v27_v2, %v64_v62  ;;  %v84_v9 = vrot.slane %v27_v2, %v68_v63 }
  0x98   :  { %v36_v31 = vmul.f32 0.00390625, %v33_v30  ;;  %v41_v32 = vmul.f32 %v37_v28, %v37_v28  ;;  %v42_v33 = vmul.f32 %v38_v29, %v38_v29 }
  0x9a   :  { %v39_v34 = vsub.f32 %v24_v4, %v36_v31  ;;  %v40_v35 = vsub.f32 %v25_v5, %v36_v31  ;;  %v45_v36 = vadd.f32 %v42_v33, %v41_v32  ;;  %v65_v4 = vrot.slane %v26_v0, %v64_v62 }
  0x9b   :  { %v69_v5 = vrot.slane %v26_v0, %v68_v63 }
  0x9c   :  { %46 = vadd.xlane.f32.xlu1 %v45_v36  ;;  %v43_v37 = vmul.f32 %v39_v34, %v39_v34  ;;  %v44_v38 = vmul.f32 %v40_v35, %v40_v35 }
  0x9e   :  { %v48_v39 = vadd.f32 %v44_v38, %v43_v37 }
  0xa0   :  { %49 = vadd.xlane.f32.xlu1 %v48_v39 }
 0x129   :  { %v47_v54 = vpop.xlane.xlu1 %46 }
 0x12a   :  { %v51_v55 = vmul.f32 0.00390625, %v47_v54 }
 0x12c   :  { %v53_v56 = vadd.f32 1e-05, %v51_v55 }
 0x12d   :  { %v50_v57 = vpop.xlane.xlu1 %49 }
 0x12e   :  { %442 = vrsqrt.f32 %v53_v56  ;;  %v52_v59 = vmul.f32 0.00390625, %v50_v57 }
 0x130   :  { %v54_v60 = vadd.f32 1e-05, %v52_v59 }
 0x132   :  { %444 = vrsqrt.f32 %v54_v60 }
 0x138   :  { %v443_v1 = vpop.eup %442 }
 0x139   :  { %v58_v3 = vmul.f32 %v443_v1, %v38_v29  ;;  %v57_v6 = vmul.f32 %v443_v1, %v37_v28 }
 0x13b   :  { %v73_v11 = vmul.f32 %v69_v5, %v58_v3  ;;  %v72_v13 = vmul.f32 %v65_v4, %v57_v6 }
 0x13c   :  { %v445_v7 = vpop.eup %444 }
 0x13d   :  { %v60_v10 = vmul.f32 %v445_v7, %v40_v35  ;;  %v59_v12 = vmul.f32 %v445_v7, %v39_v34  ;;  %v88_v16 = vadd.f32 %v84_v9, %v73_v11  ;;  %v87_v18 = vadd.f32 %v80_v8, %v72_v13 }
 0x13f   :  { %v75_v14 = vmul.f32 %v69_v5, %v60_v10  ;;  %v74_v15 = vmul.f32 %v65_v4, %v59_v12 }
 0x141   :  { %v90_v17 = vadd.f32 %v84_v9, %v75_v14  ;;  %v89_v19 = vadd.f32 %v80_v8, %v74_v15 }
 0x143   :  { %v92_v20 = vpack.c.bf16 %v90_v17, %v88_v16  ;;  %v91_v21 = vpack.c.bf16 %v89_v19, %v87_v18 }
 0x145   :  { %329 = vmatprep.mubr.bf16.mxu0 %v92_v20 }
 0x146   :  { %330 = vmatmul.mubr.bf16.vlgmr.msra.gmra.mrb[0].mxu0 %v91_v21 }
 0x219   :  { %v331_v25 = vpop.f32.mrb[0].mxu0 }
 0x21a   :  { %v332_v26 = vadd.f32 %v331_v25, %v130_v23  ;;  %v333_v27 = vpop.f32.mrb[1].mxu0 }
 0x21b   :  { %v334_v28 = vadd.f32 %v333_v27, %v134_v24  ;;  %v335_v29 = vpop.f32.mrb[2].mxu0 }
 0x21c   :  { %v336_v30 = vadd.f32 %v335_v29, %v130_v23  ;;  %v337_v31 = vpop.f32.mrb[3].mxu0 }
 0x21d   :  { %v392_v32 = vpack.c.bf16 %v334_v28, %v332_v26  ;;  %v338_v33 = vadd.f32 %v337_v31, %v134_v24 }
 0x21f   :  { %352 = vst [vmem:[%s598_s5] sm:$0xff] %v392_v32  ;;  %v393_v34 = vpack.c.bf16 %v338_v33, %v336_v30 }
 0x221   :  { %353 = vst [vmem:[%s598_s5 + $0x8] sm:$0xff] %v393_v34 }

// kernel: _lambda_.38
= control target key start
LH: loop header
LB: loop body
LE: loop exit
PB: predicated region body
PF: predicated region fallthrough
CT: control target
= control target key end

     0   :  { %s2051_s0 = inlined_call_operand.vmem [shape: bf16[16,256], index: 0, kind: input, shape index: {}]   ;;  %s2052_s3 = inlined_call_operand.vmem [shape: bf16[256,512], index: 3, kind: input, shape index: {}]   ;;  %s2053_s5 = inlined_call_operand.vmem [shape: bf16[512,256], index: 5, kind: input, shape index: {}]   ;;  %s2054_s1 = inlined_call_operand.vmem [shape: f32[1,256], index: 1, kind: input, shape index: {}]   ;;  %s2055_s2 = inlined_call_operand.vmem [shape: f32[1,256], index: 2, kind: input, shape index: {}]   ;;  %s2056_s4 = inlined_call_operand.vmem [shape: f32[1,512], index: 4, kind: input, shape index: {}]   ;;  %s2057_s6 = inlined_call_operand.vmem [shape: f32[1,256], index: 6, kind: input, shape index: {}]   ;;  %s2058_s7 = inlined_call_operand.vmem [shape: bf16[16,256], index: 7, kind: output, shape index: {}]  }
   0x1   :  { %v26_v0 = vld [vmem:[%s2051_s0] sm:$0xff]  ;;  %v27_v1 = vld [vmem:[%s2051_s0 + $0x8] sm:$0xff]  ;;  %v1406_v57 = vld [vmem:[%s2053_s5 + $0x14] ss:$8 sps:$4 sm:$0xff]  }
   0x2   :  { %v1581_v2 = vunpack.c.l.bf16 %v26_v0  ;;  %v1583_v3 = vunpack.c.h.bf16 %v26_v0  ;;  %v1585_v4 = vunpack.c.l.bf16 %v27_v1  ;;  %v1587_v5 = vunpack.c.h.bf16 %v27_v1  ;;  %v1307_v8 = vld [vmem:[%s2052_s3 + $0x4] ss:$16 sps:$4 sm:$0xff]   ;;  %v1309_v9 = vld [vmem:[%s2052_s3] ss:$16 sps:$4 sm:$0xff]   ;;  %v1357_v54 = vld [vmem:[%s2052_s3 + $0xc] ss:$16 sps:$4 sm:$0xff]  }
   0x3   :  { %505 = vmatprep.subr.bf16.mxu1 %v1307_v8  ;;  %v1310_v10 = vld [vmem:[%s2052_s3 + $0x24] ss:$16 sps:$4 sm:$0xff]   ;;  %v1312_v11 = vld [vmem:[%s2052_s3 + $0x20] ss:$16 sps:$4 sm:$0xff]  }
   0x4   :  { %v34_v6 = vadd.f32 %v1583_v3, %v1581_v2  ;;  %v37_v7 = vadd.f32 %v1587_v5, %v1585_v4  ;;  %506 = vmatpush1.bf16.msra.mxu1 %v1309_v9  ;;  %v1313_v12 = vld [vmem:[%s2052_s3 + $0x44] ss:$16 sps:$4 sm:$0xff]   ;;  %v1315_v13 = vld [vmem:[%s2052_s3 + $0x40] ss:$16 sps:$4 sm:$0xff]  }
   0x5   :  { %507 = vmatprep.subr.bf16.mxu1 %v1310_v10  ;;  %v1316_v14 = vld [vmem:[%s2052_s3 + $0x64] ss:$16 sps:$4 sm:$0xff]   ;;  %v1318_v15 = vld [vmem:[%s2052_s3 + $0x60] ss:$16 sps:$4 sm:$0xff]  }
   0x6   :  { %35 = vadd.xlane.f32.xlu0 %v34_v6  ;;  %v1319_v16 = vld [vmem:[%s2052_s3 + $0x84] ss:$16 sps:$4 sm:$0xff]   ;;  %v1321_v17 = vld [vmem:[%s2052_s3 + $0x80] ss:$16 sps:$4 sm:$0xff]  }
   0x7   :  { %v1322_v18 = vld [vmem:[%s2052_s3 + $0xa4] ss:$16 sps:$4 sm:$0xff]   ;;  %v1324_v19 = vld [vmem:[%s2052_s3 + $0xa0] ss:$16 sps:$4 sm:$0xff]  }
   0x8   :  { %508 = vmatpush1.bf16.msra.mxu1 %v1312_v11  ;;  %v1325_v20 = vld [vmem:[%s2052_s3 + $0xc4] ss:$16 sps:$4 sm:$0xff]   ;;  %v1327_v21 = vld [vmem:[%s2052_s3 + $0xc0] ss:$16 sps:$4 sm:$0xff]  }
   0x9   :  { %509 = vmatprep.subr.bf16.mxu1 %v1313_v12  ;;  %v1328_v22 = vld [vmem:[%s2052_s3 + $0xe4] ss:$16 sps:$4 sm:$0xff]   ;;  %v1330_v23 = vld [vmem:[%s2052_s3 + $0xe0] ss:$16 sps:$4 sm:$0xff]  }
   0xa   :  { %38 = vadd.xlane.f32.xlu0 %v37_v7  ;;  %v1331_v24 = vld [vmem:[%s2052_s3 + $0x104] ss:$16 sps:$4 sm:$0xff]   ;;  %v1333_v25 = vld [vmem:[%s2052_s3 + $0x100] ss:$16 sps:$4 sm:$0xff]  }
   0xb   :  { %v1334_v26 = vld [vmem:[%s2052_s3 + $0x124] ss:$16 sps:$4 sm:$0xff]   ;;  %v1336_v41 = vld [vmem:[%s2052_s3 + $0x120] ss:$16 sps:$4 sm:$0xff]  }
   0xc   :  { %510 = vmatpush1.bf16.msra.mxu1 %v1315_v13  ;;  %v1337_v42 = vld [vmem:[%s2052_s3 + $0x144] ss:$16 sps:$4 sm:$0xff]   ;;  %v1339_v43 = vld [vmem:[%s2052_s3 + $0x140] ss:$16 sps:$4 sm:$0xff]   ;;  %v68_v13 = vlaneseq }
   0xd   :  { %511 = vmatprep.subr.bf16.mxu1 %v1316_v14  ;;  %v1340_v44 = vld [vmem:[%s2052_s3 + $0x164] ss:$16 sps:$4 sm:$0xff]   ;;  %v1342_v45 = vld [vmem:[%s2052_s3 + $0x160] ss:$16 sps:$4 sm:$0xff]  }
   0xe   :  { %v1343_v46 = vld [vmem:[%s2052_s3 + $0x184] ss:$16 sps:$4 sm:$0xff]   ;;  %v1345_v47 = vld [vmem:[%s2052_s3 + $0x180] ss:$16 sps:$4 sm:$0xff]  }
   0xf   :  { %v1346_v48 = vld [vmem:[%s2052_s3 + $0x1a4] ss:$16 sps:$4 sm:$0xff]   ;;  %v1348_v49 = vld [vmem:[%s2052_s3 + $0x1a0] ss:$16 sps:$4 sm:$0xff]  }
  0x10   :  { %512 = vmatpush1.bf16.msra.mxu1 %v1318_v15  ;;  %v1349_v50 = vld [vmem:[%s2052_s3 + $0x1c4] ss:$16 sps:$4 sm:$0xff]   ;;  %v1351_v51 = vld [vmem:[%s2052_s3 + $0x1c0] ss:$16 sps:$4 sm:$0xff]  }
  0x11   :  { %513 = vmatprep.subr.bf16.mxu1 %v1319_v16  ;;  %v1352_v52 = vld [vmem:[%s2052_s3 + $0x1e4] ss:$16 sps:$4 sm:$0xff]   ;;  %v1354_v53 = vld [vmem:[%s2052_s3 + $0x1e0] ss:$16 sps:$4 sm:$0xff]   ;;  %v1754_v16 = vshrl.u32 %v68_v13, 7 }
  0x12   :  { %v1403_v55 = vld [vmem:[%s2053_s5 + $0x4] ss:$8 sps:$4 sm:$0xff]   ;;  %v1405_v56 = vld [vmem:[%s2053_s5] ss:$8 sps:$4 sm:$0xff]   ;;  %v1408_v58 = vld [vmem:[%s2053_s5 + $0x10] ss:$8 sps:$4 sm:$0xff]  }
  0x13   :  { %1047 = vmatprep.subr.bf16.mxu0 %v1403_v55  ;;  %v1409_v59 = vld [vmem:[%s2053_s5 + $0x24] ss:$8 sps:$4 sm:$0xff]   ;;  %v1411_v60 = vld [vmem:[%s2053_s5 + $0x20] ss:$8 sps:$4 sm:$0xff]   ;;  %v1412_v61 = vld [vmem:[%s2053_s5 + $0x34] ss:$8 sps:$4 sm:$0xff]  }
  0x14   :  { %514 = vmatpush1.bf16.msra.mxu1 %v1321_v17  ;;  %1048 = vmatpush1.bf16.msra.mxu0 %v1405_v56  ;;  %v1414_v62 = vld [vmem:[%s2053_s5 + $0x30] ss:$8 sps:$4 sm:$0xff]   ;;  %v1415_v63 = vld [vmem:[%s2053_s5 + $0x44] ss:$8 sps:$4 sm:$0xff]   ;;  %v1417_v0 = vld [vmem:[%s2053_s5 + $0x40] ss:$8 sps:$4 sm:$0xff]  }
  0x15   :  { %515 = vmatprep.subr.bf16.mxu1 %v1322_v18  ;;  %1049 = vmatprep.subr.bf16.mxu0 %v1406_v57  ;;  %v1418_v1 = vld [vmem:[%s2053_s5 + $0x54] ss:$8 sps:$4 sm:$0xff]   ;;  %v1420_v6 = vld [vmem:[%s2053_s5 + $0x50] ss:$8 sps:$4 sm:$0xff]   ;;  %v1421_v7 = vld [vmem:[%s2053_s5 + $0x64] ss:$8 sps:$4 sm:$0xff]  }
  0x16   :  { %v1423_v8 = vld [vmem:[%s2053_s5 + $0x60] ss:$8 sps:$4 sm:$0xff]   ;;  %v1757_v17 = vsub.s32 0, %v1754_v16  ;;  %v1760_v18 = vsub.s32 1, %v1754_v16  ;;  %v1381_v56 = vld [vmem:[%s2052_s3 + $0x10c] ss:$16 sps:$4 sm:$0xff]  }
  0x17   :  { %v1376_v55 = vld [vmem:[%s2052_s3 + $0xe8] ss:$16 sps:$4 sm:$0xff]  }
  0x18   :  { %516 = vmatpush1.bf16.msra.mxu1 %v1324_v19  ;;  %1050 = vmatpush1.bf16.msra.mxu0 %v1408_v58  ;;  %v32_v19 = vld [vmem:[%s2054_s1] sm:$0x3]  ;;  %v1379_v57 = vld [vmem:[%s2052_s3 + $0x108] ss:$16 sps:$4 sm:$0xff]   ;;  %v1384_v58 = vld [vmem:[%s2052_s3 + $0x12c] ss:$16 sps:$4 sm:$0xff]  }
  0x19   :  { %517 = vmatprep.subr.bf16.mxu1 %v1325_v20  ;;  %1051 = vmatprep.subr.bf16.mxu0 %v1409_v59  ;;  %v1382_v59 = vld [vmem:[%s2052_s3 + $0x128] ss:$16 sps:$4 sm:$0xff]  }
  0x1a   :  { %v1426_v13 = vld [vmem:[%s2053_s5 + $0x70] ss:$8 sps:$4 sm:$0xff]  }
  0x1c   :  { %518 = vmatpush1.bf16.msra.mxu1 %v1327_v21  ;;  %1052 = vmatpush1.bf16.msra.mxu0 %v1411_v60  ;;  %v33_v21 = vld [vmem:[%s2055_s2] sm:$0x3]  ;;  %v1387_v60 = vld [vmem:[%s2052_s3 + $0x14c] ss:$16 sps:$4 sm:$0xff]  }
  0x1d   :  { %519 = vmatprep.subr.bf16.mxu1 %v1328_v22  ;;  %1053 = vmatprep.subr.bf16.mxu0 %v1412_v61  ;;  %v1385_v61 = vld [vmem:[%s2052_s3 + $0x148] ss:$16 sps:$4 sm:$0xff]  }
  0x20   :  { %520 = vmatpush1.bf16.msra.mxu1 %v1330_v23  ;;  %1054 = vmatpush1.bf16.msra.mxu0 %v1414_v62  ;;  %v71_v23 = vrot.slane %v32_v19, %v1757_v17  ;;  %v1390_v62 = vld [vmem:[%s2052_s3 + $0x16c] ss:$16 sps:$4 sm:$0xff]  }
  0x21   :  { %521 = vmatprep.subr.bf16.mxu1 %v1331_v24  ;;  %1055 = vmatprep.subr.bf16.mxu0 %v1415_v63  ;;  %v75_v24 = vrot.slane %v32_v19, %v1760_v18  ;;  %v1388_v63 = vld [vmem:[%s2052_s3 + $0x168] ss:$16 sps:$4 sm:$0xff]   ;;  %v1430_v19 = vld [vmem:[%s2053_s5 + $0x94] ss:$8 sps:$4 sm:$0xff]  }
  0x24   :  { %522 = vmatpush1.bf16.msra.mxu1 %v1333_v25  ;;  %1056 = vmatpush1.bf16.msra.mxu0 %v1417_v0  ;;  %v1393_v0 = vld [vmem:[%s2052_s3 + $0x18c] ss:$16 sps:$4 sm:$0xff]  }
  0x25   :  { %523 = vmatprep.subr.bf16.mxu1 %v1334_v26  ;;  %1057 = vmatprep.subr.bf16.mxu0 %v1418_v1  ;;  %v1391_v1 = vld [vmem:[%s2052_s3 + $0x188] ss:$16 sps:$4 sm:$0xff]  }
  0x28   :  { %524 = vmatpush1.bf16.msra.mxu1 %v1336_v41  ;;  %1058 = vmatpush1.bf16.msra.mxu0 %v1420_v6  ;;  %v1396_v6 = vld [vmem:[%s2052_s3 + $0x1ac] ss:$16 sps:$4 sm:$0xff]  }
  0x29   :  { %525 = vmatprep.subr.bf16.mxu1 %v1337_v42  ;;  %1059 = vmatprep.subr.bf16.mxu0 %v1421_v7  ;;  %v1394_v7 = vld [vmem:[%s2052_s3 + $0x1a8] ss:$16 sps:$4 sm:$0xff]  }
  0x2c   :  { %526 = vmatpush1.bf16.msra.mxu1 %v1339_v43  ;;  %1060 = vmatpush1.bf16.msra.mxu0 %v1423_v8  ;;  %v1399_v8 = vld [vmem:[%s2052_s3 + $0x1cc] ss:$16 sps:$4 sm:$0xff]  }
  0x2d   :  { %527 = vmatprep.subr.bf16.mxu1 %v1340_v44  ;;  %v1363_v44 = vld [vmem:[%s2052_s3 + $0x4c] ss:$16 sps:$4 sm:$0xff]  }
  0x30   :  { %528 = vmatpush1.bf16.msra.mxu1 %v1342_v45  ;;  %v1361_v45 = vld [vmem:[%s2052_s3 + $0x48] ss:$16 sps:$4 sm:$0xff]  }
  0x31   :  { %529 = vmatprep.subr.bf16.mxu1 %v1343_v46  ;;  %v1366_v46 = vld [vmem:[%s2052_s3 + $0x6c] ss:$16 sps:$4 sm:$0xff]  }
  0x34   :  { %530 = vmatpush1.bf16.msra.mxu1 %v1345_v47  ;;  %v1364_v47 = vld [vmem:[%s2052_s3 + $0x68] ss:$16 sps:$4 sm:$0xff]  }
  0x35   :  { %531 = vmatprep.subr.bf16.mxu1 %v1346_v48  ;;  %v1369_v48 = vld [vmem:[%s2052_s3 + $0x8c] ss:$16 sps:$4 sm:$0xff]  }
  0x38   :  { %532 = vmatpush1.bf16.msra.mxu1 %v1348_v49  ;;  %v1367_v49 = vld [vmem:[%s2052_s3 + $0x88] ss:$16 sps:$4 sm:$0xff]  }
  0x39   :  { %533 = vmatprep.subr.bf16.mxu1 %v1349_v50  ;;  %v1372_v50 = vld [vmem:[%s2052_s3 + $0xac] ss:$16 sps:$4 sm:$0xff]  }
  0x3c   :  { %534 = vmatpush1.bf16.msra.mxu1 %v1351_v51  ;;  %v1370_v51 = vld [vmem:[%s2052_s3 + $0xa8] ss:$16 sps:$4 sm:$0xff]  }
  0x3d   :  { %535 = vmatprep.subr.bf16.mxu1 %v1352_v52  ;;  %v1375_v52 = vld [vmem:[%s2052_s3 + $0xcc] ss:$16 sps:$4 sm:$0xff]  }
  0x40   :  { %536 = vmatpush1.bf16.msra.mxu1 %v1354_v53  ;;  %v1373_v53 = vld [vmem:[%s2052_s3 + $0xc8] ss:$16 sps:$4 sm:$0xff]  }
  0x41   :  { %548 = vmatprep.subr.bf16.mxu1 %v1357_v54  ;;  %v1378_v54 = vld [vmem:[%s2052_s3 + $0xec] ss:$16 sps:$4 sm:$0xff]  }
  0x93   :  { %v36_v27 = vpop.xlane.xlu0 %35 }
  0x94   :  { %v41_v28 = vmul.f32 0.00390625, %v36_v27  ;;  %v86_v27 = vrot.slane %v33_v21, %v1757_v17 }
  0x96   :  { %v1651_v29 = vsub.f32 %v1581_v2, %v41_v28  ;;  %v1654_v30 = vsub.f32 %v1583_v3, %v41_v28  ;;  %v90_v28 = vrot.slane %v33_v21, %v1760_v18  ;;  %v1433_v21 = vld [vmem:[%s2053_s5 + $0xa4] ss:$8 sps:$4 sm:$0xff]  }
  0x97   :  { %v39_v31 = vpop.xlane.xlu0 %38 }
  0x98   :  { %v42_v32 = vmul.f32 0.00390625, %v39_v31  ;;  %v47_v33 = vmul.f32 %v1651_v29, %v1651_v29  ;;  %v48_v34 = vmul.f32 %v1654_v30, %v1654_v30 }
  0x9a   :  { %v1661_v35 = vsub.f32 %v1585_v4, %v42_v32  ;;  %v1664_v36 = vsub.f32 %v1587_v5, %v42_v32  ;;  %v51_v37 = vadd.f32 %v48_v34, %v47_v33 }
  0x9c   :  { %52 = vadd.xlane.f32.xlu1 %v51_v37  ;;  %v49_v38 = vmul.f32 %v1661_v35, %v1661_v35  ;;  %v50_v39 = vmul.f32 %v1664_v36, %v1664_v36 }
  0x9e   :  { %v54_v40 = vadd.f32 %v50_v39, %v49_v38 }
  0xa0   :  { %55 = vadd.xlane.f32.xlu1 %v54_v40 }
 0x129   :  { %v53_v9 = vpop.xlane.xlu1 %52 }
 0x12a   :  { %v57_v10 = vmul.f32 0.00390625, %v53_v9  ;;  %v1397_v9 = vld [vmem:[%s2052_s3 + $0x1c8] ss:$16 sps:$4 sm:$0xff]  }
 0x12c   :  { %v59_v11 = vadd.f32 1e-05, %v57_v10  ;;  %v1402_v10 = vld [vmem:[%s2052_s3 + $0x1ec] ss:$16 sps:$4 sm:$0xff]  }
 0x12d   :  { %v56_v12 = vpop.xlane.xlu1 %55 }
 0x12e   :  { %1499 = vrsqrt.f32 %v59_v11  ;;  %v58_v14 = vmul.f32 0.00390625, %v56_v12  ;;  %v1400_v11 = vld [vmem:[%s2052_s3 + $0x1e8] ss:$16 sps:$4 sm:$0xff]   ;;  %v1424_v12 = vld [vmem:[%s2053_s5 + $0x74] ss:$8 sps:$4 sm:$0xff]  }
 0x12f   :  { %1061 = vmatprep.subr.bf16.mxu0 %v1424_v12  ;;  %v1462_v12 = vld [vmem:[%s2053_s5 + $0x134] ss:$8 sps:$4 sm:$0xff]  }
 0x130   :  { %v60_v15 = vadd.f32 1e-05, %v58_v14  ;;  %1062 = vmatpush1.bf16.msra.mxu0 %v1426_v13  ;;  %v1427_v14 = vld [vmem:[%s2053_s5 + $0x84] ss:$8 sps:$4 sm:$0xff]   ;;  %v1460_v13 = vld [vmem:[%s2053_s5 + $0x130] ss:$8 sps:$4 sm:$0xff]  }
 0x131   :  { %1063 = vmatprep.subr.bf16.mxu0 %v1427_v14  ;;  %v1465_v14 = vld [vmem:[%s2053_s5 + $0x144] ss:$8 sps:$4 sm:$0xff]  }
 0x132   :  { %1501 = vrsqrt.f32 %v60_v15  ;;  %v1429_v15 = vld [vmem:[%s2053_s5 + $0x80] ss:$8 sps:$4 sm:$0xff]  }
 0x134   :  { %1064 = vmatpush1.bf16.msra.mxu0 %v1429_v15  ;;  %v1463_v15 = vld [vmem:[%s2053_s5 + $0x140] ss:$8 sps:$4 sm:$0xff]  }
 0x135   :  { %1065 = vmatprep.subr.bf16.mxu0 %v1430_v19  ;;  %v1468_v19 = vld [vmem:[%s2053_s5 + $0x154] ss:$8 sps:$4 sm:$0xff]  }
 0x138   :  { %v1500_v20 = vpop.eup %1499 }
 0x139   :  { %v64_v22 = vmul.f32 %v1500_v20, %v1654_v30  ;;  %v63_v25 = vmul.f32 %v1500_v20, %v1651_v29  ;;  %v1355_v29 = vld [vmem:[%s2052_s3 + $0x8] ss:$16 sps:$4 sm:$0xff]  }
 0x13a   :  { %v1432_v20 = vld [vmem:[%s2053_s5 + $0x90] ss:$8 sps:$4 sm:$0xff]  }
 0x13b   :  { %v79_v32 = vmul.f32 %v75_v24, %v64_v22  ;;  %v78_v34 = vmul.f32 %v71_v23, %v63_v25  ;;  %1066 = vmatpush1.bf16.msra.mxu0 %v1432_v20  ;;  %v1435_v22 = vld [vmem:[%s2053_s5 + $0xa0] ss:$8 sps:$4 sm:$0xff]   ;;  %v1439_v25 = vld [vmem:[%s2053_s5 + $0xc4] ss:$8 sps:$4 sm:$0xff]   ;;  %v1466_v20 = vld [vmem:[%s2053_s5 + $0x150] ss:$8 sps:$4 sm:$0xff]  }
 0x13c   :  { %v1502_v26 = vpop.eup %1501  ;;  %1067 = vmatprep.subr.bf16.mxu0 %v1433_v21  ;;  %v1471_v21 = vld [vmem:[%s2053_s5 + $0x164] ss:$8 sps:$4 sm:$0xff]  }
 0x13d   :  { %v66_v31 = vmul.f32 %v1502_v26, %v1664_v36  ;;  %v65_v33 = vmul.f32 %v1502_v26, %v1661_v35  ;;  %v94_v30 = vadd.f32 %v90_v28, %v79_v32  ;;  %v93_v40 = vadd.f32 %v86_v27, %v78_v34  ;;  %v1360_v36 = vld [vmem:[%s2052_s3 + $0x2c] ss:$16 sps:$4 sm:$0xff]   ;;  %v1358_v35 = vld [vmem:[%s2052_s3 + $0x28] ss:$16 sps:$4 sm:$0xff]  }
 0x13e   :  { %v1441_v26 = vld [vmem:[%s2053_s5 + $0xc0] ss:$8 sps:$4 sm:$0xff]   ;;  %v1450_v34 = vld [vmem:[%s2053_s5 + $0xf0] ss:$8 sps:$4 sm:$0xff]  }
 0x13f   :  { %v81_v37 = vmul.f32 %v75_v24, %v66_v31  ;;  %v80_v38 = vmul.f32 %v71_v23, %v65_v33  ;;  %1068 = vmatpush1.bf16.msra.mxu0 %v1435_v22  ;;  %v1436_v23 = vld [vmem:[%s2053_s5 + $0xb4] ss:$8 sps:$4 sm:$0xff]   ;;  %v1438_v24 = vld [vmem:[%s2053_s5 + $0xb0] ss:$8 sps:$4 sm:$0xff]   ;;  %v1445_v31 = vld [vmem:[%s2053_s5 + $0xe4] ss:$8 sps:$4 sm:$0xff]  }
 0x140   :  { %1069 = vmatprep.subr.bf16.mxu0 %v1436_v23  ;;  %v1447_v32 = vld [vmem:[%s2053_s5 + $0xe0] ss:$8 sps:$4 sm:$0xff]   ;;  %v1448_v33 = vld [vmem:[%s2053_s5 + $0xf4] ss:$8 sps:$4 sm:$0xff]   ;;  %v175_v22 = vsub.s32 2, %v1754_v16 }
 0x141   :  { %v96_v39 = vadd.f32 %v90_v28, %v81_v37  ;;  %v95_v41 = vadd.f32 %v86_v27, %v80_v38  ;;  %v1442_v27 = vld [vmem:[%s2053_s5 + $0xd4] ss:$8 sps:$4 sm:$0xff]   ;;  %v1444_v28 = vld [vmem:[%s2053_s5 + $0xd0] ss:$8 sps:$4 sm:$0xff]   ;;  %v1453_v37 = vld [vmem:[%s2053_s5 + $0x104] ss:$8 sps:$4 sm:$0xff]  }
 0x142   :  { %v1933_v38 = vld [vmem:[%s2056_s4] sm:$0xf] }
 0x143   :  { %v98_v42 = vpack.c.bf16 %v96_v39, %v94_v30  ;;  %v1779_v43 = vpack.c.bf16 %v95_v41, %v93_v40  ;;  %1070 = vmatpush1.bf16.msra.mxu0 %v1438_v24  ;;  %v168_v30 = vrot.slane %v1933_v38, %v1757_v17  ;;  %v172_v39 = vrot.slane %v1933_v38, %v1760_v18  ;;  %v1469_v23 = vld [vmem:[%s2053_s5 + $0x160] ss:$8 sps:$4 sm:$0xff]  }
 0x144   :  { %1071 = vmatprep.subr.bf16.mxu0 %v1439_v25  ;;  %v179_v24 = vsub.s32 3, %v1754_v16  ;;  %v1474_v25 = vld [vmem:[%s2053_s5 + $0x174] ss:$8 sps:$4 sm:$0xff]  }
 0x145   :  { %537 = vmatprep.mubr.bf16.mxu1 %v98_v42 }
 0x146   :  { %538 = vmatmul.mubr.bf16.vlgmr.msra.gmra.mrb[0].mxu1 %v1779_v43 }
 0x147   :  { %549 = vmatpush1.bf16.msra.mxu1 %v1355_v29  ;;  %580 = vmatprep.mubr.bf16.mxu1 %v98_v42 }
 0x148   :  { %550 = vmatprep.subr.bf16.mxu1 %v1360_v36  ;;  %1072 = vmatpush1.bf16.msra.mxu0 %v1441_v26  ;;  %v176_v26 = vrot.slane %v1933_v38, %v175_v22 }
 0x149   :  { %1073 = vmatprep.subr.bf16.mxu0 %v1442_v27  ;;  %v180_v27 = vrot.slane %v1933_v38, %v179_v24 }
 0x14b   :  { %551 = vmatpush1.bf16.msra.mxu1 %v1358_v35 }
 0x14c   :  { %552 = vmatprep.subr.bf16.mxu1 %v1363_v44  ;;  %1074 = vmatpush1.bf16.msra.mxu0 %v1444_v28  ;;  %v1472_v28 = vld [vmem:[%s2053_s5 + $0x170] ss:$8 sps:$4 sm:$0xff]  }
 0x14d   :  { %1075 = vmatprep.subr.bf16.mxu0 %v1445_v31  ;;  %v1477_v31 = vld [vmem:[%s2053_s5 + $0x184] ss:$8 sps:$4 sm:$0xff]  }
 0x14f   :  { %553 = vmatpush1.bf16.msra.mxu1 %v1361_v45 }
 0x150   :  { %554 = vmatprep.subr.bf16.mxu1 %v1366_v46  ;;  %1076 = vmatpush1.bf16.msra.mxu0 %v1447_v32 }
 0x151   :  { %1077 = vmatprep.subr.bf16.mxu0 %v1448_v33 }
 0x153   :  { %555 = vmatpush1.bf16.msra.mxu1 %v1364_v47 }
 0x154   :  { %556 = vmatprep.subr.bf16.mxu1 %v1369_v48  ;;  %1078 = vmatpush1.bf16.msra.mxu0 %v1450_v34 }
 0x155   :  { %1090 = vmatprep.subr.bf16.mxu0 %v1453_v37 }
 0x157   :  { %557 = vmatpush1.bf16.msra.mxu1 %v1367_v49 }
 0x158   :  { %558 = vmatprep.subr.bf16.mxu1 %v1372_v50 }
 0x15b   :  { %559 = vmatpush1.bf16.msra.mxu1 %v1370_v51 }
 0x15c   :  { %560 = vmatprep.subr.bf16.mxu1 %v1375_v52 }
 0x15f   :  { %561 = vmatpush1.bf16.msra.mxu1 %v1373_v53 }
 0x160   :  { %562 = vmatprep.subr.bf16.mxu1 %v1378_v54 }
 0x163   :  { %563 = vmatpush1.bf16.msra.mxu1 %v1376_v55 }
 0x164   :  { %564 = vmatprep.subr.bf16.mxu1 %v1381_v56 }
 0x167   :  { %565 = vmatpush1.bf16.msra.mxu1 %v1379_v57 }
 0x168   :  { %566 = vmatprep.subr.bf16.mxu1 %v1384_v58 }
 0x16b   :  { %567 = vmatpush1.bf16.msra.mxu1 %v1382_v59 }
 0x16c   :  { %568 = vmatprep.subr.bf16.mxu1 %v1387_v60 }
 0x16f   :  { %569 = vmatpush1.bf16.msra.mxu1 %v1385_v61 }
 0x170   :  { %570 = vmatprep.subr.bf16.mxu1 %v1390_v62 }
 0x173   :  { %571 = vmatpush1.bf16.msra.mxu1 %v1388_v63 }
 0x174   :  { %572 = vmatprep.subr.bf16.mxu1 %v1393_v0 }
 0x177   :  { %573 = vmatpush1.bf16.msra.mxu1 %v1391_v1 }
 0x178   :  { %574 = vmatprep.subr.bf16.mxu1 %v1396_v6 }
 0x17b   :  { %575 = vmatpush1.bf16.msra.mxu1 %v1394_v7  ;;  %v1451_v7 = vld [vmem:[%s2053_s5 + $0x100] ss:$8 sps:$4 sm:$0xff]  }
 0x17c   :  { %576 = vmatprep.subr.bf16.mxu1 %v1399_v8  ;;  %v1456_v8 = vld [vmem:[%s2053_s5 + $0x114] ss:$8 sps:$4 sm:$0xff]  }
 0x17f   :  { %577 = vmatpush1.bf16.msra.mxu1 %v1397_v9  ;;  %v1454_v9 = vld [vmem:[%s2053_s5 + $0x110] ss:$8 sps:$4 sm:$0xff]  }
 0x180   :  { %578 = vmatprep.subr.bf16.mxu1 %v1402_v10  ;;  %v1459_v10 = vld [vmem:[%s2053_s5 + $0x124] ss:$8 sps:$4 sm:$0xff]  }
 0x183   :  { %579 = vmatpush1.bf16.msra.mxu1 %v1400_v11  ;;  %v1457_v11 = vld [vmem:[%s2053_s5 + $0x120] ss:$8 sps:$4 sm:$0xff]  }
 0x186   :  { %581 = vmatmul.mubr.bf16.vlgmr.msra.gmra.mrb[4].mxu1 %v1779_v43 }
 0x219   :  { %v539_v40 = vpop.f32.mrb[0].mxu1 }
 0x21a   :  { %v540_v41 = vadd.f32 %v539_v40, %v168_v30  ;;  %v541_v42 = vpop.f32.mrb[1].mxu1 }
 0x21b   :  { %v542_v29 = vadd.f32 %v541_v42, %v172_v39  ;;  %v543_v43 = vpop.f32.mrb[2].mxu1 }
 0x21c   :  { %v1223_v36 = vmul.f32 -1.442695, %v540_v41  ;;  %v544_v35 = vadd.f32 %v543_v43, %v168_v30  ;;  %v545_v44 = vpop.f32.mrb[3].mxu1  ;;  %v1475_v30 = vld [vmem:[%s2053_s5 + $0x180] ss:$8 sps:$4 sm:$0xff]  }
 0x21d   :  { %v1224_v45 = vmul.f32 -1.442695, %v542_v29  ;;  %v546_v46 = vadd.f32 %v545_v44, %v172_v39  ;;  %v1483_v44 = vld [vmem:[%s2053_s5 + $0x1a4] ss:$8 sps:$4 sm:$0xff]  }
 0x21e   :  { %1503 = vpow2.f32 %v1223_v36  ;;  %v1227_v47 = vmul.f32 -1.442695, %v544_v35 }
 0x21f   :  { %1505 = vpow2.f32 %v1224_v45  ;;  %v1228_v48 = vmul.f32 -1.442695, %v546_v46  ;;  %v1481_v45 = vld [vmem:[%s2053_s5 + $0x1a0] ss:$8 sps:$4 sm:$0xff]  }
 0x220   :  { %1507 = vpow2.f32 %v1227_v47  ;;  %v1484_v47 = vld [vmem:[%s2053_s5 + $0x1b0] ss:$8 sps:$4 sm:$0xff]  }
 0x221   :  { %1509 = vpow2.f32 %v1228_v48 }
 0x228   :  { %v1504_v49 = vpop.eup %1503 }
 0x229   :  { %v1506_v50 = vpop.eup %1505  ;;  %v615_v51 = vadd.f32 1.0, %v1504_v49  ;;  %v1489_v49 = vld [vmem:[%s2053_s5 + $0x1c4] ss:$8 sps:$4 sm:$0xff]  }
 0x22a   :  { %v1508_v52 = vpop.eup %1507  ;;  %v616_v53 = vadd.f32 1.0, %v1506_v50 }
 0x22b   :  { %v1510_v54 = vpop.eup %1509  ;;  %1511 = vrcp.f32 %v615_v51  ;;  %v619_v55 = vadd.f32 1.0, %v1508_v52 }
 0x22c   :  { %1513 = vrcp.f32 %v616_v53  ;;  %v620_v56 = vadd.f32 1.0, %v1510_v54 }
 0x22d   :  { %1515 = vrcp.f32 %v619_v55 }
 0x22e   :  { %1517 = vrcp.f32 %v620_v56  ;;  %v1487_v56 = vld [vmem:[%s2053_s5 + $0x1c0] ss:$8 sps:$4 sm:$0xff]  }
 0x235   :  { %v1512_v57 = vpop.eup %1511 }
 0x236   :  { %v1514_v58 = vpop.eup %1513  ;;  %v639_v61 = vmul.f32 %v1512_v57, %v540_v41  ;;  %v1480_v41 = vld [vmem:[%s2053_s5 + $0x194] ss:$8 sps:$4 sm:$0xff]  }
 0x237   :  { %v1516_v59 = vpop.eup %1515  ;;  %v640_v63 = vmul.f32 %v1514_v58, %v542_v29  ;;  %v1492_v58 = vld [vmem:[%s2053_s5 + $0x1d4] ss:$8 sps:$4 sm:$0xff]  }
 0x238   :  { %v1518_v60 = vpop.eup %1517  ;;  %v643_v62 = vmul.f32 %v1516_v59, %v544_v35  ;;  %v1478_v35 = vld [vmem:[%s2053_s5 + $0x190] ss:$8 sps:$4 sm:$0xff]  }
 0x239   :  { %v644_v0 = vmul.f32 %v1518_v60, %v546_v46  ;;  %v1486_v46 = vld [vmem:[%s2053_s5 + $0x1b4] ss:$8 sps:$4 sm:$0xff]   ;;  %v1490_v59 = vld [vmem:[%s2053_s5 + $0x1d0] ss:$8 sps:$4 sm:$0xff]   ;;  %v1495_v60 = vld [vmem:[%s2053_s5 + $0x1e4] ss:$8 sps:$4 sm:$0xff]  }
 0x23a   :  { %v647_v1 = vpack.c.bf16 %v643_v62, %v639_v61  ;;  %v1493_v61 = vld [vmem:[%s2053_s5 + $0x1e0] ss:$8 sps:$4 sm:$0xff]   ;;  %v1498_v62 = vld [vmem:[%s2053_s5 + $0x1f4] ss:$8 sps:$4 sm:$0xff]  }
 0x23b   :  { %v648_v6 = vpack.c.bf16 %v644_v0, %v640_v63 }
 0x23d   :  { %1079 = vmatprep.mubr.bf16.mxu0 %v648_v6  ;;  %v1496_v6 = vld [vmem:[%s2053_s5 + $0x1f0] ss:$8 sps:$4 sm:$0xff]  }
 0x23e   :  { %1080 = vmatmul.mubr.bf16.vlgmr.msra.gmra.mrb[0].mxu0 %v647_v1 }
 0x23f   :  { %1091 = vmatpush1.bf16.msra.mxu0 %v1451_v7 }
 0x240   :  { %1092 = vmatprep.subr.bf16.mxu0 %v1456_v8 }
 0x243   :  { %1093 = vmatpush1.bf16.msra.mxu0 %v1454_v9 }
 0x244   :  { %1094 = vmatprep.subr.bf16.mxu0 %v1459_v10 }
 0x247   :  { %1095 = vmatpush1.bf16.msra.mxu0 %v1457_v11 }
 0x248   :  { %1096 = vmatprep.subr.bf16.mxu0 %v1462_v12 }
 0x24b   :  { %1097 = vmatpush1.bf16.msra.mxu0 %v1460_v13 }
 0x24c   :  { %1098 = vmatprep.subr.bf16.mxu0 %v1465_v14  ;;  %v715_v14 = vld [vmem:[%s2057_s6] sm:$0x3] }
 0x24f   :  { %1099 = vmatpush1.bf16.msra.mxu0 %v1463_v15  ;;  %v720_v15 = vrot.slane %v715_v14, %v1757_v17 }
 0x250   :  { %1100 = vmatprep.subr.bf16.mxu0 %v1468_v19  ;;  %v724_v19 = vrot.slane %v715_v14, %v1760_v18 }
 0x253   :  { %1101 = vmatpush1.bf16.msra.mxu0 %v1466_v20 }
 0x254   :  { %1102 = vmatprep.subr.bf16.mxu0 %v1471_v21 }
 0x257   :  { %1103 = vmatpush1.bf16.msra.mxu0 %v1469_v23 }
 0x258   :  { %1104 = vmatprep.subr.bf16.mxu0 %v1474_v25 }
 0x259   :  { %v582_v16 = vpop.f32.mrb[4].mxu1 }
 0x25a   :  { %v583_v32 = vadd.f32 %v582_v16, %v176_v26  ;;  %v584_v33 = vpop.f32.mrb[5].mxu1 }
 0x25b   :  { %v585_v34 = vadd.f32 %v584_v33, %v180_v27  ;;  %v586_v37 = vpop.f32.mrb[6].mxu1  ;;  %1105 = vmatpush1.bf16.msra.mxu0 %v1472_v28 }
 0x25c   :  { %v1225_v38 = vmul.f32 -1.442695, %v583_v32  ;;  %v587_v39 = vadd.f32 %v586_v37, %v176_v26  ;;  %v588_v40 = vpop.f32.mrb[7].mxu1  ;;  %1106 = vmatprep.subr.bf16.mxu0 %v1477_v31 }
 0x25d   :  { %v1226_v42 = vmul.f32 -1.442695, %v585_v34  ;;  %v589_v29 = vadd.f32 %v588_v40, %v180_v27 }
 0x25e   :  { %1519 = vpow2.f32 %v1225_v38  ;;  %v1229_v43 = vmul.f32 -1.442695, %v587_v39 }
 0x25f   :  { %1521 = vpow2.f32 %v1226_v42  ;;  %v1230_v36 = vmul.f32 -1.442695, %v589_v29  ;;  %1107 = vmatpush1.bf16.msra.mxu0 %v1475_v30 }
 0x260   :  { %1523 = vpow2.f32 %v1229_v43  ;;  %1108 = vmatprep.subr.bf16.mxu0 %v1480_v41 }
 0x261   :  { %1525 = vpow2.f32 %v1230_v36 }
 0x263   :  { %1109 = vmatpush1.bf16.msra.mxu0 %v1478_v35 }
 0x264   :  { %1110 = vmatprep.subr.bf16.mxu0 %v1483_v44 }
 0x267   :  { %1111 = vmatpush1.bf16.msra.mxu0 %v1481_v45 }
 0x268   :  { %v1520_v48 = vpop.eup %1519  ;;  %1112 = vmatprep.subr.bf16.mxu0 %v1486_v46 }
 0x269   :  { %v1522_v50 = vpop.eup %1521  ;;  %v617_v51 = vadd.f32 1.0, %v1520_v48 }
 0x26a   :  { %v1524_v52 = vpop.eup %1523  ;;  %v618_v53 = vadd.f32 1.0, %v1522_v50 }
 0x26b   :  { %v1526_v54 = vpop.eup %1525  ;;  %1527 = vrcp.f32 %v617_v51  ;;  %v621_v55 = vadd.f32 1.0, %v1524_v52  ;;  %1113 = vmatpush1.bf16.msra.mxu0 %v1484_v47 }
 0x26c   :  { %1529 = vrcp.f32 %v618_v53  ;;  %v622_v57 = vadd.f32 1.0, %v1526_v54  ;;  %1114 = vmatprep.subr.bf16.mxu0 %v1489_v49 }
 0x26d   :  { %1531 = vrcp.f32 %v621_v55 }
 0x26e   :  { %1533 = vrcp.f32 %v622_v57 }
 0x26f   :  { %1115 = vmatpush1.bf16.msra.mxu0 %v1487_v56 }
 0x270   :  { %1116 = vmatprep.subr.bf16.mxu0 %v1492_v58 }
 0x273   :  { %1117 = vmatpush1.bf16.msra.mxu0 %v1490_v59 }
 0x274   :  { %1118 = vmatprep.subr.bf16.mxu0 %v1495_v60 }
 0x275   :  { %v1528_v63 = vpop.eup %1527 }
 0x276   :  { %v1530_v0 = vpop.eup %1529  ;;  %v641_v8 = vmul.f32 %v1528_v63, %v583_v32 }
 0x277   :  { %v1532_v1 = vpop.eup %1531  ;;  %1119 = vmatpush1.bf16.msra.mxu0 %v1493_v61  ;;  %v642_v10 = vmul.f32 %v1530_v0, %v585_v34 }
 0x278   :  { %v1534_v7 = vpop.eup %1533  ;;  %v645_v9 = vmul.f32 %v1532_v1, %v587_v39  ;;  %1120 = vmatprep.subr.bf16.mxu0 %v1498_v62 }
 0x279   :  { %v646_v11 = vmul.f32 %v1534_v7, %v589_v29 }
 0x27a   :  { %v649_v12 = vpack.c.bf16 %v645_v9, %v641_v8 }
 0x27b   :  { %1121 = vmatpush1.bf16.msra.mxu0 %v1496_v6  ;;  %v650_v13 = vpack.c.bf16 %v646_v11, %v642_v10 }
 0x27d   :  { %1122 = vmatprep.mubr.bf16.mxu0 %v650_v13 }
 0x27e   :  { %1123 = vmatmul.mubr.bf16.vlgmr.msra.gmra.mrb[0].mxu0 %v649_v12 }
 0x351   :  { %v1124_v20 = vpop.f32.mrb[0].mxu0 }
 0x352   :  { %v1299_v21 = vadd.f32 %v1124_v20, %v720_v15  ;;  %v1126_v22 = vpop.f32.mrb[1].mxu0 }
 0x353   :  { %v1300_v23 = vadd.f32 %v1126_v22, %v724_v19  ;;  %v1128_v24 = vpop.f32.mrb[2].mxu0 }
 0x354   :  { %v1133_v25 = vmul.f32 0.5, %v1299_v21  ;;  %v1301_v26 = vadd.f32 %v1128_v24, %v720_v15  ;;  %v1130_v27 = vpop.f32.mrb[3].mxu0 }
 0x355   :  { %v1134_v28 = vmul.f32 0.5, %v1300_v23  ;;  %v1302_v31 = vadd.f32 %v1130_v27, %v724_v19 }
 0x356   :  { %v1137_v16 = vadd.f32 %v1133_v25, %v1581_v2  ;;  %v1135_v32 = vmul.f32 0.5, %v1301_v26 }
 0x357   :  { %v1138_v33 = vadd.f32 %v1134_v28, %v1583_v3  ;;  %v1136_v34 = vmul.f32 0.5, %v1302_v31 }
 0x358   :  { %v1139_v17 = vadd.f32 %v1135_v32, %v1585_v4 }
 0x359   :  { %v1297_v37 = vpack.c.bf16 %v1138_v33, %v1137_v16  ;;  %v1140_v18 = vadd.f32 %v1136_v34, %v1587_v5 }
 0x35b   :  { %1153 = vst [vmem:[%s2058_s7] sm:$0xff] %v1297_v37  ;;  %v1298_v30 = vpack.c.bf16 %v1140_v18, %v1139_v17 }
 0x35d   :  { %1154 = vst [vmem:[%s2058_s7 + $0x8] sm:$0xff] %v1298_v30 }

// kernel: _lambda_.40
= control target key start
LH: loop header
LB: loop body
LE: loop exit
PB: predicated region body
PF: predicated region fallthrough
CT: control target
= control target key end

     0   :  { %s1028_s0 = inlined_call_operand.vmem [shape: s32[2], index: 0, kind: input, shape index: {}]   ;;  %s1029_s1 = inlined_call_operand.vmem [shape: bf16[2,8,768], index: 1, kind: input, shape index: {}, may-alias: {1,2,3}]   ;;  %s1030_s2 = inlined_call_operand.vmem [shape: bf16[2,8,768], index: 2, kind: input, shape index: {}, may-alias: {1,2,3}]   ;;  %s1031_s3 = inlined_call_operand.vmem [shape: bf16[2,8,768], index: 3, kind: input, shape index: {}, may-alias: {1,2,3}]   ;;  %s1032_s4 = inlined_call_operand.vmem [shape: bf16[2,8,256], index: 4, kind: output, shape index: {}]  }
   0x1   :  { %s9_s17 = sshll.u32 %s1028_s0, 4  ;;  %s10_s17 = int_to_ptr.vmem [resolvable:$true] %s9_s17 }
   0x2   :  { %s861_s18 = scalar_lea.vmem %s10_s17, 16  ;;  %p866_p1 = scmp.lt.s32.totalorder %s10_s17, %s10_s17 }
   0x3   :  { %p862_p0 = scmp.ne.s32.totalorder %s10_s17, %s861_s18  ;;  %p867_p2 = scmp.lt.s32.totalorder %s861_s18, %s861_s18 }
   0x5   :  { %p868_p3 = por %p867_p2, %p866_p1 }
   0x7   :  { %p869_p4 = pnand %p868_p3, %p862_p0 }
   0x9   :  { %872 = shalt.err (!%p869_p4)  }
   0xa   :  { %s899_s19 = smov [#allocation6]  }
   0xb   :  { %12 = dma.vmem_to_smem %s10_s17, 16, %s899_s19, [#allocation5] }
   0xc   :  { %885 = dma.done.wait [#allocation5], 16 }
   0xd   :  { %886 = vsyncadd [#allocation5], 4294967280 }
   0xe   :  { %14 = sfence }
   0xf   :  { %s932_s20 = smov 0   ;;  %s934_s21 = smov 0  }
  0x10   :  { %s936_s22 = smov 0  }
  0x11 LB: > { %s39_s0 = sadd.s32 1, %s893_s21  ;;  %p764_p5 = scmp.ge.s32.totalorder %s897_s22, 1  ;;  %s897_s22 = sphi %s936_s22, %s20_s22   ;;  %s893_s21 = sphi %s934_s21, %s1036_s21   ;;  %s889_s20 = sphi %s932_s20, %s1035_s20  }
  0x12   : > { %p41_p6 = scmp.ge.s32.totalorder %s39_s0, 2  ;;  %p205_p7 = scmp.lt.s32.totalorder %s897_s22, 3 }
  0x14   : > { %s1038_s0 = smov (%p41_p6, %s39_s0), 0  ;;  %p206_p8 = pnand %p764_p5, %p205_p7 }
  0x15   : > { %p257_p9 = scmp.lt.s32.totalorder (!%p206_p8), %s889_s20, 1  ;;  %v900_v0 = vmov (!%p206_p8), 0.0   ;;  %vm901_vm0 = vmmov (!%p206_p8), 0   ;;  %vm300_vm1 = vcmask (!%p206_p8), 7168   ;;  %v902_v3 = vmov (!%p206_p8), -inf   ;;  %s307_s5 = sld [smem:[#allocation6 + %s889_s20]] (!%p206_p8) }
  0x16   : > { %209 = sbr.rel (%p206_p8) target bundleno = 1360 (0x550), region = 32  ;;  %790 = vmatprep.subr.bf16.mxu0 (!%p206_p8), %v900_v0  ;;  %792 = vmatprep.mubr.msk.bf16.mxu0 (!%p206_p8), %vm901_vm0, %v900_v0  ;;  %301 = vst.msk [vmem:[#allocation2] sm:$0xff] (!%p206_p8), %vm300_vm1, %v902_v3  ;;  %302 = vst.msk [vmem:[#allocation2 + $0x8] sm:$0xff] (!%p206_p8), %vm300_vm1, %v902_v3  ;;  %v309_v4 = vlaneseq (!%p206_p8)  ;;  %vm361_vm3 = vcmask (!%p206_p8), 64512   ;;  %v903_v15 = vmov (!%p206_p8), 0   ;;  %vm397_vm4 = vcmask (!%p206_p8), 1043456  }
  0x17   : > { %796 = vmatprep.subr.bf16.mxu1 (!%p206_p8), %v900_v0  ;;  %798 = vmatprep.mubr.msk.bf16.mxu1 (!%p206_p8), %vm901_vm0, %v900_v0  ;;  %303 = vst.msk [vmem:[#allocation3] sm:$0xff] (!%p206_p8), %vm300_vm1, %v900_v0  ;;  %304 = vst.msk [vmem:[#allocation3 + $0x8] sm:$0xff] (!%p206_p8), %vm300_vm1, %v900_v0 }
  0x18   : > { %v310_v5 = vand.u32 (!%p206_p8), 127, %v309_v4  ;;  %844 = vset.pattern.permute.xlu0 (!%p206_p8), %v903_v15  ;;  %845 = vset.pattern.permute.xlu1 (!%p206_p8), %v903_v15 }
  0x1b   : > { %v313_v6 = vstv (!%p206_p8), %s307_s5 }
  0x1c   : > { %vm983_vm2 = vcmp.lt.s32.totalorder (!%p206_p8), %v310_v5, %v313_v6 }
  0x1d   : > { %s957_s23 = scalar_select %p257_p9, %s889_s20, 1  ;;  %v360_v16 = vld [vmem:[#allocation2] sm:$0xff]  ;;  %v495_v43 = vld [vmem:[#allocation2 + $0x8] sm:$0xff] }
  0x1e   : > { %v378_v59 = vld [vmem:[#allocation3] sm:$0xff]  ;;  %v513_v3 = vld [vmem:[#allocation3 + $0x8] sm:$0xff] }
  0x1f   : > { %s963_s24 = smul.u32 24, %s957_s23  ;;  %s780_s9 = sshll.u32 %s957_s23, 3 }
  0x20   : > { %s294_s12 = scalar_lea.vmem %s1032_s4, %s780_s9 }
  0x21   : > { %s694_s27 = scalar_lea.vmem %s1030_s2, %s963_s24  ;;  %s265_s30 = scalar_lea.vmem %s1029_s1, %s963_s24 }
  0x22   : > { %v770_v1 = vld [vmem:[%s694_s27 + $0x8] sm:$0xff]  ;;  %v315_v2 = vld [vmem:[%s265_s30] sm:$0xff]  ;;  %s700_s8 = scalar_lea.vmem %s1031_s3, %s963_s24 }
  0x23   : > { %791 = vmatpush3.bf16.xpose.msra.mxu0 %v770_v1  ;;  %v771_v20 = vld [vmem:[%s700_s8 + $0x10] sm:$0xff]  ;;  %v774_v28 = vcombine.high %v770_v1, %v770_v1  ;;  %v773_v31 = vcombine.high %v315_v2, %v315_v2 }
  0x24   : > { %808 = vmatprep.subr.bf16.mxu0 %v900_v0  ;;  %v399_v21 = vsel %vm397_vm4, %v771_v20, 0  ;;  %v775_v22 = vcombine.high %v771_v20, %v771_v20 }
  0x25   : > { %797 = vmatpush3.bf16.msra.mxu1 %v399_v21 }
  0x26   : > { %v536_v23 = vsel %vm397_vm4, %v775_v22, 0  ;;  %802 = vmatprep.subr.bf16.mxu1 %v900_v0 }
  0x2a   : > { %793 = vmatmul.mubr.bf16.vlgmr.msra.gmra.mrb[0].mxu0 %v315_v2 }
  0x2b   : > { %810 = vmatprep.mubr.msk.bf16.mxu0 %vm901_vm0, %v900_v0  ;;  %809 = vmatpush3.bf16.msra.mxu0 %v536_v23 }
  0xfd   : > { %v352_v7 = vpop.f32.mrb[0].mxu0 }
  0xfe   : > { %v358_v9 = vmul.f32 0.088388346, %v352_v7  ;;  %v794_v10 = vpop.f32.mrb[1].mxu0 }
  0xff   : > { %v355_v11 = vpop.f32.mrb[2].mxu0 }
 0x100   : > { %v795_v12 = vpop.f32.mrb[3].mxu0  ;;  %v359_v13 = vsel %vm983_vm2, %v358_v9, -1e+30 }
 0x101   : > { %v362_v14 = vsel %vm361_vm3, %v359_v13, -inf }
 0x102   : > { %363 = vmax.xlane.f32.xlu0 %v362_v14 }
 0x18f   : > { %v364_v17 = vpop.xlane.xlu0 %363 }
 0x190   : > { %v365_v18 = vmax.f32 %v360_v16, %v364_v17 }
 0x192   : > { %v366_v19 = vsub.f32 %v360_v16, %v365_v18  ;;  %443 = vst.msk [vmem:[#allocation2] sm:$0xff] %vm300_vm1, %v365_v18  ;;  %371 = vperm.xlu0 %844, %v365_v18  }
 0x194   : > { %v367_v47 = vmul.f32 1.442695, %v366_v19 }
 0x211   : > { %v372_v24 = vpop.permute.xlu0 %371 }
 0x212   : > { %v374_v25 = vsub.f32 %v359_v13, %v372_v24 }
 0x214   : > { %v375_v26 = vmul.f32 1.442695, %v374_v25 }
 0x216   : > { %849 = vpow2.f32 %v375_v26 }
 0x217   : > { %851 = vpow2.f32 %v367_v47 }
 0x220   : > { %v850_v27 = vpop.eup %849 }
 0x221   : > { %v377_v29 = vsel %vm983_vm2, %v850_v27, 0.0  ;;  %v852_v50 = vpop.eup %851 }
 0x222   : > { %v393_v30 = vpack.c.bf16 %v377_v29, %v377_v29  ;;  %v380_v46 = vsel %vm361_vm3, %v377_v29, 0.0  ;;  %v379_v60 = vmul.f32 %v852_v50, %v378_v59 }
 0x224   : > { %799 = vmatmul.mubr.msk.bf16.vlgmr.msra.gmra.mrb[0].mxu1 %vm361_vm3, %v393_v30 }
 0x225   : > { %803 = vmatpush3.bf16.xpose.msra.mxu1 %v774_v28  ;;  %804 = vmatprep.mubr.msk.bf16.mxu1 %vm901_vm0, %v900_v0 }
 0x22c   : > { %805 = vmatmul.mubr.bf16.vlgmr.msra.gmra.mrb[4].mxu1 %v773_v31 }
 0x2f7   : > { %v1001_v32 = vpop.f32.mrb[0].mxu1 }
 0x2f8   : > { %v800_v33 = vpop.f32.mrb[1].mxu1 }
 0x2f9   : > { %v438_v34 = vpop.f32.mrb[2].mxu1 }
 0x2fa   : > { %v801_v35 = vpop.f32.mrb[3].mxu1 }
 0x2ff   : > { %v486_v36 = vpop.f32.mrb[4].mxu1 }
 0x300   : > { %v492_v37 = vmul.f32 0.088388346, %v486_v36  ;;  %v806_v38 = vpop.f32.mrb[5].mxu1 }
 0x301   : > { %v489_v39 = vpop.f32.mrb[6].mxu1 }
 0x302   : > { %v807_v40 = vpop.f32.mrb[7].mxu1  ;;  %v493_v41 = vsel %vm983_vm2, %v492_v37, -1e+30 }
 0x303   : > { %v496_v42 = vsel %vm361_vm3, %v493_v41, -inf }
 0x304   : > { %497 = vmax.xlane.f32.xlu1 %v496_v42 }
 0x391   : > { %v498_v44 = vpop.xlane.xlu1 %497 }
 0x392   : > { %v499_v45 = vmax.f32 %v495_v43, %v498_v44 }
 0x394   : > { %580 = vst.msk [vmem:[#allocation2 + $0x8] sm:$0xff] %vm300_vm1, %v499_v45  ;;  %505 = vperm.xlu1 %845, %v499_v45   ;;  %v500_v48 = vsub.f32 %v495_v43, %v499_v45 }
 0x396   : > { %v501_v49 = vmul.f32 1.442695, %v500_v48 }
 0x398   : > { %853 = vpow2.f32 %v501_v49 }
 0x3a2   : > { %v854_v51 = vpop.eup %853 }
 0x3a3   : > { %v514_v4 = vmul.f32 %v854_v51, %v513_v3 }
 0x3b8   : > { %381 = vadd.xlane.f32.xlu1 %v380_v46 }
 0x3c9   : > { %389 = vperm.xlu1 %845, %v852_v50  }
 0x3cd   : > { %524 = vperm.xlu1 %845, %v854_v51  }
 0x413   : > { %v506_v52 = vpop.permute.xlu1 %505 }
 0x414   : > { %v508_v53 = vsub.f32 %v493_v41, %v506_v52 }
 0x416   : > { %v509_v54 = vmul.f32 1.442695, %v508_v53 }
 0x418   : > { %855 = vpow2.f32 %v509_v54 }
 0x422   : > { %v856_v55 = vpop.eup %855 }
 0x423   : > { %v511_v56 = vsel %vm983_vm2, %v856_v55, 0.0 }
 0x424   : > { %v515_v57 = vsel %vm361_vm3, %v511_v56, 0.0  ;;  %v528_v58 = vpack.c.bf16 %v511_v56, %v511_v56 }
 0x425   : > { %516 = vadd.xlane.f32.xlu0 %v515_v57 }
 0x426   : > { %811 = vmatmul.mubr.msk.bf16.vlgmr.msra.gmra.mrb[4].mxu0 %vm361_vm3, %v528_v58 }
 0x445   : > { %v382_v61 = vpop.xlane.xlu1 %381 }
 0x446   : > { %v383_v62 = vadd.f32 %v382_v61, %v379_v60 }
 0x448   : > { %385 = vst.msk [vmem:[#allocation3] sm:$0xff] %vm300_vm1, %v383_v62 }
 0x449   : > { %v390_v15 = vpop.permute.xlu1 %389 }
 0x44a   : > { %v392_v17 = vmul.f32 0.0, %v390_v15 }
 0x44c   : > { %v441_v20 = vadd.f32 %v1001_v32, %v392_v17 }
 0x44d   : > { %v525_v16 = vpop.permute.xlu1 %524 }
 0x44e   : > { %v527_v18 = vmul.f32 0.0, %v525_v16 }
 0x44f   : > { %v584_v63 = vld [vmem:[#allocation3] sm:$0xff] }
 0x450   : > { %v586_v0 = vmax.f32 %v584_v63, 1e-30  ;;  %vm585_vm5 = vcmp.gt.f32.partialorder %v584_v63, 0.0 }
 0x452   : > { %857 = vrcp.f32 %v586_v0 }
 0x45c   : > { %v858_v1 = vpop.eup %857 }
 0x45d   : > { %v588_v2 = vsel %vm585_vm5, %v858_v1, 0.0 }
 0x45e   : > { %592 = vperm.xlu1 %845, %v588_v2  }
 0x4b2   : > { %v517_v5 = vpop.xlane.xlu0 %516 }
 0x4b3   : > { %v518_v6 = vadd.f32 %v517_v5, %v514_v4 }
 0x4b5   : > { %519 = vst.msk [vmem:[#allocation3 + $0x8] sm:$0xff] %vm300_vm1, %v518_v6 }
 0x4bc   : > { %v597_v7 = vld [vmem:[#allocation3 + $0x8] sm:$0xff] }
 0x4bd   : > { %v599_v8 = vmax.f32 %v597_v7, 1e-30  ;;  %vm598_vm6 = vcmp.gt.f32.partialorder %v597_v7, 0.0 }
 0x4bf   : > { %859 = vrcp.f32 %v599_v8 }
 0x4c9   : > { %v860_v9 = vpop.eup %859 }
 0x4ca   : > { %v601_v10 = vsel %vm598_vm6, %v860_v9, 0.0 }
 0x4cb   : > { %605 = vperm.xlu0 %844, %v601_v10  }
 0x4dd   : > { %v593_v19 = vpop.permute.xlu1 %592 }
 0x4de   : > { %v595_v23 = vmul.f32 %v593_v19, %v441_v20 }
 0x4f9   : > { %v572_v11 = vpop.f32.mrb[4].mxu0 }
 0x4fa   : > { %v812_v12 = vpop.f32.mrb[5].mxu0  ;;  %v578_v21 = vadd.f32 %v572_v11, %v527_v18 }
 0x4fb   : > { %v575_v13 = vpop.f32.mrb[6].mxu0 }
 0x4fc   : > { %v813_v14 = vpop.f32.mrb[7].mxu0 }
 0x54a   : > { %v606_v22 = vpop.permute.xlu0 %605 }
 0x54b   : > { %v608_v24 = vmul.f32 %v606_v22, %v578_v21 }
 0x54d   : > { %v781_v25 = vpack.c.bf16 %v608_v24, %v595_v23 }
 0x54f   : > { %616 = vst [vmem:[%s294_s12] sm:$0xff] %v781_v25 }
 0x550 PF: > { %s20_s22 = sadd.s32 1, %s897_s22   ;;  %s1035_s20 = smov %s893_s21 }
 0x551   : > { %p17_p10 = scmp.ge.s32.totalorder %s20_s22, 4   ;;  %s1036_s21 = smov %s1038_s0 }
 0x553   :  { %19 = sbr.rel (!%p17_p10) target bundleno = 17 (0x11), region = 79 }

// kernel: _lambda_.43
= control target key start
LH: loop header
LB: loop body
LE: loop exit
PB: predicated region body
PF: predicated region fallthrough
CT: control target
= control target key end

     0   :  { %8 = vsyncpa [#allocation3], 0  ;;  %s748_s12 = smov 0   ;;  %s1056_s0 = inlined_call_operand.vmem [shape: bf16[2,24,256], index: 0, kind: input, shape index: {}]   ;;  %s1057_s1 = inlined_call_operand.vmem [shape: f32[15,256], index: 1, kind: input, shape index: {}]   ;;  %s1058_s2 = inlined_call_operand.hbm [shape: f32[1,256], index: 2, kind: input, shape index: {}]   ;;  %s1059_s3 = inlined_call_operand.vmem [shape: bf16[2,8,256], index: 3, kind: output, shape index: {}]  }
   0x1 LB: > { %s754_s13 = sadd.s32 4294967295, %s725_s12   ;;  %p630_p0 = scmp.ge.s32.totalorder %s725_s12, 1  ;;  %s725_s12 = sphi %s748_s12, %s14_s12  }
   0x2   : > { %p113_p1 = scmp.lt.s32.totalorder %s725_s12, 3  ;;  %p1060_p3 = scmp.eq.s32.totalorder %s754_s13, 0 }
   0x3   : > { %s727_s15 = smov [#allocation2]   ;;  %s687_s20 = scalar_lea.hbm %s1058_s2, 32 }
   0x4   : > { %p758_p2 = pnand %p630_p0, %p113_p1  ;;  %s129_s16 = sshll.u32 %s727_s15, 4  ;;  %s130_s16 = int_to_ptr.vmem [resolvable:$true] %s129_s16 }
   0x5   : > { %p688_p6 = scmp.ne.s32.totalorder %s1058_s2, %s687_s20  ;;  %p694_p10 = scmp.lt.u32.totalorder %s687_s20, %s1058_s2 }
   0x6   : > { %s1062_s14 = scalar_select %p758_p2, 1, 0 }
   0x7   : > { %p664_p4 = pneg %p758_p2 }
   0x9   : > { %p767_p5 = pnand %p1060_p3, %p664_p4 }
   0xb   : > { %p689_p7 = pneg %p767_p5 }
   0xd   : > { %p690_p8 = pnand %p689_p7, %p688_p6 }
   0xf   : > { %p691_p9 = pneg %p690_p8 }
  0x11   : > { %p696_p11 = pnand %p694_p10, %p691_p9 }
  0x13   : > { %699 = shalt.err (!%p696_p11)
}
  0x14   : > { %s700_s25 = scalar_lea.vmem %s130_s16, 32  ;;  %p708_p1 = scmp.lt.s32.totalorder %s130_s16, %s130_s16 }
  0x15   : > { %p701_p12 = scmp.ne.s32.totalorder %s130_s16, %s700_s25  ;;  %p709_p4 = scmp.lt.s32.totalorder %s700_s25, %s700_s25 }
  0x17   : > { %p703_p13 = pnand %p701_p12, %p689_p7  ;;  %p710_p3 = por %p709_p4, %p708_p1 }
  0x19   : > { %p704_p0 = pneg %p703_p13 }
  0x1b   : > { %p711_p2 = pnand %p710_p3, %p704_p0 }
  0x1d   : > { %714 = shalt.err (!%p711_p2)
}
  0x1e   : > { %667 = dma.hbm_to_vmem [thread:$0]  (!%p767_p5), %s1058_s2, 32, %s130_s16, [#allocation3]  }
  0x1f   : > { %p1064_p6 = scmp.ne.s32.totalorder %s1062_s14, 0 }
  0x20   : > { %p1065_p8 = scmp.eq.s32.totalorder (!%p1064_p6), %s754_s13, 0 }
  0x21   : > { %150 = sbr.rel (%p1064_p6) target bundleno = 126 (0x7e), region = 32 }
  0x28   : > { %720 = dma.done.wait (%p1065_p8), [#allocation3], 32   ;;  %p1066_p7 = pmov %p1065_p8 }
  0x29   : > { %p174_p9 = scmp.lt.s32.totalorder %s754_s13, 1  ;;  %v195_v0 = vlaneseq  ;;  %v193_v11 = vld [vmem:[%s1057_s1] ss:$8 sm:$0x3] }
  0x2a   : > { %722 = vsyncadd (%p1066_p7), [#allocation3], 4294967264  ;;  %v638_v12 = vld [vmem:[%s1057_s1 + $0x1] ss:$8 sm:$0x3] }
  0x2b   : > { %s1068_s13 = smov (!%p174_p9, %s754_s13), 1  ;;  %v797_v1 = vshrl.u32 %v195_v0, 7  ;;  %v639_v25 = vld [vmem:[%s1057_s1 + $0x2] ss:$8 sm:$0x3] }
  0x2c   : > { %s659_s28 = smul.u32 24, %s1068_s13  ;;  %v640_v38 = vld [vmem:[%s1057_s1 + $0x3] ss:$8 sm:$0x3]  ;;  %s657_s10 = sshll.u32 %s1068_s13, 3 }
  0x2d   : > { %v801_v2 = vsub.s32 0, %v797_v1  ;;  %v804_v3 = vsub.s32 1, %v797_v1  ;;  %vm215_vm0 = vcmp.lt.s32.totalorder %v797_v1, 7  ;;  %vm239_vm1 = vcmp.lt.s32.totalorder %v797_v1, 6  ;;  %s183_s15 = scalar_lea.vmem %s1059_s3, %s657_s10 }
  0x2e   : > { %s178_s4 = scalar_lea.vmem %s1056_s0, %s659_s28  ;;  %vm263_vm2 = vcmp.lt.s32.totalorder %v797_v1, 5  ;;  %vm287_vm3 = vcmp.lt.s32.totalorder %v797_v1, 4  ;;  %vm311_vm4 = vcmp.lt.s32.totalorder %v797_v1, 3  ;;  %vm335_vm5 = vcmp.lt.s32.totalorder %v797_v1, 2 }
  0x2f   : > { %v184_v4 = vld [vmem:[%s178_s4] sm:$0xff]  ;;  %v185_v5 = vld [vmem:[%s178_s4 + $0x8] sm:$0xff]  ;;  %v186_v6 = vld [vmem:[%s178_s4 + $0x10] sm:$0xff]  ;;  %v198_v15 = vrot.slane %v193_v11, %v801_v2  ;;  %v202_v16 = vrot.slane %v193_v11, %v804_v3  ;;  %v224_v23 = vrot.slane %v638_v12, %v801_v2  ;;  %v228_v24 = vrot.slane %v638_v12, %v804_v3 }
  0x30   : > { %v812_v7 = vunpack.c.l.bf16 %v184_v4  ;;  %v814_v8 = vunpack.c.h.bf16 %v184_v4  ;;  %v816_v9 = vunpack.c.l.bf16 %v185_v5  ;;  %v818_v10 = vunpack.c.h.bf16 %v185_v5  ;;  %v641_v51 = vld [vmem:[%s1057_s1 + $0x4] ss:$8 sm:$0x3]  ;;  %v642_v0 = vld [vmem:[%s1057_s1 + $0x5] ss:$8 sm:$0x3] }
  0x31   : > { %v826_v13 = vunpack.c.l.bf16 %v186_v6  ;;  %v828_v14 = vunpack.c.h.bf16 %v186_v6  ;;  %v248_v34 = vrot.slane %v639_v25, %v801_v2  ;;  %v252_v35 = vrot.slane %v639_v25, %v804_v3 }
  0x32   : > { %v209_v17 = vrot.slane %v812_v7, 1  ;;  %v210_v18 = vrot.slane %v814_v8, 1  ;;  %v211_v19 = vrot.slane %v816_v9, 1  ;;  %v212_v20 = vrot.slane %v818_v10, 1 }
  0x33   : > { %v205_v21 = vmul.f32 %v198_v15, %v812_v7  ;;  %v206_v22 = vmul.f32 %v202_v16, %v814_v8  ;;  %v235_v28 = vrot.slane %v812_v7, 2  ;;  %v236_v29 = vrot.slane %v814_v8, 2 }
  0x34   : > { %v216_v26 = vsel %vm215_vm0, %v209_v17, %v211_v19  ;;  %v217_v27 = vsel %vm215_vm0, %v210_v18, %v212_v20  ;;  %v237_v32 = vrot.slane %v816_v9, 2  ;;  %v238_v33 = vrot.slane %v818_v10, 2 }
  0x35   : > { %v231_v30 = vmul.f32 %v224_v23, %v216_v26  ;;  %v232_v31 = vmul.f32 %v228_v24, %v217_v27  ;;  %v259_v36 = vrot.slane %v812_v7, 3  ;;  %v260_v37 = vrot.slane %v814_v8, 3  ;;  %v643_v24 = vld [vmem:[%s1057_s1 + $0x6] ss:$8 sm:$0x3] }
  0x36   : > { %v240_v41 = vsel %vm239_vm1, %v235_v28, %v237_v32  ;;  %v241_v42 = vsel %vm239_vm1, %v236_v29, %v238_v33  ;;  %v261_v45 = vrot.slane %v816_v9, 3  ;;  %v262_v46 = vrot.slane %v818_v10, 3 }
  0x37   : > { %v233_v39 = vadd.f32 %v231_v30, %v205_v21  ;;  %v234_v40 = vadd.f32 %v232_v31, %v206_v22  ;;  %v255_v43 = vmul.f32 %v248_v34, %v240_v41  ;;  %v256_v44 = vmul.f32 %v252_v35, %v241_v42  ;;  %v644_v35 = vld [vmem:[%s1057_s1 + $0x7] ss:$8 sm:$0x3] }
  0x38   : > { %v272_v47 = vrot.slane %v640_v38, %v801_v2  ;;  %v276_v48 = vrot.slane %v640_v38, %v804_v3  ;;  %v283_v49 = vrot.slane %v812_v7, 4  ;;  %v284_v50 = vrot.slane %v814_v8, 4 }
  0x39   : > { %v257_v52 = vadd.f32 %v255_v43, %v233_v39  ;;  %v258_v53 = vadd.f32 %v256_v44, %v234_v40  ;;  %v264_v54 = vsel %vm263_vm2, %v259_v36, %v261_v45  ;;  %v265_v55 = vsel %vm263_vm2, %v260_v37, %v262_v46  ;;  %v645_v40 = vld [vmem:[%s1057_s1 + $0x10] ss:$8 sm:$0x3] }
  0x3a   : > { %v279_v56 = vmul.f32 %v272_v47, %v264_v54  ;;  %v280_v57 = vmul.f32 %v276_v48, %v265_v55  ;;  %v285_v58 = vrot.slane %v816_v9, 4  ;;  %v286_v59 = vrot.slane %v818_v10, 4 }
  0x3b   : > { %vm359_vm6 = vcmp.lt.s32.totalorder %v797_v1, 1  ;;  %v296_v60 = vrot.slane %v641_v51, %v801_v2  ;;  %v300_v61 = vrot.slane %v641_v51, %v804_v3  ;;  %v307_v62 = vrot.slane %v812_v7, 5 }
  0x3c   : > { %v308_v63 = vrot.slane %v814_v8, 5  ;;  %v281_v4 = vadd.f32 %v279_v56, %v257_v52  ;;  %v282_v5 = vadd.f32 %v280_v57, %v258_v53  ;;  %v288_v6 = vsel %vm287_vm3, %v283_v49, %v285_v58  ;;  %v646_v53 = vld [vmem:[%s1057_s1 + $0x11] ss:$8 sm:$0x3] }
  0x3d   : > { %v289_v11 = vsel %vm287_vm3, %v284_v50, %v286_v59  ;;  %v303_v12 = vmul.f32 %v296_v60, %v288_v6  ;;  %v309_v16 = vrot.slane %v816_v9, 5  ;;  %v310_v17 = vrot.slane %v818_v10, 5 }
  0x3e   : > { %v304_v15 = vmul.f32 %v300_v61, %v289_v11  ;;  %v320_v18 = vrot.slane %v642_v0, %v801_v2  ;;  %v324_v21 = vrot.slane %v642_v0, %v804_v3  ;;  %v331_v22 = vrot.slane %v812_v7, 6  ;;  %v647_v0 = vld [vmem:[%s1057_s1 + $0x12] ss:$8 sm:$0x3] }
  0x3f   : > { %v332_v23 = vrot.slane %v814_v8, 6  ;;  %v305_v25 = vadd.f32 %v303_v12, %v281_v4  ;;  %v312_v27 = vsel %vm311_vm4, %v307_v62, %v309_v16  ;;  %v313_v28 = vsel %vm311_vm4, %v308_v63, %v310_v17 }
  0x40   : > { %v306_v26 = vadd.f32 %v304_v15, %v282_v5  ;;  %v327_v29 = vmul.f32 %v320_v18, %v312_v27  ;;  %v328_v30 = vmul.f32 %v324_v21, %v313_v28  ;;  %v333_v31 = vrot.slane %v816_v9, 6 }
  0x41   : > { %v334_v34 = vrot.slane %v818_v10, 6  ;;  %v344_v36 = vrot.slane %v643_v24, %v801_v2  ;;  %v348_v37 = vrot.slane %v643_v24, %v804_v3  ;;  %v355_v38 = vrot.slane %v812_v7, 7 }
  0x42   : > { %v356_v39 = vrot.slane %v814_v8, 7  ;;  %v329_v41 = vadd.f32 %v327_v29, %v305_v25  ;;  %v330_v42 = vadd.f32 %v328_v30, %v306_v26  ;;  %v336_v43 = vsel %vm335_vm5, %v331_v22, %v333_v31  ;;  %v648_v30 = vld [vmem:[%s1057_s1 + $0x13] ss:$8 sm:$0x3] }
  0x43   : > { %v337_v44 = vsel %vm335_vm5, %v332_v23, %v334_v34  ;;  %v351_v47 = vmul.f32 %v344_v36, %v336_v43  ;;  %v357_v8 = vrot.slane %v816_v9, 7  ;;  %v358_v48 = vrot.slane %v818_v10, 7 }
  0x44   : > { %v352_v7 = vmul.f32 %v348_v37, %v337_v44  ;;  %v368_v49 = vrot.slane %v644_v35, %v801_v2  ;;  %v372_v50 = vrot.slane %v644_v35, %v804_v3  ;;  %v385_v51 = vrot.slane %v645_v40, %v801_v2 }
  0x45   : > { %v389_v52 = vrot.slane %v645_v40, %v804_v3  ;;  %v353_v54 = vadd.f32 %v351_v47, %v329_v41  ;;  %v360_v56 = vsel %vm359_vm6, %v355_v38, %v357_v8  ;;  %v361_v57 = vsel %vm359_vm6, %v356_v39, %v358_v48  ;;  %v649_v41 = vld [vmem:[%s1057_s1 + $0x14] ss:$8 sm:$0x3] }
  0x46   : > { %v354_v55 = vadd.f32 %v352_v7, %v330_v42  ;;  %v375_v60 = vmul.f32 %v368_v49, %v360_v56  ;;  %v376_v61 = vmul.f32 %v372_v50, %v361_v57  ;;  %v392_v62 = vmul.f32 %v385_v51, %v816_v9 }
  0x47   : > { %v393_v63 = vmul.f32 %v389_v52, %v818_v10  ;;  %v396_v4 = vrot.slane %v826_v13, 1  ;;  %v397_v5 = vrot.slane %v828_v14, 1  ;;  %v406_v6 = vrot.slane %v646_v53, %v801_v2 }
  0x48   : > { %v410_v11 = vrot.slane %v646_v53, %v804_v3  ;;  %v377_v12 = vadd.f32 %v375_v60, %v353_v54  ;;  %v378_v15 = vadd.f32 %v376_v61, %v354_v55  ;;  %v417_v18 = vrot.slane %v826_v13, 2  ;;  %v651_v61 = vld [vmem:[%s1057_s1 + $0x16] ss:$8 sm:$0x3] }
  0x49   : > { %v418_v21 = vrot.slane %v828_v14, 2  ;;  %v398_v22 = vsel %vm215_vm0, %v211_v19, %v396_v4  ;;  %v399_v23 = vsel %vm215_vm0, %v212_v20, %v397_v5  ;;  %v427_v24 = vrot.slane %v647_v0, %v801_v2 }
  0x4a   : > { %v431_v25 = vrot.slane %v647_v0, %v804_v3  ;;  %v394_v26 = vadd.f32 %v392_v62, %v377_v12  ;;  %v395_v27 = vadd.f32 %v393_v63, %v378_v15  ;;  %v413_v28 = vmul.f32 %v406_v6, %v398_v22  ;;  %v522_v0 = vld [vmem:[#allocation2] sm:$0x3] }
  0x4b   : > { %v414_v29 = vmul.f32 %v410_v11, %v399_v23  ;;  %v419_v19 = vsel %vm239_vm1, %v237_v32, %v417_v18  ;;  %v420_v20 = vsel %vm239_vm1, %v238_v33, %v418_v21  ;;  %v438_v35 = vrot.slane %v826_v13, 3 }
  0x4c   : > { %v439_v36 = vrot.slane %v828_v14, 3  ;;  %v415_v37 = vadd.f32 %v413_v28, %v394_v26  ;;  %v434_v39 = vmul.f32 %v427_v24, %v419_v19  ;;  %v435_v40 = vmul.f32 %v431_v25, %v420_v20 }
  0x4d   : > { %v416_v38 = vadd.f32 %v414_v29, %v395_v27  ;;  %v440_v32 = vsel %vm263_vm2, %v261_v45, %v438_v35  ;;  %v448_v42 = vrot.slane %v648_v30, %v801_v2  ;;  %v452_v43 = vrot.slane %v648_v30, %v804_v3 }
  0x4e   : > { %v441_v33 = vsel %vm263_vm2, %v262_v46, %v439_v36  ;;  %v436_v44 = vadd.f32 %v434_v39, %v415_v37  ;;  %v459_v7 = vrot.slane %v826_v13, 4  ;;  %v460_v8 = vrot.slane %v828_v14, 4  ;;  %v650_v46 = vld [vmem:[%s1057_s1 + $0x15] ss:$8 sm:$0x3] }
  0x4f   : > { %v437_v47 = vadd.f32 %v435_v40, %v416_v38  ;;  %v455_v48 = vmul.f32 %v448_v42, %v440_v32  ;;  %v456_v49 = vmul.f32 %v452_v43, %v441_v33  ;;  %v469_v50 = vrot.slane %v649_v41, %v801_v2 }
  0x50   : > { %v473_v45 = vrot.slane %v649_v41, %v804_v3  ;;  %v461_v51 = vsel %vm287_vm3, %v285_v58, %v459_v7  ;;  %v462_v52 = vsel %vm287_vm3, %v286_v59, %v460_v8  ;;  %v480_v53 = vrot.slane %v826_v13, 5 }
  0x51   : > { %v481_v54 = vrot.slane %v828_v14, 5  ;;  %v457_v55 = vadd.f32 %v455_v48, %v436_v44  ;;  %v458_v56 = vadd.f32 %v456_v49, %v437_v47  ;;  %v476_v57 = vmul.f32 %v469_v50, %v461_v51 }
  0x52   : > { %v477_v60 = vmul.f32 %v473_v45, %v462_v52  ;;  %v482_v58 = vsel %vm311_vm4, %v309_v16, %v480_v53  ;;  %v490_v62 = vrot.slane %v650_v46, %v801_v2  ;;  %v494_v63 = vrot.slane %v650_v46, %v804_v3 }
  0x53   : > { %v483_v59 = vsel %vm311_vm4, %v310_v17, %v481_v54  ;;  %v478_v4 = vadd.f32 %v476_v57, %v457_v55  ;;  %v501_v6 = vrot.slane %v826_v13, 6  ;;  %v502_v11 = vrot.slane %v828_v14, 6 }
  0x54   : > { %v479_v5 = vadd.f32 %v477_v60, %v458_v56  ;;  %v497_v12 = vmul.f32 %v490_v62, %v482_v58  ;;  %v498_v15 = vmul.f32 %v494_v63, %v483_v59  ;;  %v511_v16 = vrot.slane %v651_v61, %v801_v2 }
  0x55   : > { %v515_v18 = vrot.slane %v651_v61, %v804_v3  ;;  %v503_v17 = vsel %vm335_vm5, %v333_v31, %v501_v6  ;;  %v504_v21 = vsel %vm335_vm5, %v334_v34, %v502_v11  ;;  %v527_v13 = vrot.slane %v522_v0, %v801_v2 }
  0x56   : > { %v531_v14 = vrot.slane %v522_v0, %v804_v3  ;;  %v499_v22 = vadd.f32 %v497_v12, %v478_v4  ;;  %v500_v23 = vadd.f32 %v498_v15, %v479_v5  ;;  %v518_v24 = vmul.f32 %v511_v16, %v503_v17 }
  0x57   : > { %v519_v25 = vmul.f32 %v515_v18, %v504_v21 }
  0x58   : > { %v520_v26 = vadd.f32 %v518_v24, %v499_v22 }
  0x59   : > { %v521_v27 = vadd.f32 %v519_v25, %v500_v23 }
  0x5a   : > { %v534_v28 = vadd.f32 %v527_v13, %v520_v26 }
  0x5b   : > { %v535_v9 = vadd.f32 %v531_v14, %v521_v27 }
  0x5c   : > { %v652_v29 = vmul.f32 -0.999995, %v534_v28  ;;  %v536_v3 = vmul.f32 0.999995, %v534_v28 }
  0x5d   : > { %v653_v31 = vmul.f32 -0.999995, %v535_v9  ;;  %v537_v20 = vmul.f32 0.999995, %v535_v9 }
  0x5e   : > { %v540_v30 = vmul.f32 1.442695, %v652_v29 }
  0x5f   : > { %v542_v10 = vmul.f32 1.442695, %v653_v31 }
  0x60   : > { %679 = vpow2.f32 %v540_v30 }
  0x61   : > { %681 = vpow2.f32 %v542_v10 }
  0x6a   : > { %v680_v1 = vpop.eup %679 }
  0x6b   : > { %v682_v34 = vpop.eup %681  ;;  %v544_v2 = vadd.f32 1.0, %v680_v1 }
  0x6c   : > { %v545_v19 = vadd.f32 1.0, %v682_v34 }
  0x6d   : > { %683 = vrcp.f32 %v544_v2 }
  0x6e   : > { %685 = vrcp.f32 %v545_v19 }
  0x77   : > { %v684_v35 = vpop.eup %683 }
  0x78   : > { %v686_v36 = vpop.eup %685  ;;  %v550_v37 = vmul.f32 %v684_v35, %v536_v3 }
  0x79   : > { %v551_v38 = vmul.f32 %v686_v36, %v537_v20 }
  0x7b   : > { %v658_v39 = vpack.c.bf16 %v551_v38, %v550_v37 }
  0x7d   : > { %560 = vst [vmem:[%s183_s15] sm:$0xff] %v658_v39 }
  0x7e PF: > { %s14_s12 = sadd.s32 1, %s725_s12  }
  0x7f   : > { %p11_p2 = scmp.ge.s32.totalorder %s14_s12, 4  }
  0x81   :  { %13 = sbr.rel (!%p11_p2) target bundleno = 1 (0x1), region = 81 }
  0x88   :  { %582 = vsyncpa [#allocation3], 1 }
  0x89   :  { %584 = vsyncpa [#allocation3 + $0x1], 1 }

// kernel: _lambda_.42
= control target key start
LH: loop header
LB: loop body
LE: loop exit
PB: predicated region body
PF: predicated region fallthrough
CT: control target
= control target key end

     0   :  { %v841_v8 = vmov 0   ;;  %s1145_s0 = inlined_call_operand.vmem [shape: bf16[16,256], index: 0, kind: input, shape index: {}]   ;;  %s1146_s3 = inlined_call_operand.vmem [shape: f32[16,1], index: 3, kind: input, shape index: {}]   ;;  %s1147_s4 = inlined_call_operand.vmem [shape: bf16[256,512], index: 4, kind: input, shape index: {}]   ;;  %s1148_s1 = inlined_call_operand.vmem [shape: f32[1,256], index: 1, kind: input, shape index: {}]   ;;  %s1149_s2 = inlined_call_operand.vmem [shape: f32[1,256], index: 2, kind: input, shape index: {}]   ;;  %s1150_s5 = inlined_call_operand.vmem [shape: f32[1,512], index: 5, kind: input, shape index: {}]   ;;  %s1151_s6 = inlined_call_operand.vmem [shape: bf16[16,256], index: 6, kind: output, shape index: {}]  }
   0x1   :  { %v880_v0 = vld [vmem:[%s1145_s0] sm:$0xff]  ;;  %v885_v1 = vld [vmem:[%s1145_s0 + $0x8] sm:$0xff]  ;;  %723 = vset.pattern.permute.xlu0 %v841_v8  ;;  %724 = vset.pattern.permute.xlu1 %v841_v8 }
   0x2   :  { %v25_v2 = vunpack.c.l.bf16 %v880_v0  ;;  %v26_v3 = vunpack.c.h.bf16 %v880_v0  ;;  %v27_v4 = vunpack.c.l.bf16 %v885_v1  ;;  %v28_v5 = vunpack.c.h.bf16 %v885_v1  ;;  %v94_v9 = vld [vmem:[%s1146_s3] sm:$0xff]  ;;  %v727_v11 = vld [vmem:[%s1147_s4 + $0xc] ss:$16 sps:$4 sm:$0xff]   ;;  %v730_v13 = vld [vmem:[%s1147_s4 + $0x8] ss:$16 sps:$4 sm:$0xff]  }
   0x3   :  { %v725_v10 = vld [vmem:[%s1147_s4 + $0x4] ss:$16 sps:$4 sm:$0xff]   ;;  %v729_v12 = vld [vmem:[%s1147_s4] ss:$16 sps:$4 sm:$0xff]   ;;  %561 = vmatprep.subr.bf16.mxu1 %v727_v11  ;;  %v733_v15 = vld [vmem:[%s1147_s4 + $0x2c] ss:$16 sps:$4 sm:$0xff]  }
   0x4   :  { %v31_v6 = vadd.f32 %v26_v3, %v25_v2  ;;  %v34_v7 = vadd.f32 %v28_v5, %v27_v4  ;;  %518 = vmatprep.subr.bf16.mxu0 %v725_v10  ;;  %v731_v14 = vld [vmem:[%s1147_s4 + $0x24] ss:$16 sps:$4 sm:$0xff]   ;;  %562 = vmatpush1.bf16.msra.mxu1 %v730_v13  ;;  %v735_v16 = vld [vmem:[%s1147_s4 + $0x20] ss:$16 sps:$4 sm:$0xff]   ;;  %v736_v17 = vld [vmem:[%s1147_s4 + $0x28] ss:$16 sps:$4 sm:$0xff]  }
   0x5   :  { %519 = vmatpush1.bf16.msra.mxu0 %v729_v12  ;;  %563 = vmatprep.subr.bf16.mxu1 %v733_v15  ;;  %v737_v18 = vld [vmem:[%s1147_s4 + $0x44] ss:$16 sps:$4 sm:$0xff]   ;;  %v739_v19 = vld [vmem:[%s1147_s4 + $0x4c] ss:$16 sps:$4 sm:$0xff]   ;;  %v741_v20 = vld [vmem:[%s1147_s4 + $0x40] ss:$16 sps:$4 sm:$0xff]  }
   0x6   :  { %32 = vadd.xlane.f32.xlu0 %v31_v6  ;;  %520 = vmatprep.subr.bf16.mxu0 %v731_v14  ;;  %v742_v21 = vld [vmem:[%s1147_s4 + $0x48] ss:$16 sps:$4 sm:$0xff]   ;;  %v743_v22 = vld [vmem:[%s1147_s4 + $0x64] ss:$16 sps:$4 sm:$0xff]   ;;  %v745_v23 = vld [vmem:[%s1147_s4 + $0x6c] ss:$16 sps:$4 sm:$0xff]  }
   0x7   :  { %v747_v24 = vld [vmem:[%s1147_s4 + $0x60] ss:$16 sps:$4 sm:$0xff]   ;;  %v748_v25 = vld [vmem:[%s1147_s4 + $0x68] ss:$16 sps:$4 sm:$0xff]   ;;  %v749_v26 = vld [vmem:[%s1147_s4 + $0x84] ss:$16 sps:$4 sm:$0xff]  }
   0x8   :  { %564 = vmatpush1.bf16.msra.mxu1 %v736_v17  ;;  %v751_v27 = vld [vmem:[%s1147_s4 + $0x8c] ss:$16 sps:$4 sm:$0xff]   ;;  %v753_v28 = vld [vmem:[%s1147_s4 + $0x80] ss:$16 sps:$4 sm:$0xff]   ;;  %v754_v29 = vld [vmem:[%s1147_s4 + $0x88] ss:$16 sps:$4 sm:$0xff]  }
   0x9   :  { %521 = vmatpush1.bf16.msra.mxu0 %v735_v16  ;;  %565 = vmatprep.subr.bf16.mxu1 %v739_v19  ;;  %v755_v30 = vld [vmem:[%s1147_s4 + $0xa4] ss:$16 sps:$4 sm:$0xff]   ;;  %v757_v31 = vld [vmem:[%s1147_s4 + $0xac] ss:$16 sps:$4 sm:$0xff]   ;;  %v759_v32 = vld [vmem:[%s1147_s4 + $0xa0] ss:$16 sps:$4 sm:$0xff]  }
   0xa   :  { %35 = vadd.xlane.f32.xlu0 %v34_v7  ;;  %522 = vmatprep.subr.bf16.mxu0 %v737_v18  ;;  %v760_v33 = vld [vmem:[%s1147_s4 + $0xa8] ss:$16 sps:$4 sm:$0xff]   ;;  %v761_v34 = vld [vmem:[%s1147_s4 + $0xc4] ss:$16 sps:$4 sm:$0xff]   ;;  %v763_v35 = vld [vmem:[%s1147_s4 + $0xcc] ss:$16 sps:$4 sm:$0xff]  }
   0xb   :  { %v765_v36 = vld [vmem:[%s1147_s4 + $0xc0] ss:$16 sps:$4 sm:$0xff]   ;;  %v766_v37 = vld [vmem:[%s1147_s4 + $0xc8] ss:$16 sps:$4 sm:$0xff]   ;;  %v767_v38 = vld [vmem:[%s1147_s4 + $0xe4] ss:$16 sps:$4 sm:$0xff]  }
   0xc   :  { %566 = vmatpush1.bf16.msra.mxu1 %v742_v21  ;;  %v769_v39 = vld [vmem:[%s1147_s4 + $0xec] ss:$16 sps:$4 sm:$0xff]   ;;  %v771_v40 = vld [vmem:[%s1147_s4 + $0xe0] ss:$16 sps:$4 sm:$0xff]   ;;  %v772_v41 = vld [vmem:[%s1147_s4 + $0xe8] ss:$16 sps:$4 sm:$0xff]  }
   0xd   :  { %523 = vmatpush1.bf16.msra.mxu0 %v741_v20  ;;  %567 = vmatprep.subr.bf16.mxu1 %v745_v23  ;;  %v773_v42 = vld [vmem:[%s1147_s4 + $0x104] ss:$16 sps:$4 sm:$0xff]   ;;  %v775_v43 = vld [vmem:[%s1147_s4 + $0x10c] ss:$16 sps:$4 sm:$0xff]   ;;  %v777_v44 = vld [vmem:[%s1147_s4 + $0x100] ss:$16 sps:$4 sm:$0xff]  }
   0xe   :  { %524 = vmatprep.subr.bf16.mxu0 %v743_v22  ;;  %v778_v45 = vld [vmem:[%s1147_s4 + $0x108] ss:$16 sps:$4 sm:$0xff]   ;;  %v779_v60 = vld [vmem:[%s1147_s4 + $0x124] ss:$16 sps:$4 sm:$0xff]   ;;  %v781_v61 = vld [vmem:[%s1147_s4 + $0x12c] ss:$16 sps:$4 sm:$0xff]  }
   0xf   :  { %v783_v62 = vld [vmem:[%s1147_s4 + $0x120] ss:$16 sps:$4 sm:$0xff]   ;;  %v784_v63 = vld [vmem:[%s1147_s4 + $0x128] ss:$16 sps:$4 sm:$0xff]   ;;  %v785_v1 = vld [vmem:[%s1147_s4 + $0x144] ss:$16 sps:$4 sm:$0xff]  }
  0x10   :  { %568 = vmatpush1.bf16.msra.mxu1 %v748_v25  ;;  %v95_v0 = vld [vmem:[%s1146_s3 + $0x8] sm:$0xff]  ;;  %v795_v7 = vld [vmem:[%s1147_s4 + $0x160] ss:$16 sps:$4 sm:$0xff]   ;;  %v803_v13 = vld [vmem:[%s1147_s4 + $0x1a4] ss:$16 sps:$4 sm:$0xff]  }
  0x11   :  { %525 = vmatpush1.bf16.msra.mxu0 %v747_v24  ;;  %569 = vmatprep.subr.bf16.mxu1 %v751_v27  ;;  %v793_v6 = vld [vmem:[%s1147_s4 + $0x16c] ss:$16 sps:$4 sm:$0xff]   ;;  %v796_v8 = vld [vmem:[%s1147_s4 + $0x168] ss:$16 sps:$4 sm:$0xff]   ;;  %v801_v11 = vld [vmem:[%s1147_s4 + $0x180] ss:$16 sps:$4 sm:$0xff]   ;;  %v65_v27 = vlaneseq }
  0x12   :  { %526 = vmatprep.subr.bf16.mxu0 %v749_v26  ;;  %v799_v10 = vld [vmem:[%s1147_s4 + $0x18c] ss:$16 sps:$4 sm:$0xff]   ;;  %v802_v12 = vld [vmem:[%s1147_s4 + $0x188] ss:$16 sps:$4 sm:$0xff]   ;;  %v807_v15 = vld [vmem:[%s1147_s4 + $0x1a0] ss:$16 sps:$4 sm:$0xff]  }
  0x13   :  { %v805_v14 = vld [vmem:[%s1147_s4 + $0x1ac] ss:$16 sps:$4 sm:$0xff]   ;;  %v808_v16 = vld [vmem:[%s1147_s4 + $0x1a8] ss:$16 sps:$4 sm:$0xff]   ;;  %v809_v17 = vld [vmem:[%s1147_s4 + $0x1c4] ss:$16 sps:$4 sm:$0xff]  }
  0x14   :  { %570 = vmatpush1.bf16.msra.mxu1 %v754_v29  ;;  %v811_v18 = vld [vmem:[%s1147_s4 + $0x1cc] ss:$16 sps:$4 sm:$0xff]   ;;  %v813_v19 = vld [vmem:[%s1147_s4 + $0x1c0] ss:$16 sps:$4 sm:$0xff]   ;;  %v814_v20 = vld [vmem:[%s1147_s4 + $0x1c8] ss:$16 sps:$4 sm:$0xff]  }
  0x15   :  { %527 = vmatpush1.bf16.msra.mxu0 %v753_v28  ;;  %571 = vmatprep.subr.bf16.mxu1 %v757_v31  ;;  %v815_v21 = vld [vmem:[%s1147_s4 + $0x1e4] ss:$16 sps:$4 sm:$0xff]   ;;  %v817_v22 = vld [vmem:[%s1147_s4 + $0x1ec] ss:$16 sps:$4 sm:$0xff]   ;;  %v819_v23 = vld [vmem:[%s1147_s4 + $0x1e0] ss:$16 sps:$4 sm:$0xff]  }
  0x16   :  { %528 = vmatprep.subr.bf16.mxu0 %v755_v30  ;;  %v820_v24 = vld [vmem:[%s1147_s4 + $0x1e8] ss:$16 sps:$4 sm:$0xff]   ;;  %v66_v31 = vshrl.u32 %v65_v27, 7 }
  0x18   :  { %572 = vmatpush1.bf16.msra.mxu1 %v760_v33  ;;  %v67_v33 = vsub.s32 0, %v66_v31 }
  0x19   :  { %529 = vmatpush1.bf16.msra.mxu0 %v759_v32  ;;  %573 = vmatprep.subr.bf16.mxu1 %v763_v35  ;;  %v29_v35 = vld [vmem:[%s1148_s1] sm:$0x3] }
  0x1a   :  { %530 = vmatprep.subr.bf16.mxu0 %v761_v34  ;;  %v1121_v34 = vsub.s32 1, %v66_v31 }
  0x1c   :  { %574 = vmatpush1.bf16.msra.mxu1 %v766_v37  ;;  %v72_v37 = vrot.slane %v29_v35, %v1121_v34 }
  0x1d   :  { %531 = vmatpush1.bf16.msra.mxu0 %v765_v36  ;;  %575 = vmatprep.subr.bf16.mxu1 %v769_v39  ;;  %v68_v36 = vrot.slane %v29_v35, %v67_v33  ;;  %v30_v39 = vld [vmem:[%s1149_s2] sm:$0x3] }
  0x1e   :  { %532 = vmatprep.subr.bf16.mxu0 %v767_v38 }
  0x20   :  { %98 = vperm.xlu0 %723, %v94_v9   ;;  %576 = vmatpush1.bf16.msra.mxu1 %v772_v41  ;;  %v797_v9 = vld [vmem:[%s1147_s4 + $0x184] ss:$16 sps:$4 sm:$0xff]  }
  0x21   :  { %533 = vmatpush1.bf16.msra.mxu0 %v771_v40  ;;  %577 = vmatprep.subr.bf16.mxu1 %v775_v43 }
  0x22   :  { %534 = vmatprep.subr.bf16.mxu0 %v773_v42 }
  0x24   :  { %578 = vmatpush1.bf16.msra.mxu1 %v778_v45  ;;  %v87_v45 = vrot.slane %v30_v39, %v1121_v34 }
  0x25   :  { %535 = vmatpush1.bf16.msra.mxu0 %v777_v44  ;;  %579 = vmatprep.subr.bf16.mxu1 %v781_v61  ;;  %v83_v44 = vrot.slane %v30_v39, %v67_v33 }
  0x26   :  { %536 = vmatprep.subr.bf16.mxu0 %v779_v60 }
  0x28   :  { %580 = vmatpush1.bf16.msra.mxu1 %v784_v63 }
  0x29   :  { %537 = vmatpush1.bf16.msra.mxu0 %v783_v62 }
  0x2a   :  { %538 = vmatprep.subr.bf16.mxu0 %v785_v1  ;;  %v192_v1 = vsub.s32 3, %v66_v31 }
  0x93   :  { %v33_v46 = vpop.xlane.xlu0 %32 }
  0x94   :  { %v38_v47 = vmul.f32 0.00390625, %v33_v46 }
  0x96   :  { %v1012_v48 = vsub.f32 %v25_v2, %v38_v47  ;;  %v1016_v49 = vsub.f32 %v26_v3, %v38_v47  ;;  %v787_v2 = vld [vmem:[%s1147_s4 + $0x14c] ss:$16 sps:$4 sm:$0xff]   ;;  %v789_v3 = vld [vmem:[%s1147_s4 + $0x140] ss:$16 sps:$4 sm:$0xff]  }
  0x97   :  { %v36_v50 = vpop.xlane.xlu0 %35  ;;  %581 = vmatprep.subr.bf16.mxu1 %v787_v2  ;;  %539 = vmatpush1.bf16.msra.mxu0 %v789_v3 }
  0x98   :  { %v39_v51 = vmul.f32 0.00390625, %v36_v50  ;;  %v44_v52 = vmul.f32 %v1012_v48, %v1012_v48  ;;  %v45_v53 = vmul.f32 %v1016_v49, %v1016_v49 }
  0x9a   :  { %v1024_v54 = vsub.f32 %v27_v4, %v39_v51  ;;  %v1028_v55 = vsub.f32 %v28_v5, %v39_v51  ;;  %v48_v56 = vadd.f32 %v45_v53, %v44_v52  ;;  %v790_v4 = vld [vmem:[%s1147_s4 + $0x148] ss:$16 sps:$4 sm:$0xff]   ;;  %v791_v5 = vld [vmem:[%s1147_s4 + $0x164] ss:$16 sps:$4 sm:$0xff]  }
  0x9b   :  { %582 = vmatpush1.bf16.msra.mxu1 %v790_v4  ;;  %540 = vmatprep.subr.bf16.mxu0 %v791_v5 }
  0x9c   :  { %49 = vadd.xlane.f32.xlu1 %v48_v56  ;;  %v46_v57 = vmul.f32 %v1024_v54, %v1024_v54  ;;  %v47_v58 = vmul.f32 %v1028_v55, %v1028_v55  ;;  %583 = vmatprep.subr.bf16.mxu1 %v793_v6 }
  0x9d   :  { %541 = vmatpush1.bf16.msra.mxu0 %v795_v7 }
  0x9e   :  { %v51_v59 = vadd.f32 %v47_v58, %v46_v57  ;;  %542 = vmatprep.subr.bf16.mxu0 %v797_v9 }
  0x9f   :  { %584 = vmatpush1.bf16.msra.mxu1 %v796_v8  ;;  %v99_v57 = vpop.permute.xlu0 %98 }
  0xa0   :  { %52 = vadd.xlane.f32.xlu1 %v51_v59  ;;  %585 = vmatprep.subr.bf16.mxu1 %v799_v10 }
  0xa1   :  { %543 = vmatpush1.bf16.msra.mxu0 %v801_v11 }
  0xa2   :  { %544 = vmatprep.subr.bf16.mxu0 %v803_v13 }
  0xa3   :  { %586 = vmatpush1.bf16.msra.mxu1 %v802_v12 }
  0xa4   :  { %587 = vmatprep.subr.bf16.mxu1 %v805_v14 }
  0xa5   :  { %545 = vmatpush1.bf16.msra.mxu0 %v807_v15 }
  0xa6   :  { %546 = vmatprep.subr.bf16.mxu0 %v809_v17 }
  0xa7   :  { %588 = vmatpush1.bf16.msra.mxu1 %v808_v16 }
  0xa8   :  { %589 = vmatprep.subr.bf16.mxu1 %v811_v18 }
  0xa9   :  { %547 = vmatpush1.bf16.msra.mxu0 %v813_v19 }
  0xaa   :  { %548 = vmatprep.subr.bf16.mxu0 %v815_v21 }
  0xab   :  { %590 = vmatpush1.bf16.msra.mxu1 %v814_v20 }
  0xac   :  { %591 = vmatprep.subr.bf16.mxu1 %v817_v22 }
  0xad   :  { %549 = vmatpush1.bf16.msra.mxu0 %v819_v23 }
  0xaf   :  { %592 = vmatpush1.bf16.msra.mxu1 %v820_v24 }
  0xb1   :  { %103 = vperm.xlu1 %724, %v95_v0  }
 0x129   :  { %v50_v25 = vpop.xlane.xlu1 %49 }
 0x12a   :  { %v54_v26 = vmul.f32 0.00390625, %v50_v25 }
 0x12c   :  { %v56_v28 = vadd.f32 1e-05, %v54_v26 }
 0x12d   :  { %v53_v29 = vpop.xlane.xlu1 %52 }
 0x12e   :  { %821 = vrsqrt.f32 %v56_v28  ;;  %v55_v30 = vmul.f32 0.00390625, %v53_v29 }
 0x130   :  { %v57_v32 = vadd.f32 1e-05, %v55_v30 }
 0x131   :  { %v104_v58 = vpop.permute.xlu1 %103 }
 0x132   :  { %823 = vrsqrt.f32 %v57_v32 }
 0x138   :  { %v822_v38 = vpop.eup %821 }
 0x139   :  { %v60_v40 = vmul.f32 %v822_v38, %v1012_v48  ;;  %v61_v41 = vmul.f32 %v822_v38, %v1016_v49 }
 0x13b   :  { %v75_v42 = vmul.f32 %v68_v36, %v60_v40  ;;  %v76_v43 = vmul.f32 %v72_v37, %v61_v41 }
 0x13c   :  { %v824_v46 = vpop.eup %823 }
 0x13d   :  { %v62_v47 = vmul.f32 %v824_v46, %v1024_v54  ;;  %v63_v50 = vmul.f32 %v824_v46, %v1028_v55  ;;  %v90_v51 = vadd.f32 %v83_v44, %v75_v42  ;;  %v91_v52 = vadd.f32 %v87_v45, %v76_v43  ;;  %v176_v55 = vld [vmem:[%s1150_s5] sm:$0xf] }
 0x13e   :  { %v188_v54 = vsub.s32 2, %v66_v31  ;;  %v181_v2 = vrot.slane %v176_v55, %v67_v33  ;;  %v193_v4 = vrot.slane %v176_v55, %v192_v1  ;;  %v185_v31 = vrot.slane %v176_v55, %v1121_v34 }
 0x13f   :  { %v77_v53 = vmul.f32 %v68_v36, %v62_v47  ;;  %v78_v56 = vmul.f32 %v72_v37, %v63_v50  ;;  %v106_v60 = vmul.f32 %v99_v57, %v90_v51  ;;  %v107_v49 = vmul.f32 %v99_v57, %v91_v52 }
 0x140   :  { %v189_v3 = vrot.slane %v176_v55, %v188_v54 }
 0x141   :  { %v92_v59 = vadd.f32 %v83_v44, %v77_v53  ;;  %v93_v48 = vadd.f32 %v87_v45, %v78_v56 }
 0x143   :  { %v108_v61 = vmul.f32 %v104_v58, %v92_v59  ;;  %v109_v62 = vmul.f32 %v104_v58, %v93_v48 }
 0x145   :  { %v110_v63 = vpack.c.bf16 %v108_v61, %v106_v60  ;;  %v111_v0 = vpack.c.bf16 %v109_v62, %v107_v49 }
 0x147   :  { %550 = vmatprep.mubr.bf16.mxu0 %v111_v0  ;;  %593 = vmatprep.mubr.bf16.mxu1 %v111_v0 }
 0x148   :  { %551 = vmatmul.mubr.bf16.vlgmr.msra.gmra.mrb[0].mxu0 %v110_v63  ;;  %594 = vmatmul.mubr.bf16.vlgmr.msra.gmra.mrb[0].mxu1 %v110_v63 }
 0x21b   :  { %v552_v5 = vpop.f32.mrb[0].mxu0  ;;  %v595_v6 = vpop.f32.mrb[0].mxu1 }
 0x21c   :  { %v553_v7 = vadd.f32 %v552_v5, %v181_v2  ;;  %v596_v8 = vadd.f32 %v595_v6, %v189_v3  ;;  %v554_v9 = vpop.f32.mrb[1].mxu0  ;;  %v597_v10 = vpop.f32.mrb[1].mxu1 }
 0x21d   :  { %v598_v11 = vadd.f32 %v597_v10, %v193_v4  ;;  %v556_v12 = vpop.f32.mrb[2].mxu0  ;;  %v599_v13 = vpop.f32.mrb[2].mxu1  ;;  %v555_v33 = vadd.f32 %v554_v9, %v185_v31 }
 0x21e   :  { %v714_v14 = vmul.f32 -1.442695, %v596_v8  ;;  %v557_v15 = vadd.f32 %v556_v12, %v181_v2  ;;  %v600_v16 = vadd.f32 %v599_v13, %v189_v3  ;;  %v558_v17 = vpop.f32.mrb[3].mxu0  ;;  %v601_v18 = vpop.f32.mrb[3].mxu1 }
 0x21f   :  { %v715_v19 = vmul.f32 -1.442695, %v598_v11  ;;  %v602_v20 = vadd.f32 %v601_v18, %v193_v4  ;;  %v559_v39 = vadd.f32 %v558_v17, %v185_v31 }
 0x220   :  { %825 = vpow2.f32 %v714_v14  ;;  %v716_v21 = vmul.f32 -1.442695, %v600_v16 }
 0x221   :  { %827 = vpow2.f32 %v715_v19  ;;  %v717_v22 = vmul.f32 -1.442695, %v602_v20 }
 0x222   :  { %829 = vpow2.f32 %v716_v21 }
 0x223   :  { %831 = vpow2.f32 %v717_v22 }
 0x22a   :  { %v826_v23 = vpop.eup %825 }
 0x22b   :  { %v828_v24 = vpop.eup %827  ;;  %v616_v25 = vadd.f32 1.0, %v826_v23 }
 0x22c   :  { %v830_v26 = vpop.eup %829  ;;  %v617_v27 = vadd.f32 1.0, %v828_v24 }
 0x22d   :  { %v832_v28 = vpop.eup %831  ;;  %833 = vrcp.f32 %v616_v25  ;;  %v618_v29 = vadd.f32 1.0, %v830_v26 }
 0x22e   :  { %835 = vrcp.f32 %v617_v27  ;;  %v619_v30 = vadd.f32 1.0, %v832_v28 }
 0x22f   :  { %837 = vrcp.f32 %v618_v29 }
 0x230   :  { %839 = vrcp.f32 %v619_v30 }
 0x237   :  { %v834_v32 = vpop.eup %833 }
 0x238   :  { %v836_v35 = vpop.eup %835  ;;  %v628_v36 = vmul.f32 %v834_v32, %v553_v7 }
 0x239   :  { %v838_v37 = vpop.eup %837  ;;  %v629_v38 = vmul.f32 %v836_v35, %v555_v33 }
 0x23a   :  { %v840_v40 = vpop.eup %839  ;;  %v630_v41 = vmul.f32 %v838_v37, %v557_v15 }
 0x23b   :  { %v720_v42 = vpack.c.bf16 %v629_v38, %v628_v36  ;;  %v631_v43 = vmul.f32 %v840_v40, %v559_v39 }
 0x23d   :  { %644 = vst [vmem:[%s1151_s6] sm:$0xff] %v720_v42  ;;  %v721_v44 = vpack.c.bf16 %v631_v43, %v630_v41 }
 0x23f   :  { %645 = vst [vmem:[%s1151_s6 + $0x8] sm:$0xff] %v721_v44 }

// kernel: _lambda_.46
= control target key start
LH: loop header
LB: loop body
LE: loop exit
PB: predicated region body
PF: predicated region fallthrough
CT: control target
= control target key end

     0   :  { %8 = vsyncpa [#allocation3], 0  ;;  %s245_s0 = inlined_call_operand.vmem [shape: bf16[16,256], index: 0, kind: input, shape index: {}]   ;;  %s246_s1 = inlined_call_operand.hbm [shape: f32[1,256], index: 1, kind: input, shape index: {}]   ;;  %s247_s2 = inlined_call_operand.hbm [shape: f32[1,256], index: 2, kind: input, shape index: {}]   ;;  %s248_s3 = inlined_call_operand.vmem [shape: bf16[16,256], index: 3, kind: output, shape index: {}]  }
   0x1   :  { %9 = vsyncpa [#allocation5], 0  ;;  %s187_s12 = smov [#allocation2]   ;;  %s188_s14 = smov [#allocation4]  }
   0x2   :  { %s18_s13 = sshll.u32 %s187_s12, 4  ;;  %s28_s15 = sshll.u32 %s188_s14, 4  ;;  %s19_s13 = int_to_ptr.vmem [resolvable:$true] %s18_s13  ;;  %s29_s15 = int_to_ptr.vmem [resolvable:$true] %s28_s15 }
   0x3   :  { %s139_s18 = scalar_lea.hbm %s246_s1, 32 }
   0x4   :  { %p140_p0 = scmp.ne.s32.totalorder %s246_s1, %s139_s18  ;;  %p143_p1 = scmp.lt.u32.totalorder %s139_s18, %s246_s1 }
   0x6   :  { %p145_p2 = pnand %p143_p1, %p140_p0 }
   0x8   :  { %148 = shalt.err (!%p145_p2)
}
   0x9   :  { %s149_s23 = scalar_lea.vmem %s19_s13, 32  ;;  %p154_p4 = scmp.lt.s32.totalorder %s19_s13, %s19_s13 }
   0xa   :  { %p150_p3 = scmp.ne.s32.totalorder %s19_s13, %s149_s23  ;;  %p155_p5 = scmp.lt.s32.totalorder %s149_s23, %s149_s23 }
   0xc   :  { %p156_p6 = por %p155_p5, %p154_p4 }
   0xe   :  { %p157_p7 = pnand %p156_p6, %p150_p3 }
  0x10   :  { %160 = shalt.err (!%p157_p7)
}
  0x11   :  { %21 = dma.hbm_to_vmem [thread:$0]  %s246_s1, 32, %s19_s13, [#allocation3]  }
  0x12   :  { %s161_s28 = scalar_lea.hbm %s247_s2, 32 }
  0x13   :  { %p162_p8 = scmp.ne.s32.totalorder %s247_s2, %s161_s28  ;;  %p165_p9 = scmp.lt.u32.totalorder %s161_s28, %s247_s2 }
  0x15   :  { %p167_p10 = pnand %p165_p9, %p162_p8 }
  0x17   :  { %170 = shalt.err (!%p167_p10)
}
  0x18   :  { %s171_s6 = scalar_lea.vmem %s29_s15, 32  ;;  %p176_p12 = scmp.lt.s32.totalorder %s29_s15, %s29_s15 }
  0x19   :  { %p172_p11 = scmp.ne.s32.totalorder %s29_s15, %s171_s6  ;;  %p177_p13 = scmp.lt.s32.totalorder %s171_s6, %s171_s6 }
  0x1b   :  { %p178_p0 = por %p177_p13, %p176_p12 }
  0x1d   :  { %p179_p1 = pnand %p178_p0, %p172_p11 }
  0x1f   :  { %182 = shalt.err (!%p179_p1)
}
  0x20   :  { %31 = dma.hbm_to_vmem [thread:$0]  %s247_s2, 32, %s29_s15, [#allocation5]  }
  0x21   :  { %183 = dma.done.wait [#allocation3], 32  }
  0x22   :  { %184 = vsyncadd [#allocation3], 4294967264 }
  0x23   :  { %185 = dma.done.wait [#allocation5], 32  }
  0x24   :  { %186 = vsyncadd [#allocation5], 4294967264  ;;  %v38_v0 = vld [vmem:[%s245_s0] sm:$0xff]  ;;  %v39_v1 = vld [vmem:[%s245_s0 + $0x8] sm:$0xff]  ;;  %v80_v24 = vlaneseq }
  0x25   :  { %v40_v2 = vunpack.c.l.bf16 %v38_v0  ;;  %v41_v3 = vunpack.c.h.bf16 %v38_v0  ;;  %v42_v4 = vunpack.c.l.bf16 %v39_v1  ;;  %v43_v5 = vunpack.c.h.bf16 %v39_v1  ;;  %v44_v32 = vld [vmem:[#allocation2] sm:$0x3]  ;;  %v45_v33 = vld [vmem:[#allocation4] sm:$0x3] }
  0x26   :  { %v81_v28 = vshrl.u32 %v80_v24, 7 }
  0x27   :  { %v46_v6 = vadd.f32 %v41_v3, %v40_v2  ;;  %v49_v7 = vadd.f32 %v43_v5, %v42_v4 }
  0x28   :  { %v82_v30 = vsub.s32 0, %v81_v28  ;;  %v86_v31 = vsub.s32 1, %v81_v28 }
  0x29   :  { %47 = vadd.xlane.f32.xlu0 %v46_v6 }
  0x2a   :  { %v83_v34 = vrot.slane %v44_v32, %v82_v30  ;;  %v87_v35 = vrot.slane %v44_v32, %v86_v31  ;;  %v98_v37 = vrot.slane %v45_v33, %v82_v30  ;;  %v102_v38 = vrot.slane %v45_v33, %v86_v31 }
  0x2d   :  { %50 = vadd.xlane.f32.xlu0 %v49_v7 }
  0xb6   :  { %v48_v8 = vpop.xlane.xlu0 %47 }
  0xb7   :  { %v53_v9 = vmul.f32 0.00390625, %v48_v8 }
  0xb9   :  { %v55_v10 = vsub.f32 %v40_v2, %v53_v9  ;;  %v56_v11 = vsub.f32 %v41_v3, %v53_v9 }
  0xba   :  { %v51_v12 = vpop.xlane.xlu0 %50 }
  0xbb   :  { %v54_v13 = vmul.f32 0.00390625, %v51_v12  ;;  %v59_v14 = vmul.f32 %v55_v10, %v55_v10  ;;  %v60_v15 = vmul.f32 %v56_v11, %v56_v11 }
  0xbd   :  { %v57_v16 = vsub.f32 %v42_v4, %v54_v13  ;;  %v58_v17 = vsub.f32 %v43_v5, %v54_v13  ;;  %v63_v18 = vadd.f32 %v60_v15, %v59_v14 }
  0xbf   :  { %64 = vadd.xlane.f32.xlu1 %v63_v18  ;;  %v61_v19 = vmul.f32 %v57_v16, %v57_v16  ;;  %v62_v20 = vmul.f32 %v58_v17, %v58_v17 }
  0xc1   :  { %v66_v21 = vadd.f32 %v62_v20, %v61_v19 }
  0xc3   :  { %67 = vadd.xlane.f32.xlu1 %v66_v21 }
 0x14c   :  { %v65_v22 = vpop.xlane.xlu1 %64 }
 0x14d   :  { %v69_v23 = vmul.f32 0.00390625, %v65_v22 }
 0x14f   :  { %v71_v25 = vadd.f32 1e-05, %v69_v23 }
 0x150   :  { %v68_v26 = vpop.xlane.xlu1 %67 }
 0x151   :  { %135 = vrsqrt.f32 %v71_v25  ;;  %v70_v27 = vmul.f32 0.00390625, %v68_v26 }
 0x153   :  { %v72_v29 = vadd.f32 1e-05, %v70_v27 }
 0x155   :  { %137 = vrsqrt.f32 %v72_v29 }
 0x15b   :  { %v136_v36 = vpop.eup %135 }
 0x15c   :  { %v75_v39 = vmul.f32 %v136_v36, %v55_v10  ;;  %v76_v40 = vmul.f32 %v136_v36, %v56_v11 }
 0x15e   :  { %v90_v41 = vmul.f32 %v83_v34, %v75_v39  ;;  %v91_v42 = vmul.f32 %v87_v35, %v76_v40 }
 0x15f   :  { %v138_v43 = vpop.eup %137 }
 0x160   :  { %v105_v44 = vadd.f32 %v98_v37, %v90_v41  ;;  %v106_v45 = vadd.f32 %v102_v38, %v91_v42  ;;  %v77_v46 = vmul.f32 %v138_v43, %v57_v16  ;;  %v78_v47 = vmul.f32 %v138_v43, %v58_v17 }
 0x162   :  { %v131_v48 = vpack.c.bf16 %v106_v45, %v105_v44  ;;  %v92_v49 = vmul.f32 %v83_v34, %v77_v46  ;;  %v93_v50 = vmul.f32 %v87_v35, %v78_v47 }
 0x164   :  { %121 = vst [vmem:[%s248_s3] sm:$0xff] %v131_v48  ;;  %v107_v51 = vadd.f32 %v98_v37, %v92_v49  ;;  %v108_v52 = vadd.f32 %v102_v38, %v93_v50 }
 0x166   :  { %v132_v53 = vpack.c.bf16 %v108_v52, %v107_v51 }
 0x168   :  { %122 = vst [vmem:[%s248_s3 + $0x8] sm:$0xff] %v132_v53 }
 0x169   :  { %127 = vsyncpa [#allocation3], 1 }
 0x16a   :  { %128 = vsyncpa [#allocation5], 1 }

// kernel: _lambda_.44
= control target key start
LH: loop header
LB: loop body
LE: loop exit
PB: predicated region body
PF: predicated region fallthrough
CT: control target
= control target key end

     0   :  { %v445_v1 = vmov 0   ;;  %v296_v37 = vlaneseq  ;;  %s599_s1 = inlined_call_operand.vmem [shape: bf16[256,256], index: 1, kind: input, shape index: {}]   ;;  %s600_s0 = inlined_call_operand.vmem [shape: bf16[16,256], index: 0, kind: input, shape index: {}]   ;;  %s601_s3 = inlined_call_operand.vmem [shape: f32[16,1], index: 3, kind: input, shape index: {}]   ;;  %s602_s2 = inlined_call_operand.vmem [shape: f32[1,256], index: 2, kind: input, shape index: {}]   ;;  %s603_s4 = inlined_call_operand.vmem [shape: bf16[16,256], index: 4, kind: input, shape index: {}]   ;;  %s604_s5 = inlined_call_operand.vmem [shape: bf16[16,256], index: 5, kind: output, shape index: {}]  }
   0x1   :  { %v394_v0 = vld [vmem:[%s599_s1 + $0x4] ss:$8 sps:$4 sm:$0xff]   ;;  %393 = vset.pattern.permute.xlu0 %v445_v1  ;;  %v396_v2 = vld [vmem:[%s599_s1] ss:$8 sps:$4 sm:$0xff]   ;;  %v397_v3 = vld [vmem:[%s599_s1 + $0x14] ss:$8 sps:$4 sm:$0xff]  }
   0x2   :  { %236 = vmatprep.subr.bf16.mxu0 %v394_v0  ;;  %v399_v4 = vld [vmem:[%s599_s1 + $0x10] ss:$8 sps:$4 sm:$0xff]   ;;  %v400_v5 = vld [vmem:[%s599_s1 + $0x24] ss:$8 sps:$4 sm:$0xff]   ;;  %v402_v6 = vld [vmem:[%s599_s1 + $0x20] ss:$8 sps:$4 sm:$0xff]  }
   0x3   :  { %237 = vmatpush1.bf16.msra.mxu0 %v396_v2  ;;  %v403_v7 = vld [vmem:[%s599_s1 + $0x34] ss:$8 sps:$4 sm:$0xff]   ;;  %v405_v8 = vld [vmem:[%s599_s1 + $0x30] ss:$8 sps:$4 sm:$0xff]   ;;  %v406_v9 = vld [vmem:[%s599_s1 + $0x44] ss:$8 sps:$4 sm:$0xff]  }
   0x4   :  { %238 = vmatprep.subr.bf16.mxu0 %v397_v3  ;;  %v408_v10 = vld [vmem:[%s599_s1 + $0x40] ss:$8 sps:$4 sm:$0xff]   ;;  %v409_v11 = vld [vmem:[%s599_s1 + $0x54] ss:$8 sps:$4 sm:$0xff]   ;;  %v411_v12 = vld [vmem:[%s599_s1 + $0x50] ss:$8 sps:$4 sm:$0xff]  }
   0x5   :  { %v412_v13 = vld [vmem:[%s599_s1 + $0x64] ss:$8 sps:$4 sm:$0xff]   ;;  %v414_v16 = vld [vmem:[%s599_s1 + $0x60] ss:$8 sps:$4 sm:$0xff]   ;;  %v415_v17 = vld [vmem:[%s599_s1 + $0x74] ss:$8 sps:$4 sm:$0xff]  }
   0x6   :  { %v444_v14 = vld [vmem:[%s600_s0 + $0x4] ss:$8 sps:$4 sm:$0xff]   ;;  %v417_v19 = vld [vmem:[%s599_s1 + $0x70] ss:$8 sps:$4 sm:$0xff]   ;;  %v420_v21 = vld [vmem:[%s599_s1 + $0x80] ss:$8 sps:$4 sm:$0xff]  }
   0x7   :  { %239 = vmatpush1.bf16.msra.mxu0 %v399_v4  ;;  %v310_v15 = vld [vmem:[%s601_s3] sm:$0xff]  ;;  %268 = vmatprep.mubr.bf16.mxu0 %v444_v14  ;;  %v311_v18 = vld [vmem:[%s601_s3 + $0x8] sm:$0xff]  ;;  %v421_v22 = vld [vmem:[%s599_s1 + $0x94] ss:$8 sps:$4 sm:$0xff]   ;;  %v297_v38 = vshrl.u32 %v296_v37, 7 }
   0x8   :  { %240 = vmatprep.subr.bf16.mxu0 %v400_v5  ;;  %314 = vperm.xlu0 %393, %v310_v15   ;;  %v418_v20 = vld [vmem:[%s599_s1 + $0x84] ss:$8 sps:$4 sm:$0xff]   ;;  %v423_v23 = vld [vmem:[%s599_s1 + $0x90] ss:$8 sps:$4 sm:$0xff]   ;;  %v426_v25 = vld [vmem:[%s599_s1 + $0xa0] ss:$8 sps:$4 sm:$0xff]  }
   0x9   :  { %v424_v24 = vld [vmem:[%s599_s1 + $0xa4] ss:$8 sps:$4 sm:$0xff]   ;;  %v427_v26 = vld [vmem:[%s599_s1 + $0xb4] ss:$8 sps:$4 sm:$0xff]   ;;  %v429_v27 = vld [vmem:[%s599_s1 + $0xb0] ss:$8 sps:$4 sm:$0xff]  }
   0xa   :  { %v430_v28 = vld [vmem:[%s599_s1 + $0xc4] ss:$8 sps:$4 sm:$0xff]   ;;  %v432_v29 = vld [vmem:[%s599_s1 + $0xc0] ss:$8 sps:$4 sm:$0xff]   ;;  %v433_v30 = vld [vmem:[%s599_s1 + $0xd4] ss:$8 sps:$4 sm:$0xff]  }
   0xb   :  { %241 = vmatpush1.bf16.msra.mxu0 %v402_v6  ;;  %v435_v31 = vld [vmem:[%s599_s1 + $0xd0] ss:$8 sps:$4 sm:$0xff]   ;;  %v436_v32 = vld [vmem:[%s599_s1 + $0xe4] ss:$8 sps:$4 sm:$0xff]   ;;  %v438_v33 = vld [vmem:[%s599_s1 + $0xe0] ss:$8 sps:$4 sm:$0xff]  }
   0xc   :  { %242 = vmatprep.subr.bf16.mxu0 %v403_v7  ;;  %319 = vperm.xlu0 %393, %v311_v18   ;;  %v439_v34 = vld [vmem:[%s599_s1 + $0xf4] ss:$8 sps:$4 sm:$0xff]   ;;  %v441_v35 = vld [vmem:[%s599_s1 + $0xf0] ss:$8 sps:$4 sm:$0xff]   ;;  %v442_v36 = vld [vmem:[%s600_s0] ss:$8 sps:$4 sm:$0xff]  }
   0xd   :  { %v298_v39 = vsub.s32 0, %v297_v38  ;;  %v294_v40 = vld [vmem:[%s602_s2] sm:$0x3]  ;;  %v302_v41 = vsub.s32 1, %v297_v38  ;;  %v327_v47 = vld [vmem:[%s603_s4 + $0x8] sm:$0xff] }
   0xe   :  { %v326_v44 = vld [vmem:[%s603_s4] sm:$0xff]  ;;  %v330_v56 = vunpack.c.l.bf16 %v327_v47  ;;  %v331_v61 = vunpack.c.h.bf16 %v327_v47 }
   0xf   :  { %243 = vmatpush1.bf16.msra.mxu0 %v405_v8  ;;  %v299_v42 = vrot.slane %v294_v40, %v298_v39  ;;  %v303_v45 = vrot.slane %v294_v40, %v302_v41  ;;  %v328_v49 = vunpack.c.l.bf16 %v326_v44  ;;  %v329_v52 = vunpack.c.h.bf16 %v326_v44 }
  0x10   :  { %244 = vmatprep.subr.bf16.mxu0 %v406_v9 }
  0x13   :  { %245 = vmatpush1.bf16.msra.mxu0 %v408_v10 }
  0x14   :  { %246 = vmatprep.subr.bf16.mxu0 %v409_v11 }
  0x17   :  { %247 = vmatpush1.bf16.msra.mxu0 %v411_v12 }
  0x18   :  { %248 = vmatprep.subr.bf16.mxu0 %v412_v13 }
  0x1b   :  { %249 = vmatpush1.bf16.msra.mxu0 %v414_v16 }
  0x1c   :  { %250 = vmatprep.subr.bf16.mxu0 %v415_v17 }
  0x1f   :  { %251 = vmatpush1.bf16.msra.mxu0 %v417_v19 }
  0x20   :  { %252 = vmatprep.subr.bf16.mxu0 %v418_v20 }
  0x23   :  { %253 = vmatpush1.bf16.msra.mxu0 %v420_v21 }
  0x24   :  { %254 = vmatprep.subr.bf16.mxu0 %v421_v22 }
  0x27   :  { %255 = vmatpush1.bf16.msra.mxu0 %v423_v23 }
  0x28   :  { %256 = vmatprep.subr.bf16.mxu0 %v424_v24 }
  0x2b   :  { %257 = vmatpush1.bf16.msra.mxu0 %v426_v25 }
  0x2c   :  { %258 = vmatprep.subr.bf16.mxu0 %v427_v26 }
  0x2f   :  { %259 = vmatpush1.bf16.msra.mxu0 %v429_v27 }
  0x30   :  { %260 = vmatprep.subr.bf16.mxu0 %v430_v28 }
  0x33   :  { %261 = vmatpush1.bf16.msra.mxu0 %v432_v29 }
  0x34   :  { %262 = vmatprep.subr.bf16.mxu0 %v433_v30 }
  0x37   :  { %263 = vmatpush1.bf16.msra.mxu0 %v435_v31 }
  0x38   :  { %264 = vmatprep.subr.bf16.mxu0 %v436_v32 }
  0x3b   :  { %265 = vmatpush1.bf16.msra.mxu0 %v438_v33 }
  0x3c   :  { %266 = vmatprep.subr.bf16.mxu0 %v439_v34 }
  0x3f   :  { %267 = vmatpush1.bf16.msra.mxu0 %v441_v35 }
  0x42   :  { %269 = vmatmul.mubr.bf16.vlgmr.msra.gmra.mrb[0].mxu0 %v442_v36 }
  0x87   :  { %v315_v43 = vpop.permute.xlu0 %314 }
  0x8b   :  { %v320_v58 = vpop.permute.xlu0 %319 }
 0x115   :  { %v270_v46 = vpop.f32.mrb[0].mxu0 }
 0x116   :  { %v306_v48 = vadd.f32 %v299_v42, %v270_v46  ;;  %v272_v50 = vpop.f32.mrb[1].mxu0 }
 0x117   :  { %v307_v51 = vadd.f32 %v303_v45, %v272_v50  ;;  %v274_v53 = vpop.f32.mrb[2].mxu0 }
 0x118   :  { %v322_v54 = vmul.f32 %v315_v43, %v306_v48  ;;  %v308_v55 = vadd.f32 %v299_v42, %v274_v53  ;;  %v276_v57 = vpop.f32.mrb[3].mxu0 }
 0x119   :  { %v323_v59 = vmul.f32 %v315_v43, %v307_v51  ;;  %v309_v60 = vadd.f32 %v303_v45, %v276_v57 }
 0x11a   :  { %v332_v62 = vadd.f32 %v328_v49, %v322_v54  ;;  %v324_v63 = vmul.f32 %v320_v58, %v308_v55 }
 0x11b   :  { %v333_v0 = vadd.f32 %v329_v52, %v323_v59  ;;  %v325_v1 = vmul.f32 %v320_v58, %v309_v60 }
 0x11c   :  { %v334_v2 = vadd.f32 %v330_v56, %v324_v63 }
 0x11d   :  { %v390_v3 = vpack.c.bf16 %v333_v0, %v332_v62  ;;  %v335_v4 = vadd.f32 %v331_v61, %v325_v1 }
 0x11f   :  { %348 = vst [vmem:[%s604_s5] sm:$0xff] %v390_v3  ;;  %v391_v5 = vpack.c.bf16 %v335_v4, %v334_v2 }
 0x121   :  { %349 = vst [vmem:[%s604_s5 + $0x8] sm:$0xff] %v391_v5 }

// kernel: _lambda_.52
= control target key start
LH: loop header
LB: loop body
LE: loop exit
PB: predicated region body
PF: predicated region fallthrough
CT: control target
= control target key end

     0   :  { %s677_s12 = smov 0   ;;  %s949_s0 = inlined_call_operand.vmem [shape: bf16[2,24,256], index: 0, kind: input, shape index: {}]   ;;  %s950_s1 = inlined_call_operand.vmem [shape: f32[15,256], index: 1, kind: input, shape index: {}]   ;;  %s951_s2 = inlined_call_operand.vmem [shape: f32[1,256], index: 2, kind: input, shape index: {}]   ;;  %s952_s3 = inlined_call_operand.vmem [shape: bf16[2,8,256], index: 3, kind: output, shape index: {}]  }
   0x1 LB: > { %s603_s13 = sadd.s32 4294967295, %s655_s12   ;;  %p607_p0 = scmp.ge.s32.totalorder %s655_s12, 1  ;;  %s655_s12 = sphi %s677_s12, %s13_s12  }
   0x2   : > { %p137_p1 = scmp.lt.s32.totalorder %s655_s12, 3 }
   0x4   : > { %p138_p2 = pnand %p607_p0, %p137_p1 }
   0x5   : > { %p161_p3 = scmp.lt.s32.totalorder (!%p138_p2), %s603_s13, 1  ;;  %v182_v0 = vlaneseq (!%p138_p2)  ;;  %v180_v1 = vld [vmem:[%s950_s1] ss:$8 sm:$0x3] (!%p138_p2) }
   0x6   : > { %141 = sbr.rel (%p138_p2) target bundleno = 94 (0x5e), region = 32  ;;  %v611_v3 = vld [vmem:[%s950_s1 + $0x1] ss:$8 sm:$0x3] (!%p138_p2) }
   0x7   : > { %v690_v2 = vshrl.u32 (!%p138_p2), %v182_v0, 7  ;;  %v612_v4 = vld [vmem:[%s950_s1 + $0x2] ss:$8 sm:$0x3] (!%p138_p2) }
   0x8   : > { %v613_v7 = vld [vmem:[%s950_s1 + $0x3] ss:$8 sm:$0x3] (!%p138_p2)  ;;  %v721_v12 = vld [vmem:[%s950_s1 + $0x4] ss:$8 sm:$0x3] (!%p138_p2) }
   0x9   : > { %v700_v5 = vsub.s32 (!%p138_p2), 0, %v690_v2  ;;  %v703_v6 = vsub.s32 (!%p138_p2), 1, %v690_v2  ;;  %vm202_vm0 = vcmp.lt.s32.totalorder (!%p138_p2), %v690_v2, 7  ;;  %vm226_vm1 = vcmp.lt.s32.totalorder (!%p138_p2), %v690_v2, 6 }
   0xa   : > { %vm250_vm2 = vcmp.lt.s32.totalorder (!%p138_p2), %v690_v2, 5  ;;  %vm274_vm3 = vcmp.lt.s32.totalorder (!%p138_p2), %v690_v2, 4  ;;  %vm298_vm4 = vcmp.lt.s32.totalorder (!%p138_p2), %v690_v2, 3  ;;  %vm322_vm5 = vcmp.lt.s32.totalorder (!%p138_p2), %v690_v2, 2 }
   0xb   : > { %v185_v8 = vrot.slane (!%p138_p2), %v180_v1, %v700_v5  ;;  %v189_v9 = vrot.slane (!%p138_p2), %v180_v1, %v703_v6  ;;  %v211_v10 = vrot.slane (!%p138_p2), %v611_v3, %v700_v5  ;;  %v215_v11 = vrot.slane (!%p138_p2), %v611_v3, %v703_v6  ;;  %v615_v0 = vld [vmem:[%s950_s1 + $0x5] ss:$8 sm:$0x3] (!%p138_p2) }
   0xc   : > { %v235_v16 = vrot.slane (!%p138_p2), %v612_v4, %v700_v5  ;;  %v239_v17 = vrot.slane (!%p138_p2), %v612_v4, %v703_v6  ;;  %v259_v18 = vrot.slane (!%p138_p2), %v613_v7, %v700_v5  ;;  %v263_v19 = vrot.slane (!%p138_p2), %v613_v7, %v703_v6 }
   0xd   : > { %s954_s13 = smov (!%p161_p3, %s603_s13), 1  ;;  %v283_v26 = vrot.slane %v721_v12, %v700_v5  ;;  %v287_v27 = vrot.slane %v721_v12, %v703_v6  ;;  %vm346_vm6 = vcmp.lt.s32.totalorder %v690_v2, 1 }
   0xe   : > { %s632_s20 = smul.u32 24, %s954_s13 }
  0x10   : > { %s165_s25 = scalar_lea.vmem %s949_s0, %s632_s20 }
  0x11   : > { %v171_v13 = vld [vmem:[%s165_s25] sm:$0xff]  ;;  %v172_v14 = vld [vmem:[%s165_s25 + $0x8] sm:$0xff]  ;;  %v173_v15 = vld [vmem:[%s165_s25 + $0x10] sm:$0xff]  ;;  %s630_s25 = sshll.u32 %s954_s13, 3 }
  0x12   : > { %v727_v20 = vunpack.c.l.bf16 %v171_v13  ;;  %v729_v21 = vunpack.c.h.bf16 %v171_v13  ;;  %v731_v22 = vunpack.c.l.bf16 %v172_v14  ;;  %v733_v23 = vunpack.c.h.bf16 %v172_v14  ;;  %s170_s28 = scalar_lea.vmem %s952_s3, %s630_s25 }
  0x13   : > { %v736_v24 = vunpack.c.l.bf16 %v173_v15  ;;  %v738_v25 = vunpack.c.h.bf16 %v173_v15  ;;  %v307_v14 = vrot.slane %v615_v0, %v700_v5  ;;  %v311_v15 = vrot.slane %v615_v0, %v703_v6 }
  0x14   : > { %v192_v28 = vmul.f32 %v185_v8, %v727_v20  ;;  %v193_v29 = vmul.f32 %v189_v9, %v729_v21  ;;  %v196_v30 = vrot.slane %v727_v20, 1  ;;  %v197_v31 = vrot.slane %v729_v21, 1 }
  0x15   : > { %v198_v32 = vrot.slane %v731_v22, 1  ;;  %v199_v33 = vrot.slane %v733_v23, 1  ;;  %v222_v34 = vrot.slane %v727_v20, 2  ;;  %v223_v35 = vrot.slane %v729_v21, 2 }
  0x16   : > { %v224_v36 = vrot.slane %v731_v22, 2  ;;  %v225_v37 = vrot.slane %v733_v23, 2  ;;  %v246_v38 = vrot.slane %v727_v20, 3  ;;  %v247_v39 = vrot.slane %v729_v21, 3 }
  0x17   : > { %v203_v40 = vsel %vm202_vm0, %v196_v30, %v198_v32  ;;  %v204_v41 = vsel %vm202_vm0, %v197_v31, %v199_v33  ;;  %v248_v42 = vrot.slane %v731_v22, 3  ;;  %v249_v43 = vrot.slane %v733_v23, 3  ;;  %v617_v31 = vld [vmem:[%s950_s1 + $0x7] ss:$8 sm:$0x3] }
  0x18   : > { %v218_v44 = vmul.f32 %v211_v10, %v203_v40  ;;  %v219_v45 = vmul.f32 %v215_v11, %v204_v41  ;;  %v227_v46 = vsel %vm226_vm1, %v222_v34, %v224_v36  ;;  %v228_v47 = vsel %vm226_vm1, %v223_v35, %v225_v37  ;;  %v618_v40 = vld [vmem:[%s950_s1 + $0x10] ss:$8 sm:$0x3] }
  0x19   : > { %v242_v48 = vmul.f32 %v235_v16, %v227_v46  ;;  %v243_v49 = vmul.f32 %v239_v17, %v228_v47  ;;  %v251_v50 = vsel %vm250_vm2, %v246_v38, %v248_v42  ;;  %v252_v51 = vsel %vm250_vm2, %v247_v39, %v249_v43  ;;  %v616_v16 = vld [vmem:[%s950_s1 + $0x6] ss:$8 sm:$0x3] }
  0x1a   : > { %v220_v52 = vadd.f32 %v218_v44, %v192_v28  ;;  %v221_v53 = vadd.f32 %v219_v45, %v193_v29  ;;  %v266_v54 = vmul.f32 %v259_v18, %v251_v50  ;;  %v267_v55 = vmul.f32 %v263_v19, %v252_v51 }
  0x1b   : > { %v270_v56 = vrot.slane %v727_v20, 4  ;;  %v271_v57 = vrot.slane %v729_v21, 4  ;;  %v272_v58 = vrot.slane %v731_v22, 4  ;;  %v273_v59 = vrot.slane %v733_v23, 4 }
  0x1c   : > { %v244_v60 = vadd.f32 %v242_v48, %v220_v52  ;;  %v245_v61 = vadd.f32 %v243_v49, %v221_v53  ;;  %v294_v62 = vrot.slane %v727_v20, 5  ;;  %v295_v63 = vrot.slane %v729_v21, 5  ;;  %v619_v52 = vld [vmem:[%s950_s1 + $0x11] ss:$8 sm:$0x3] }
  0x1d   : > { %v275_v1 = vsel %vm274_vm3, %v270_v56, %v272_v58  ;;  %v276_v3 = vsel %vm274_vm3, %v271_v57, %v273_v59  ;;  %v296_v4 = vrot.slane %v731_v22, 5  ;;  %v297_v7 = vrot.slane %v733_v23, 5 }
  0x1e   : > { %v268_v8 = vadd.f32 %v266_v54, %v244_v60  ;;  %v269_v9 = vadd.f32 %v267_v55, %v245_v61  ;;  %v290_v10 = vmul.f32 %v283_v26, %v275_v1  ;;  %v291_v11 = vmul.f32 %v287_v27, %v276_v3 }
  0x1f   : > { %v299_v12 = vsel %vm298_vm4, %v294_v62, %v296_v4  ;;  %v300_v13 = vsel %vm298_vm4, %v295_v63, %v297_v7  ;;  %v318_v19 = vrot.slane %v727_v20, 6  ;;  %v319_v26 = vrot.slane %v729_v21, 6  ;;  %v620_v63 = vld [vmem:[%s950_s1 + $0x12] ss:$8 sm:$0x3] }
  0x20   : > { %v292_v17 = vadd.f32 %v290_v10, %v268_v8  ;;  %v293_v18 = vadd.f32 %v291_v11, %v269_v9  ;;  %v314_v27 = vmul.f32 %v307_v14, %v299_v12  ;;  %v315_v28 = vmul.f32 %v311_v15, %v300_v13 }
  0x21   : > { %v320_v29 = vrot.slane %v731_v22, 6  ;;  %v321_v30 = vrot.slane %v733_v23, 6  ;;  %v331_v34 = vrot.slane %v616_v16, %v700_v5  ;;  %v335_v35 = vrot.slane %v616_v16, %v703_v6 }
  0x22   : > { %v342_v38 = vrot.slane %v727_v20, 7  ;;  %v343_v39 = vrot.slane %v729_v21, 7  ;;  %v316_v41 = vadd.f32 %v314_v27, %v292_v17  ;;  %v317_v44 = vadd.f32 %v315_v28, %v293_v18  ;;  %v621_v27 = vld [vmem:[%s950_s1 + $0x13] ss:$8 sm:$0x3] }
  0x23   : > { %v323_v45 = vsel %vm322_vm5, %v318_v19, %v320_v29  ;;  %v324_v46 = vsel %vm322_vm5, %v319_v26, %v321_v30  ;;  %v344_v21 = vrot.slane %v731_v22, 7  ;;  %v345_v48 = vrot.slane %v733_v23, 7 }
  0x24   : > { %v338_v47 = vmul.f32 %v331_v34, %v323_v45  ;;  %v339_v20 = vmul.f32 %v335_v35, %v324_v46  ;;  %v355_v49 = vrot.slane %v617_v31, %v700_v5  ;;  %v359_v50 = vrot.slane %v617_v31, %v703_v6 }
  0x25   : > { %v372_v51 = vrot.slane %v618_v40, %v700_v5  ;;  %v347_v55 = vsel %vm346_vm6, %v342_v38, %v344_v21  ;;  %v348_v56 = vsel %vm346_vm6, %v343_v39, %v345_v48  ;;  %v376_v61 = vrot.slane %v618_v40, %v703_v6  ;;  %v622_v40 = vld [vmem:[%s950_s1 + $0x14] ss:$8 sm:$0x3] }
  0x26   : > { %v340_v53 = vadd.f32 %v338_v47, %v316_v41  ;;  %v341_v54 = vadd.f32 %v339_v20, %v317_v44  ;;  %v362_v57 = vmul.f32 %v355_v49, %v347_v55  ;;  %v363_v60 = vmul.f32 %v359_v50, %v348_v56 }
  0x27   : > { %v379_v62 = vmul.f32 %v372_v51, %v731_v22  ;;  %v383_v0 = vrot.slane %v736_v24, 1  ;;  %v384_v1 = vrot.slane %v738_v25, 1  ;;  %v393_v3 = vrot.slane %v619_v52, %v700_v5 }
  0x28   : > { %v397_v8 = vrot.slane %v619_v52, %v703_v6  ;;  %v364_v9 = vadd.f32 %v362_v57, %v340_v53  ;;  %v365_v10 = vadd.f32 %v363_v60, %v341_v54  ;;  %v380_v11 = vmul.f32 %v376_v61, %v733_v23  ;;  %v624_v60 = vld [vmem:[%s950_s1 + $0x16] ss:$8 sm:$0x3] }
  0x29   : > { %v404_v12 = vrot.slane %v736_v24, 2  ;;  %v385_v13 = vsel %vm202_vm0, %v198_v32, %v383_v0  ;;  %v386_v14 = vsel %vm202_vm0, %v199_v33, %v384_v1  ;;  %v405_v15 = vrot.slane %v738_v25, 2 }
  0x2a   : > { %v414_v16 = vrot.slane %v620_v63, %v700_v5  ;;  %v381_v17 = vadd.f32 %v379_v62, %v364_v9  ;;  %v382_v18 = vadd.f32 %v380_v11, %v365_v10  ;;  %v400_v19 = vmul.f32 %v393_v3, %v385_v13 }
  0x2b   : > { %v401_v26 = vmul.f32 %v397_v8, %v386_v14  ;;  %v406_v32 = vsel %vm226_vm1, %v224_v36, %v404_v12  ;;  %v407_v33 = vsel %vm226_vm1, %v225_v37, %v405_v15  ;;  %v418_v28 = vrot.slane %v620_v63, %v703_v6  ;;  %v509_v8 = vld [vmem:[%s951_s2] sm:$0x3] }
  0x2c   : > { %v425_v31 = vrot.slane %v736_v24, 3  ;;  %v402_v34 = vadd.f32 %v400_v19, %v381_v17  ;;  %v421_v38 = vmul.f32 %v414_v16, %v406_v32  ;;  %v426_v39 = vrot.slane %v738_v25, 3 }
  0x2d   : > { %v403_v35 = vadd.f32 %v401_v26, %v382_v18  ;;  %v422_v41 = vmul.f32 %v418_v28, %v407_v33  ;;  %v435_v37 = vrot.slane %v621_v27, %v700_v5  ;;  %v439_v44 = vrot.slane %v621_v27, %v703_v6 }
  0x2e   : > { %v427_v36 = vsel %vm250_vm2, %v248_v42, %v425_v31  ;;  %v423_v45 = vadd.f32 %v421_v38, %v402_v34  ;;  %v428_v46 = vsel %vm250_vm2, %v249_v43, %v426_v39  ;;  %v446_v47 = vrot.slane %v736_v24, 4  ;;  %v623_v42 = vld [vmem:[%s950_s1 + $0x15] ss:$8 sm:$0x3] }
  0x2f   : > { %v447_v20 = vrot.slane %v738_v25, 4  ;;  %v424_v21 = vadd.f32 %v422_v41, %v403_v35  ;;  %v442_v48 = vmul.f32 %v435_v37, %v427_v36  ;;  %v443_v49 = vmul.f32 %v439_v44, %v428_v46 }
  0x30   : > { %v456_v50 = vrot.slane %v622_v40, %v700_v5  ;;  %v448_v51 = vsel %vm274_vm3, %v272_v58, %v446_v47  ;;  %v460_v52 = vrot.slane %v622_v40, %v703_v6  ;;  %v467_v53 = vrot.slane %v736_v24, 5 }
  0x31   : > { %v449_v43 = vsel %vm274_vm3, %v273_v59, %v447_v20  ;;  %v444_v54 = vadd.f32 %v442_v48, %v423_v45  ;;  %v445_v55 = vadd.f32 %v443_v49, %v424_v21  ;;  %v468_v57 = vrot.slane %v738_v25, 5 }
  0x32   : > { %v463_v56 = vmul.f32 %v456_v50, %v448_v51  ;;  %v464_v61 = vmul.f32 %v460_v52, %v449_v43  ;;  %v469_v58 = vsel %vm298_vm4, %v296_v4, %v467_v53  ;;  %v477_v59 = vrot.slane %v623_v42, %v700_v5 }
  0x33   : > { %v481_v62 = vrot.slane %v623_v42, %v703_v6  ;;  %v470_v0 = vsel %vm298_vm4, %v297_v7, %v468_v57  ;;  %v488_v1 = vrot.slane %v736_v24, 6  ;;  %v489_v3 = vrot.slane %v738_v25, 6 }
  0x34   : > { %v465_v63 = vadd.f32 %v463_v56, %v444_v54  ;;  %v466_v9 = vadd.f32 %v464_v61, %v445_v55  ;;  %v484_v4 = vmul.f32 %v477_v59, %v469_v58  ;;  %v498_v11 = vrot.slane %v624_v60, %v700_v5 }
  0x35   : > { %v485_v10 = vmul.f32 %v481_v62, %v470_v0  ;;  %v490_v12 = vsel %vm322_vm5, %v320_v29, %v488_v1  ;;  %v491_v24 = vsel %vm322_vm5, %v321_v30, %v489_v3  ;;  %v502_v25 = vrot.slane %v624_v60, %v703_v6 }
  0x36   : > { %v486_v7 = vadd.f32 %v484_v4, %v465_v63  ;;  %v505_v14 = vmul.f32 %v498_v11, %v490_v12  ;;  %v514_v15 = vrot.slane %v509_v8, %v700_v5  ;;  %v518_v17 = vrot.slane %v509_v8, %v703_v6 }
  0x37   : > { %v487_v13 = vadd.f32 %v485_v10, %v466_v9  ;;  %v506_v16 = vmul.f32 %v502_v25, %v491_v24 }
  0x38   : > { %v507_v18 = vadd.f32 %v505_v14, %v486_v7 }
  0x39   : > { %v508_v22 = vadd.f32 %v506_v16, %v487_v13 }
  0x3a   : > { %v521_v19 = vadd.f32 %v514_v15, %v507_v18 }
  0x3b   : > { %v522_v26 = vadd.f32 %v518_v17, %v508_v22 }
  0x3c   : > { %v625_v29 = vmul.f32 -0.999995, %v521_v19  ;;  %v523_v5 = vmul.f32 0.999995, %v521_v19 }
  0x3d   : > { %v626_v23 = vmul.f32 -0.999995, %v522_v26  ;;  %v524_v31 = vmul.f32 0.999995, %v522_v26 }
  0x3e   : > { %v527_v27 = vmul.f32 1.442695, %v625_v29 }
  0x3f   : > { %v529_v2 = vmul.f32 1.442695, %v626_v23 }
  0x40   : > { %641 = vpow2.f32 %v527_v27 }
  0x41   : > { %643 = vpow2.f32 %v529_v2 }
  0x4a   : > { %v642_v30 = vpop.eup %641 }
  0x4b   : > { %v644_v32 = vpop.eup %643  ;;  %v531_v33 = vadd.f32 1.0, %v642_v30 }
  0x4c   : > { %v532_v28 = vadd.f32 1.0, %v644_v32 }
  0x4d   : > { %645 = vrcp.f32 %v531_v33 }
  0x4e   : > { %647 = vrcp.f32 %v532_v28 }
  0x57   : > { %v646_v6 = vpop.eup %645 }
  0x58   : > { %v648_v34 = vpop.eup %647  ;;  %v537_v35 = vmul.f32 %v646_v6, %v523_v5 }
  0x59   : > { %v538_v38 = vmul.f32 %v648_v34, %v524_v31 }
  0x5b   : > { %v631_v39 = vpack.c.bf16 %v538_v38, %v537_v35 }
  0x5d   : > { %547 = vst [vmem:[%s170_s28] sm:$0xff] %v631_v39 }
  0x5e PF: > { %s13_s12 = sadd.s32 1, %s655_s12  }
  0x5f   : > { %p10_p4 = scmp.ge.s32.totalorder %s13_s12, 4  }
  0x61   :  { %12 = sbr.rel (!%p10_p4) target bundleno = 1 (0x1), region = 76 }

// kernel: _lambda_.55
= control target key start
LH: loop header
LB: loop body
LE: loop exit
PB: predicated region body
PF: predicated region fallthrough
CT: control target
= control target key end

     0   :  { %v56_v24 = vlaneseq  ;;  %s149_s0 = inlined_call_operand.vmem [shape: bf16[16,256], index: 0, kind: input, shape index: {}]   ;;  %s150_s1 = inlined_call_operand.vmem [shape: f32[1,256], index: 1, kind: input, shape index: {}]   ;;  %s151_s2 = inlined_call_operand.vmem [shape: f32[1,256], index: 2, kind: input, shape index: {}]   ;;  %s152_s3 = inlined_call_operand.vmem [shape: bf16[16,256], index: 3, kind: output, shape index: {}]  }
   0x1   :  { %v14_v0 = vld [vmem:[%s149_s0] sm:$0xff]  ;;  %v15_v1 = vld [vmem:[%s149_s0 + $0x8] sm:$0xff] }
   0x2   :  { %v16_v2 = vunpack.c.l.bf16 %v14_v0  ;;  %v17_v3 = vunpack.c.h.bf16 %v14_v0  ;;  %v18_v4 = vunpack.c.l.bf16 %v15_v1  ;;  %v19_v5 = vunpack.c.h.bf16 %v15_v1  ;;  %v20_v32 = vld [vmem:[%s150_s1] sm:$0x3] }
   0x3   :  { %v57_v28 = vshrl.u32 %v56_v24, 7  ;;  %v21_v33 = vld [vmem:[%s151_s2] sm:$0x3] }
   0x4   :  { %v22_v6 = vadd.f32 %v17_v3, %v16_v2  ;;  %v25_v7 = vadd.f32 %v19_v5, %v18_v4 }
   0x5   :  { %v58_v30 = vsub.s32 0, %v57_v28  ;;  %v62_v31 = vsub.s32 1, %v57_v28 }
   0x6   :  { %23 = vadd.xlane.f32.xlu0 %v22_v6 }
   0x7   :  { %v59_v34 = vrot.slane %v20_v32, %v58_v30  ;;  %v63_v35 = vrot.slane %v20_v32, %v62_v31  ;;  %v74_v37 = vrot.slane %v21_v33, %v58_v30  ;;  %v78_v38 = vrot.slane %v21_v33, %v62_v31 }
   0xa   :  { %26 = vadd.xlane.f32.xlu0 %v25_v7 }
  0x93   :  { %v24_v8 = vpop.xlane.xlu0 %23 }
  0x94   :  { %v29_v9 = vmul.f32 0.00390625, %v24_v8 }
  0x96   :  { %v31_v10 = vsub.f32 %v16_v2, %v29_v9  ;;  %v32_v11 = vsub.f32 %v17_v3, %v29_v9 }
  0x97   :  { %v27_v12 = vpop.xlane.xlu0 %26 }
  0x98   :  { %v30_v13 = vmul.f32 0.00390625, %v27_v12  ;;  %v35_v14 = vmul.f32 %v31_v10, %v31_v10  ;;  %v36_v15 = vmul.f32 %v32_v11, %v32_v11 }
  0x9a   :  { %v33_v16 = vsub.f32 %v18_v4, %v30_v13  ;;  %v34_v17 = vsub.f32 %v19_v5, %v30_v13  ;;  %v39_v18 = vadd.f32 %v36_v15, %v35_v14 }
  0x9c   :  { %40 = vadd.xlane.f32.xlu1 %v39_v18  ;;  %v37_v19 = vmul.f32 %v33_v16, %v33_v16  ;;  %v38_v20 = vmul.f32 %v34_v17, %v34_v17 }
  0x9e   :  { %v42_v21 = vadd.f32 %v38_v20, %v37_v19 }
  0xa0   :  { %43 = vadd.xlane.f32.xlu1 %v42_v21 }
 0x129   :  { %v41_v22 = vpop.xlane.xlu1 %40 }
 0x12a   :  { %v45_v23 = vmul.f32 0.00390625, %v41_v22 }
 0x12c   :  { %v47_v25 = vadd.f32 1e-05, %v45_v23 }
 0x12d   :  { %v44_v26 = vpop.xlane.xlu1 %43 }
 0x12e   :  { %107 = vrsqrt.f32 %v47_v25  ;;  %v46_v27 = vmul.f32 0.00390625, %v44_v26 }
 0x130   :  { %v48_v29 = vadd.f32 1e-05, %v46_v27 }
 0x132   :  { %109 = vrsqrt.f32 %v48_v29 }
 0x138   :  { %v108_v36 = vpop.eup %107 }
 0x139   :  { %v51_v39 = vmul.f32 %v108_v36, %v31_v10  ;;  %v52_v40 = vmul.f32 %v108_v36, %v32_v11 }
 0x13b   :  { %v66_v41 = vmul.f32 %v59_v34, %v51_v39  ;;  %v67_v42 = vmul.f32 %v63_v35, %v52_v40 }
 0x13c   :  { %v110_v43 = vpop.eup %109 }
 0x13d   :  { %v81_v44 = vadd.f32 %v74_v37, %v66_v41  ;;  %v82_v45 = vadd.f32 %v78_v38, %v67_v42  ;;  %v53_v46 = vmul.f32 %v110_v43, %v33_v16  ;;  %v54_v47 = vmul.f32 %v110_v43, %v34_v17 }
 0x13f   :  { %v105_v48 = vpack.c.bf16 %v82_v45, %v81_v44  ;;  %v68_v49 = vmul.f32 %v59_v34, %v53_v46  ;;  %v69_v50 = vmul.f32 %v63_v35, %v54_v47 }
 0x141   :  { %97 = vst [vmem:[%s152_s3] sm:$0xff] %v105_v48  ;;  %v83_v51 = vadd.f32 %v74_v37, %v68_v49  ;;  %v84_v52 = vadd.f32 %v78_v38, %v69_v50 }
 0x143   :  { %v106_v53 = vpack.c.bf16 %v84_v52, %v83_v51 }
 0x145   :  { %98 = vst [vmem:[%s152_s3 + $0x8] sm:$0xff] %v106_v53 }

// kernel: _lambda_.64
= control target key start
LH: loop header
LB: loop body
LE: loop exit
PB: predicated region body
PF: predicated region fallthrough
CT: control target
= control target key end

     0   :  { %s1029_s0 = inlined_call_operand.vmem [shape: s32[2], index: 0, kind: input, shape index: {}]   ;;  %s1030_s1 = inlined_call_operand.vmem [shape: bf16[2,8,256], index: 1, kind: input, shape index: {}]   ;;  %s1031_s2 = inlined_call_operand.vmem [shape: bf16[2,8,512], index: 2, kind: input, shape index: {}, may-alias: {2,3}]   ;;  %s1032_s3 = inlined_call_operand.vmem [shape: bf16[2,8,512], index: 3, kind: input, shape index: {}, may-alias: {2,3}]   ;;  %s1033_s4 = inlined_call_operand.vmem [shape: bf16[2,8,256], index: 4, kind: output, shape index: {}]  }
   0x1   :  { %s9_s17 = sshll.u32 %s1029_s0, 4  ;;  %s10_s17 = int_to_ptr.vmem [resolvable:$true] %s9_s17 }
   0x2   :  { %s859_s18 = scalar_lea.vmem %s10_s17, 16  ;;  %p864_p1 = scmp.lt.s32.totalorder %s10_s17, %s10_s17 }
   0x3   :  { %p860_p0 = scmp.ne.s32.totalorder %s10_s17, %s859_s18  ;;  %p865_p2 = scmp.lt.s32.totalorder %s859_s18, %s859_s18 }
   0x5   :  { %p866_p3 = por %p865_p2, %p864_p1 }
   0x7   :  { %p867_p4 = pnand %p866_p3, %p860_p0 }
   0x9   :  { %870 = shalt.err (!%p867_p4)  }
   0xa   :  { %s897_s19 = smov [#allocation6]  }
   0xb   :  { %12 = dma.vmem_to_smem %s10_s17, 16, %s897_s19, [#allocation5] }
   0xc   :  { %883 = dma.done.wait [#allocation5], 16 }
   0xd   :  { %884 = vsyncadd [#allocation5], 4294967280 }
   0xe   :  { %14 = sfence }
   0xf   :  { %s930_s20 = smov 0   ;;  %s932_s21 = smov 0  }
  0x10   :  { %s934_s22 = smov 0  }
  0x11 LB: > { %s39_s0 = sadd.s32 1, %s891_s21  ;;  %p758_p5 = scmp.ge.s32.totalorder %s895_s22, 1  ;;  %s895_s22 = sphi %s934_s22, %s20_s22   ;;  %s891_s21 = sphi %s932_s21, %s1037_s21   ;;  %s887_s20 = sphi %s930_s20, %s1036_s20  }
  0x12   : > { %p41_p6 = scmp.ge.s32.totalorder %s39_s0, 2  ;;  %p204_p7 = scmp.lt.s32.totalorder %s895_s22, 3 }
  0x14   : > { %s1039_s0 = smov (%p41_p6, %s39_s0), 0  ;;  %p205_p8 = pnand %p758_p5, %p204_p7 }
  0x15   : > { %p255_p9 = scmp.lt.s32.totalorder (!%p205_p8), %s887_s20, 1  ;;  %v898_v0 = vmov (!%p205_p8), 0.0   ;;  %vm899_vm0 = vmmov (!%p205_p8), 0   ;;  %vm297_vm1 = vcmask (!%p205_p8), 7168   ;;  %v900_v3 = vmov (!%p205_p8), -inf   ;;  %s304_s6 = sld [smem:[#allocation6 + %s887_s20]] (!%p205_p8) }
  0x16   : > { %208 = sbr.rel (%p205_p8) target bundleno = 1359 (0x54f), region = 32  ;;  %789 = vmatprep.subr.bf16.mxu0 (!%p205_p8), %v898_v0  ;;  %791 = vmatprep.mubr.msk.bf16.mxu0 (!%p205_p8), %vm899_vm0, %v898_v0  ;;  %298 = vst.msk [vmem:[#allocation2] sm:$0xff] (!%p205_p8), %vm297_vm1, %v900_v3  ;;  %299 = vst.msk [vmem:[#allocation2 + $0x8] sm:$0xff] (!%p205_p8), %vm297_vm1, %v900_v3  ;;  %v306_v4 = vlaneseq (!%p205_p8)  ;;  %vm358_vm3 = vcmask (!%p205_p8), 64512   ;;  %v901_v15 = vmov (!%p205_p8), 0   ;;  %vm394_vm4 = vcmask (!%p205_p8), 1043456  }
  0x17   : > { %795 = vmatprep.subr.bf16.mxu1 (!%p205_p8), %v898_v0  ;;  %797 = vmatprep.mubr.msk.bf16.mxu1 (!%p205_p8), %vm899_vm0, %v898_v0  ;;  %300 = vst.msk [vmem:[#allocation3] sm:$0xff] (!%p205_p8), %vm297_vm1, %v898_v0  ;;  %301 = vst.msk [vmem:[#allocation3 + $0x8] sm:$0xff] (!%p205_p8), %vm297_vm1, %v898_v0 }
  0x18   : > { %v307_v5 = vand.u32 (!%p205_p8), 127, %v306_v4  ;;  %842 = vset.pattern.permute.xlu0 (!%p205_p8), %v901_v15  ;;  %843 = vset.pattern.permute.xlu1 (!%p205_p8), %v901_v15 }
  0x1b   : > { %v310_v6 = vstv (!%p205_p8), %s304_s6 }
  0x1c   : > { %vm982_vm2 = vcmp.lt.s32.totalorder (!%p205_p8), %v307_v5, %v310_v6 }
  0x1d   : > { %s955_s23 = scalar_select %p255_p9, %s887_s20, 1  ;;  %v357_v16 = vld [vmem:[#allocation2] sm:$0xff]  ;;  %v492_v43 = vld [vmem:[#allocation2 + $0x8] sm:$0xff] }
  0x1e   : > { %v375_v59 = vld [vmem:[#allocation3] sm:$0xff]  ;;  %v510_v3 = vld [vmem:[#allocation3 + $0x8] sm:$0xff] }
  0x1f   : > { %s777_s24 = sshll.u32 %s955_s23, 4  ;;  %s776_s28 = sshll.u32 %s955_s23, 3 }
  0x20   : > { %s272_s27 = scalar_lea.vmem %s1031_s2, %s777_s24  ;;  %s263_s5 = scalar_lea.vmem %s1030_s1, %s776_s28 }
  0x21   : > { %v313_v1 = vld [vmem:[%s272_s27] sm:$0xff]  ;;  %s694_s9 = scalar_lea.vmem %s1032_s3, %s777_s24  ;;  %s291_s12 = scalar_lea.vmem %s1033_s4, %s776_s28 }
  0x22   : > { %790 = vmatpush3.bf16.xpose.msra.mxu0 %v313_v1  ;;  %v312_v2 = vld [vmem:[%s263_s5] sm:$0xff]  ;;  %v767_v20 = vld [vmem:[%s694_s9 + $0x8] sm:$0xff]  ;;  %v770_v28 = vcombine.high %v313_v1, %v313_v1 }
  0x23   : > { %807 = vmatprep.subr.bf16.mxu0 %v898_v0  ;;  %v396_v21 = vsel %vm394_vm4, %v767_v20, 0  ;;  %v771_v22 = vcombine.high %v767_v20, %v767_v20  ;;  %v769_v31 = vcombine.high %v312_v2, %v312_v2 }
  0x24   : > { %796 = vmatpush3.bf16.msra.mxu1 %v396_v21 }
  0x25   : > { %v533_v23 = vsel %vm394_vm4, %v771_v22, 0  ;;  %801 = vmatprep.subr.bf16.mxu1 %v898_v0 }
  0x29   : > { %792 = vmatmul.mubr.bf16.vlgmr.msra.gmra.mrb[0].mxu0 %v312_v2 }
  0x2a   : > { %809 = vmatprep.mubr.msk.bf16.mxu0 %vm899_vm0, %v898_v0  ;;  %808 = vmatpush3.bf16.msra.mxu0 %v533_v23 }
  0xfc   : > { %v349_v7 = vpop.f32.mrb[0].mxu0 }
  0xfd   : > { %v355_v9 = vmul.f32 0.088388346, %v349_v7  ;;  %v793_v10 = vpop.f32.mrb[1].mxu0 }
  0xfe   : > { %v352_v11 = vpop.f32.mrb[2].mxu0 }
  0xff   : > { %v794_v12 = vpop.f32.mrb[3].mxu0  ;;  %v356_v13 = vsel %vm982_vm2, %v355_v9, -1e+30 }
 0x100   : > { %v359_v14 = vsel %vm358_vm3, %v356_v13, -inf }
 0x101   : > { %360 = vmax.xlane.f32.xlu0 %v359_v14 }
 0x18e   : > { %v361_v17 = vpop.xlane.xlu0 %360 }
 0x18f   : > { %v362_v18 = vmax.f32 %v357_v16, %v361_v17 }
 0x191   : > { %v363_v19 = vsub.f32 %v357_v16, %v362_v18  ;;  %440 = vst.msk [vmem:[#allocation2] sm:$0xff] %vm297_vm1, %v362_v18  ;;  %368 = vperm.xlu0 %842, %v362_v18  }
 0x193   : > { %v364_v47 = vmul.f32 1.442695, %v363_v19 }
 0x210   : > { %v369_v24 = vpop.permute.xlu0 %368 }
 0x211   : > { %v371_v25 = vsub.f32 %v356_v13, %v369_v24 }
 0x213   : > { %v372_v26 = vmul.f32 1.442695, %v371_v25 }
 0x215   : > { %847 = vpow2.f32 %v372_v26 }
 0x216   : > { %849 = vpow2.f32 %v364_v47 }
 0x21f   : > { %v848_v27 = vpop.eup %847 }
 0x220   : > { %v374_v29 = vsel %vm982_vm2, %v848_v27, 0.0  ;;  %v850_v50 = vpop.eup %849 }
 0x221   : > { %v390_v30 = vpack.c.bf16 %v374_v29, %v374_v29  ;;  %v377_v46 = vsel %vm358_vm3, %v374_v29, 0.0  ;;  %v376_v60 = vmul.f32 %v850_v50, %v375_v59 }
 0x223   : > { %798 = vmatmul.mubr.msk.bf16.vlgmr.msra.gmra.mrb[0].mxu1 %vm358_vm3, %v390_v30 }
 0x224   : > { %802 = vmatpush3.bf16.xpose.msra.mxu1 %v770_v28  ;;  %803 = vmatprep.mubr.msk.bf16.mxu1 %vm899_vm0, %v898_v0 }
 0x22b   : > { %804 = vmatmul.mubr.bf16.vlgmr.msra.gmra.mrb[4].mxu1 %v769_v31 }
 0x2f6   : > { %v1001_v32 = vpop.f32.mrb[0].mxu1 }
 0x2f7   : > { %v799_v33 = vpop.f32.mrb[1].mxu1 }
 0x2f8   : > { %v435_v34 = vpop.f32.mrb[2].mxu1 }
 0x2f9   : > { %v800_v35 = vpop.f32.mrb[3].mxu1 }
 0x2fe   : > { %v483_v36 = vpop.f32.mrb[4].mxu1 }
 0x2ff   : > { %v489_v37 = vmul.f32 0.088388346, %v483_v36  ;;  %v805_v38 = vpop.f32.mrb[5].mxu1 }
 0x300   : > { %v486_v39 = vpop.f32.mrb[6].mxu1 }
 0x301   : > { %v806_v40 = vpop.f32.mrb[7].mxu1  ;;  %v490_v41 = vsel %vm982_vm2, %v489_v37, -1e+30 }
 0x302   : > { %v493_v42 = vsel %vm358_vm3, %v490_v41, -inf }
 0x303   : > { %494 = vmax.xlane.f32.xlu1 %v493_v42 }
 0x390   : > { %v495_v44 = vpop.xlane.xlu1 %494 }
 0x391   : > { %v496_v45 = vmax.f32 %v492_v43, %v495_v44 }
 0x393   : > { %577 = vst.msk [vmem:[#allocation2 + $0x8] sm:$0xff] %vm297_vm1, %v496_v45  ;;  %502 = vperm.xlu1 %843, %v496_v45   ;;  %v497_v48 = vsub.f32 %v492_v43, %v496_v45 }
 0x395   : > { %v498_v49 = vmul.f32 1.442695, %v497_v48 }
 0x397   : > { %851 = vpow2.f32 %v498_v49 }
 0x3a1   : > { %v852_v51 = vpop.eup %851 }
 0x3a2   : > { %v511_v4 = vmul.f32 %v852_v51, %v510_v3 }
 0x3b7   : > { %378 = vadd.xlane.f32.xlu1 %v377_v46 }
 0x3c8   : > { %386 = vperm.xlu1 %843, %v850_v50  }
 0x3cc   : > { %521 = vperm.xlu1 %843, %v852_v51  }
 0x412   : > { %v503_v52 = vpop.permute.xlu1 %502 }
 0x413   : > { %v505_v53 = vsub.f32 %v490_v41, %v503_v52 }
 0x415   : > { %v506_v54 = vmul.f32 1.442695, %v505_v53 }
 0x417   : > { %853 = vpow2.f32 %v506_v54 }
 0x421   : > { %v854_v55 = vpop.eup %853 }
 0x422   : > { %v508_v56 = vsel %vm982_vm2, %v854_v55, 0.0 }
 0x423   : > { %v512_v57 = vsel %vm358_vm3, %v508_v56, 0.0  ;;  %v525_v58 = vpack.c.bf16 %v508_v56, %v508_v56 }
 0x424   : > { %513 = vadd.xlane.f32.xlu0 %v512_v57 }
 0x425   : > { %810 = vmatmul.mubr.msk.bf16.vlgmr.msra.gmra.mrb[4].mxu0 %vm358_vm3, %v525_v58 }
 0x444   : > { %v379_v61 = vpop.xlane.xlu1 %378 }
 0x445   : > { %v380_v62 = vadd.f32 %v379_v61, %v376_v60 }
 0x447   : > { %382 = vst.msk [vmem:[#allocation3] sm:$0xff] %vm297_vm1, %v380_v62 }
 0x448   : > { %v387_v15 = vpop.permute.xlu1 %386 }
 0x449   : > { %v389_v17 = vmul.f32 0.0, %v387_v15 }
 0x44b   : > { %v438_v20 = vadd.f32 %v1001_v32, %v389_v17 }
 0x44c   : > { %v522_v16 = vpop.permute.xlu1 %521 }
 0x44d   : > { %v524_v18 = vmul.f32 0.0, %v522_v16 }
 0x44e   : > { %v581_v63 = vld [vmem:[#allocation3] sm:$0xff] }
 0x44f   : > { %v583_v0 = vmax.f32 %v581_v63, 1e-30  ;;  %vm582_vm5 = vcmp.gt.f32.partialorder %v581_v63, 0.0 }
 0x451   : > { %855 = vrcp.f32 %v583_v0 }
 0x45b   : > { %v856_v1 = vpop.eup %855 }
 0x45c   : > { %v585_v2 = vsel %vm582_vm5, %v856_v1, 0.0 }
 0x45d   : > { %589 = vperm.xlu1 %843, %v585_v2  }
 0x4b1   : > { %v514_v5 = vpop.xlane.xlu0 %513 }
 0x4b2   : > { %v515_v6 = vadd.f32 %v514_v5, %v511_v4 }
 0x4b4   : > { %516 = vst.msk [vmem:[#allocation3 + $0x8] sm:$0xff] %vm297_vm1, %v515_v6 }
 0x4bb   : > { %v594_v7 = vld [vmem:[#allocation3 + $0x8] sm:$0xff] }
 0x4bc   : > { %v596_v8 = vmax.f32 %v594_v7, 1e-30  ;;  %vm595_vm6 = vcmp.gt.f32.partialorder %v594_v7, 0.0 }
 0x4be   : > { %857 = vrcp.f32 %v596_v8 }
 0x4c8   : > { %v858_v9 = vpop.eup %857 }
 0x4c9   : > { %v598_v10 = vsel %vm595_vm6, %v858_v9, 0.0 }
 0x4ca   : > { %602 = vperm.xlu0 %842, %v598_v10  }
 0x4dc   : > { %v590_v19 = vpop.permute.xlu1 %589 }
 0x4dd   : > { %v592_v23 = vmul.f32 %v590_v19, %v438_v20 }
 0x4f8   : > { %v569_v11 = vpop.f32.mrb[4].mxu0 }
 0x4f9   : > { %v811_v12 = vpop.f32.mrb[5].mxu0  ;;  %v575_v21 = vadd.f32 %v569_v11, %v524_v18 }
 0x4fa   : > { %v572_v13 = vpop.f32.mrb[6].mxu0 }
 0x4fb   : > { %v812_v14 = vpop.f32.mrb[7].mxu0 }
 0x549   : > { %v603_v22 = vpop.permute.xlu0 %602 }
 0x54a   : > { %v605_v24 = vmul.f32 %v603_v22, %v575_v21 }
 0x54c   : > { %v780_v25 = vpack.c.bf16 %v605_v24, %v592_v23 }
 0x54e   : > { %613 = vst [vmem:[%s291_s12] sm:$0xff] %v780_v25 }
 0x54f PF: > { %s20_s22 = sadd.s32 1, %s895_s22   ;;  %s1036_s20 = smov %s891_s21 }
 0x550   : > { %p17_p10 = scmp.ge.s32.totalorder %s20_s22, 4   ;;  %s1037_s21 = smov %s1039_s0 }
 0x552   :  { %19 = sbr.rel (!%p17_p10) target bundleno = 17 (0x11), region = 79 }

// kernel: _lambda_.63
= control target key start
LH: loop header
LB: loop body
LE: loop exit
PB: predicated region body
PF: predicated region fallthrough
CT: control target
= control target key end

     0   :  { %s1011_s1 = inlined_call_operand.vmem [shape: bf16[256,512], index: 1, kind: input, shape index: {}]   ;;  %s1012_s0 = inlined_call_operand.vmem [shape: bf16[16,256], index: 0, kind: input, shape index: {}]   ;;  %s1013_s2 = inlined_call_operand.vmem [shape: f32[1,512], index: 2, kind: input, shape index: {}]   ;;  %s1014_s3 = inlined_call_operand.vmem [shape: bf16[16,512], index: 3, kind: output, shape index: {}]  }
   0x1   :  { %v679_v0 = vld [vmem:[%s1011_s1 + $0x4] ss:$16 sps:$4 sm:$0xff]   ;;  %v681_v1 = vld [vmem:[%s1011_s1 + $0xc] ss:$16 sps:$4 sm:$0xff]   ;;  %v683_v2 = vld [vmem:[%s1011_s1] ss:$16 sps:$4 sm:$0xff]  }
   0x2   :  { %430 = vmatprep.subr.bf16.mxu0 %v679_v0  ;;  %v684_v3 = vld [vmem:[%s1011_s1 + $0x8] ss:$16 sps:$4 sm:$0xff]   ;;  %473 = vmatprep.subr.bf16.mxu1 %v681_v1  ;;  %v685_v4 = vld [vmem:[%s1011_s1 + $0x24] ss:$16 sps:$4 sm:$0xff]   ;;  %v687_v5 = vld [vmem:[%s1011_s1 + $0x2c] ss:$16 sps:$4 sm:$0xff]  }
   0x3   :  { %431 = vmatpush1.bf16.msra.mxu0 %v683_v2  ;;  %474 = vmatpush1.bf16.msra.mxu1 %v684_v3  ;;  %v689_v6 = vld [vmem:[%s1011_s1 + $0x20] ss:$16 sps:$4 sm:$0xff]   ;;  %v690_v7 = vld [vmem:[%s1011_s1 + $0x28] ss:$16 sps:$4 sm:$0xff]   ;;  %v691_v8 = vld [vmem:[%s1011_s1 + $0x44] ss:$16 sps:$4 sm:$0xff]   ;;  %v545_v2 = vlaneseq }
   0x4   :  { %432 = vmatprep.subr.bf16.mxu0 %v685_v4  ;;  %475 = vmatprep.subr.bf16.mxu1 %v687_v5  ;;  %v693_v9 = vld [vmem:[%s1011_s1 + $0x4c] ss:$16 sps:$4 sm:$0xff]   ;;  %v695_v10 = vld [vmem:[%s1011_s1 + $0x40] ss:$16 sps:$4 sm:$0xff]   ;;  %v696_v11 = vld [vmem:[%s1011_s1 + $0x48] ss:$16 sps:$4 sm:$0xff]  }
   0x5   :  { %v697_v12 = vld [vmem:[%s1011_s1 + $0x64] ss:$16 sps:$4 sm:$0xff]   ;;  %v699_v13 = vld [vmem:[%s1011_s1 + $0x6c] ss:$16 sps:$4 sm:$0xff]   ;;  %v701_v14 = vld [vmem:[%s1011_s1 + $0x60] ss:$16 sps:$4 sm:$0xff]  }
   0x6   :  { %v702_v15 = vld [vmem:[%s1011_s1 + $0x68] ss:$16 sps:$4 sm:$0xff]   ;;  %v703_v16 = vld [vmem:[%s1011_s1 + $0x84] ss:$16 sps:$4 sm:$0xff]   ;;  %v705_v17 = vld [vmem:[%s1011_s1 + $0x8c] ss:$16 sps:$4 sm:$0xff]  }
   0x7   :  { %433 = vmatpush1.bf16.msra.mxu0 %v689_v6  ;;  %476 = vmatpush1.bf16.msra.mxu1 %v690_v7  ;;  %v707_v18 = vld [vmem:[%s1011_s1 + $0x80] ss:$16 sps:$4 sm:$0xff]   ;;  %v708_v19 = vld [vmem:[%s1011_s1 + $0x88] ss:$16 sps:$4 sm:$0xff]   ;;  %v709_v20 = vld [vmem:[%s1011_s1 + $0xa4] ss:$16 sps:$4 sm:$0xff]  }
   0x8   :  { %434 = vmatprep.subr.bf16.mxu0 %v691_v8  ;;  %477 = vmatprep.subr.bf16.mxu1 %v693_v9  ;;  %v711_v21 = vld [vmem:[%s1011_s1 + $0xac] ss:$16 sps:$4 sm:$0xff]   ;;  %v713_v22 = vld [vmem:[%s1011_s1 + $0xa0] ss:$16 sps:$4 sm:$0xff]   ;;  %v714_v23 = vld [vmem:[%s1011_s1 + $0xa8] ss:$16 sps:$4 sm:$0xff]  }
   0x9   :  { %v715_v24 = vld [vmem:[%s1011_s1 + $0xc4] ss:$16 sps:$4 sm:$0xff]   ;;  %v717_v25 = vld [vmem:[%s1011_s1 + $0xcc] ss:$16 sps:$4 sm:$0xff]   ;;  %v719_v26 = vld [vmem:[%s1011_s1 + $0xc0] ss:$16 sps:$4 sm:$0xff]  }
   0xa   :  { %v720_v27 = vld [vmem:[%s1011_s1 + $0xc8] ss:$16 sps:$4 sm:$0xff]   ;;  %v721_v28 = vld [vmem:[%s1011_s1 + $0xe4] ss:$16 sps:$4 sm:$0xff]   ;;  %v723_v29 = vld [vmem:[%s1011_s1 + $0xec] ss:$16 sps:$4 sm:$0xff]  }
   0xb   :  { %435 = vmatpush1.bf16.msra.mxu0 %v695_v10  ;;  %478 = vmatpush1.bf16.msra.mxu1 %v696_v11  ;;  %v725_v30 = vld [vmem:[%s1011_s1 + $0xe0] ss:$16 sps:$4 sm:$0xff]   ;;  %v726_v31 = vld [vmem:[%s1011_s1 + $0xe8] ss:$16 sps:$4 sm:$0xff]   ;;  %v727_v32 = vld [vmem:[%s1011_s1 + $0x104] ss:$16 sps:$4 sm:$0xff]  }
   0xc   :  { %436 = vmatprep.subr.bf16.mxu0 %v697_v12  ;;  %479 = vmatprep.subr.bf16.mxu1 %v699_v13  ;;  %v729_v33 = vld [vmem:[%s1011_s1 + $0x10c] ss:$16 sps:$4 sm:$0xff]   ;;  %v731_v34 = vld [vmem:[%s1011_s1 + $0x100] ss:$16 sps:$4 sm:$0xff]   ;;  %v732_v35 = vld [vmem:[%s1011_s1 + $0x108] ss:$16 sps:$4 sm:$0xff]  }
   0xd   :  { %v733_v36 = vld [vmem:[%s1011_s1 + $0x124] ss:$16 sps:$4 sm:$0xff]   ;;  %v735_v37 = vld [vmem:[%s1011_s1 + $0x12c] ss:$16 sps:$4 sm:$0xff]   ;;  %v737_v38 = vld [vmem:[%s1011_s1 + $0x120] ss:$16 sps:$4 sm:$0xff]  }
   0xe   :  { %v738_v39 = vld [vmem:[%s1011_s1 + $0x128] ss:$16 sps:$4 sm:$0xff]   ;;  %v739_v40 = vld [vmem:[%s1011_s1 + $0x144] ss:$16 sps:$4 sm:$0xff]   ;;  %v741_v41 = vld [vmem:[%s1011_s1 + $0x14c] ss:$16 sps:$4 sm:$0xff]  }
   0xf   :  { %437 = vmatpush1.bf16.msra.mxu0 %v701_v14  ;;  %480 = vmatpush1.bf16.msra.mxu1 %v702_v15  ;;  %v743_v42 = vld [vmem:[%s1011_s1 + $0x140] ss:$16 sps:$4 sm:$0xff]   ;;  %v744_v43 = vld [vmem:[%s1011_s1 + $0x148] ss:$16 sps:$4 sm:$0xff]   ;;  %v745_v44 = vld [vmem:[%s1011_s1 + $0x164] ss:$16 sps:$4 sm:$0xff]  }
  0x10   :  { %438 = vmatprep.subr.bf16.mxu0 %v703_v16  ;;  %481 = vmatprep.subr.bf16.mxu1 %v705_v17  ;;  %v747_v45 = vld [vmem:[%s1011_s1 + $0x16c] ss:$16 sps:$4 sm:$0xff]   ;;  %v749_v47 = vld [vmem:[%s1011_s1 + $0x160] ss:$16 sps:$4 sm:$0xff]   ;;  %v750_v48 = vld [vmem:[%s1011_s1 + $0x168] ss:$16 sps:$4 sm:$0xff]  }
  0x11   :  { %v777_v46 = vld [vmem:[%s1012_s0 + $0x4] ss:$8 sps:$4 sm:$0xff]   ;;  %v755_v51 = vld [vmem:[%s1011_s1 + $0x180] ss:$16 sps:$4 sm:$0xff]   ;;  %v756_v52 = vld [vmem:[%s1011_s1 + $0x188] ss:$16 sps:$4 sm:$0xff]  }
  0x12   :  { %v751_v49 = vld [vmem:[%s1011_s1 + $0x184] ss:$16 sps:$4 sm:$0xff]   ;;  %v753_v50 = vld [vmem:[%s1011_s1 + $0x18c] ss:$16 sps:$4 sm:$0xff]   ;;  %462 = vmatprep.mubr.bf16.mxu0 %v777_v46  ;;  %505 = vmatprep.mubr.bf16.mxu1 %v777_v46  ;;  %v761_v55 = vld [vmem:[%s1011_s1 + $0x1a0] ss:$16 sps:$4 sm:$0xff]  }
  0x13   :  { %439 = vmatpush1.bf16.msra.mxu0 %v707_v18  ;;  %482 = vmatpush1.bf16.msra.mxu1 %v708_v19  ;;  %v757_v53 = vld [vmem:[%s1011_s1 + $0x1a4] ss:$16 sps:$4 sm:$0xff]   ;;  %v759_v54 = vld [vmem:[%s1011_s1 + $0x1ac] ss:$16 sps:$4 sm:$0xff]   ;;  %v762_v56 = vld [vmem:[%s1011_s1 + $0x1a8] ss:$16 sps:$4 sm:$0xff]  }
  0x14   :  { %440 = vmatprep.subr.bf16.mxu0 %v709_v20  ;;  %483 = vmatprep.subr.bf16.mxu1 %v711_v21  ;;  %v763_v57 = vld [vmem:[%s1011_s1 + $0x1c4] ss:$16 sps:$4 sm:$0xff]   ;;  %v765_v58 = vld [vmem:[%s1011_s1 + $0x1cc] ss:$16 sps:$4 sm:$0xff]   ;;  %v767_v59 = vld [vmem:[%s1011_s1 + $0x1c0] ss:$16 sps:$4 sm:$0xff]  }
  0x15   :  { %v768_v60 = vld [vmem:[%s1011_s1 + $0x1c8] ss:$16 sps:$4 sm:$0xff]   ;;  %v769_v61 = vld [vmem:[%s1011_s1 + $0x1e4] ss:$16 sps:$4 sm:$0xff]   ;;  %v771_v62 = vld [vmem:[%s1011_s1 + $0x1ec] ss:$16 sps:$4 sm:$0xff]  }
  0x16   :  { %v773_v63 = vld [vmem:[%s1011_s1 + $0x1e0] ss:$16 sps:$4 sm:$0xff]   ;;  %v774_v0 = vld [vmem:[%s1011_s1 + $0x1e8] ss:$16 sps:$4 sm:$0xff]   ;;  %v546_v3 = vshrl.u32 %v545_v2, 7 }
  0x17   :  { %441 = vmatpush1.bf16.msra.mxu0 %v713_v22  ;;  %484 = vmatpush1.bf16.msra.mxu1 %v714_v23  ;;  %v775_v1 = vld [vmem:[%s1012_s0] ss:$8 sps:$4 sm:$0xff]  }
  0x18   :  { %442 = vmatprep.subr.bf16.mxu0 %v715_v24  ;;  %485 = vmatprep.subr.bf16.mxu1 %v717_v25  ;;  %v547_v4 = vsub.s32 0, %v546_v3  ;;  %v555_v5 = vsub.s32 2, %v546_v3  ;;  %v543_v6 = vld [vmem:[%s1013_s2] sm:$0xf]  ;;  %v551_v7 = vsub.s32 1, %v546_v3  ;;  %v559_v8 = vsub.s32 3, %v546_v3 }
  0x1a   :  { %v548_v9 = vrot.slane %v543_v6, %v547_v4  ;;  %v556_v10 = vrot.slane %v543_v6, %v555_v5  ;;  %v552_v11 = vrot.slane %v543_v6, %v551_v7  ;;  %v560_v12 = vrot.slane %v543_v6, %v559_v8 }
  0x1b   :  { %443 = vmatpush1.bf16.msra.mxu0 %v719_v26  ;;  %486 = vmatpush1.bf16.msra.mxu1 %v720_v27 }
  0x1c   :  { %444 = vmatprep.subr.bf16.mxu0 %v721_v28  ;;  %487 = vmatprep.subr.bf16.mxu1 %v723_v29 }
  0x1f   :  { %445 = vmatpush1.bf16.msra.mxu0 %v725_v30  ;;  %488 = vmatpush1.bf16.msra.mxu1 %v726_v31 }
  0x20   :  { %446 = vmatprep.subr.bf16.mxu0 %v727_v32  ;;  %489 = vmatprep.subr.bf16.mxu1 %v729_v33 }
  0x23   :  { %447 = vmatpush1.bf16.msra.mxu0 %v731_v34  ;;  %490 = vmatpush1.bf16.msra.mxu1 %v732_v35 }
  0x24   :  { %448 = vmatprep.subr.bf16.mxu0 %v733_v36  ;;  %491 = vmatprep.subr.bf16.mxu1 %v735_v37 }
  0x27   :  { %449 = vmatpush1.bf16.msra.mxu0 %v737_v38  ;;  %492 = vmatpush1.bf16.msra.mxu1 %v738_v39 }
  0x28   :  { %450 = vmatprep.subr.bf16.mxu0 %v739_v40  ;;  %493 = vmatprep.subr.bf16.mxu1 %v741_v41 }
  0x2b   :  { %451 = vmatpush1.bf16.msra.mxu0 %v743_v42  ;;  %494 = vmatpush1.bf16.msra.mxu1 %v744_v43 }
  0x2c   :  { %452 = vmatprep.subr.bf16.mxu0 %v745_v44  ;;  %495 = vmatprep.subr.bf16.mxu1 %v747_v45 }
  0x2f   :  { %453 = vmatpush1.bf16.msra.mxu0 %v749_v47  ;;  %496 = vmatpush1.bf16.msra.mxu1 %v750_v48 }
  0x30   :  { %454 = vmatprep.subr.bf16.mxu0 %v751_v49  ;;  %497 = vmatprep.subr.bf16.mxu1 %v753_v50 }
  0x33   :  { %455 = vmatpush1.bf16.msra.mxu0 %v755_v51  ;;  %498 = vmatpush1.bf16.msra.mxu1 %v756_v52 }
  0x34   :  { %456 = vmatprep.subr.bf16.mxu0 %v757_v53  ;;  %499 = vmatprep.subr.bf16.mxu1 %v759_v54 }
  0x37   :  { %457 = vmatpush1.bf16.msra.mxu0 %v761_v55  ;;  %500 = vmatpush1.bf16.msra.mxu1 %v762_v56 }
  0x38   :  { %458 = vmatprep.subr.bf16.mxu0 %v763_v57  ;;  %501 = vmatprep.subr.bf16.mxu1 %v765_v58 }
  0x3b   :  { %459 = vmatpush1.bf16.msra.mxu0 %v767_v59  ;;  %502 = vmatpush1.bf16.msra.mxu1 %v768_v60 }
  0x3c   :  { %460 = vmatprep.subr.bf16.mxu0 %v769_v61  ;;  %503 = vmatprep.subr.bf16.mxu1 %v771_v62 }
  0x3f   :  { %461 = vmatpush1.bf16.msra.mxu0 %v773_v63  ;;  %504 = vmatpush1.bf16.msra.mxu1 %v774_v0 }
  0x42   :  { %463 = vmatmul.mubr.bf16.vlgmr.msra.gmra.mrb[0].mxu0 %v775_v1  ;;  %506 = vmatmul.mubr.bf16.vlgmr.msra.gmra.mrb[0].mxu1 %v775_v1 }
 0x115   :  { %v464_v13 = vpop.f32.mrb[0].mxu0  ;;  %v507_v14 = vpop.f32.mrb[0].mxu1 }
 0x116   :  { %v565_v15 = vadd.f32 %v548_v9, %v464_v13  ;;  %v567_v16 = vadd.f32 %v556_v10, %v507_v14  ;;  %v466_v17 = vpop.f32.mrb[1].mxu0  ;;  %v509_v18 = vpop.f32.mrb[1].mxu1 }
 0x117   :  { %v566_v19 = vadd.f32 %v552_v11, %v466_v17  ;;  %v568_v20 = vadd.f32 %v560_v12, %v509_v18  ;;  %v468_v21 = vpop.f32.mrb[2].mxu0  ;;  %v511_v22 = vpop.f32.mrb[2].mxu1 }
 0x118   :  { %v569_v23 = vadd.f32 %v548_v9, %v468_v21  ;;  %v571_v24 = vadd.f32 %v556_v10, %v511_v22  ;;  %v470_v25 = vpop.f32.mrb[3].mxu0  ;;  %v513_v26 = vpop.f32.mrb[3].mxu1 }
 0x119   :  { %v675_v27 = vpack.c.bf16 %v566_v19, %v565_v15  ;;  %v676_v28 = vpack.c.bf16 %v568_v20, %v567_v16  ;;  %v570_v29 = vadd.f32 %v552_v11, %v470_v25  ;;  %v572_v30 = vadd.f32 %v560_v12, %v513_v26 }
 0x11b   :  { %597 = vst [vmem:[%s1014_s3] sm:$0xff] %v675_v27  ;;  %598 = vst [vmem:[%s1014_s3 + $0x8] sm:$0xff] %v676_v28  ;;  %v677_v31 = vpack.c.bf16 %v570_v29, %v569_v23  ;;  %v678_v32 = vpack.c.bf16 %v572_v30, %v571_v24 }
 0x11d   :  { %599 = vst [vmem:[%s1014_s3 + $0x10] sm:$0xff] %v677_v31  ;;  %600 = vst [vmem:[%s1014_s3 + $0x18] sm:$0xff] %v678_v32 }

// kernel: _lambda_.68
= control target key start
LH: loop header
LB: loop body
LE: loop exit
PB: predicated region body
PF: predicated region fallthrough
CT: control target
= control target key end

     0   :  { %s385_s1 = inlined_call_operand.vmem [shape: bf16[256,128], index: 1, kind: input, shape index: {}]   ;;  %s386_s0 = inlined_call_operand.vmem [shape: bf16[16,256], index: 0, kind: input, shape index: {}]   ;;  %s387_s2 = inlined_call_operand.vmem [shape: f32[1,128], index: 2, kind: input, shape index: {}]   ;;  %s388_s3 = inlined_call_operand.vmem [shape: bf16[16,128], index: 3, kind: output, shape index: {}]  }
   0x1   :  { %v286_v0 = vld [vmem:[%s385_s1 + $0x40] sm:$0xff]   ;;  %v288_v2 = vld [vmem:[%s385_s1 + $0x48] sm:$0xff]   ;;  %v290_v4 = vld [vmem:[%s385_s1 + $0x50] sm:$0xff]  }
   0x2   :  { %v287_v1 = vld [vmem:[%s385_s1] sm:$0xff]   ;;  %264 = vmatprep.subr.bf16.mxu0 %v286_v0  ;;  %v289_v3 = vld [vmem:[%s385_s1 + $0x8] sm:$0xff]   ;;  %v291_v5 = vld [vmem:[%s385_s1 + $0x10] sm:$0xff]  }
   0x3   :  { %265 = vmatpush3.bf16.msra.mxu0 %v287_v1  ;;  %v292_v6 = vld [vmem:[%s385_s1 + $0x58] sm:$0xff]   ;;  %v294_v8 = vld [vmem:[%s385_s1 + $0x60] sm:$0xff]   ;;  %v296_v10 = vld [vmem:[%s385_s1 + $0x68] sm:$0xff]  }
   0x4   :  { %266 = vmatprep.subr.bf16.mxu0 %v288_v2  ;;  %v293_v7 = vld [vmem:[%s385_s1 + $0x18] sm:$0xff]   ;;  %v295_v9 = vld [vmem:[%s385_s1 + $0x20] sm:$0xff]   ;;  %v297_v12 = vld [vmem:[%s385_s1 + $0x28] sm:$0xff]  }
   0x5   :  { %v304_v11 = vld [vmem:[%s386_s0 + $0x4] ss:$8 sps:$4 sm:$0xff]   ;;  %v298_v13 = vld [vmem:[%s385_s1 + $0x70] sm:$0xff]   ;;  %v300_v15 = vld [vmem:[%s385_s1 + $0x78] sm:$0xff]  }
   0x6   :  { %195 = vmatprep.mubr.bf16.mxu0 %v304_v11  ;;  %v299_v14 = vld [vmem:[%s385_s1 + $0x30] sm:$0xff]   ;;  %v301_v16 = vld [vmem:[%s385_s1 + $0x38] sm:$0xff]   ;;  %v302_v17 = vld [vmem:[%s386_s0] ss:$8 sps:$4 sm:$0xff]  }
   0x7   :  { %267 = vmatpush3.bf16.msra.mxu0 %v289_v3  ;;  %v254_v22 = vld [vmem:[%s387_s2] ss:$0 sm:$0xff] }
   0x8   :  { %268 = vmatprep.subr.bf16.mxu0 %v290_v4 }
   0xb   :  { %269 = vmatpush3.bf16.msra.mxu0 %v291_v5 }
   0xc   :  { %270 = vmatprep.subr.bf16.mxu0 %v292_v6 }
   0xf   :  { %271 = vmatpush3.bf16.msra.mxu0 %v293_v7 }
  0x10   :  { %272 = vmatprep.subr.bf16.mxu0 %v294_v8 }
  0x13   :  { %273 = vmatpush3.bf16.msra.mxu0 %v295_v9 }
  0x14   :  { %274 = vmatprep.subr.bf16.mxu0 %v296_v10 }
  0x17   :  { %275 = vmatpush3.bf16.msra.mxu0 %v297_v12 }
  0x18   :  { %276 = vmatprep.subr.bf16.mxu0 %v298_v13 }
  0x1b   :  { %277 = vmatpush3.bf16.msra.mxu0 %v299_v14 }
  0x1c   :  { %278 = vmatprep.subr.bf16.mxu0 %v300_v15 }
  0x1f   :  { %279 = vmatpush3.bf16.msra.mxu0 %v301_v16 }
  0x22   :  { %196 = vmatmul.mubr.bf16.vlgmr.msra.gmra.mrb[0].mxu0 %v302_v17 }
  0xf5   :  { %v280_v18 = vpop.f32.mrb[0].mxu0 }
  0xf6   :  { %v281_v19 = vpop.f32.mrb[1].mxu0 }
  0xf7   :  { %v282_v20 = vadd.f32 %v281_v19, %v280_v18  ;;  %v283_v21 = vpop.f32.mrb[2].mxu0 }
  0xf8   :  { %v284_v23 = vpop.f32.mrb[3].mxu0 }
  0xf9   :  { %v285_v24 = vadd.f32 %v284_v23, %v283_v21  ;;  %v220_v25 = vadd.f32 %v282_v20, %v254_v22 }
  0xfb   :  { %v221_v26 = vadd.f32 %v285_v24, %v254_v22 }
  0xfd   :  { %v262_v27 = vpack.c.bf16 %v221_v26, %v220_v25 }
  0xff   :  { %263 = vst [vmem:[%s388_s3] sm:$0xff] %v262_v27  }

// kernel: _lambda_.66
= control target key start
LH: loop header
LB: loop body
LE: loop exit
PB: predicated region body
PF: predicated region fallthrough
CT: control target
= control target key end

     0   :  { %s1959_s0 = inlined_call_operand.vmem [shape: bf16[16,256], index: 0, kind: input, shape index: {}]   ;;  %s1960_s3 = inlined_call_operand.vmem [shape: bf16[256,512], index: 3, kind: input, shape index: {}]   ;;  %s1961_s5 = inlined_call_operand.vmem [shape: bf16[512,256], index: 5, kind: input, shape index: {}]   ;;  %s1962_s1 = inlined_call_operand.vmem [shape: f32[1,256], index: 1, kind: input, shape index: {}]   ;;  %s1963_s2 = inlined_call_operand.vmem [shape: f32[1,256], index: 2, kind: input, shape index: {}]   ;;  %s1964_s4 = inlined_call_operand.vmem [shape: f32[1,512], index: 4, kind: input, shape index: {}]   ;;  %s1965_s6 = inlined_call_operand.vmem [shape: f32[1,256], index: 6, kind: input, shape index: {}]   ;;  %s1966_s7 = inlined_call_operand.vmem [shape: bf16[16,256], index: 7, kind: output, shape index: {}]  }
   0x1   :  { %v26_v0 = vld [vmem:[%s1959_s0] sm:$0xff]  ;;  %v27_v1 = vld [vmem:[%s1959_s0 + $0x8] sm:$0xff]  ;;  %v1346_v57 = vld [vmem:[%s1961_s5 + $0x14] ss:$8 sps:$4 sm:$0xff]  }
   0x2   :  { %v1489_v2 = vunpack.c.l.bf16 %v26_v0  ;;  %v1491_v3 = vunpack.c.h.bf16 %v26_v0  ;;  %v1493_v4 = vunpack.c.l.bf16 %v27_v1  ;;  %v1495_v5 = vunpack.c.h.bf16 %v27_v1  ;;  %v1247_v8 = vld [vmem:[%s1960_s3 + $0x4] ss:$16 sps:$4 sm:$0xff]   ;;  %v1249_v9 = vld [vmem:[%s1960_s3] ss:$16 sps:$4 sm:$0xff]   ;;  %v1297_v54 = vld [vmem:[%s1960_s3 + $0xc] ss:$16 sps:$4 sm:$0xff]  }
   0x3   :  { %505 = vmatprep.subr.bf16.mxu1 %v1247_v8  ;;  %v1250_v10 = vld [vmem:[%s1960_s3 + $0x24] ss:$16 sps:$4 sm:$0xff]   ;;  %v1252_v11 = vld [vmem:[%s1960_s3 + $0x20] ss:$16 sps:$4 sm:$0xff]  }
   0x4   :  { %v34_v6 = vadd.f32 %v1491_v3, %v1489_v2  ;;  %v37_v7 = vadd.f32 %v1495_v5, %v1493_v4  ;;  %506 = vmatpush1.bf16.msra.mxu1 %v1249_v9  ;;  %v1253_v12 = vld [vmem:[%s1960_s3 + $0x44] ss:$16 sps:$4 sm:$0xff]   ;;  %v1255_v13 = vld [vmem:[%s1960_s3 + $0x40] ss:$16 sps:$4 sm:$0xff]  }
   0x5   :  { %507 = vmatprep.subr.bf16.mxu1 %v1250_v10  ;;  %v1256_v14 = vld [vmem:[%s1960_s3 + $0x64] ss:$16 sps:$4 sm:$0xff]   ;;  %v1258_v15 = vld [vmem:[%s1960_s3 + $0x60] ss:$16 sps:$4 sm:$0xff]  }
   0x6   :  { %35 = vadd.xlane.f32.xlu0 %v34_v6  ;;  %v1259_v16 = vld [vmem:[%s1960_s3 + $0x84] ss:$16 sps:$4 sm:$0xff]   ;;  %v1261_v17 = vld [vmem:[%s1960_s3 + $0x80] ss:$16 sps:$4 sm:$0xff]  }
   0x7   :  { %v1262_v18 = vld [vmem:[%s1960_s3 + $0xa4] ss:$16 sps:$4 sm:$0xff]   ;;  %v1264_v19 = vld [vmem:[%s1960_s3 + $0xa0] ss:$16 sps:$4 sm:$0xff]  }
   0x8   :  { %508 = vmatpush1.bf16.msra.mxu1 %v1252_v11  ;;  %v1265_v20 = vld [vmem:[%s1960_s3 + $0xc4] ss:$16 sps:$4 sm:$0xff]   ;;  %v1267_v21 = vld [vmem:[%s1960_s3 + $0xc0] ss:$16 sps:$4 sm:$0xff]  }
   0x9   :  { %509 = vmatprep.subr.bf16.mxu1 %v1253_v12  ;;  %v1268_v22 = vld [vmem:[%s1960_s3 + $0xe4] ss:$16 sps:$4 sm:$0xff]   ;;  %v1270_v23 = vld [vmem:[%s1960_s3 + $0xe0] ss:$16 sps:$4 sm:$0xff]  }
   0xa   :  { %38 = vadd.xlane.f32.xlu0 %v37_v7  ;;  %v1271_v24 = vld [vmem:[%s1960_s3 + $0x104] ss:$16 sps:$4 sm:$0xff]   ;;  %v1273_v25 = vld [vmem:[%s1960_s3 + $0x100] ss:$16 sps:$4 sm:$0xff]  }
   0xb   :  { %v1274_v26 = vld [vmem:[%s1960_s3 + $0x124] ss:$16 sps:$4 sm:$0xff]   ;;  %v1276_v41 = vld [vmem:[%s1960_s3 + $0x120] ss:$16 sps:$4 sm:$0xff]  }
   0xc   :  { %510 = vmatpush1.bf16.msra.mxu1 %v1255_v13  ;;  %v1277_v42 = vld [vmem:[%s1960_s3 + $0x144] ss:$16 sps:$4 sm:$0xff]   ;;  %v1279_v43 = vld [vmem:[%s1960_s3 + $0x140] ss:$16 sps:$4 sm:$0xff]  }
   0xd   :  { %511 = vmatprep.subr.bf16.mxu1 %v1256_v14  ;;  %v1280_v44 = vld [vmem:[%s1960_s3 + $0x164] ss:$16 sps:$4 sm:$0xff]   ;;  %v1282_v45 = vld [vmem:[%s1960_s3 + $0x160] ss:$16 sps:$4 sm:$0xff]  }
   0xe   :  { %v1283_v46 = vld [vmem:[%s1960_s3 + $0x184] ss:$16 sps:$4 sm:$0xff]   ;;  %v1285_v47 = vld [vmem:[%s1960_s3 + $0x180] ss:$16 sps:$4 sm:$0xff]  }
   0xf   :  { %v1286_v48 = vld [vmem:[%s1960_s3 + $0x1a4] ss:$16 sps:$4 sm:$0xff]   ;;  %v1288_v49 = vld [vmem:[%s1960_s3 + $0x1a0] ss:$16 sps:$4 sm:$0xff]  }
  0x10   :  { %512 = vmatpush1.bf16.msra.mxu1 %v1258_v15  ;;  %v1289_v50 = vld [vmem:[%s1960_s3 + $0x1c4] ss:$16 sps:$4 sm:$0xff]   ;;  %v1291_v51 = vld [vmem:[%s1960_s3 + $0x1c0] ss:$16 sps:$4 sm:$0xff]  }
  0x11   :  { %513 = vmatprep.subr.bf16.mxu1 %v1259_v16  ;;  %v1292_v52 = vld [vmem:[%s1960_s3 + $0x1e4] ss:$16 sps:$4 sm:$0xff]   ;;  %v1294_v53 = vld [vmem:[%s1960_s3 + $0x1e0] ss:$16 sps:$4 sm:$0xff]  }
  0x12   :  { %v1343_v55 = vld [vmem:[%s1961_s5 + $0x4] ss:$8 sps:$4 sm:$0xff]   ;;  %v1345_v56 = vld [vmem:[%s1961_s5] ss:$8 sps:$4 sm:$0xff]   ;;  %v1348_v58 = vld [vmem:[%s1961_s5 + $0x10] ss:$8 sps:$4 sm:$0xff]  }
  0x13   :  { %999 = vmatprep.subr.bf16.mxu0 %v1343_v55  ;;  %v1349_v59 = vld [vmem:[%s1961_s5 + $0x24] ss:$8 sps:$4 sm:$0xff]   ;;  %v1351_v60 = vld [vmem:[%s1961_s5 + $0x20] ss:$8 sps:$4 sm:$0xff]   ;;  %v1352_v61 = vld [vmem:[%s1961_s5 + $0x34] ss:$8 sps:$4 sm:$0xff]  }
  0x14   :  { %514 = vmatpush1.bf16.msra.mxu1 %v1261_v17  ;;  %1000 = vmatpush1.bf16.msra.mxu0 %v1345_v56  ;;  %v1354_v62 = vld [vmem:[%s1961_s5 + $0x30] ss:$8 sps:$4 sm:$0xff]   ;;  %v1355_v63 = vld [vmem:[%s1961_s5 + $0x44] ss:$8 sps:$4 sm:$0xff]   ;;  %v1357_v0 = vld [vmem:[%s1961_s5 + $0x40] ss:$8 sps:$4 sm:$0xff]  }
  0x15   :  { %515 = vmatprep.subr.bf16.mxu1 %v1262_v18  ;;  %1001 = vmatprep.subr.bf16.mxu0 %v1346_v57  ;;  %v1358_v1 = vld [vmem:[%s1961_s5 + $0x54] ss:$8 sps:$4 sm:$0xff]   ;;  %v1360_v6 = vld [vmem:[%s1961_s5 + $0x50] ss:$8 sps:$4 sm:$0xff]   ;;  %v1361_v7 = vld [vmem:[%s1961_s5 + $0x64] ss:$8 sps:$4 sm:$0xff]  }
  0x16   :  { %v1363_v8 = vld [vmem:[%s1961_s5 + $0x60] ss:$8 sps:$4 sm:$0xff]   ;;  %v1364_v9 = vld [vmem:[%s1961_s5 + $0x74] ss:$8 sps:$4 sm:$0xff]   ;;  %v1366_v10 = vld [vmem:[%s1961_s5 + $0x70] ss:$8 sps:$4 sm:$0xff]  }
  0x17   :  { %v1367_v11 = vld [vmem:[%s1961_s5 + $0x84] ss:$8 sps:$4 sm:$0xff]   ;;  %v1369_v12 = vld [vmem:[%s1961_s5 + $0x80] ss:$8 sps:$4 sm:$0xff]   ;;  %v1370_v13 = vld [vmem:[%s1961_s5 + $0x94] ss:$8 sps:$4 sm:$0xff]  }
  0x18   :  { %516 = vmatpush1.bf16.msra.mxu1 %v1264_v19  ;;  %1002 = vmatpush1.bf16.msra.mxu0 %v1348_v58  ;;  %v1372_v16 = vld [vmem:[%s1961_s5 + $0x90] ss:$8 sps:$4 sm:$0xff]   ;;  %v1373_v17 = vld [vmem:[%s1961_s5 + $0xa4] ss:$8 sps:$4 sm:$0xff]  }
  0x19   :  { %517 = vmatprep.subr.bf16.mxu1 %v1265_v20  ;;  %1003 = vmatprep.subr.bf16.mxu0 %v1349_v59  ;;  %v68_v20 = vlaneseq  ;;  %v1295_v56 = vld [vmem:[%s1960_s3 + $0x8] ss:$16 sps:$4 sm:$0xff]   ;;  %v1303_v58 = vld [vmem:[%s1960_s3 + $0x4c] ss:$16 sps:$4 sm:$0xff]  }
  0x1a   :  { %v1301_v59 = vld [vmem:[%s1960_s3 + $0x48] ss:$16 sps:$4 sm:$0xff]  }
  0x1c   :  { %518 = vmatpush1.bf16.msra.mxu1 %v1267_v21  ;;  %1004 = vmatpush1.bf16.msra.mxu0 %v1351_v60  ;;  %v1306_v60 = vld [vmem:[%s1960_s3 + $0x6c] ss:$16 sps:$4 sm:$0xff]  }
  0x1d   :  { %519 = vmatprep.subr.bf16.mxu1 %v1268_v22  ;;  %1005 = vmatprep.subr.bf16.mxu0 %v1352_v61  ;;  %v1375_v22 = vld [vmem:[%s1961_s5 + $0xa0] ss:$8 sps:$4 sm:$0xff]  }
  0x1e   :  { %v1304_v61 = vld [vmem:[%s1960_s3 + $0x68] ss:$16 sps:$4 sm:$0xff]  }
  0x20   :  { %520 = vmatpush1.bf16.msra.mxu1 %v1270_v23  ;;  %1006 = vmatpush1.bf16.msra.mxu0 %v1354_v62  ;;  %v1376_v23 = vld [vmem:[%s1961_s5 + $0xb4] ss:$8 sps:$4 sm:$0xff]  }
  0x21   :  { %521 = vmatprep.subr.bf16.mxu1 %v1271_v24  ;;  %1007 = vmatprep.subr.bf16.mxu0 %v1355_v63  ;;  %v1309_v62 = vld [vmem:[%s1960_s3 + $0x8c] ss:$16 sps:$4 sm:$0xff]   ;;  %v1307_v63 = vld [vmem:[%s1960_s3 + $0x88] ss:$16 sps:$4 sm:$0xff]  }
  0x24   :  { %522 = vmatpush1.bf16.msra.mxu1 %v1273_v25  ;;  %1008 = vmatpush1.bf16.msra.mxu0 %v1357_v0  ;;  %v1689_v25 = vshrl.u32 %v68_v20, 7  ;;  %v1312_v0 = vld [vmem:[%s1960_s3 + $0xac] ss:$16 sps:$4 sm:$0xff]  }
  0x25   :  { %523 = vmatprep.subr.bf16.mxu1 %v1274_v26  ;;  %1009 = vmatprep.subr.bf16.mxu0 %v1358_v1  ;;  %v1378_v26 = vld [vmem:[%s1961_s5 + $0xb0] ss:$8 sps:$4 sm:$0xff]   ;;  %v1336_v20 = vld [vmem:[%s1960_s3 + $0x1ac] ss:$16 sps:$4 sm:$0xff]  }
  0x26   :  { %v1310_v1 = vld [vmem:[%s1960_s3 + $0xa8] ss:$16 sps:$4 sm:$0xff]  }
  0x28   :  { %524 = vmatpush1.bf16.msra.mxu1 %v1276_v41  ;;  %1010 = vmatpush1.bf16.msra.mxu0 %v1360_v6  ;;  %v1315_v6 = vld [vmem:[%s1960_s3 + $0xcc] ss:$16 sps:$4 sm:$0xff]  }
  0x29   :  { %525 = vmatprep.subr.bf16.mxu1 %v1277_v42  ;;  %1011 = vmatprep.subr.bf16.mxu0 %v1361_v7  ;;  %v1313_v7 = vld [vmem:[%s1960_s3 + $0xc8] ss:$16 sps:$4 sm:$0xff]  }
  0x2c   :  { %526 = vmatpush1.bf16.msra.mxu1 %v1279_v43  ;;  %1012 = vmatpush1.bf16.msra.mxu0 %v1363_v8  ;;  %v1384_v43 = vld [vmem:[%s1961_s5 + $0xd0] ss:$8 sps:$4 sm:$0xff]   ;;  %v1318_v8 = vld [vmem:[%s1960_s3 + $0xec] ss:$16 sps:$4 sm:$0xff]  }
  0x2d   :  { %527 = vmatprep.subr.bf16.mxu1 %v1280_v44  ;;  %1013 = vmatprep.subr.bf16.mxu0 %v1364_v9  ;;  %v1316_v9 = vld [vmem:[%s1960_s3 + $0xe8] ss:$16 sps:$4 sm:$0xff]  }
  0x30   :  { %528 = vmatpush1.bf16.msra.mxu1 %v1282_v45  ;;  %1014 = vmatpush1.bf16.msra.mxu0 %v1366_v10  ;;  %v1321_v10 = vld [vmem:[%s1960_s3 + $0x10c] ss:$16 sps:$4 sm:$0xff]  }
  0x31   :  { %529 = vmatprep.subr.bf16.mxu1 %v1283_v46  ;;  %1015 = vmatprep.subr.bf16.mxu0 %v1367_v11  ;;  %v1319_v11 = vld [vmem:[%s1960_s3 + $0x108] ss:$16 sps:$4 sm:$0xff]  }
  0x34   :  { %530 = vmatpush1.bf16.msra.mxu1 %v1285_v47  ;;  %1016 = vmatpush1.bf16.msra.mxu0 %v1369_v12  ;;  %v1324_v12 = vld [vmem:[%s1960_s3 + $0x12c] ss:$16 sps:$4 sm:$0xff]  }
  0x35   :  { %531 = vmatprep.subr.bf16.mxu1 %v1286_v48  ;;  %1017 = vmatprep.subr.bf16.mxu0 %v1370_v13  ;;  %v1322_v13 = vld [vmem:[%s1960_s3 + $0x128] ss:$16 sps:$4 sm:$0xff]  }
  0x38   :  { %532 = vmatpush1.bf16.msra.mxu1 %v1288_v49  ;;  %1018 = vmatpush1.bf16.msra.mxu0 %v1372_v16  ;;  %v1330_v16 = vld [vmem:[%s1960_s3 + $0x16c] ss:$16 sps:$4 sm:$0xff]  }
  0x39   :  { %533 = vmatprep.subr.bf16.mxu1 %v1289_v50  ;;  %1019 = vmatprep.subr.bf16.mxu0 %v1373_v17  ;;  %v1328_v17 = vld [vmem:[%s1960_s3 + $0x168] ss:$16 sps:$4 sm:$0xff]  }
  0x3c   :  { %534 = vmatpush1.bf16.msra.mxu1 %v1291_v51  ;;  %1020 = vmatpush1.bf16.msra.mxu0 %v1375_v22  ;;  %v1339_v22 = vld [vmem:[%s1960_s3 + $0x1cc] ss:$16 sps:$4 sm:$0xff]  }
  0x3d   :  { %535 = vmatprep.subr.bf16.mxu1 %v1292_v52  ;;  %1021 = vmatprep.subr.bf16.mxu0 %v1376_v23  ;;  %v1337_v23 = vld [vmem:[%s1960_s3 + $0x1c8] ss:$16 sps:$4 sm:$0xff]  }
  0x40   :  { %536 = vmatpush1.bf16.msra.mxu1 %v1294_v53  ;;  %1022 = vmatpush1.bf16.msra.mxu0 %v1378_v26  ;;  %v1340_v26 = vld [vmem:[%s1960_s3 + $0x1e8] ss:$16 sps:$4 sm:$0xff]  }
  0x41   :  { %548 = vmatprep.subr.bf16.mxu1 %v1297_v54 }
  0x93   :  { %v36_v27 = vpop.xlane.xlu0 %35 }
  0x94   :  { %v41_v28 = vmul.f32 0.00390625, %v36_v27  ;;  %v1379_v27 = vld [vmem:[%s1961_s5 + $0xc4] ss:$8 sps:$4 sm:$0xff]  }
  0x95   :  { %1023 = vmatprep.subr.bf16.mxu0 %v1379_v27  ;;  %v1385_v27 = vld [vmem:[%s1961_s5 + $0xe4] ss:$8 sps:$4 sm:$0xff]  }
  0x96   :  { %v1559_v29 = vsub.f32 %v1489_v2, %v41_v28  ;;  %v1562_v30 = vsub.f32 %v1491_v3, %v41_v28  ;;  %v1698_v28 = vsub.s32 0, %v1689_v25 }
  0x97   :  { %v39_v31 = vpop.xlane.xlu0 %38 }
  0x98   :  { %v42_v32 = vmul.f32 0.00390625, %v39_v31  ;;  %v47_v33 = vmul.f32 %v1559_v29, %v1559_v29  ;;  %v48_v34 = vmul.f32 %v1562_v30, %v1562_v30  ;;  %v1701_v31 = vsub.s32 1, %v1689_v25 }
  0x9a   :  { %v1569_v35 = vsub.f32 %v1493_v4, %v42_v32  ;;  %v1572_v36 = vsub.f32 %v1495_v5, %v42_v32  ;;  %v51_v37 = vadd.f32 %v48_v34, %v47_v33  ;;  %v32_v32 = vld [vmem:[%s1962_s1] sm:$0x3]  ;;  %v1382_v34 = vld [vmem:[%s1961_s5 + $0xd4] ss:$8 sps:$4 sm:$0xff]  }
  0x9b   :  { %v1381_v33 = vld [vmem:[%s1961_s5 + $0xc0] ss:$8 sps:$4 sm:$0xff]   ;;  %v75_v41 = vrot.slane %v32_v32, %v1701_v31 }
  0x9c   :  { %52 = vadd.xlane.f32.xlu1 %v51_v37  ;;  %v49_v38 = vmul.f32 %v1569_v35, %v1569_v35  ;;  %v50_v39 = vmul.f32 %v1572_v36, %v1572_v36  ;;  %1024 = vmatpush1.bf16.msra.mxu0 %v1381_v33  ;;  %v1388_v33 = vld [vmem:[%s1961_s5 + $0xf4] ss:$8 sps:$4 sm:$0xff]  }
  0x9d   :  { %1025 = vmatprep.subr.bf16.mxu0 %v1382_v34  ;;  %v1390_v34 = vld [vmem:[%s1961_s5 + $0xf0] ss:$8 sps:$4 sm:$0xff]  }
  0x9e   :  { %v54_v40 = vadd.f32 %v50_v39, %v49_v38  ;;  %v33_v38 = vld [vmem:[%s1963_s2] sm:$0x3] }
  0x9f   :  { %v86_v45 = vrot.slane %v33_v38, %v1698_v28  ;;  %v90_v46 = vrot.slane %v33_v38, %v1701_v31  ;;  %v1841_v38 = vld [vmem:[%s1964_s4] sm:$0xf] }
  0xa0   :  { %55 = vadd.xlane.f32.xlu1 %v54_v40  ;;  %v71_v40 = vrot.slane %v32_v32, %v1698_v28  ;;  %1026 = vmatpush1.bf16.msra.mxu0 %v1384_v43  ;;  %v1387_v32 = vld [vmem:[%s1961_s5 + $0xe0] ss:$8 sps:$4 sm:$0xff]  }
  0xa1   :  { %1027 = vmatprep.subr.bf16.mxu0 %v1385_v27  ;;  %v1438_v27 = vld [vmem:[%s1961_s5 + $0x1f4] ss:$8 sps:$4 sm:$0xff]  }
  0xa4   :  { %1028 = vmatpush1.bf16.msra.mxu0 %v1387_v32 }
  0xa5   :  { %1029 = vmatprep.subr.bf16.mxu0 %v1388_v33 }
  0xa8   :  { %1030 = vmatpush1.bf16.msra.mxu0 %v1390_v34 }
 0x129   :  { %v53_v14 = vpop.xlane.xlu1 %52 }
 0x12a   :  { %v57_v15 = vmul.f32 0.00390625, %v53_v14  ;;  %v1327_v14 = vld [vmem:[%s1960_s3 + $0x14c] ss:$16 sps:$4 sm:$0xff]  }
 0x12c   :  { %v59_v18 = vadd.f32 1e-05, %v57_v15  ;;  %v1325_v15 = vld [vmem:[%s1960_s3 + $0x148] ss:$16 sps:$4 sm:$0xff]  }
 0x12d   :  { %v56_v19 = vpop.xlane.xlu1 %55 }
 0x12e   :  { %1439 = vrsqrt.f32 %v59_v18  ;;  %v58_v21 = vmul.f32 0.00390625, %v56_v19  ;;  %v1333_v18 = vld [vmem:[%s1960_s3 + $0x18c] ss:$16 sps:$4 sm:$0xff]   ;;  %v1331_v19 = vld [vmem:[%s1960_s3 + $0x188] ss:$16 sps:$4 sm:$0xff]  }
 0x130   :  { %v60_v24 = vadd.f32 1e-05, %v58_v21  ;;  %v1334_v21 = vld [vmem:[%s1960_s3 + $0x1a8] ss:$16 sps:$4 sm:$0xff]  }
 0x132   :  { %1441 = vrsqrt.f32 %v60_v24  ;;  %v1342_v24 = vld [vmem:[%s1960_s3 + $0x1ec] ss:$16 sps:$4 sm:$0xff]  }
 0x138   :  { %v1440_v37 = vpop.eup %1439 }
 0x139   :  { %v64_v39 = vmul.f32 %v1440_v37, %v1562_v30  ;;  %v63_v42 = vmul.f32 %v1440_v37, %v1559_v29  ;;  %v1393_v37 = vld [vmem:[%s1961_s5 + $0x104] ss:$8 sps:$4 sm:$0xff]  }
 0x13a   :  { %1042 = vmatprep.subr.bf16.mxu0 %v1393_v37 }
 0x13b   :  { %v79_v30 = vmul.f32 %v75_v41, %v64_v39  ;;  %v78_v49 = vmul.f32 %v71_v40, %v63_v42  ;;  %v168_v39 = vrot.slane %v1841_v38, %v1698_v28 }
 0x13c   :  { %v1442_v44 = vpop.eup %1441 }
 0x13d   :  { %v66_v47 = vmul.f32 %v1442_v44, %v1572_v36  ;;  %v65_v48 = vmul.f32 %v1442_v44, %v1569_v35  ;;  %v94_v51 = vadd.f32 %v90_v46, %v79_v30  ;;  %v93_v53 = vadd.f32 %v86_v45, %v78_v49  ;;  %v1300_v36 = vld [vmem:[%s1960_s3 + $0x2c] ss:$16 sps:$4 sm:$0xff]   ;;  %v1298_v35 = vld [vmem:[%s1960_s3 + $0x28] ss:$16 sps:$4 sm:$0xff]  }
 0x13f   :  { %v81_v50 = vmul.f32 %v75_v41, %v66_v47  ;;  %v80_v29 = vmul.f32 %v71_v40, %v65_v48  ;;  %v172_v40 = vrot.slane %v1841_v38, %v1701_v31 }
 0x141   :  { %v96_v52 = vadd.f32 %v90_v46, %v81_v50  ;;  %v95_v54 = vadd.f32 %v86_v45, %v80_v29 }
 0x143   :  { %v98_v55 = vpack.c.bf16 %v96_v52, %v94_v51  ;;  %v1729_v57 = vpack.c.bf16 %v95_v54, %v93_v53  ;;  %v1391_v53 = vld [vmem:[%s1961_s5 + $0x100] ss:$8 sps:$4 sm:$0xff]   ;;  %v1396_v54 = vld [vmem:[%s1961_s5 + $0x114] ss:$8 sps:$4 sm:$0xff]  }
 0x145   :  { %537 = vmatprep.mubr.bf16.mxu1 %v98_v55 }
 0x146   :  { %538 = vmatmul.mubr.bf16.vlgmr.msra.gmra.mrb[0].mxu1 %v1729_v57 }
 0x147   :  { %549 = vmatpush1.bf16.msra.mxu1 %v1295_v56  ;;  %580 = vmatprep.mubr.bf16.mxu1 %v98_v55  ;;  %v1394_v55 = vld [vmem:[%s1961_s5 + $0x110] ss:$8 sps:$4 sm:$0xff]   ;;  %v1399_v56 = vld [vmem:[%s1961_s5 + $0x124] ss:$8 sps:$4 sm:$0xff]  }
 0x148   :  { %550 = vmatprep.subr.bf16.mxu1 %v1300_v36  ;;  %v1402_v36 = vld [vmem:[%s1961_s5 + $0x134] ss:$8 sps:$4 sm:$0xff]  }
 0x14b   :  { %551 = vmatpush1.bf16.msra.mxu1 %v1298_v35  ;;  %v1400_v35 = vld [vmem:[%s1961_s5 + $0x130] ss:$8 sps:$4 sm:$0xff]  }
 0x14c   :  { %552 = vmatprep.subr.bf16.mxu1 %v1303_v58  ;;  %v1405_v58 = vld [vmem:[%s1961_s5 + $0x144] ss:$8 sps:$4 sm:$0xff]  }
 0x14f   :  { %553 = vmatpush1.bf16.msra.mxu1 %v1301_v59  ;;  %v1403_v59 = vld [vmem:[%s1961_s5 + $0x140] ss:$8 sps:$4 sm:$0xff]  }
 0x150   :  { %554 = vmatprep.subr.bf16.mxu1 %v1306_v60  ;;  %v1408_v60 = vld [vmem:[%s1961_s5 + $0x154] ss:$8 sps:$4 sm:$0xff]  }
 0x153   :  { %555 = vmatpush1.bf16.msra.mxu1 %v1304_v61  ;;  %v1406_v61 = vld [vmem:[%s1961_s5 + $0x150] ss:$8 sps:$4 sm:$0xff]  }
 0x154   :  { %556 = vmatprep.subr.bf16.mxu1 %v1309_v62  ;;  %v1411_v62 = vld [vmem:[%s1961_s5 + $0x164] ss:$8 sps:$4 sm:$0xff]  }
 0x157   :  { %557 = vmatpush1.bf16.msra.mxu1 %v1307_v63  ;;  %v1409_v63 = vld [vmem:[%s1961_s5 + $0x160] ss:$8 sps:$4 sm:$0xff]  }
 0x158   :  { %558 = vmatprep.subr.bf16.mxu1 %v1312_v0  ;;  %v1414_v0 = vld [vmem:[%s1961_s5 + $0x174] ss:$8 sps:$4 sm:$0xff]  }
 0x15b   :  { %559 = vmatpush1.bf16.msra.mxu1 %v1310_v1  ;;  %v1412_v1 = vld [vmem:[%s1961_s5 + $0x170] ss:$8 sps:$4 sm:$0xff]  }
 0x15c   :  { %560 = vmatprep.subr.bf16.mxu1 %v1315_v6  ;;  %v1417_v6 = vld [vmem:[%s1961_s5 + $0x184] ss:$8 sps:$4 sm:$0xff]  }
 0x15f   :  { %561 = vmatpush1.bf16.msra.mxu1 %v1313_v7  ;;  %v1415_v7 = vld [vmem:[%s1961_s5 + $0x180] ss:$8 sps:$4 sm:$0xff]  }
 0x160   :  { %562 = vmatprep.subr.bf16.mxu1 %v1318_v8  ;;  %v1420_v8 = vld [vmem:[%s1961_s5 + $0x194] ss:$8 sps:$4 sm:$0xff]  }
 0x163   :  { %563 = vmatpush1.bf16.msra.mxu1 %v1316_v9  ;;  %v1418_v9 = vld [vmem:[%s1961_s5 + $0x190] ss:$8 sps:$4 sm:$0xff]  }
 0x164   :  { %564 = vmatprep.subr.bf16.mxu1 %v1321_v10  ;;  %v1423_v10 = vld [vmem:[%s1961_s5 + $0x1a4] ss:$8 sps:$4 sm:$0xff]  }
 0x167   :  { %565 = vmatpush1.bf16.msra.mxu1 %v1319_v11  ;;  %v1421_v11 = vld [vmem:[%s1961_s5 + $0x1a0] ss:$8 sps:$4 sm:$0xff]  }
 0x168   :  { %566 = vmatprep.subr.bf16.mxu1 %v1324_v12  ;;  %v1426_v12 = vld [vmem:[%s1961_s5 + $0x1b4] ss:$8 sps:$4 sm:$0xff]  }
 0x16b   :  { %567 = vmatpush1.bf16.msra.mxu1 %v1322_v13  ;;  %v1424_v13 = vld [vmem:[%s1961_s5 + $0x1b0] ss:$8 sps:$4 sm:$0xff]  }
 0x16c   :  { %568 = vmatprep.subr.bf16.mxu1 %v1327_v14  ;;  %v1429_v14 = vld [vmem:[%s1961_s5 + $0x1c4] ss:$8 sps:$4 sm:$0xff]  }
 0x16f   :  { %569 = vmatpush1.bf16.msra.mxu1 %v1325_v15  ;;  %v1427_v15 = vld [vmem:[%s1961_s5 + $0x1c0] ss:$8 sps:$4 sm:$0xff]  }
 0x170   :  { %570 = vmatprep.subr.bf16.mxu1 %v1330_v16  ;;  %v1432_v16 = vld [vmem:[%s1961_s5 + $0x1d4] ss:$8 sps:$4 sm:$0xff]  }
 0x173   :  { %571 = vmatpush1.bf16.msra.mxu1 %v1328_v17  ;;  %v175_v17 = vsub.s32 2, %v1689_v25 }
 0x174   :  { %572 = vmatprep.subr.bf16.mxu1 %v1333_v18  ;;  %v179_v18 = vsub.s32 3, %v1689_v25  ;;  %v1433_v25 = vld [vmem:[%s1961_s5 + $0x1e0] ss:$8 sps:$4 sm:$0xff]  }
 0x177   :  { %573 = vmatpush1.bf16.msra.mxu1 %v1331_v19  ;;  %v1430_v19 = vld [vmem:[%s1961_s5 + $0x1d0] ss:$8 sps:$4 sm:$0xff]  }
 0x178   :  { %574 = vmatprep.subr.bf16.mxu1 %v1336_v20  ;;  %v176_v20 = vrot.slane %v1841_v38, %v175_v17 }
 0x17b   :  { %575 = vmatpush1.bf16.msra.mxu1 %v1334_v21  ;;  %v1435_v21 = vld [vmem:[%s1961_s5 + $0x1e4] ss:$8 sps:$4 sm:$0xff]  }
 0x17c   :  { %576 = vmatprep.subr.bf16.mxu1 %v1339_v22  ;;  %v180_v22 = vrot.slane %v1841_v38, %v179_v18  ;;  %v1436_v38 = vld [vmem:[%s1961_s5 + $0x1f0] ss:$8 sps:$4 sm:$0xff]  }
 0x17f   :  { %577 = vmatpush1.bf16.msra.mxu1 %v1337_v23 }
 0x180   :  { %578 = vmatprep.subr.bf16.mxu1 %v1342_v24 }
 0x183   :  { %579 = vmatpush1.bf16.msra.mxu1 %v1340_v26 }
 0x186   :  { %581 = vmatmul.mubr.bf16.vlgmr.msra.gmra.mrb[4].mxu1 %v1729_v57  ;;  %v1397_v57 = vld [vmem:[%s1961_s5 + $0x120] ss:$8 sps:$4 sm:$0xff]  }
 0x219   :  { %v539_v41 = vpop.f32.mrb[0].mxu1 }
 0x21a   :  { %v540_v42 = vadd.f32 %v539_v41, %v168_v39  ;;  %v541_v43 = vpop.f32.mrb[1].mxu1 }
 0x21b   :  { %v542_v44 = vadd.f32 %v541_v43, %v172_v40  ;;  %v543_v45 = vpop.f32.mrb[2].mxu1 }
 0x21c   :  { %v544_v46 = vadd.f32 %v543_v45, %v168_v39  ;;  %v545_v47 = vpop.f32.mrb[3].mxu1  ;;  %v591_v48 = vmax.f32 %v540_v42, 0.0 }
 0x21d   :  { %v546_v30 = vadd.f32 %v545_v47, %v172_v40  ;;  %v592_v50 = vmax.f32 %v542_v44, 0.0 }
 0x21e   :  { %v595_v49 = vmax.f32 %v544_v46, 0.0  ;;  %v667_v46 = vld [vmem:[%s1965_s6] sm:$0x3] }
 0x21f   :  { %v596_v29 = vmax.f32 %v546_v30, 0.0  ;;  %v672_v47 = vrot.slane %v667_v46, %v1698_v28  ;;  %v676_v30 = vrot.slane %v667_v46, %v1701_v31 }
 0x220   :  { %v599_v51 = vpack.c.bf16 %v595_v49, %v591_v48 }
 0x221   :  { %v600_v52 = vpack.c.bf16 %v596_v29, %v592_v50 }
 0x223   :  { %1031 = vmatprep.mubr.bf16.mxu0 %v600_v52 }
 0x224   :  { %1032 = vmatmul.mubr.bf16.vlgmr.msra.gmra.mrb[0].mxu0 %v599_v51 }
 0x225   :  { %1043 = vmatpush1.bf16.msra.mxu0 %v1391_v53 }
 0x226   :  { %1044 = vmatprep.subr.bf16.mxu0 %v1396_v54 }
 0x229   :  { %1045 = vmatpush1.bf16.msra.mxu0 %v1394_v55 }
 0x22a   :  { %1046 = vmatprep.subr.bf16.mxu0 %v1399_v56 }
 0x22d   :  { %1047 = vmatpush1.bf16.msra.mxu0 %v1397_v57 }
 0x22e   :  { %1048 = vmatprep.subr.bf16.mxu0 %v1402_v36 }
 0x231   :  { %1049 = vmatpush1.bf16.msra.mxu0 %v1400_v35 }
 0x232   :  { %1050 = vmatprep.subr.bf16.mxu0 %v1405_v58 }
 0x235   :  { %1051 = vmatpush1.bf16.msra.mxu0 %v1403_v59 }
 0x236   :  { %1052 = vmatprep.subr.bf16.mxu0 %v1408_v60 }
 0x239   :  { %1053 = vmatpush1.bf16.msra.mxu0 %v1406_v61 }
 0x23a   :  { %1054 = vmatprep.subr.bf16.mxu0 %v1411_v62 }
 0x23d   :  { %1055 = vmatpush1.bf16.msra.mxu0 %v1409_v63 }
 0x23e   :  { %1056 = vmatprep.subr.bf16.mxu0 %v1414_v0 }
 0x241   :  { %1057 = vmatpush1.bf16.msra.mxu0 %v1412_v1 }
 0x242   :  { %1058 = vmatprep.subr.bf16.mxu0 %v1417_v6 }
 0x245   :  { %1059 = vmatpush1.bf16.msra.mxu0 %v1415_v7 }
 0x246   :  { %1060 = vmatprep.subr.bf16.mxu0 %v1420_v8 }
 0x249   :  { %1061 = vmatpush1.bf16.msra.mxu0 %v1418_v9 }
 0x24a   :  { %1062 = vmatprep.subr.bf16.mxu0 %v1423_v10 }
 0x24d   :  { %1063 = vmatpush1.bf16.msra.mxu0 %v1421_v11 }
 0x24e   :  { %1064 = vmatprep.subr.bf16.mxu0 %v1426_v12 }
 0x251   :  { %1065 = vmatpush1.bf16.msra.mxu0 %v1424_v13 }
 0x252   :  { %1066 = vmatprep.subr.bf16.mxu0 %v1429_v14 }
 0x255   :  { %1067 = vmatpush1.bf16.msra.mxu0 %v1427_v15 }
 0x256   :  { %1068 = vmatprep.subr.bf16.mxu0 %v1432_v16 }
 0x259   :  { %v582_v23 = vpop.f32.mrb[4].mxu1  ;;  %1069 = vmatpush1.bf16.msra.mxu0 %v1430_v19 }
 0x25a   :  { %v583_v24 = vadd.f32 %v582_v23, %v176_v20  ;;  %v584_v26 = vpop.f32.mrb[5].mxu1  ;;  %1070 = vmatprep.subr.bf16.mxu0 %v1435_v21 }
 0x25b   :  { %v585_v32 = vadd.f32 %v584_v26, %v180_v22  ;;  %v586_v33 = vpop.f32.mrb[6].mxu1 }
 0x25c   :  { %v587_v34 = vadd.f32 %v586_v33, %v176_v20  ;;  %v588_v37 = vpop.f32.mrb[7].mxu1  ;;  %v593_v40 = vmax.f32 %v583_v24, 0.0 }
 0x25d   :  { %v589_v39 = vadd.f32 %v588_v37, %v180_v22  ;;  %1071 = vmatpush1.bf16.msra.mxu0 %v1433_v25  ;;  %v594_v42 = vmax.f32 %v585_v32, 0.0 }
 0x25e   :  { %v597_v41 = vmax.f32 %v587_v34, 0.0  ;;  %1072 = vmatprep.subr.bf16.mxu0 %v1438_v27 }
 0x25f   :  { %v598_v43 = vmax.f32 %v589_v39, 0.0 }
 0x260   :  { %v601_v44 = vpack.c.bf16 %v597_v41, %v593_v40 }
 0x261   :  { %v602_v45 = vpack.c.bf16 %v598_v43, %v594_v42  ;;  %1073 = vmatpush1.bf16.msra.mxu0 %v1436_v38 }
 0x263   :  { %1074 = vmatprep.mubr.bf16.mxu0 %v602_v45 }
 0x264   :  { %1075 = vmatmul.mubr.bf16.vlgmr.msra.gmra.mrb[0].mxu0 %v601_v44 }
 0x337   :  { %v1076_v48 = vpop.f32.mrb[0].mxu0 }
 0x338   :  { %v1239_v49 = vadd.f32 %v1076_v48, %v672_v47  ;;  %v1078_v50 = vpop.f32.mrb[1].mxu0 }
 0x339   :  { %v1240_v29 = vadd.f32 %v1078_v50, %v676_v30  ;;  %v1080_v51 = vpop.f32.mrb[2].mxu0 }
 0x33a   :  { %v1085_v52 = vadd.f32 %v1239_v49, %v1489_v2  ;;  %v1241_v53 = vadd.f32 %v1080_v51, %v672_v47  ;;  %v1082_v54 = vpop.f32.mrb[3].mxu0 }
 0x33b   :  { %v1086_v55 = vadd.f32 %v1240_v29, %v1491_v3  ;;  %v1242_v56 = vadd.f32 %v1082_v54, %v676_v30 }
 0x33c   :  { %v1087_v57 = vadd.f32 %v1241_v53, %v1493_v4 }
 0x33d   :  { %v1237_v36 = vpack.c.bf16 %v1086_v55, %v1085_v52  ;;  %v1088_v35 = vadd.f32 %v1242_v56, %v1495_v5 }
 0x33f   :  { %1101 = vst [vmem:[%s1966_s7] sm:$0xff] %v1237_v36  ;;  %v1238_v28 = vpack.c.bf16 %v1088_v35, %v1087_v57 }
 0x341   :  { %1102 = vst [vmem:[%s1966_s7 + $0x8] sm:$0xff] %v1238_v28 }

// kernel: _lambda_.69
= control target key start
LH: loop header
LB: loop body
LE: loop exit
PB: predicated region body
PF: predicated region fallthrough
CT: control target
= control target key end

     0   :  { %s69_s0 = inlined_call_operand.vmem [shape: bf16[16,128], index: 0, kind: input, shape index: {}]   ;;  %s70_s1 = inlined_call_operand.vmem [shape: f32[16,128], index: 1, kind: output, shape index: {}]  }
   0x1   :  { %v39_v0 = vld [vmem:[%s69_s0] sm:$0xff]  }
   0x2   :  { %v40_v1 = vunpack.c.l.bf16 %v39_v0  ;;  %v41_v2 = vunpack.c.h.bf16 %v39_v0 }
   0x4   :  { %12 = vmax.xlane.f32.xlu0 %v40_v1 }
   0x8   :  { %14 = vmax.xlane.f32.xlu0 %v41_v2 }
  0x91   :  { %v13_v3 = vpop.xlane.xlu0 %12 }
  0x92   :  { %v16_v4 = vsub.f32 %v40_v1, %v13_v3 }
  0x94   :  { %v18_v5 = vmul.f32 1.442695, %v16_v4 }
  0x95   :  { %v15_v6 = vpop.xlane.xlu0 %14 }
  0x96   :  { %v17_v7 = vsub.f32 %v41_v2, %v15_v6  ;;  %42 = vpow2.f32 %v18_v5 }
  0x98   :  { %v20_v8 = vmul.f32 1.442695, %v17_v7 }
  0x9a   :  { %44 = vpow2.f32 %v20_v8 }
  0xa0   :  { %v43_v9 = vpop.eup %42 }
  0xa1   :  { %22 = vadd.xlane.f32.xlu1 %v43_v9 }
  0xa4   :  { %v45_v10 = vpop.eup %44 }
  0xa5   :  { %24 = vadd.xlane.f32.xlu1 %v45_v10 }
 0x12e   :  { %v23_v11 = vpop.xlane.xlu1 %22 }
 0x12f   :  { %46 = vlog2.f32 %v23_v11 }
 0x132   :  { %v25_v12 = vpop.xlane.xlu1 %24 }
 0x133   :  { %48 = vlog2.f32 %v25_v12 }
 0x139   :  { %v47_v13 = vpop.eup %46 }
 0x13a   :  { %v27_v14 = vmul.f32 0.6931472, %v47_v13 }
 0x13c   :  { %v30_v15 = vsub.f32 %v16_v4, %v27_v14 }
 0x13d   :  { %v49_v16 = vpop.eup %48 }
 0x13e   :  { %32 = vst [vmem:[%s70_s1] sm:$0xff] %v30_v15  ;;  %v29_v17 = vmul.f32 0.6931472, %v49_v16 }
 0x140   :  { %v31_v18 = vsub.f32 %v17_v7, %v29_v17 }
 0x142   :  { %33 = vst [vmem:[%s70_s1 + $0x8] sm:$0xff] %v31_v18 }

</bundles_post_ra>
